<compile_context>
chip_gen: v6e
topology: v6e:2x2x1
jax: 0.10.0
libtpu: 0.0.40
codegen_flags: <defaults>
</compile_context>

<pallas_src>
import functools

import jax
import jax.numpy as jnp
from jax import lax
from jax.experimental import pallas as pl
from jax.experimental.pallas import tpu as pltpu

_SLOPE = 0.01        # LeakyReLU negative_slope in the module
_BN_EPS = 1e-5       # nn.BatchNorm2d default eps
_TAPS = tuple((ki, kj) for ki in range(3) for kj in range(3))   # t = ki*3 + kj


# --------------------------------------------------------------------------
# Kernel
# --------------------------------------------------------------------------
def _leaky_relu(x, slope):
    return jnp.where(x >= 0, x, slope * x)


def _zero_halo(buf):
    """Zero only the 1-pixel halo border of a (H+2, W+2, C) scratch buffer."""
    hp, wp, c = buf.shape
    z_row = jnp.zeros((1, wp, c), buf.dtype)
    z_col = jnp.zeros((hp, 1, c), buf.dtype)
    buf[0:1, :, :] = z_row
    buf[hp - 1:hp, :, :] = z_row
    buf[:, 0:1, :] = z_col
    buf[:, wp - 1:wp, :] = z_col


def _ffu_kernel(col1_ref, res_ref, w1, b1, w2, b2, w3, b3, w4, b4, w6, b6,
                out_ref, buf_a, buf_b, col_ref, *, slope):
    # col1_ref: (1, H*W, 9*Cin) bf16   conv1 im2col patches (built in wrapper)
    # res_ref : (1, Cin, H*W)  f32     residual, channel-major, lane-dense
    # w1      : (9*Cin , Cmid) bf16    BN-folded, im2col-ordered weights
    # w2..w4  : (9*Cmid, Cmid) bf16
    # w6      : (Cin, 9*Cmid)  bf16    conv6 weights, output-channel major
    # b1..b4  : (1, Cmid) f32 ; b6: (Cin, 1) f32
    # out_ref : (1, Cin, H*W)  f32     lane-dense output store
    # buf_a/b : (H+2, W+2, Cmid) f32   padded ping-pong activations (VMEM)
    # col_ref : (H*W, 9*Cmid) bf16     im2col staging slab (VMEM)
    hp, wp, cmid = buf_a.shape
    H, W = hp - 2, wp - 2
    hw = H * W

    # Interior is fully rewritten before every read; only the halo border
    # needs zeroing (and is re-zeroed every step, so this is megacore-safe).
    _zero_halo(buf_a)
    _zero_halo(buf_b)

    # ---- conv1 (+folded BN) + LeakyReLU: one (HW, 9*Cin) @ (9*Cin, Cmid) ----
    acc = jnp.dot(col1_ref[0, :, :], w1[...],
                  preferred_element_type=jnp.float32)
    act = _leaky_relu(acc + b1[...], slope)
    buf_a[1:H + 1, 1:W + 1, :] = act.reshape(H, W, cmid)

    def pack_taps(src):
        # Pack the 9 shifted taps of the padded activation into one bf16
        # (HW, 9*Cmid) im2col slab (9x deeper MXU contraction).
        for t, (ki, kj) in enumerate(_TAPS):
            col_ref[:, t * cmid:(t + 1) * cmid] = (
                src[ki:ki + H, kj:kj + W, :]
                .reshape(hw, cmid).astype(col_ref.dtype))

    def conv_mid(src, dst, w, b):
        pack_taps(src)
        acc = jnp.dot(col_ref[...], w[...],
                      preferred_element_type=jnp.float32)
        dst[1:H + 1, 1:W + 1, :] = (
            _leaky_relu(acc + b[...], slope).reshape(H, W, cmid))

    # ---- conv2..conv4 ------------------------------------------------------
    conv_mid(buf_a, buf_b, w2, b2)
    conv_mid(buf_b, buf_a, w3, b3)
    conv_mid(buf_a, buf_b, w4, b4)

    # ---- conv6 + residual + LeakyReLU --------------------------------------
    # Computed channels-on-sublanes / pixels-on-lanes ((Cin, 9C) @ (HW, 9C)^T)
    # so the residual add and the output store are lane-dense.
    pack_taps(buf_b)
    acc6 = lax.dot_general(
        w6[...], col_ref[...],
        dimension_numbers=(((1,), (1,)), ((), ())),
        preferred_element_type=jnp.float32)                 # (Cin, H*W)
    y = _leaky_relu(acc6 + b6[...] + res_ref[0, :, :], slope)
    out_ref[0, :, :] = y.astype(out_ref.dtype)


# --------------------------------------------------------------------------
# Wrapper
# --------------------------------------------------------------------------
def _fold_bn(w, b, gamma, beta, mean, var, eps=_BN_EPS):
    """Fold eval-mode BatchNorm2d into the preceding conv (OIHW weight)."""
    scale = gamma / jnp.sqrt(var + eps)
    return w * scale[:, None, None, None], (b - mean) * scale + beta


def _prep_w_lhs(w):
    # OIHW (Cout, Cin, 3, 3) -> (9*Cin, Cout); row index = (ki*3 + kj)*Cin + ci
    cout, cin = w.shape[0], w.shape[1]
    return (jnp.transpose(w, (2, 3, 1, 0))
            .reshape(9 * cin, cout).astype(jnp.bfloat16))


def _prep_w_rhs(w):
    # OIHW (Cout, Cin, 3, 3) -> (Cout, 9*Cin); col index = (ki*3 + kj)*Cin + ci
    cout, cin = w.shape[0], w.shape[1]
    return (jnp.transpose(w, (0, 2, 3, 1))
            .reshape(cout, 9 * cin).astype(jnp.bfloat16))


def _im2col_input(x):
    # (B, C, H, W) -> (B, H*W, 9*C); column = (ki*3 + kj)*C + c (zero padded).
    B, C, H, W = x.shape
    xp = jnp.pad(x, ((0, 0), (0, 0), (1, 1), (1, 1)))
    slabs = [xp[:, :, ki:ki + H, kj:kj + W] for ki, kj in _TAPS]   # (B,C,H,W)
    col = jnp.stack(slabs, axis=1)                                 # (B,9,C,H,W)
    col = jnp.transpose(col, (0, 3, 4, 1, 2))                      # (B,H,W,9,C)
    return col.reshape(B, H * W, 9 * C)


def _vmem_limit_bytes():
    """Per-generation scoped-VMEM budget (leave headroom, don't hardcode)."""
    cap = 64 * 1024 * 1024                                # conservative default
    try:
        cap = int(getattr(pltpu.get_tpu_info(), "vmem_capacity_bytes", cap))
    except Exception:
        pass
    return min((cap * 3) // 4, 96 * 1024 * 1024)


def feature_forward_unit(x, p, *, slope=_SLOPE):
    """Pallas forward of FeatureForwardUnit (BN in inference/running-stats form)."""
    orig_shape = x.shape
    if x.ndim == 5:                       # (N, C, H, W, 2) -> (N, -1, H, W)
        x = x.reshape(x.shape[0], -1, x.shape[2], x.shape[3])

    x = x.astype(jnp.float32)
    B, Cin, H, W = x.shape
    Cmid = p["w1"].shape[0]
    if W % 8 != 0:
        raise ValueError("W must be a multiple of 8 for layout-clean "
                         "(H, W, C) <-> (H*W, C) reshapes inside the kernel.")

    w1, b1 = _fold_bn(p["w1"], p["b1"], p["g1"], p["be1"], p["m1"], p["v1"])
    w2, b2 = _fold_bn(p["w2"], p["b2"], p["g2"], p["be2"], p["m2"], p["v2"])
    w3, b3 = _fold_bn(p["w3"], p["b3"], p["g3"], p["be3"], p["m3"], p["v3"])
    w4, b4 = _fold_bn(p["w4"], p["b4"], p["g4"], p["be4"], p["m4"], p["v4"])
    w6, b6 = p["w6"], p["b6"]

    ws = [_prep_w_lhs(w1), _prep_w_lhs(w2), _prep_w_lhs(w3), _prep_w_lhs(w4),
          _prep_w_rhs(w6)]
    bs = [b1.reshape(1, Cmid).astype(jnp.float32),
          b2.reshape(1, Cmid).astype(jnp.float32),
          b3.reshape(1, Cmid).astype(jnp.float32),
          b4.reshape(1, Cmid).astype(jnp.float32),
          b6.reshape(Cin, 1).astype(jnp.float32)]

    col1 = _im2col_input(x).astype(jnp.bfloat16)      # (B, H*W, 9*Cin)
    res = x.reshape(B, Cin, H * W)                    # (B, Cin, H*W), f32

    in_specs = [
        pl.BlockSpec((1, H * W, 9 * Cin), lambda b: (b, 0, 0)),
        pl.BlockSpec((1, Cin, H * W), lambda b: (b, 0, 0)),
    ]
    operands = [col1, res]
    for w, bias in zip(ws, bs):
        in_specs.append(pl.BlockSpec(w.shape, lambda b: (0, 0)))
        operands.append(w)
        in_specs.append(pl.BlockSpec(bias.shape, lambda b: (0, 0)))
        operands.append(bias)

    out_flat = pl.pallas_call(
        functools.partial(_ffu_kernel, slope=slope),
        out_shape=jax.ShapeDtypeStruct((B, Cin, H * W), jnp.float32),
        grid=(B,),
        in_specs=in_specs,
        out_specs=pl.BlockSpec((1, Cin, H * W), lambda b: (b, 0, 0)),
        scratch_shapes=[
            pltpu.VMEM((H + 2, W + 2, Cmid), jnp.float32),   # ping activation
            pltpu.VMEM((H + 2, W + 2, Cmid), jnp.float32),   # pong activation
            pltpu.VMEM((H * W, 9 * Cmid), jnp.bfloat16),     # im2col slab
        ],
        compiler_params=pltpu.CompilerParams(
            dimension_semantics=("parallel",),
            vmem_limit_bytes=_vmem_limit_bytes(),
        ),
    )(*operands)

    out = out_flat.reshape(B, Cin, H, W)
    if len(orig_shape) == 5:
        out = out.reshape(orig_shape)
    return out


def feature_extractor(k, img, k_params, img_params):
    """FeatureExtractor.forward(k, img) -> (k_feature, img_feature)."""
    return (feature_forward_unit(k, k_params),
            feature_forward_unit(img, img_params))


# --------------------------------------------------------------------------
# Pure-JAX reference (mirrors the PyTorch forward, eval-mode BN, f32)
# --------------------------------------------------------------------------
def _conv2d_ref(x, w, b):
    y = lax.conv_general_dilated(
        x, w, window_strides=(1, 1), padding=((1, 1), (1, 1)),
        dimension_numbers=("NCHW", "OIHW", "NCHW"))
    return y + b[None, :, None, None]


def _bn_ref(x, gamma, beta, mean, var, eps=_BN_EPS):
    inv = (gamma / jnp.sqrt(var + eps))[None, :, None, None]
    return (x - mean[None, :, None, None]) * inv + beta[None, :, None, None]


def _ffu_reference(x, p, slope=_SLOPE):
    h = x
    for i in (1, 2, 3, 4):
        h = _conv2d_ref(h, p[f"w{i}"], p[f"b{i}"])
        h = _bn_ref(h, p[f"g{i}"], p[f"be{i}"], p[f"m{i}"], p[f"v{i}"])
        h = jnp.where(h >= 0, h, slope * h)
    h = _conv2d_ref(h, p["w6"], p["b6"]) + x
    return jnp.where(h >= 0, h, slope * h)


# --------------------------------------------------------------------------
# Test harness
# --------------------------------------------------------------------------
def _make_ffu_params(key, indim, middim):
    keys = iter(jax.random.split(key, 32))

    def nxt():
        return next(keys)

    def conv_w(cout, cin):
        return jax.random.normal(nxt(), (cout, cin, 3, 3), jnp.float32) * \
            jnp.sqrt(2.0 / (cin * 9))

    p = {}
    dims = {1: (middim, indim), 2: (middim, middim),
            3: (middim, middim), 4: (middim, middim)}
    for li, (co, ci) in dims.items():
        p[f"w{li}"] = conv_w(co, ci)
        p[f"b{li}"] = 0.05 * jax.random.normal(nxt(), (co,), jnp.float32)
        p[f"g{li}"] = 1.0 + 0.2 * jax.random.normal(nxt(), (co,), jnp.float32)
        p[f"be{li}"] = 0.1 * jax.random.normal(nxt(), (co,), jnp.float32)
        p[f"m{li}"] = 0.1 * jax.random.normal(nxt(), (co,), jnp.float32)
        p[f"v{li}"] = 0.5 + jax.random.uniform(nxt(), (co,), jnp.float32)
    p["w6"] = conv_w(indim, middim)
    p["b6"] = 0.05 * jax.random.normal(nxt(), (indim,), jnp.float32)
    return p


if __name__ == "__main__":
    key = jax.random.PRNGKey(0)
    kx, kimg, kp1, kp2 = jax.random.split(key, 4)

    B, INDIM, MIDDIM, H, W = 2, 2, 32, 16, 16
    k_in = jax.random.normal(kx, (B, INDIM, H, W), jnp.float32)
    img_in = jax.random.normal(kimg, (B, INDIM, H, W), jnp.float32)

    k_params = _make_ffu_params(kp1, INDIM, MIDDIM)
    img_params = _make_ffu_params(kp2, INDIM, MIDDIM)

    k_feat, img_feat = feature_extractor(k_in, img_in, k_params, img_params)
    k_feat = jax.block_until_ready(k_feat)
    img_feat = jax.block_until_ready(img_feat)

    k_ref = _ffu_reference(k_in, k_params)
    img_ref = _ffu_reference(img_in, img_params)

    assert k_feat.shape == k_in.shape and img_feat.shape == img_in.shape
    # bf16 MXU path (weights + im2col patches) with f32 accumulation over 5
    # chained convs -> compare against the f32 reference with a bf16 tolerance.
    assert jnp.allclose(k_feat, k_ref, atol=5e-2, rtol=5e-2), \
        "kspace branch mismatch"
    assert jnp.allclose(img_feat, img_ref, atol=5e-2, rtol=5e-2), \
        "image branch mismatch"

    print("KERNEL_OK")
</pallas_src>

<mosaic_0001>
module attributes {stable_mosaic.version = 11 : i64} {
  func.func @_ffu_kernel(%arg0: i32, %arg1: memref<1x256x18xbf16, #tpu.memory_space<vmem>>, %arg2: memref<1x2x256xf32, #tpu.memory_space<vmem>>, %arg3: memref<18x32xbf16, #tpu.memory_space<vmem>>, %arg4: memref<1x32xf32, #tpu.memory_space<vmem>>, %arg5: memref<288x32xbf16, #tpu.memory_space<vmem>>, %arg6: memref<1x32xf32, #tpu.memory_space<vmem>>, %arg7: memref<288x32xbf16, #tpu.memory_space<vmem>>, %arg8: memref<1x32xf32, #tpu.memory_space<vmem>>, %arg9: memref<288x32xbf16, #tpu.memory_space<vmem>>, %arg10: memref<1x32xf32, #tpu.memory_space<vmem>>, %arg11: memref<2x288xbf16, #tpu.memory_space<vmem>>, %arg12: memref<2x1xf32, #tpu.memory_space<vmem>>, %arg13: memref<1x2x256xf32, #tpu.memory_space<vmem>>, %arg14: memref<18x18x32xf32, #tpu.memory_space<vmem>>, %arg15: memref<18x18x32xf32, #tpu.memory_space<vmem>>, %arg16: memref<256x288xbf16, #tpu.memory_space<vmem>>) attributes {dimension_semantics = [#tpu.dimension_semantics<parallel>], iteration_bounds = array<i64: 2>, scalar_prefetch = 0 : i64, scratch_operands = 3 : i64, tpu.core_type = #tpu.core_type<tc>, window_params = [{transform_indices = @transform_0, window_bounds = array<i64: 1, 256, 18>}, {transform_indices = @transform_1, window_bounds = array<i64: 1, 2, 256>}, {pipeline_mode = #tpu.pipeline_mode<synchronous>, transform_indices = @transform_2, window_bounds = array<i64: 18, 32>}, {pipeline_mode = #tpu.pipeline_mode<synchronous>, transform_indices = @transform_3, window_bounds = array<i64: 1, 32>}, {pipeline_mode = #tpu.pipeline_mode<synchronous>, transform_indices = @transform_4, window_bounds = array<i64: 288, 32>}, {pipeline_mode = #tpu.pipeline_mode<synchronous>, transform_indices = @transform_5, window_bounds = array<i64: 1, 32>}, {pipeline_mode = #tpu.pipeline_mode<synchronous>, transform_indices = @transform_6, window_bounds = array<i64: 288, 32>}, {pipeline_mode = #tpu.pipeline_mode<synchronous>, transform_indices = @transform_7, window_bounds = array<i64: 1, 32>}, {pipeline_mode = #tpu.pipeline_mode<synchronous>, transform_indices = @transform_8, window_bounds = array<i64: 288, 32>}, {pipeline_mode = #tpu.pipeline_mode<synchronous>, transform_indices = @transform_9, window_bounds = array<i64: 1, 32>}, {pipeline_mode = #tpu.pipeline_mode<synchronous>, transform_indices = @transform_10, window_bounds = array<i64: 2, 288>}, {pipeline_mode = #tpu.pipeline_mode<synchronous>, transform_indices = @transform_11, window_bounds = array<i64: 2, 1>}, {transform_indices = @transform_12, window_bounds = array<i64: 1, 2, 256>}]} {
    %cst = arith.constant 0.000000e+00 : f32
    %0 = vector.broadcast %cst : f32 to vector<1x18x32xf32>
    %cst_0 = arith.constant 0.000000e+00 : f32
    %1 = vector.broadcast %cst_0 : f32 to vector<18x1x32xf32>
    %c0 = arith.constant 0 : index
    %c0_1 = arith.constant 0 : index
    %c0_2 = arith.constant 0 : index
    %2 = vector.load %arg14[%c0, %c0_1, %c0_2] : memref<18x18x32xf32, #tpu.memory_space<vmem>>, vector<1x18x32xf32>
    tpu.vector_store %arg14[%c0, %c0_1, %c0_2], %0 {strides = array<i32>} : memref<18x18x32xf32, #tpu.memory_space<vmem>>, vector<1x18x32xf32>,
    %c17 = arith.constant 17 : index
    %c0_3 = arith.constant 0 : index
    %c0_4 = arith.constant 0 : index
    %3 = vector.load %arg14[%c17, %c0_3, %c0_4] : memref<18x18x32xf32, #tpu.memory_space<vmem>>, vector<1x18x32xf32>
    tpu.vector_store %arg14[%c17, %c0_3, %c0_4], %0 {strides = array<i32>} : memref<18x18x32xf32, #tpu.memory_space<vmem>>, vector<1x18x32xf32>,
    %c0_5 = arith.constant 0 : index
    %c0_6 = arith.constant 0 : index
    %c0_7 = arith.constant 0 : index
    %4 = vector.load %arg14[%c0_5, %c0_6, %c0_7] : memref<18x18x32xf32, #tpu.memory_space<vmem>>, vector<18x1x32xf32>
    tpu.vector_store %arg14[%c0_5, %c0_6, %c0_7], %1 {strides = array<i32>} : memref<18x18x32xf32, #tpu.memory_space<vmem>>, vector<18x1x32xf32>,
    %c0_8 = arith.constant 0 : index
    %c17_9 = arith.constant 17 : index
    %c0_10 = arith.constant 0 : index
    %5 = vector.load %arg14[%c0_8, %c17_9, %c0_10] : memref<18x18x32xf32, #tpu.memory_space<vmem>>, vector<18x1x32xf32>
    tpu.vector_store %arg14[%c0_8, %c17_9, %c0_10], %1 {strides = array<i32>} : memref<18x18x32xf32, #tpu.memory_space<vmem>>, vector<18x1x32xf32>,
    %cst_11 = arith.constant 0.000000e+00 : f32
    %6 = vector.broadcast %cst_11 : f32 to vector<1x18x32xf32>
    %cst_12 = arith.constant 0.000000e+00 : f32
    %7 = vector.broadcast %cst_12 : f32 to vector<18x1x32xf32>
    %c0_13 = arith.constant 0 : index
    %c0_14 = arith.constant 0 : index
    %c0_15 = arith.constant 0 : index
    %8 = vector.load %arg15[%c0_13, %c0_14, %c0_15] : memref<18x18x32xf32, #tpu.memory_space<vmem>>, vector<1x18x32xf32>
    tpu.vector_store %arg15[%c0_13, %c0_14, %c0_15], %6 {strides = array<i32>} : memref<18x18x32xf32, #tpu.memory_space<vmem>>, vector<1x18x32xf32>,
    %c17_16 = arith.constant 17 : index
    %c0_17 = arith.constant 0 : index
    %c0_18 = arith.constant 0 : index
    %9 = vector.load %arg15[%c17_16, %c0_17, %c0_18] : memref<18x18x32xf32, #tpu.memory_space<vmem>>, vector<1x18x32xf32>
    tpu.vector_store %arg15[%c17_16, %c0_17, %c0_18], %6 {strides = array<i32>} : memref<18x18x32xf32, #tpu.memory_space<vmem>>, vector<1x18x32xf32>,
    %c0_19 = arith.constant 0 : index
    %c0_20 = arith.constant 0 : index
    %c0_21 = arith.constant 0 : index
    %10 = vector.load %arg15[%c0_19, %c0_20, %c0_21] : memref<18x18x32xf32, #tpu.memory_space<vmem>>, vector<18x1x32xf32>
    tpu.vector_store %arg15[%c0_19, %c0_20, %c0_21], %7 {strides = array<i32>} : memref<18x18x32xf32, #tpu.memory_space<vmem>>, vector<18x1x32xf32>,
    %c0_22 = arith.constant 0 : index
    %c17_23 = arith.constant 17 : index
    %c0_24 = arith.constant 0 : index
    %11 = vector.load %arg15[%c0_22, %c17_23, %c0_24] : memref<18x18x32xf32, #tpu.memory_space<vmem>>, vector<18x1x32xf32>
    tpu.vector_store %arg15[%c0_22, %c17_23, %c0_24], %7 {strides = array<i32>} : memref<18x18x32xf32, #tpu.memory_space<vmem>>, vector<18x1x32xf32>,
    %c0_25 = arith.constant 0 : index
    %c0_26 = arith.constant 0 : index
    %c0_27 = arith.constant 0 : index
    %12 = vector.load %arg1[%c0_25, %c0_26, %c0_27] : memref<1x256x18xbf16, #tpu.memory_space<vmem>>, vector<1x256x18xbf16>
    %13 = vector.shape_cast %12 : vector<1x256x18xbf16> to vector<256x18xbf16>
    %c0_28 = arith.constant 0 : index
    %c0_29 = arith.constant 0 : index
    %14 = vector.load %arg3[%c0_28, %c0_29] : memref<18x32xbf16, #tpu.memory_space<vmem>>, vector<18x32xbf16>
    %cst_30 = arith.constant dense<0.000000e+00> : vector<256x32xf32>
    %15 = tpu.matmul %13, %14, %cst_30 {dimension_numbers = #tpu.dot_dimension_numbers<[1], [0], [0], [1], [0, 0, 1, 1], [], []>} : vector<256x18xbf16>, vector<18x32xbf16>, vector<256x32xf32> -> vector<256x32xf32>
    %c0_31 = arith.constant 0 : index
    %c0_32 = arith.constant 0 : index
    %16 = vector.load %arg4[%c0_31, %c0_32] : memref<1x32xf32, #tpu.memory_space<vmem>>, vector<1x32xf32>
    %17 = vector.broadcast %16 : vector<1x32xf32> to vector<256x32xf32>
    %18 = arith.addf %15, %17 : vector<256x32xf32>
    %cst_33 = arith.constant 0.000000e+00 : f32
    %19 = vector.broadcast %cst_33 : f32 to vector<256x32xf32>
    %20 = arith.cmpf oge, %18, %19 : vector<256x32xf32>
    %cst_34 = arith.constant 0.00999999977 : f32
    %21 = vector.broadcast %cst_34 : f32 to vector<256x32xf32>
    %22 = arith.mulf %21, %18 : vector<256x32xf32>
    %23 = arith.select %20, %18, %22 : vector<256x32xi1>, vector<256x32xf32>
    %24 = vector.shape_cast %23 : vector<256x32xf32> to vector<16x16x32xf32>
    %c1 = arith.constant 1 : index
    %c1_35 = arith.constant 1 : index
    %c0_36 = arith.constant 0 : index
    %25 = vector.load %arg14[%c1, %c1_35, %c0_36] : memref<18x18x32xf32, #tpu.memory_space<vmem>>, vector<16x16x32xf32>
    tpu.vector_store %arg14[%c1, %c1_35, %c0_36], %24 {strides = array<i32>} : memref<18x18x32xf32, #tpu.memory_space<vmem>>, vector<16x16x32xf32>,
    %c0_37 = arith.constant 0 : index
    %c0_38 = arith.constant 0 : index
    %c0_39 = arith.constant 0 : index
    %26 = vector.load %arg14[%c0_37, %c0_38, %c0_39] : memref<18x18x32xf32, #tpu.memory_space<vmem>>, vector<16x16x32xf32>
    %27 = vector.shape_cast %26 : vector<16x16x32xf32> to vector<256x32xf32>
    %28 = arith.truncf %27 : vector<256x32xf32> to vector<256x32xbf16>
    %c0_40 = arith.constant 0 : index
    %c0_41 = arith.constant 0 : index
    %29 = vector.load %arg16[%c0_40, %c0_41] : memref<256x288xbf16, #tpu.memory_space<vmem>>, vector<256x32xbf16>
    tpu.vector_store %arg16[%c0_40, %c0_41], %28 {strides = array<i32>} : memref<256x288xbf16, #tpu.memory_space<vmem>>, vector<256x32xbf16>,
    %c0_42 = arith.constant 0 : index
    %c1_43 = arith.constant 1 : index
    %c0_44 = arith.constant 0 : index
    %30 = vector.load %arg14[%c0_42, %c1_43, %c0_44] : memref<18x18x32xf32, #tpu.memory_space<vmem>>, vector<16x16x32xf32>
    %31 = vector.shape_cast %30 : vector<16x16x32xf32> to vector<256x32xf32>
    %32 = arith.truncf %31 : vector<256x32xf32> to vector<256x32xbf16>
    %c0_45 = arith.constant 0 : index
    %c32 = arith.constant 32 : index
    %33 = vector.load %arg16[%c0_45, %c32] : memref<256x288xbf16, #tpu.memory_space<vmem>>, vector<256x32xbf16>
    tpu.vector_store %arg16[%c0_45, %c32], %32 {strides = array<i32>} : memref<256x288xbf16, #tpu.memory_space<vmem>>, vector<256x32xbf16>,
    %c0_46 = arith.constant 0 : index
    %c2 = arith.constant 2 : index
    %c0_47 = arith.constant 0 : index
    %34 = vector.load %arg14[%c0_46, %c2, %c0_47] : memref<18x18x32xf32, #tpu.memory_space<vmem>>, vector<16x16x32xf32>
    %35 = vector.shape_cast %34 : vector<16x16x32xf32> to vector<256x32xf32>
    %36 = arith.truncf %35 : vector<256x32xf32> to vector<256x32xbf16>
    %c0_48 = arith.constant 0 : index
    %c64 = arith.constant 64 : index
    %37 = vector.load %arg16[%c0_48, %c64] : memref<256x288xbf16, #tpu.memory_space<vmem>>, vector<256x32xbf16>
    tpu.vector_store %arg16[%c0_48, %c64], %36 {strides = array<i32>} : memref<256x288xbf16, #tpu.memory_space<vmem>>, vector<256x32xbf16>,
    %c1_49 = arith.constant 1 : index
    %c0_50 = arith.constant 0 : index
    %c0_51 = arith.constant 0 : index
    %38 = vector.load %arg14[%c1_49, %c0_50, %c0_51] : memref<18x18x32xf32, #tpu.memory_space<vmem>>, vector<16x16x32xf32>
    %39 = vector.shape_cast %38 : vector<16x16x32xf32> to vector<256x32xf32>
    %40 = arith.truncf %39 : vector<256x32xf32> to vector<256x32xbf16>
    %c0_52 = arith.constant 0 : index
    %c96 = arith.constant 96 : index
    %41 = vector.load %arg16[%c0_52, %c96] : memref<256x288xbf16, #tpu.memory_space<vmem>>, vector<256x32xbf16>
    tpu.vector_store %arg16[%c0_52, %c96], %40 {strides = array<i32>} : memref<256x288xbf16, #tpu.memory_space<vmem>>, vector<256x32xbf16>,
    %c1_53 = arith.constant 1 : index
    %c1_54 = arith.constant 1 : index
    %c0_55 = arith.constant 0 : index
    %42 = vector.load %arg14[%c1_53, %c1_54, %c0_55] : memref<18x18x32xf32, #tpu.memory_space<vmem>>, vector<16x16x32xf32>
    %43 = vector.shape_cast %42 : vector<16x16x32xf32> to vector<256x32xf32>
    %44 = arith.truncf %43 : vector<256x32xf32> to vector<256x32xbf16>
    %c0_56 = arith.constant 0 : index
    %c128 = arith.constant 128 : index
    %45 = vector.load %arg16[%c0_56, %c128] : memref<256x288xbf16, #tpu.memory_space<vmem>>, vector<256x32xbf16>
    tpu.vector_store %arg16[%c0_56, %c128], %44 {strides = array<i32>} : memref<256x288xbf16, #tpu.memory_space<vmem>>, vector<256x32xbf16>,
    %c1_57 = arith.constant 1 : index
    %c2_58 = arith.constant 2 : index
    %c0_59 = arith.constant 0 : index
    %46 = vector.load %arg14[%c1_57, %c2_58, %c0_59] : memref<18x18x32xf32, #tpu.memory_space<vmem>>, vector<16x16x32xf32>
    %47 = vector.shape_cast %46 : vector<16x16x32xf32> to vector<256x32xf32>
    %48 = arith.truncf %47 : vector<256x32xf32> to vector<256x32xbf16>
    %c0_60 = arith.constant 0 : index
    %c160 = arith.constant 160 : index
    %49 = vector.load %arg16[%c0_60, %c160] : memref<256x288xbf16, #tpu.memory_space<vmem>>, vector<256x32xbf16>
    tpu.vector_store %arg16[%c0_60, %c160], %48 {strides = array<i32>} : memref<256x288xbf16, #tpu.memory_space<vmem>>, vector<256x32xbf16>,
    %c2_61 = arith.constant 2 : index
    %c0_62 = arith.constant 0 : index
    %c0_63 = arith.constant 0 : index
    %50 = vector.load %arg14[%c2_61, %c0_62, %c0_63] : memref<18x18x32xf32, #tpu.memory_space<vmem>>, vector<16x16x32xf32>
    %51 = vector.shape_cast %50 : vector<16x16x32xf32> to vector<256x32xf32>
    %52 = arith.truncf %51 : vector<256x32xf32> to vector<256x32xbf16>
    %c0_64 = arith.constant 0 : index
    %c192 = arith.constant 192 : index
    %53 = vector.load %arg16[%c0_64, %c192] : memref<256x288xbf16, #tpu.memory_space<vmem>>, vector<256x32xbf16>
    tpu.vector_store %arg16[%c0_64, %c192], %52 {strides = array<i32>} : memref<256x288xbf16, #tpu.memory_space<vmem>>, vector<256x32xbf16>,
    %c2_65 = arith.constant 2 : index
    %c1_66 = arith.constant 1 : index
    %c0_67 = arith.constant 0 : index
    %54 = vector.load %arg14[%c2_65, %c1_66, %c0_67] : memref<18x18x32xf32, #tpu.memory_space<vmem>>, vector<16x16x32xf32>
    %55 = vector.shape_cast %54 : vector<16x16x32xf32> to vector<256x32xf32>
    %56 = arith.truncf %55 : vector<256x32xf32> to vector<256x32xbf16>
    %c0_68 = arith.constant 0 : index
    %c224 = arith.constant 224 : index
    %57 = vector.load %arg16[%c0_68, %c224] : memref<256x288xbf16, #tpu.memory_space<vmem>>, vector<256x32xbf16>
    tpu.vector_store %arg16[%c0_68, %c224], %56 {strides = array<i32>} : memref<256x288xbf16, #tpu.memory_space<vmem>>, vector<256x32xbf16>,
    %c2_69 = arith.constant 2 : index
    %c2_70 = arith.constant 2 : index
    %c0_71 = arith.constant 0 : index
    %58 = vector.load %arg14[%c2_69, %c2_70, %c0_71] : memref<18x18x32xf32, #tpu.memory_space<vmem>>, vector<16x16x32xf32>
    %59 = vector.shape_cast %58 : vector<16x16x32xf32> to vector<256x32xf32>
    %60 = arith.truncf %59 : vector<256x32xf32> to vector<256x32xbf16>
    %c0_72 = arith.constant 0 : index
    %c256 = arith.constant 256 : index
    %61 = vector.load %arg16[%c0_72, %c256] : memref<256x288xbf16, #tpu.memory_space<vmem>>, vector<256x32xbf16>
    tpu.vector_store %arg16[%c0_72, %c256], %60 {strides = array<i32>} : memref<256x288xbf16, #tpu.memory_space<vmem>>, vector<256x32xbf16>,
    %c0_73 = arith.constant 0 : index
    %c0_74 = arith.constant 0 : index
    %62 = vector.load %arg16[%c0_73, %c0_74] : memref<256x288xbf16, #tpu.memory_space<vmem>>, vector<256x288xbf16>
    %c0_75 = arith.constant 0 : index
    %c0_76 = arith.constant 0 : index
    %63 = vector.load %arg5[%c0_75, %c0_76] : memref<288x32xbf16, #tpu.memory_space<vmem>>, vector<288x32xbf16>
    %cst_77 = arith.constant dense<0.000000e+00> : vector<256x32xf32>
    %64 = tpu.matmul %62, %63, %cst_77 {dimension_numbers = #tpu.dot_dimension_numbers<[1], [0], [0], [1], [0, 0, 1, 1], [], []>} : vector<256x288xbf16>, vector<288x32xbf16>, vector<256x32xf32> -> vector<256x32xf32>
    %c0_78 = arith.constant 0 : index
    %c0_79 = arith.constant 0 : index
    %65 = vector.load %arg6[%c0_78, %c0_79] : memref<1x32xf32, #tpu.memory_space<vmem>>, vector<1x32xf32>
    %66 = vector.broadcast %65 : vector<1x32xf32> to vector<256x32xf32>
    %67 = arith.addf %64, %66 : vector<256x32xf32>
    %cst_80 = arith.constant 0.000000e+00 : f32
    %68 = vector.broadcast %cst_80 : f32 to vector<256x32xf32>
    %69 = arith.cmpf oge, %67, %68 : vector<256x32xf32>
    %cst_81 = arith.constant 0.00999999977 : f32
    %70 = vector.broadcast %cst_81 : f32 to vector<256x32xf32>
    %71 = arith.mulf %70, %67 : vector<256x32xf32>
    %72 = arith.select %69, %67, %71 : vector<256x32xi1>, vector<256x32xf32>
    %73 = vector.shape_cast %72 : vector<256x32xf32> to vector<16x16x32xf32>
    %c1_82 = arith.constant 1 : index
    %c1_83 = arith.constant 1 : index
    %c0_84 = arith.constant 0 : index
    %74 = vector.load %arg15[%c1_82, %c1_83, %c0_84] : memref<18x18x32xf32, #tpu.memory_space<vmem>>, vector<16x16x32xf32>
    tpu.vector_store %arg15[%c1_82, %c1_83, %c0_84], %73 {strides = array<i32>} : memref<18x18x32xf32, #tpu.memory_space<vmem>>, vector<16x16x32xf32>,
    %c0_85 = arith.constant 0 : index
    %c0_86 = arith.constant 0 : index
    %c0_87 = arith.constant 0 : index
    %75 = vector.load %arg15[%c0_85, %c0_86, %c0_87] : memref<18x18x32xf32, #tpu.memory_space<vmem>>, vector<16x16x32xf32>
    %76 = vector.shape_cast %75 : vector<16x16x32xf32> to vector<256x32xf32>
    %77 = arith.truncf %76 : vector<256x32xf32> to vector<256x32xbf16>
    %c0_88 = arith.constant 0 : index
    %c0_89 = arith.constant 0 : index
    %78 = vector.load %arg16[%c0_88, %c0_89] : memref<256x288xbf16, #tpu.memory_space<vmem>>, vector<256x32xbf16>
    tpu.vector_store %arg16[%c0_88, %c0_89], %77 {strides = array<i32>} : memref<256x288xbf16, #tpu.memory_space<vmem>>, vector<256x32xbf16>,
    %c0_90 = arith.constant 0 : index
    %c1_91 = arith.constant 1 : index
    %c0_92 = arith.constant 0 : index
    %79 = vector.load %arg15[%c0_90, %c1_91, %c0_92] : memref<18x18x32xf32, #tpu.memory_space<vmem>>, vector<16x16x32xf32>
    %80 = vector.shape_cast %79 : vector<16x16x32xf32> to vector<256x32xf32>
    %81 = arith.truncf %80 : vector<256x32xf32> to vector<256x32xbf16>
    %c0_93 = arith.constant 0 : index
    %c32_94 = arith.constant 32 : index
    %82 = vector.load %arg16[%c0_93, %c32_94] : memref<256x288xbf16, #tpu.memory_space<vmem>>, vector<256x32xbf16>
    tpu.vector_store %arg16[%c0_93, %c32_94], %81 {strides = array<i32>} : memref<256x288xbf16, #tpu.memory_space<vmem>>, vector<256x32xbf16>,
    %c0_95 = arith.constant 0 : index
    %c2_96 = arith.constant 2 : index
    %c0_97 = arith.constant 0 : index
    %83 = vector.load %arg15[%c0_95, %c2_96, %c0_97] : memref<18x18x32xf32, #tpu.memory_space<vmem>>, vector<16x16x32xf32>
    %84 = vector.shape_cast %83 : vector<16x16x32xf32> to vector<256x32xf32>
    %85 = arith.truncf %84 : vector<256x32xf32> to vector<256x32xbf16>
    %c0_98 = arith.constant 0 : index
    %c64_99 = arith.constant 64 : index
    %86 = vector.load %arg16[%c0_98, %c64_99] : memref<256x288xbf16, #tpu.memory_space<vmem>>, vector<256x32xbf16>
    tpu.vector_store %arg16[%c0_98, %c64_99], %85 {strides = array<i32>} : memref<256x288xbf16, #tpu.memory_space<vmem>>, vector<256x32xbf16>,
    %c1_100 = arith.constant 1 : index
    %c0_101 = arith.constant 0 : index
    %c0_102 = arith.constant 0 : index
    %87 = vector.load %arg15[%c1_100, %c0_101, %c0_102] : memref<18x18x32xf32, #tpu.memory_space<vmem>>, vector<16x16x32xf32>
    %88 = vector.shape_cast %87 : vector<16x16x32xf32> to vector<256x32xf32>
    %89 = arith.truncf %88 : vector<256x32xf32> to vector<256x32xbf16>
    %c0_103 = arith.constant 0 : index
    %c96_104 = arith.constant 96 : index
    %90 = vector.load %arg16[%c0_103, %c96_104] : memref<256x288xbf16, #tpu.memory_space<vmem>>, vector<256x32xbf16>
    tpu.vector_store %arg16[%c0_103, %c96_104], %89 {strides = array<i32>} : memref<256x288xbf16, #tpu.memory_space<vmem>>, vector<256x32xbf16>,
    %c1_105 = arith.constant 1 : index
    %c1_106 = arith.constant 1 : index
    %c0_107 = arith.constant 0 : index
    %91 = vector.load %arg15[%c1_105, %c1_106, %c0_107] : memref<18x18x32xf32, #tpu.memory_space<vmem>>, vector<16x16x32xf32>
    %92 = vector.shape_cast %91 : vector<16x16x32xf32> to vector<256x32xf32>
    %93 = arith.truncf %92 : vector<256x32xf32> to vector<256x32xbf16>
    %c0_108 = arith.constant 0 : index
    %c128_109 = arith.constant 128 : index
    %94 = vector.load %arg16[%c0_108, %c128_109] : memref<256x288xbf16, #tpu.memory_space<vmem>>, vector<256x32xbf16>
    tpu.vector_store %arg16[%c0_108, %c128_109], %93 {strides = array<i32>} : memref<256x288xbf16, #tpu.memory_space<vmem>>, vector<256x32xbf16>,
    %c1_110 = arith.constant 1 : index
    %c2_111 = arith.constant 2 : index
    %c0_112 = arith.constant 0 : index
    %95 = vector.load %arg15[%c1_110, %c2_111, %c0_112] : memref<18x18x32xf32, #tpu.memory_space<vmem>>, vector<16x16x32xf32>
    %96 = vector.shape_cast %95 : vector<16x16x32xf32> to vector<256x32xf32>
    %97 = arith.truncf %96 : vector<256x32xf32> to vector<256x32xbf16>
    %c0_113 = arith.constant 0 : index
    %c160_114 = arith.constant 160 : index
    %98 = vector.load %arg16[%c0_113, %c160_114] : memref<256x288xbf16, #tpu.memory_space<vmem>>, vector<256x32xbf16>
    tpu.vector_store %arg16[%c0_113, %c160_114], %97 {strides = array<i32>} : memref<256x288xbf16, #tpu.memory_space<vmem>>, vector<256x32xbf16>,
    %c2_115 = arith.constant 2 : index
    %c0_116 = arith.constant 0 : index
    %c0_117 = arith.constant 0 : index
    %99 = vector.load %arg15[%c2_115, %c0_116, %c0_117] : memref<18x18x32xf32, #tpu.memory_space<vmem>>, vector<16x16x32xf32>
    %100 = vector.shape_cast %99 : vector<16x16x32xf32> to vector<256x32xf32>
    %101 = arith.truncf %100 : vector<256x32xf32> to vector<256x32xbf16>
    %c0_118 = arith.constant 0 : index
    %c192_119 = arith.constant 192 : index
    %102 = vector.load %arg16[%c0_118, %c192_119] : memref<256x288xbf16, #tpu.memory_space<vmem>>, vector<256x32xbf16>
    tpu.vector_store %arg16[%c0_118, %c192_119], %101 {strides = array<i32>} : memref<256x288xbf16, #tpu.memory_space<vmem>>, vector<256x32xbf16>,
    %c2_120 = arith.constant 2 : index
    %c1_121 = arith.constant 1 : index
    %c0_122 = arith.constant 0 : index
    %103 = vector.load %arg15[%c2_120, %c1_121, %c0_122] : memref<18x18x32xf32, #tpu.memory_space<vmem>>, vector<16x16x32xf32>
    %104 = vector.shape_cast %103 : vector<16x16x32xf32> to vector<256x32xf32>
    %105 = arith.truncf %104 : vector<256x32xf32> to vector<256x32xbf16>
    %c0_123 = arith.constant 0 : index
    %c224_124 = arith.constant 224 : index
    %106 = vector.load %arg16[%c0_123, %c224_124] : memref<256x288xbf16, #tpu.memory_space<vmem>>, vector<256x32xbf16>
    tpu.vector_store %arg16[%c0_123, %c224_124], %105 {strides = array<i32>} : memref<256x288xbf16, #tpu.memory_space<vmem>>, vector<256x32xbf16>,
    %c2_125 = arith.constant 2 : index
    %c2_126 = arith.constant 2 : index
    %c0_127 = arith.constant 0 : index
    %107 = vector.load %arg15[%c2_125, %c2_126, %c0_127] : memref<18x18x32xf32, #tpu.memory_space<vmem>>, vector<16x16x32xf32>
    %108 = vector.shape_cast %107 : vector<16x16x32xf32> to vector<256x32xf32>
    %109 = arith.truncf %108 : vector<256x32xf32> to vector<256x32xbf16>
    %c0_128 = arith.constant 0 : index
    %c256_129 = arith.constant 256 : index
    %110 = vector.load %arg16[%c0_128, %c256_129] : memref<256x288xbf16, #tpu.memory_space<vmem>>, vector<256x32xbf16>
    tpu.vector_store %arg16[%c0_128, %c256_129], %109 {strides = array<i32>} : memref<256x288xbf16, #tpu.memory_space<vmem>>, vector<256x32xbf16>,
    %c0_130 = arith.constant 0 : index
    %c0_131 = arith.constant 0 : index
    %111 = vector.load %arg16[%c0_130, %c0_131] : memref<256x288xbf16, #tpu.memory_space<vmem>>, vector<256x288xbf16>
    %c0_132 = arith.constant 0 : index
    %c0_133 = arith.constant 0 : index
    %112 = vector.load %arg7[%c0_132, %c0_133] : memref<288x32xbf16, #tpu.memory_space<vmem>>, vector<288x32xbf16>
    %cst_134 = arith.constant dense<0.000000e+00> : vector<256x32xf32>
    %113 = tpu.matmul %111, %112, %cst_134 {dimension_numbers = #tpu.dot_dimension_numbers<[1], [0], [0], [1], [0, 0, 1, 1], [], []>} : vector<256x288xbf16>, vector<288x32xbf16>, vector<256x32xf32> -> vector<256x32xf32>
    %c0_135 = arith.constant 0 : index
    %c0_136 = arith.constant 0 : index
    %114 = vector.load %arg8[%c0_135, %c0_136] : memref<1x32xf32, #tpu.memory_space<vmem>>, vector<1x32xf32>
    %115 = vector.broadcast %114 : vector<1x32xf32> to vector<256x32xf32>
    %116 = arith.addf %113, %115 : vector<256x32xf32>
    %cst_137 = arith.constant 0.000000e+00 : f32
    %117 = vector.broadcast %cst_137 : f32 to vector<256x32xf32>
    %118 = arith.cmpf oge, %116, %117 : vector<256x32xf32>
    %cst_138 = arith.constant 0.00999999977 : f32
    %119 = vector.broadcast %cst_138 : f32 to vector<256x32xf32>
    %120 = arith.mulf %119, %116 : vector<256x32xf32>
    %121 = arith.select %118, %116, %120 : vector<256x32xi1>, vector<256x32xf32>
    %122 = vector.shape_cast %121 : vector<256x32xf32> to vector<16x16x32xf32>
    %c1_139 = arith.constant 1 : index
    %c1_140 = arith.constant 1 : index
    %c0_141 = arith.constant 0 : index
    %123 = vector.load %arg14[%c1_139, %c1_140, %c0_141] : memref<18x18x32xf32, #tpu.memory_space<vmem>>, vector<16x16x32xf32>
    tpu.vector_store %arg14[%c1_139, %c1_140, %c0_141], %122 {strides = array<i32>} : memref<18x18x32xf32, #tpu.memory_space<vmem>>, vector<16x16x32xf32>,
    %c0_142 = arith.constant 0 : index
    %c0_143 = arith.constant 0 : index
    %c0_144 = arith.constant 0 : index
    %124 = vector.load %arg14[%c0_142, %c0_143, %c0_144] : memref<18x18x32xf32, #tpu.memory_space<vmem>>, vector<16x16x32xf32>
    %125 = vector.shape_cast %124 : vector<16x16x32xf32> to vector<256x32xf32>
    %126 = arith.truncf %125 : vector<256x32xf32> to vector<256x32xbf16>
    %c0_145 = arith.constant 0 : index
    %c0_146 = arith.constant 0 : index
    %127 = vector.load %arg16[%c0_145, %c0_146] : memref<256x288xbf16, #tpu.memory_space<vmem>>, vector<256x32xbf16>
    tpu.vector_store %arg16[%c0_145, %c0_146], %126 {strides = array<i32>} : memref<256x288xbf16, #tpu.memory_space<vmem>>, vector<256x32xbf16>,
    %c0_147 = arith.constant 0 : index
    %c1_148 = arith.constant 1 : index
    %c0_149 = arith.constant 0 : index
    %128 = vector.load %arg14[%c0_147, %c1_148, %c0_149] : memref<18x18x32xf32, #tpu.memory_space<vmem>>, vector<16x16x32xf32>
    %129 = vector.shape_cast %128 : vector<16x16x32xf32> to vector<256x32xf32>
    %130 = arith.truncf %129 : vector<256x32xf32> to vector<256x32xbf16>
    %c0_150 = arith.constant 0 : index
    %c32_151 = arith.constant 32 : index
    %131 = vector.load %arg16[%c0_150, %c32_151] : memref<256x288xbf16, #tpu.memory_space<vmem>>, vector<256x32xbf16>
    tpu.vector_store %arg16[%c0_150, %c32_151], %130 {strides = array<i32>} : memref<256x288xbf16, #tpu.memory_space<vmem>>, vector<256x32xbf16>,
    %c0_152 = arith.constant 0 : index
    %c2_153 = arith.constant 2 : index
    %c0_154 = arith.constant 0 : index
    %132 = vector.load %arg14[%c0_152, %c2_153, %c0_154] : memref<18x18x32xf32, #tpu.memory_space<vmem>>, vector<16x16x32xf32>
    %133 = vector.shape_cast %132 : vector<16x16x32xf32> to vector<256x32xf32>
    %134 = arith.truncf %133 : vector<256x32xf32> to vector<256x32xbf16>
    %c0_155 = arith.constant 0 : index
    %c64_156 = arith.constant 64 : index
    %135 = vector.load %arg16[%c0_155, %c64_156] : memref<256x288xbf16, #tpu.memory_space<vmem>>, vector<256x32xbf16>
    tpu.vector_store %arg16[%c0_155, %c64_156], %134 {strides = array<i32>} : memref<256x288xbf16, #tpu.memory_space<vmem>>, vector<256x32xbf16>,
    %c1_157 = arith.constant 1 : index
    %c0_158 = arith.constant 0 : index
    %c0_159 = arith.constant 0 : index
    %136 = vector.load %arg14[%c1_157, %c0_158, %c0_159] : memref<18x18x32xf32, #tpu.memory_space<vmem>>, vector<16x16x32xf32>
    %137 = vector.shape_cast %136 : vector<16x16x32xf32> to vector<256x32xf32>
    %138 = arith.truncf %137 : vector<256x32xf32> to vector<256x32xbf16>
    %c0_160 = arith.constant 0 : index
    %c96_161 = arith.constant 96 : index
    %139 = vector.load %arg16[%c0_160, %c96_161] : memref<256x288xbf16, #tpu.memory_space<vmem>>, vector<256x32xbf16>
    tpu.vector_store %arg16[%c0_160, %c96_161], %138 {strides = array<i32>} : memref<256x288xbf16, #tpu.memory_space<vmem>>, vector<256x32xbf16>,
    %c1_162 = arith.constant 1 : index
    %c1_163 = arith.constant 1 : index
    %c0_164 = arith.constant 0 : index
    %140 = vector.load %arg14[%c1_162, %c1_163, %c0_164] : memref<18x18x32xf32, #tpu.memory_space<vmem>>, vector<16x16x32xf32>
    %141 = vector.shape_cast %140 : vector<16x16x32xf32> to vector<256x32xf32>
    %142 = arith.truncf %141 : vector<256x32xf32> to vector<256x32xbf16>
    %c0_165 = arith.constant 0 : index
    %c128_166 = arith.constant 128 : index
    %143 = vector.load %arg16[%c0_165, %c128_166] : memref<256x288xbf16, #tpu.memory_space<vmem>>, vector<256x32xbf16>
    tpu.vector_store %arg16[%c0_165, %c128_166], %142 {strides = array<i32>} : memref<256x288xbf16, #tpu.memory_space<vmem>>, vector<256x32xbf16>,
    %c1_167 = arith.constant 1 : index
    %c2_168 = arith.constant 2 : index
    %c0_169 = arith.constant 0 : index
    %144 = vector.load %arg14[%c1_167, %c2_168, %c0_169] : memref<18x18x32xf32, #tpu.memory_space<vmem>>, vector<16x16x32xf32>
    %145 = vector.shape_cast %144 : vector<16x16x32xf32> to vector<256x32xf32>
    %146 = arith.truncf %145 : vector<256x32xf32> to vector<256x32xbf16>
    %c0_170 = arith.constant 0 : index
    %c160_171 = arith.constant 160 : index
    %147 = vector.load %arg16[%c0_170, %c160_171] : memref<256x288xbf16, #tpu.memory_space<vmem>>, vector<256x32xbf16>
    tpu.vector_store %arg16[%c0_170, %c160_171], %146 {strides = array<i32>} : memref<256x288xbf16, #tpu.memory_space<vmem>>, vector<256x32xbf16>,
    %c2_172 = arith.constant 2 : index
    %c0_173 = arith.constant 0 : index
    %c0_174 = arith.constant 0 : index
    %148 = vector.load %arg14[%c2_172, %c0_173, %c0_174] : memref<18x18x32xf32, #tpu.memory_space<vmem>>, vector<16x16x32xf32>
    %149 = vector.shape_cast %148 : vector<16x16x32xf32> to vector<256x32xf32>
    %150 = arith.truncf %149 : vector<256x32xf32> to vector<256x32xbf16>
    %c0_175 = arith.constant 0 : index
    %c192_176 = arith.constant 192 : index
    %151 = vector.load %arg16[%c0_175, %c192_176] : memref<256x288xbf16, #tpu.memory_space<vmem>>, vector<256x32xbf16>
    tpu.vector_store %arg16[%c0_175, %c192_176], %150 {strides = array<i32>} : memref<256x288xbf16, #tpu.memory_space<vmem>>, vector<256x32xbf16>,
    %c2_177 = arith.constant 2 : index
    %c1_178 = arith.constant 1 : index
    %c0_179 = arith.constant 0 : index
    %152 = vector.load %arg14[%c2_177, %c1_178, %c0_179] : memref<18x18x32xf32, #tpu.memory_space<vmem>>, vector<16x16x32xf32>
    %153 = vector.shape_cast %152 : vector<16x16x32xf32> to vector<256x32xf32>
    %154 = arith.truncf %153 : vector<256x32xf32> to vector<256x32xbf16>
    %c0_180 = arith.constant 0 : index
    %c224_181 = arith.constant 224 : index
    %155 = vector.load %arg16[%c0_180, %c224_181] : memref<256x288xbf16, #tpu.memory_space<vmem>>, vector<256x32xbf16>
    tpu.vector_store %arg16[%c0_180, %c224_181], %154 {strides = array<i32>} : memref<256x288xbf16, #tpu.memory_space<vmem>>, vector<256x32xbf16>,
    %c2_182 = arith.constant 2 : index
    %c2_183 = arith.constant 2 : index
    %c0_184 = arith.constant 0 : index
    %156 = vector.load %arg14[%c2_182, %c2_183, %c0_184] : memref<18x18x32xf32, #tpu.memory_space<vmem>>, vector<16x16x32xf32>
    %157 = vector.shape_cast %156 : vector<16x16x32xf32> to vector<256x32xf32>
    %158 = arith.truncf %157 : vector<256x32xf32> to vector<256x32xbf16>
    %c0_185 = arith.constant 0 : index
    %c256_186 = arith.constant 256 : index
    %159 = vector.load %arg16[%c0_185, %c256_186] : memref<256x288xbf16, #tpu.memory_space<vmem>>, vector<256x32xbf16>
    tpu.vector_store %arg16[%c0_185, %c256_186], %158 {strides = array<i32>} : memref<256x288xbf16, #tpu.memory_space<vmem>>, vector<256x32xbf16>,
    %c0_187 = arith.constant 0 : index
    %c0_188 = arith.constant 0 : index
    %160 = vector.load %arg16[%c0_187, %c0_188] : memref<256x288xbf16, #tpu.memory_space<vmem>>, vector<256x288xbf16>
    %c0_189 = arith.constant 0 : index
    %c0_190 = arith.constant 0 : index
    %161 = vector.load %arg9[%c0_189, %c0_190] : memref<288x32xbf16, #tpu.memory_space<vmem>>, vector<288x32xbf16>
    %cst_191 = arith.constant dense<0.000000e+00> : vector<256x32xf32>
    %162 = tpu.matmul %160, %161, %cst_191 {dimension_numbers = #tpu.dot_dimension_numbers<[1], [0], [0], [1], [0, 0, 1, 1], [], []>} : vector<256x288xbf16>, vector<288x32xbf16>, vector<256x32xf32> -> vector<256x32xf32>
    %c0_192 = arith.constant 0 : index
    %c0_193 = arith.constant 0 : index
    %163 = vector.load %arg10[%c0_192, %c0_193] : memref<1x32xf32, #tpu.memory_space<vmem>>, vector<1x32xf32>
    %164 = vector.broadcast %163 : vector<1x32xf32> to vector<256x32xf32>
    %165 = arith.addf %162, %164 : vector<256x32xf32>
    %cst_194 = arith.constant 0.000000e+00 : f32
    %166 = vector.broadcast %cst_194 : f32 to vector<256x32xf32>
    %167 = arith.cmpf oge, %165, %166 : vector<256x32xf32>
    %cst_195 = arith.constant 0.00999999977 : f32
    %168 = vector.broadcast %cst_195 : f32 to vector<256x32xf32>
    %169 = arith.mulf %168, %165 : vector<256x32xf32>
    %170 = arith.select %167, %165, %169 : vector<256x32xi1>, vector<256x32xf32>
    %171 = vector.shape_cast %170 : vector<256x32xf32> to vector<16x16x32xf32>
    %c1_196 = arith.constant 1 : index
    %c1_197 = arith.constant 1 : index
    %c0_198 = arith.constant 0 : index
    %172 = vector.load %arg15[%c1_196, %c1_197, %c0_198] : memref<18x18x32xf32, #tpu.memory_space<vmem>>, vector<16x16x32xf32>
    tpu.vector_store %arg15[%c1_196, %c1_197, %c0_198], %171 {strides = array<i32>} : memref<18x18x32xf32, #tpu.memory_space<vmem>>, vector<16x16x32xf32>,
    %c0_199 = arith.constant 0 : index
    %c0_200 = arith.constant 0 : index
    %c0_201 = arith.constant 0 : index
    %173 = vector.load %arg15[%c0_199, %c0_200, %c0_201] : memref<18x18x32xf32, #tpu.memory_space<vmem>>, vector<16x16x32xf32>
    %174 = vector.shape_cast %173 : vector<16x16x32xf32> to vector<256x32xf32>
    %175 = arith.truncf %174 : vector<256x32xf32> to vector<256x32xbf16>
    %c0_202 = arith.constant 0 : index
    %c0_203 = arith.constant 0 : index
    %176 = vector.load %arg16[%c0_202, %c0_203] : memref<256x288xbf16, #tpu.memory_space<vmem>>, vector<256x32xbf16>
    tpu.vector_store %arg16[%c0_202, %c0_203], %175 {strides = array<i32>} : memref<256x288xbf16, #tpu.memory_space<vmem>>, vector<256x32xbf16>,
    %c0_204 = arith.constant 0 : index
    %c1_205 = arith.constant 1 : index
    %c0_206 = arith.constant 0 : index
    %177 = vector.load %arg15[%c0_204, %c1_205, %c0_206] : memref<18x18x32xf32, #tpu.memory_space<vmem>>, vector<16x16x32xf32>
    %178 = vector.shape_cast %177 : vector<16x16x32xf32> to vector<256x32xf32>
    %179 = arith.truncf %178 : vector<256x32xf32> to vector<256x32xbf16>
    %c0_207 = arith.constant 0 : index
    %c32_208 = arith.constant 32 : index
    %180 = vector.load %arg16[%c0_207, %c32_208] : memref<256x288xbf16, #tpu.memory_space<vmem>>, vector<256x32xbf16>
    tpu.vector_store %arg16[%c0_207, %c32_208], %179 {strides = array<i32>} : memref<256x288xbf16, #tpu.memory_space<vmem>>, vector<256x32xbf16>,
    %c0_209 = arith.constant 0 : index
    %c2_210 = arith.constant 2 : index
    %c0_211 = arith.constant 0 : index
    %181 = vector.load %arg15[%c0_209, %c2_210, %c0_211] : memref<18x18x32xf32, #tpu.memory_space<vmem>>, vector<16x16x32xf32>
    %182 = vector.shape_cast %181 : vector<16x16x32xf32> to vector<256x32xf32>
    %183 = arith.truncf %182 : vector<256x32xf32> to vector<256x32xbf16>
    %c0_212 = arith.constant 0 : index
    %c64_213 = arith.constant 64 : index
    %184 = vector.load %arg16[%c0_212, %c64_213] : memref<256x288xbf16, #tpu.memory_space<vmem>>, vector<256x32xbf16>
    tpu.vector_store %arg16[%c0_212, %c64_213], %183 {strides = array<i32>} : memref<256x288xbf16, #tpu.memory_space<vmem>>, vector<256x32xbf16>,
    %c1_214 = arith.constant 1 : index
    %c0_215 = arith.constant 0 : index
    %c0_216 = arith.constant 0 : index
    %185 = vector.load %arg15[%c1_214, %c0_215, %c0_216] : memref<18x18x32xf32, #tpu.memory_space<vmem>>, vector<16x16x32xf32>
    %186 = vector.shape_cast %185 : vector<16x16x32xf32> to vector<256x32xf32>
    %187 = arith.truncf %186 : vector<256x32xf32> to vector<256x32xbf16>
    %c0_217 = arith.constant 0 : index
    %c96_218 = arith.constant 96 : index
    %188 = vector.load %arg16[%c0_217, %c96_218] : memref<256x288xbf16, #tpu.memory_space<vmem>>, vector<256x32xbf16>
    tpu.vector_store %arg16[%c0_217, %c96_218], %187 {strides = array<i32>} : memref<256x288xbf16, #tpu.memory_space<vmem>>, vector<256x32xbf16>,
    %c1_219 = arith.constant 1 : index
    %c1_220 = arith.constant 1 : index
    %c0_221 = arith.constant 0 : index
    %189 = vector.load %arg15[%c1_219, %c1_220, %c0_221] : memref<18x18x32xf32, #tpu.memory_space<vmem>>, vector<16x16x32xf32>
    %190 = vector.shape_cast %189 : vector<16x16x32xf32> to vector<256x32xf32>
    %191 = arith.truncf %190 : vector<256x32xf32> to vector<256x32xbf16>
    %c0_222 = arith.constant 0 : index
    %c128_223 = arith.constant 128 : index
    %192 = vector.load %arg16[%c0_222, %c128_223] : memref<256x288xbf16, #tpu.memory_space<vmem>>, vector<256x32xbf16>
    tpu.vector_store %arg16[%c0_222, %c128_223], %191 {strides = array<i32>} : memref<256x288xbf16, #tpu.memory_space<vmem>>, vector<256x32xbf16>,
    %c1_224 = arith.constant 1 : index
    %c2_225 = arith.constant 2 : index
    %c0_226 = arith.constant 0 : index
    %193 = vector.load %arg15[%c1_224, %c2_225, %c0_226] : memref<18x18x32xf32, #tpu.memory_space<vmem>>, vector<16x16x32xf32>
    %194 = vector.shape_cast %193 : vector<16x16x32xf32> to vector<256x32xf32>
    %195 = arith.truncf %194 : vector<256x32xf32> to vector<256x32xbf16>
    %c0_227 = arith.constant 0 : index
    %c160_228 = arith.constant 160 : index
    %196 = vector.load %arg16[%c0_227, %c160_228] : memref<256x288xbf16, #tpu.memory_space<vmem>>, vector<256x32xbf16>
    tpu.vector_store %arg16[%c0_227, %c160_228], %195 {strides = array<i32>} : memref<256x288xbf16, #tpu.memory_space<vmem>>, vector<256x32xbf16>,
    %c2_229 = arith.constant 2 : index
    %c0_230 = arith.constant 0 : index
    %c0_231 = arith.constant 0 : index
    %197 = vector.load %arg15[%c2_229, %c0_230, %c0_231] : memref<18x18x32xf32, #tpu.memory_space<vmem>>, vector<16x16x32xf32>
    %198 = vector.shape_cast %197 : vector<16x16x32xf32> to vector<256x32xf32>
    %199 = arith.truncf %198 : vector<256x32xf32> to vector<256x32xbf16>
    %c0_232 = arith.constant 0 : index
    %c192_233 = arith.constant 192 : index
    %200 = vector.load %arg16[%c0_232, %c192_233] : memref<256x288xbf16, #tpu.memory_space<vmem>>, vector<256x32xbf16>
    tpu.vector_store %arg16[%c0_232, %c192_233], %199 {strides = array<i32>} : memref<256x288xbf16, #tpu.memory_space<vmem>>, vector<256x32xbf16>,
    %c2_234 = arith.constant 2 : index
    %c1_235 = arith.constant 1 : index
    %c0_236 = arith.constant 0 : index
    %201 = vector.load %arg15[%c2_234, %c1_235, %c0_236] : memref<18x18x32xf32, #tpu.memory_space<vmem>>, vector<16x16x32xf32>
    %202 = vector.shape_cast %201 : vector<16x16x32xf32> to vector<256x32xf32>
    %203 = arith.truncf %202 : vector<256x32xf32> to vector<256x32xbf16>
    %c0_237 = arith.constant 0 : index
    %c224_238 = arith.constant 224 : index
    %204 = vector.load %arg16[%c0_237, %c224_238] : memref<256x288xbf16, #tpu.memory_space<vmem>>, vector<256x32xbf16>
    tpu.vector_store %arg16[%c0_237, %c224_238], %203 {strides = array<i32>} : memref<256x288xbf16, #tpu.memory_space<vmem>>, vector<256x32xbf16>,
    %c2_239 = arith.constant 2 : index
    %c2_240 = arith.constant 2 : index
    %c0_241 = arith.constant 0 : index
    %205 = vector.load %arg15[%c2_239, %c2_240, %c0_241] : memref<18x18x32xf32, #tpu.memory_space<vmem>>, vector<16x16x32xf32>
    %206 = vector.shape_cast %205 : vector<16x16x32xf32> to vector<256x32xf32>
    %207 = arith.truncf %206 : vector<256x32xf32> to vector<256x32xbf16>
    %c0_242 = arith.constant 0 : index
    %c256_243 = arith.constant 256 : index
    %208 = vector.load %arg16[%c0_242, %c256_243] : memref<256x288xbf16, #tpu.memory_space<vmem>>, vector<256x32xbf16>
    tpu.vector_store %arg16[%c0_242, %c256_243], %207 {strides = array<i32>} : memref<256x288xbf16, #tpu.memory_space<vmem>>, vector<256x32xbf16>,
    %c0_244 = arith.constant 0 : index
    %c0_245 = arith.constant 0 : index
    %209 = vector.load %arg11[%c0_244, %c0_245] : memref<2x288xbf16, #tpu.memory_space<vmem>>, vector<2x288xbf16>
    %c0_246 = arith.constant 0 : index
    %c0_247 = arith.constant 0 : index
    %210 = vector.load %arg16[%c0_246, %c0_247] : memref<256x288xbf16, #tpu.memory_space<vmem>>, vector<256x288xbf16>
    %cst_248 = arith.constant dense<0.000000e+00> : vector<2x256xf32>
    %211 = tpu.matmul %209, %210, %cst_248 {dimension_numbers = #tpu.dot_dimension_numbers<[1], [1], [0], [0], [0, 0, 1, 0], [], []>} : vector<2x288xbf16>, vector<256x288xbf16>, vector<2x256xf32> -> vector<2x256xf32>
    %c0_249 = arith.constant 0 : index
    %c0_250 = arith.constant 0 : index
    %212 = vector.load %arg12[%c0_249, %c0_250] : memref<2x1xf32, #tpu.memory_space<vmem>>, vector<2x1xf32>
    %213 = vector.broadcast %212 : vector<2x1xf32> to vector<2x256xf32>
    %214 = arith.addf %211, %213 : vector<2x256xf32>
    %c0_251 = arith.constant 0 : index
    %c0_252 = arith.constant 0 : index
    %c0_253 = arith.constant 0 : index
    %215 = vector.load %arg2[%c0_251, %c0_252, %c0_253] : memref<1x2x256xf32, #tpu.memory_space<vmem>>, vector<1x2x256xf32>
    %216 = vector.shape_cast %215 : vector<1x2x256xf32> to vector<2x256xf32>
    %217 = arith.addf %214, %216 : vector<2x256xf32>
    %cst_254 = arith.constant 0.000000e+00 : f32
    %218 = vector.broadcast %cst_254 : f32 to vector<2x256xf32>
    %219 = arith.cmpf oge, %217, %218 : vector<2x256xf32>
    %cst_255 = arith.constant 0.00999999977 : f32
    %220 = vector.broadcast %cst_255 : f32 to vector<2x256xf32>
    %221 = arith.mulf %220, %217 : vector<2x256xf32>
    %222 = arith.select %219, %217, %221 : vector<2x256xi1>, vector<2x256xf32>
    %c0_256 = arith.constant 0 : index
    %c0_257 = arith.constant 0 : index
    %c0_258 = arith.constant 0 : index
    %223 = vector.load %arg13[%c0_256, %c0_257, %c0_258] : memref<1x2x256xf32, #tpu.memory_space<vmem>>, vector<1x2x256xf32>
    %224 = vector.shape_cast %223 : vector<1x2x256xf32> to vector<2x256xf32>
    %225 = vector.shape_cast %222 : vector<2x256xf32> to vector<1x2x256xf32>
    tpu.vector_store %arg13[%c0_256, %c0_257, %c0_258], %225 {strides = array<i32>} : memref<1x2x256xf32, #tpu.memory_space<vmem>>, vector<1x2x256xf32>,
    return
  }
  func.func @transform_0(%arg0: i32) -> (i32, i32, i32) {
    %c0_i32 = arith.constant 0 : i32
    %c0_i32_0 = arith.constant 0 : i32
    %c0_i32_1 = arith.constant 0 : i32
    return %arg0, %c0_i32, %c0_i32_0 : i32, i32, i32
  }
  func.func @transform_1(%arg0: i32) -> (i32, i32, i32) {
    %c0_i32 = arith.constant 0 : i32
    %c0_i32_0 = arith.constant 0 : i32
    %c0_i32_1 = arith.constant 0 : i32
    return %arg0, %c0_i32, %c0_i32_0 : i32, i32, i32
  }
  func.func @transform_2(%arg0: i32) -> (i32, i32) {
    %c0_i32 = arith.constant 0 : i32
    %c0_i32_0 = arith.constant 0 : i32
    %c0_i32_1 = arith.constant 0 : i32
    return %c0_i32, %c0_i32_0 : i32, i32
  }
  func.func @transform_3(%arg0: i32) -> (i32, i32) {
    %c0_i32 = arith.constant 0 : i32
    %c0_i32_0 = arith.constant 0 : i32
    %c0_i32_1 = arith.constant 0 : i32
    return %c0_i32, %c0_i32_0 : i32, i32
  }
  func.func @transform_4(%arg0: i32) -> (i32, i32) {
    %c0_i32 = arith.constant 0 : i32
    %c0_i32_0 = arith.constant 0 : i32
    %c0_i32_1 = arith.constant 0 : i32
    return %c0_i32, %c0_i32_0 : i32, i32
  }
  func.func @transform_5(%arg0: i32) -> (i32, i32) {
    %c0_i32 = arith.constant 0 : i32
    %c0_i32_0 = arith.constant 0 : i32
    %c0_i32_1 = arith.constant 0 : i32
    return %c0_i32, %c0_i32_0 : i32, i32
  }
  func.func @transform_6(%arg0: i32) -> (i32, i32) {
    %c0_i32 = arith.constant 0 : i32
    %c0_i32_0 = arith.constant 0 : i32
    %c0_i32_1 = arith.constant 0 : i32
    return %c0_i32, %c0_i32_0 : i32, i32
  }
  func.func @transform_7(%arg0: i32) -> (i32, i32) {
    %c0_i32 = arith.constant 0 : i32
    %c0_i32_0 = arith.constant 0 : i32
    %c0_i32_1 = arith.constant 0 : i32
    return %c0_i32, %c0_i32_0 : i32, i32
  }
  func.func @transform_8(%arg0: i32) -> (i32, i32) {
    %c0_i32 = arith.constant 0 : i32
    %c0_i32_0 = arith.constant 0 : i32
    %c0_i32_1 = arith.constant 0 : i32
    return %c0_i32, %c0_i32_0 : i32, i32
  }
  func.func @transform_9(%arg0: i32) -> (i32, i32) {
    %c0_i32 = arith.constant 0 : i32
    %c0_i32_0 = arith.constant 0 : i32
    %c0_i32_1 = arith.constant 0 : i32
    return %c0_i32, %c0_i32_0 : i32, i32
  }
  func.func @transform_10(%arg0: i32) -> (i32, i32) {
    %c0_i32 = arith.constant 0 : i32
    %c0_i32_0 = arith.constant 0 : i32
    %c0_i32_1 = arith.constant 0 : i32
    return %c0_i32, %c0_i32_0 : i32, i32
  }
  func.func @transform_11(%arg0: i32) -> (i32, i32) {
    %c0_i32 = arith.constant 0 : i32
    %c0_i32_0 = arith.constant 0 : i32
    %c0_i32_1 = arith.constant 0 : i32
    return %c0_i32, %c0_i32_0 : i32, i32
  }
  func.func @transform_12(%arg0: i32) -> (i32, i32, i32) {
    %c0_i32 = arith.constant 0 : i32
    %c0_i32_0 = arith.constant 0 : i32
    %c0_i32_1 = arith.constant 0 : i32
    return %arg0, %c0_i32, %c0_i32_0 : i32, i32, i32
  }
}

</mosaic_0001>

<bundles_post_ra>
// kernel: tpu_custom_call.1
= control target key start
LH: loop header
LB: loop body
LE: loop exit
PB: predicated region body
PF: predicated region fallthrough
CT: control target
= control target key end

     0   :  { %s20795_s0 = inlined_call_operand.vmem [shape: bf16[2,256,18], index: 0, kind: input, shape index: {}]   ;;  %s20796_s1 = inlined_call_operand.vmem [shape: f32[2,2,256], index: 1, kind: input, shape index: {}]   ;;  %s20797_s2 = inlined_call_operand.vmem [shape: bf16[18,32], index: 2, kind: input, shape index: {}]   ;;  %s20798_s3 = inlined_call_operand.vmem [shape: f32[1,32], index: 3, kind: input, shape index: {}]   ;;  %s20799_s4 = inlined_call_operand.vmem [shape: bf16[288,32], index: 4, kind: input, shape index: {}]   ;;  %s20800_s5 = inlined_call_operand.vmem [shape: f32[1,32], index: 5, kind: input, shape index: {}]   ;;  %s20801_s6 = inlined_call_operand.vmem [shape: bf16[288,32], index: 6, kind: input, shape index: {}]   ;;  %s20802_s7 = inlined_call_operand.vmem [shape: f32[1,32], index: 7, kind: input, shape index: {}]   ;;  %s20803_s8 = inlined_call_operand.vmem [shape: bf16[288,32], index: 8, kind: input, shape index: {}]   ;;  %s20804_s9 = inlined_call_operand.vmem [shape: f32[1,32], index: 9, kind: input, shape index: {}]   ;;  %s20805_s10 = inlined_call_operand.vmem [shape: bf16[2,288], index: 10, kind: input, shape index: {}]   ;;  %s20806_s11 = inlined_call_operand.vmem [shape: f32[2,1], index: 11, kind: input, shape index: {}]   ;;  %s20807_s12 = inlined_call_operand.hbm [shape: f32[2,2,256], index: 12, kind: output, shape index: {}]  }
   0x1   :  { %20812 = sst [smem:[#allocation8_spill]] %s20795_s0 }
   0x2   :  { %20813 = sst [smem:[#allocation9_spill]] %s20796_s1 }
   0x3   :  { %20814 = sst [smem:[#allocation10_spill]] %s20797_s2 }
   0x4   :  { %17 = vsyncpa [#allocation6], 0 }
   0x5   :  { %19 = vsyncpa [#allocation6 + $0x1], 0  ;;  %s16553_s21 = smov 0   ;;  %s16555_s22 = smov 0  }
   0x6   :  { %s16557_s23 = smov 0   ;;  %s16559_s24 = smov 0  }
   0x7 LB: > { %s16574_s25 = sadd.s32 4294967295, %s16479_s24   ;;  %s12898_s26 = sadd.s32 4294967294, %s16479_s24   ;;  %s16479_s24 = sphi %s16559_s24, %s20825_s24   ;;  %s16475_s23 = sphi %s16557_s23, %s20824_s23   ;;  %s16471_s22 = sphi %s16555_s22, %s20823_s22   ;;  %s16467_s21 = sphi %s16553_s21, %s20822_s21  }
   0x8   : > { %s16578_s27 = sadd.s32 1, %s16479_s24   ;;  %s294_s28 = sadd.s32 1, %s16475_s23 }
   0x9   : > { %s291_s29 = ssub.s32 %s16479_s24, %s16578_s27  ;;  %p304_p0 = scmp.ne.s32.totalorder %s16475_s23, %s16471_s22 }
   0xa   : > { %p292_p1 = scmp.eq.s32.totalorder %s291_s29, 0  ;;  %p305_p2 = scmp.eq.s32.totalorder %s16574_s25, 1 }
   0xb   : > { %p310_p3 = scmp.ne.s32.totalorder %s16471_s22, %s16467_s21  ;;  %p311_p4 = scmp.eq.s32.totalorder %s12898_s26, 1 }
   0xc   : > { %s16589_s30 = scalar_select %p292_p1, %s16475_s23, %s294_s28  }
   0xd   : > { %p16591_p5 = por %p305_p2, %p304_p0  ;;  %p16595_p6 = por %p311_p4, %p310_p3 }
   0xe   : > { %p12901_p7 = scmp.ge.s32.totalorder %s16479_s24, 1  ;;  %p375_p8 = scmp.lt.s32.totalorder %s16479_s24, 3 }
  0x10   : > { %p376_p9 = pnand %p12901_p7, %p375_p8 }
  0x11   : > { %s20817_s2 = sld [smem:[#allocation10_spill]] (!%p376_p9)  ;;  %p422_p10 = scmp.lt.s32.totalorder (!%p376_p9), %s16574_s25, 1 }
  0x12   : > { %379 = sbr.rel (%p376_p9) target bundleno = 2314 (0x90a), region = 68  ;;  %s20818_s0 = sld [smem:[#allocation8_spill]] (!%p376_p9) }
  0x13   : > { %s20808_s15 = smov (!%p376_p9), 32   ;;  %s16483_s16 = smov (!%p376_p9), 64  }
  0x14   : > { %s20819_s26 = smov (!%p376_p9), 32   ;;  %s20820_s17 = smov (!%p376_p9), 96  }
  0x15   : > { %s20821_s1 = sld [smem:[#allocation9_spill]] (!%p376_p9) }
  0x17   : > { %v16196_v0 = vld [vmem:[%s20817_s2 + $0x8] ss:$0 sps:$4 sm:$0x11]   ;;  %vm702_vm0 = vcmask 1040384   ;;  %v16197_v1 = vld [vmem:[%s20817_s2] sm:$0xff]   ;;  %s16609_s19 = scalar_select %p422_p10, %s16574_s25, 1 }
  0x18   : > { %16141 = vmatprep.subr.msk.bf16.mxu0 %vm702_vm0, %v16196_v0  ;;  %v704_v2 = vsel %vm702_vm0, %v16196_v0, 0  ;;  %vm653_vm1 = vcmask 146432   ;;  %vm433_vm2 = vcmask 261120   ;;  %v16481_v13 = vmov 0.0   ;;  %v16824_v34 = vld [vmem:[%s20798_s3] ss:$0 sm:$0xff] }
  0x19   : > { %15982 = vmatpush3.bf16.msra.mxu0 %v704_v2  ;;  %s14400_s20 = sshll.u32 %s16609_s19, 7  ;;  %434 = vst.msk [vmem:[#allocation2] sm:$0xff] %vm433_vm2, %v16481_v13  ;;  %435 = vst.msk [vmem:[#allocation2 + $0x8] sm:$0xff] %vm433_vm2, %v16481_v13  ;;  %vm436_vm3 = vcmask 254976   ;;  %vm442_vm4 = vcmask 253952   ;;  %vm1413_vm5 = vcmask 519424  }
  0x1a   : > { %15983 = vmatprep.subr.bf16.mxu0 %v16197_v1  ;;  %s16615_s29 = scalar_lea.vmem %s20818_s0, %s14400_s20  ;;  %439 = vst.msk [vmem:[#allocation2 + $0x198] sm:$0xff] %vm433_vm2, %v16481_v13  ;;  %440 = vst.msk [vmem:[#allocation2 + $0x1a0] sm:$0xff] %vm433_vm2, %v16481_v13  ;;  %vm1156_vm6 = vcmask 257024   ;;  %vm1670_vm7 = vcmask 781824   ;;  %s20810_s20 = smov 96  }
  0x1b   : > { %v16198_v3 = vld [vmem:[%s16615_s29] sm:$0xff]   ;;  %v16199_v4 = vld [vmem:[%s16615_s29 + $0x8] sm:$0xff]   ;;  %v16200_v5 = vld [vmem:[%s16615_s29 + $0x10] sm:$0xff]   ;;  %479 = vst.msk [vmem:[#allocation3] sm:$0xff] %vm433_vm2, %v16481_v13  ;;  %s14401_s28 = sshll.u32 %s16609_s19, 2  ;;  %s15554_s19 = sshll.u32 %s16574_s25, 6 }
  0x1c   : > { %15985 = vmatprep.mubr.msk.bf16.mxu0 %vm653_vm1, %v16198_v3  ;;  %v16201_v6 = vld [vmem:[%s16615_s29 + $0x18] sm:$0xff]   ;;  %v16202_v7 = vld [vmem:[%s16615_s29 + $0x20] sm:$0xff]   ;;  %v16203_v8 = vld [vmem:[%s16615_s29 + $0x28] sm:$0xff]   ;;  %480 = vst.msk [vmem:[#allocation3 + $0x8] sm:$0xff] %vm433_vm2, %v16481_v13  ;;  %s12825_s18 = scalar_lea.hbm %s20807_s12, %s15554_s19 }
  0x1d   : > { %15984 = vmatpush3.bf16.msra.mxu0 %v16197_v1  ;;  %v16204_v9 = vld [vmem:[%s16615_s29 + $0x30] sm:$0xff]   ;;  %v16205_v10 = vld [vmem:[%s16615_s29 + $0x38] sm:$0xff]   ;;  %v16206_v11 = vld [vmem:[%s16615_s29 + $0x40] sm:$0xff]   ;;  %483 = vst.msk [vmem:[#allocation3 + $0x198] sm:$0xff] %vm433_vm2, %v16481_v13 }
  0x1e   : > { %v16207_v12 = vld [vmem:[%s16615_s29 + $0x48] sm:$0xff]   ;;  %484 = vst.msk [vmem:[#allocation3 + $0x1a0] sm:$0xff] %vm433_vm2, %v16481_v13  ;;  %v16208_v16 = vld [vmem:[%s16615_s29 + $0x50] sm:$0xff]   ;;  %v16209_v19 = vld [vmem:[%s16615_s29 + $0x58] sm:$0xff]  }
  0x1f   : > { %437 = vst.msk [vmem:[#allocation2 + $0x10] sm:$0x3] %vm436_vm3, %v16481_v13  ;;  %441 = vst.msk [vmem:[#allocation2 + $0x1a8] sm:$0x3] %vm436_vm3, %v16481_v13  ;;  %v16210_v24 = vld [vmem:[%s16615_s29 + $0x60] sm:$0xff]   ;;  %v16211_v25 = vld [vmem:[%s16615_s29 + $0x68] sm:$0xff]  }
  0x20   : > { %15986 = vmatmul.mubr.msk.bf16.vlgmr.msra.gmra.mxu0 %vm653_vm1, %v16199_v4  ;;  %481 = vst.msk [vmem:[#allocation3 + $0x10] sm:$0x3] %vm436_vm3, %v16481_v13  ;;  %485 = vst.msk [vmem:[#allocation3 + $0x1a8] sm:$0x3] %vm436_vm3, %v16481_v13  ;;  %v1189_v14 = vld [vmem:[#allocation2 + $0x1] sm:$0xff]  ;;  %v16212_v26 = vld [vmem:[%s16615_s29 + $0x70] sm:$0xff]  }
  0x21   : > { %15989 = vmatprep.mubr.msk.bf16.mxu0 %vm653_vm1, %v16200_v5  ;;  %v14434_v15 = vpack.c.bf16 %v1189_v14, %v1189_v14  ;;  %461 = vst.msk [vmem:[#allocation2 + $0x11] sm:$0x1] %vm442_vm4, %v16481_v13  ;;  %443 = vst.msk [vmem:[#allocation2] sm:$0x1] %vm442_vm4, %v16481_v13  ;;  %v1446_v20 = vld [vmem:[#allocation2 + $0x2] sm:$0xff]  ;;  %v16213_v27 = vld [vmem:[%s16615_s29 + $0x78] sm:$0xff]  }
  0x22   : > { %444 = vst.msk [vmem:[#allocation2 + $0x18] sm:$0x1] %vm442_vm4, %v16481_v13  ;;  %445 = vst.msk [vmem:[#allocation2 + $0x30] sm:$0x1] %vm442_vm4, %v16481_v13  ;;  %v14466_v21 = vpack.c.bf16 %v1446_v20, %v1446_v20  ;;  %v997_v31 = vld [vmem:[#allocation2 + $0x8] sm:$0xff] }
  0x23   : > { %1317 = vrot.lane.b32.xlu0 %v14434_v15, %s20808_s15  ;;  %446 = vst.msk [vmem:[#allocation2 + $0x48] sm:$0x1] %vm442_vm4, %v16481_v13  ;;  %447 = vst.msk [vmem:[#allocation2 + $0x60] sm:$0x1] %vm442_vm4, %v16481_v13  ;;  %v14403_v32 = vpack.c.bf16 %v997_v31, %v997_v31 }
  0x24   : > { %448 = vst.msk [vmem:[#allocation2 + $0x78] sm:$0x1] %vm442_vm4, %v16481_v13  ;;  %449 = vst.msk [vmem:[#allocation2 + $0x90] sm:$0x1] %vm442_vm4, %v16481_v13 }
  0x25   : > { %450 = vst.msk [vmem:[#allocation2 + $0xa8] sm:$0x1] %vm442_vm4, %v16481_v13  ;;  %451 = vst.msk [vmem:[#allocation2 + $0xc0] sm:$0x1] %vm442_vm4, %v16481_v13 }
  0x26   : > { %452 = vst.msk [vmem:[#allocation2 + $0xd8] sm:$0x1] %vm442_vm4, %v16481_v13  ;;  %453 = vst.msk [vmem:[#allocation2 + $0xf0] sm:$0x1] %vm442_vm4, %v16481_v13  ;;  %v1190_v17 = vld [vmem:[#allocation2 + $0x9] sm:$0xff] }
  0x27   : > { %454 = vst.msk [vmem:[#allocation2 + $0x108] sm:$0x1] %vm442_vm4, %v16481_v13  ;;  %455 = vst.msk [vmem:[#allocation2 + $0x120] sm:$0x1] %vm442_vm4, %v16481_v13  ;;  %v14435_v18 = vpack.c.bf16 %v1190_v17, %v1190_v17 }
  0x28   : > { %15990 = vmatmul.mubr.msk.bf16.gmra.mxu0 %vm653_vm1, %v16201_v6  ;;  %456 = vst.msk [vmem:[#allocation2 + $0x138] sm:$0x1] %vm442_vm4, %v16481_v13  ;;  %457 = vst.msk [vmem:[#allocation2 + $0x150] sm:$0x1] %vm442_vm4, %v16481_v13  ;;  %v1447_v22 = vld [vmem:[#allocation2 + $0xa] sm:$0xff]  ;;  %v996_v28 = vld [vmem:[#allocation2] sm:$0xff] }
  0x29   : > { %15993 = vmatprep.mubr.msk.bf16.mxu0 %vm653_vm1, %v16202_v7  ;;  %458 = vst.msk [vmem:[#allocation2 + $0x168] sm:$0x1] %vm442_vm4, %v16481_v13  ;;  %459 = vst.msk [vmem:[#allocation2 + $0x180] sm:$0x1] %vm442_vm4, %v16481_v13  ;;  %1319 = vrot.lane.b32.xlu0 %v14435_v18, %s20808_s15  ;;  %v14467_v23 = vpack.c.bf16 %v1447_v22, %v1447_v22  ;;  %v14402_v29 = vpack.c.bf16 %v996_v28, %v996_v28 }
  0x2a   : > { %460 = vst.msk [vmem:[#allocation2 + $0x198] sm:$0x1] %vm442_vm4, %v16481_v13  ;;  %462 = vst.msk [vmem:[#allocation2 + $0x29] sm:$0x1] %vm442_vm4, %v16481_v13 }
  0x2b   : > { %463 = vst.msk [vmem:[#allocation2 + $0x41] sm:$0x1] %vm442_vm4, %v16481_v13  ;;  %464 = vst.msk [vmem:[#allocation2 + $0x59] sm:$0x1] %vm442_vm4, %v16481_v13  ;;  %1576 = vrot.lane.b32.xlu1 %v14467_v23, %s16483_s16 }
  0x2c   : > { %465 = vst.msk [vmem:[#allocation2 + $0x71] sm:$0x1] %vm442_vm4, %v16481_v13  ;;  %466 = vst.msk [vmem:[#allocation2 + $0x89] sm:$0x1] %vm442_vm4, %v16481_v13 }
  0x2d   : > { %467 = vst.msk [vmem:[#allocation2 + $0xa1] sm:$0x1] %vm442_vm4, %v16481_v13  ;;  %468 = vst.msk [vmem:[#allocation2 + $0xb9] sm:$0x1] %vm442_vm4, %v16481_v13  ;;  %1574 = vrot.lane.b32.xlu0 %v14466_v21, %s16483_s16 }
  0x2e   : > { %469 = vst.msk [vmem:[#allocation2 + $0xd1] sm:$0x1] %vm442_vm4, %v16481_v13  ;;  %470 = vst.msk [vmem:[#allocation2 + $0xe9] sm:$0x1] %vm442_vm4, %v16481_v13 }
  0x2f   : > { %471 = vst.msk [vmem:[#allocation2 + $0x101] sm:$0x1] %vm442_vm4, %v16481_v13  ;;  %472 = vst.msk [vmem:[#allocation2 + $0x119] sm:$0x1] %vm442_vm4, %v16481_v13 }
  0x30   : > { %15994 = vmatmul.mubr.msk.bf16.gmra.mxu0 %vm653_vm1, %v16203_v8  ;;  %473 = vst.msk [vmem:[#allocation2 + $0x131] sm:$0x1] %vm442_vm4, %v16481_v13  ;;  %474 = vst.msk [vmem:[#allocation2 + $0x149] sm:$0x1] %vm442_vm4, %v16481_v13 }
  0x31   : > { %15997 = vmatprep.mubr.msk.bf16.mxu0 %vm653_vm1, %v16204_v9  ;;  %475 = vst.msk [vmem:[#allocation2 + $0x161] sm:$0x1] %vm442_vm4, %v16481_v13  ;;  %476 = vst.msk [vmem:[#allocation2 + $0x179] sm:$0x1] %vm442_vm4, %v16481_v13 }
  0x32   : > { %477 = vst.msk [vmem:[#allocation2 + $0x191] sm:$0x1] %vm442_vm4, %v16481_v13  ;;  %478 = vst.msk [vmem:[#allocation2 + $0x1a9] sm:$0x1] %vm442_vm4, %v16481_v13 }
  0x33   : > { %486 = vst.msk [vmem:[#allocation3] sm:$0x1] %vm442_vm4, %v16481_v13  ;;  %487 = vst.msk [vmem:[#allocation3 + $0x18] sm:$0x1] %vm442_vm4, %v16481_v13 }
  0x34   : > { %488 = vst.msk [vmem:[#allocation3 + $0x30] sm:$0x1] %vm442_vm4, %v16481_v13  ;;  %489 = vst.msk [vmem:[#allocation3 + $0x48] sm:$0x1] %vm442_vm4, %v16481_v13 }
  0x35   : > { %490 = vst.msk [vmem:[#allocation3 + $0x60] sm:$0x1] %vm442_vm4, %v16481_v13  ;;  %491 = vst.msk [vmem:[#allocation3 + $0x78] sm:$0x1] %vm442_vm4, %v16481_v13 }
  0x36   : > { %492 = vst.msk [vmem:[#allocation3 + $0x90] sm:$0x1] %vm442_vm4, %v16481_v13  ;;  %493 = vst.msk [vmem:[#allocation3 + $0xa8] sm:$0x1] %vm442_vm4, %v16481_v13 }
  0x37   : > { %494 = vst.msk [vmem:[#allocation3 + $0xc0] sm:$0x1] %vm442_vm4, %v16481_v13  ;;  %495 = vst.msk [vmem:[#allocation3 + $0xd8] sm:$0x1] %vm442_vm4, %v16481_v13 }
  0x38   : > { %15998 = vmatmul.mubr.msk.bf16.gmra.mxu0 %vm653_vm1, %v16205_v10  ;;  %496 = vst.msk [vmem:[#allocation3 + $0xf0] sm:$0x1] %vm442_vm4, %v16481_v13  ;;  %497 = vst.msk [vmem:[#allocation3 + $0x108] sm:$0x1] %vm442_vm4, %v16481_v13 }
  0x39   : > { %16001 = vmatprep.mubr.msk.bf16.mxu0 %vm653_vm1, %v16206_v11  ;;  %498 = vst.msk [vmem:[#allocation3 + $0x120] sm:$0x1] %vm442_vm4, %v16481_v13  ;;  %499 = vst.msk [vmem:[#allocation3 + $0x138] sm:$0x1] %vm442_vm4, %v16481_v13 }
  0x3a   : > { %500 = vst.msk [vmem:[#allocation3 + $0x150] sm:$0x1] %vm442_vm4, %v16481_v13  ;;  %501 = vst.msk [vmem:[#allocation3 + $0x168] sm:$0x1] %vm442_vm4, %v16481_v13 }
  0x3b   : > { %502 = vst.msk [vmem:[#allocation3 + $0x180] sm:$0x1] %vm442_vm4, %v16481_v13  ;;  %503 = vst.msk [vmem:[#allocation3 + $0x198] sm:$0x1] %vm442_vm4, %v16481_v13 }
  0x3c   : > { %504 = vst.msk [vmem:[#allocation3 + $0x11] sm:$0x1] %vm442_vm4, %v16481_v13  ;;  %505 = vst.msk [vmem:[#allocation3 + $0x29] sm:$0x1] %vm442_vm4, %v16481_v13 }
  0x3d   : > { %506 = vst.msk [vmem:[#allocation3 + $0x41] sm:$0x1] %vm442_vm4, %v16481_v13  ;;  %507 = vst.msk [vmem:[#allocation3 + $0x59] sm:$0x1] %vm442_vm4, %v16481_v13 }
  0x3e   : > { %508 = vst.msk [vmem:[#allocation3 + $0x71] sm:$0x1] %vm442_vm4, %v16481_v13  ;;  %509 = vst.msk [vmem:[#allocation3 + $0x89] sm:$0x1] %vm442_vm4, %v16481_v13 }
  0x3f   : > { %510 = vst.msk [vmem:[#allocation3 + $0xa1] sm:$0x1] %vm442_vm4, %v16481_v13  ;;  %511 = vst.msk [vmem:[#allocation3 + $0xb9] sm:$0x1] %vm442_vm4, %v16481_v13 }
  0x40   : > { %16002 = vmatmul.mubr.msk.bf16.gmra.mxu0 %vm653_vm1, %v16207_v12  ;;  %512 = vst.msk [vmem:[#allocation3 + $0xd1] sm:$0x1] %vm442_vm4, %v16481_v13  ;;  %513 = vst.msk [vmem:[#allocation3 + $0xe9] sm:$0x1] %vm442_vm4, %v16481_v13 }
  0x41   : > { %514 = vst.msk [vmem:[#allocation3 + $0x101] sm:$0x1] %vm442_vm4, %v16481_v13  ;;  %515 = vst.msk [vmem:[#allocation3 + $0x119] sm:$0x1] %vm442_vm4, %v16481_v13  ;;  %16005 = vmatprep.mubr.msk.bf16.mxu0 %vm653_vm1, %v16208_v16 }
  0x42   : > { %516 = vst.msk [vmem:[#allocation3 + $0x131] sm:$0x1] %vm442_vm4, %v16481_v13  ;;  %517 = vst.msk [vmem:[#allocation3 + $0x149] sm:$0x1] %vm442_vm4, %v16481_v13 }
  0x43   : > { %518 = vst.msk [vmem:[#allocation3 + $0x161] sm:$0x1] %vm442_vm4, %v16481_v13  ;;  %519 = vst.msk [vmem:[#allocation3 + $0x179] sm:$0x1] %vm442_vm4, %v16481_v13 }
  0x44   : > { %520 = vst.msk [vmem:[#allocation3 + $0x191] sm:$0x1] %vm442_vm4, %v16481_v13  ;;  %521 = vst.msk [vmem:[#allocation3 + $0x1a9] sm:$0x1] %vm442_vm4, %v16481_v13 }
  0x45   : > { %1157 = vst.msk [vmem:[#allocation4] sm:$0xf] %vm1156_vm6, %v14402_v29  ;;  %1158 = vst.msk [vmem:[#allocation4 + $0xc] sm:$0xf] %vm1156_vm6, %v14403_v32 }
  0x48   : > { %16006 = vmatmul.mubr.msk.bf16.gmra.mxu0 %vm653_vm1, %v16209_v19 }
  0x49   : > { %16009 = vmatprep.mubr.msk.bf16.mxu0 %vm653_vm1, %v16210_v24 }
  0x50   : > { %16010 = vmatmul.mubr.msk.bf16.gmra.mxu0 %vm653_vm1, %v16211_v25 }
  0x51   : > { %16013 = vmatprep.mubr.msk.bf16.mxu0 %vm653_vm1, %v16212_v26 }
  0x58   : > { %16014 = vmatmul.mubr.msk.bf16.gmra.mxu0 %vm653_vm1, %v16213_v27 }
  0x95   : > { %v1318_v30 = vpop.permute.xlu0 %1317 }
  0x96   : > { %1414 = vst.msk [vmem:[#allocation4] sm:$0xf] %vm1413_vm5, %v1318_v30 }
  0x9b   : > { %v1320_v33 = vpop.permute.xlu0 %1319 }
  0x9c   : > { %1415 = vst.msk [vmem:[#allocation4 + $0xc] sm:$0xf] %vm1413_vm5, %v1320_v33 }
  0x9d   : > { %v1577_v37 = vpop.permute.xlu1 %1576 }
  0x9e   : > { %1672 = vst.msk [vmem:[#allocation4 + $0xc] sm:$0xf] %vm1670_vm7, %v1577_v37 }
  0x9f   : > { %v1575_v35 = vpop.permute.xlu0 %1574 }
  0xa0   : > { %1671 = vst.msk [vmem:[#allocation4] sm:$0xf] %vm1670_vm7, %v1575_v35 }
  0xe0   : > { %v15987_v36 = vpop.f32.mrf.mxu0 }
  0xe1   : > { %v749_v38 = vadd.f32 %v15987_v36, %v16824_v34 }
  0xe2   : > { %v740_v39 = vpop.f32.mrf.mxu0 }
  0xe3   : > { %vm869_vm8 = vcmp.ge.f32.partialorder %v749_v38, 0.0  ;;  %v901_v40 = vmul.f32 0.01, %v749_v38  ;;  %v741_v41 = vadd.f32 %v16824_v34, %v740_v39 }
  0xe4   : > { %v15988_v42 = vpop.f32.mrf.mxu0 }
  0xe5   : > { %v933_v43 = vsel %vm869_vm8, %v749_v38, %v901_v40  ;;  %vm867_vm9 = vcmp.ge.f32.partialorder %v741_v41, 0.0  ;;  %v899_v44 = vmul.f32 0.01, %v741_v41  ;;  %v752_v45 = vadd.f32 %v15988_v42, %v16824_v34 }
  0xe6   : > { %966 = vst.msk [vmem:[#allocation2 + $0x31] sm:$0xff] %vm433_vm2, %v933_v43  ;;  %v743_v46 = vpop.f32.mrf.mxu0 }
  0xe7   : > { %v931_v47 = vsel %vm867_vm9, %v741_v41, %v899_v44  ;;  %vm870_vm10 = vcmp.ge.f32.partialorder %v752_v45, 0.0  ;;  %v902_v48 = vmul.f32 0.01, %v752_v45  ;;  %v744_v49 = vadd.f32 %v16824_v34, %v743_v46 }
  0xe8   : > { %964 = vst.msk [vmem:[#allocation2 + $0x19] sm:$0xff] %vm433_vm2, %v931_v47  ;;  %v15991_v50 = vpop.f32.mrf.mxu0 }
  0xe9   : > { %v934_v51 = vsel %vm870_vm10, %v752_v45, %v902_v48  ;;  %vm868_vm11 = vcmp.ge.f32.partialorder %v744_v49, 0.0  ;;  %v900_v52 = vmul.f32 0.01, %v744_v49  ;;  %v765_v53 = vadd.f32 %v15991_v50, %v16824_v34 }
  0xea   : > { %967 = vst.msk [vmem:[#allocation2 + $0x39] sm:$0xff] %vm433_vm2, %v934_v51  ;;  %v756_v54 = vpop.f32.mrf.mxu0 }
  0xeb   : > { %v932_v55 = vsel %vm868_vm11, %v744_v49, %v900_v52  ;;  %vm873_vm12 = vcmp.ge.f32.partialorder %v765_v53, 0.0  ;;  %v905_v56 = vmul.f32 0.01, %v765_v53  ;;  %v757_v57 = vadd.f32 %v16824_v34, %v756_v54  ;;  %v16214_v49 = vld [vmem:[%s20799_s4 + $0x78] sm:$0xff]  }
  0xec   : > { %965 = vst.msk [vmem:[#allocation2 + $0x21] sm:$0xff] %vm433_vm2, %v932_v55  ;;  %v15992_v58 = vpop.f32.mrf.mxu0  ;;  %15573 = vmatprep.subr.bf16.mxu0 %v16214_v49  ;;  %16125 = vmatprep.subr.bf16.mxu1 %v16214_v49 }
  0xed   : > { %v1193_v59 = vld [vmem:[#allocation2 + $0x31] sm:$0xff]  ;;  %v937_v61 = vsel %vm873_vm12, %v765_v53, %v905_v56  ;;  %vm871_vm13 = vcmp.ge.f32.partialorder %v757_v57, 0.0  ;;  %v903_v62 = vmul.f32 0.01, %v757_v57  ;;  %v768_v63 = vadd.f32 %v15992_v58, %v16824_v34 }
  0xee   : > { %v1705_v60 = vld [vmem:[#allocation2 + $0x30] sm:$0xff]  ;;  %v16839_v0 = vpack.c.bf16 %v1193_v59, %v1193_v59  ;;  %970 = vst.msk [vmem:[#allocation2 + $0x61] sm:$0xff] %vm433_vm2, %v937_v61  ;;  %v759_v2 = vpop.f32.mrf.mxu0 }
  0xef   : > { %v16841_v1 = vpack.c.bf16 %v1705_v60, %v1705_v60  ;;  %v1191_v3 = vld [vmem:[#allocation2 + $0x19] sm:$0xff]  ;;  %v935_v5 = vsel %vm871_vm13, %v757_v57, %v903_v62  ;;  %vm874_vm14 = vcmp.ge.f32.partialorder %v768_v63, 0.0  ;;  %v906_v6 = vmul.f32 0.01, %v768_v63 }
  0xf0   : > { %v1703_v4 = vld [vmem:[#allocation2 + $0x18] sm:$0xff]  ;;  %v760_v7 = vadd.f32 %v16824_v34, %v759_v2  ;;  %1325 = vrot.lane.b32.xlu0 %v16839_v0, %s20808_s15  ;;  %v14436_v8 = vpack.c.bf16 %v1191_v3, %v1191_v3  ;;  %968 = vst.msk [vmem:[#allocation2 + $0x49] sm:$0xff] %vm433_vm2, %v935_v5  ;;  %v15995_v10 = vpop.f32.mrf.mxu0 }
  0xf1   : > { %v16847_v9 = vpack.c.bf16 %v1703_v4, %v1703_v4  ;;  %1161 = vst.msk [vmem:[#allocation4 + $0x30] sm:$0xf] %vm1156_vm6, %v16841_v1  ;;  %2122 = vst.msk [vmem:[#allocation4 + $0x1c] sm:$0xf] %vm1156_vm6, %v16839_v0  ;;  %v2921_v11 = vld [vmem:[#allocation2 + $0x32] sm:$0xff]  ;;  %v938_v13 = vsel %vm874_vm14, %v768_v63, %v906_v6  ;;  %v781_v15 = vadd.f32 %v15995_v10, %v16824_v34  ;;  %v2922_v20 = vld [vmem:[#allocation2 + $0x3a] sm:$0xff] }
  0xf2   : > { %v1194_v12 = vld [vmem:[#allocation2 + $0x39] sm:$0xff]  ;;  %vm872_vm15 = vcmp.ge.f32.partialorder %v760_v7, 0.0  ;;  %v904_v14 = vmul.f32 0.01, %v760_v7  ;;  %v16855_v16 = vpack.c.bf16 %v2921_v11, %v2921_v11  ;;  %1321 = vrot.lane.b32.xlu1 %v14436_v8, %s20808_s15  ;;  %971 = vst.msk [vmem:[#allocation2 + $0x69] sm:$0xff] %vm433_vm2, %v938_v13  ;;  %v772_v19 = vpop.f32.mrf.mxu0  ;;  %v14659_v35 = vpack.c.bf16 %v2922_v20, %v2922_v20  ;;  %v16216_v13 = vld [vmem:[%s20799_s4 + $0x70] sm:$0xff]  }
  0xf3   : > { %v16858_v17 = vpack.c.bf16 %v1194_v12, %v1194_v12  ;;  %v1706_v18 = vld [vmem:[#allocation2 + $0x38] sm:$0xff]  ;;  %1159 = vst.msk [vmem:[#allocation4 + $0x18] sm:$0xf] %vm1156_vm6, %v16847_v9  ;;  %2120 = vst.msk [vmem:[#allocation4 + $0x4] sm:$0xf] %vm1156_vm6, %v14436_v8  ;;  %v1192_v23 = vld [vmem:[#allocation2 + $0x21] sm:$0xff]  ;;  %v773_v27 = vadd.f32 %v16824_v34, %v772_v19 }
  0xf4   : > { %v16864_v21 = vpack.c.bf16 %v1706_v18, %v1706_v18  ;;  %v936_v22 = vsel %vm872_vm15, %v760_v7, %v904_v14  ;;  %vm877_vm0 = vcmp.ge.f32.partialorder %v781_v15, 0.0  ;;  %v909_v24 = vmul.f32 0.01, %v781_v15  ;;  %3081 = vst.msk [vmem:[#allocation4 + $0x8] sm:$0xf] %vm1156_vm6, %v16855_v16  ;;  %1835 = vrot.lane.b32.xlu0 %v16841_v1, %s20810_s20  ;;  %v1704_v26 = vld [vmem:[#allocation2 + $0x20] sm:$0xff]  ;;  %v15996_v28 = vpop.f32.mrf.mxu0 }
  0xf5   : > { %969 = vst.msk [vmem:[#allocation2 + $0x51] sm:$0xff] %vm433_vm2, %v936_v22  ;;  %v16871_v25 = vpack.c.bf16 %v1192_v23, %v1192_v23  ;;  %v1451_v29 = vld [vmem:[#allocation2 + $0x3a] sm:$0xff]  ;;  %v16876_v30 = vpack.c.bf16 %v1704_v26, %v1704_v26  ;;  %v784_v33 = vadd.f32 %v15996_v28, %v16824_v34  ;;  %vm875_vm1 = vcmp.ge.f32.partialorder %v773_v27, 0.0  ;;  %v16217_v19 = vld [vmem:[%s20799_s4 + $0x30] sm:$0xff]  }
  0xf6   : > { %2123 = vst.msk [vmem:[#allocation4 + $0x28] sm:$0xf] %vm1156_vm6, %v16858_v17  ;;  %v1709_v31 = vld [vmem:[#allocation2 + $0x60] sm:$0xff]  ;;  %v941_v32 = vsel %vm877_vm0, %v781_v15, %v909_v24  ;;  %1162 = vst.msk [vmem:[#allocation4 + $0x3c] sm:$0xf] %vm1156_vm6, %v16864_v21  ;;  %1327 = vrot.lane.b32.xlu1 %v16858_v17, %s20808_s15  ;;  %v775_v39 = vpop.f32.mrf.mxu0  ;;  %v16894_v45 = vpack.c.bf16 %v1451_v29, %v1451_v29  ;;  %v16215_v60 = vld [vmem:[%s20799_s4 + $0x38] sm:$0xff]  }
  0xf7   : > { %v1966_v36 = vld [vmem:[#allocation2 + $0x61] sm:$0xff]  ;;  %v16883_v37 = vpack.c.bf16 %v1709_v31, %v1709_v31  ;;  %974 = vst.msk [vmem:[#allocation2 + $0x91] sm:$0xff] %vm433_vm2, %v941_v32  ;;  %v907_v38 = vmul.f32 0.01, %v773_v27  ;;  %vm878_vm3 = vcmp.ge.f32.partialorder %v784_v33, 0.0  ;;  %v776_v42 = vadd.f32 %v16824_v34, %v775_v39  ;;  %v1964_v44 = vld [vmem:[#allocation2 + $0x49] sm:$0xff]  ;;  %15574 = vmatpush3.bf16.msra.mxu0 %v16215_v60  ;;  %16133 = vmatpush3.bf16.msra.mxu1 %v16215_v60 }
  0xf8   : > { %2121 = vst.msk [vmem:[#allocation4 + $0x10] sm:$0xf] %vm1156_vm6, %v16871_v25  ;;  %v1707_v40 = vld [vmem:[#allocation2 + $0x48] sm:$0xff]  ;;  %v910_v41 = vmul.f32 0.01, %v784_v33  ;;  %v14536_v43 = vpack.c.bf16 %v1966_v36, %v1966_v36  ;;  %2537 = vrot.lane.b32.xlu0 %v16841_v1, %s16483_s16  ;;  %v15999_v48 = vpop.f32.mrf.mxu0  ;;  %v14534_v50 = vpack.c.bf16 %v1964_v44, %v1964_v44  ;;  %15575 = vmatprep.subr.bf16.mxu0 %v16216_v13  ;;  %v16220_v44 = vld [vmem:[%s20799_s4 + $0x60] sm:$0xff]  }
  0xf9   : > { %1160 = vst.msk [vmem:[#allocation4 + $0x24] sm:$0xf] %vm1156_vm6, %v16876_v30  ;;  %3082 = vst.msk [vmem:[#allocation4 + $0x14] sm:$0xf] %vm1156_vm6, %v14659_v35  ;;  %v16896_v46 = vpack.c.bf16 %v1707_v40, %v1707_v40  ;;  %v939_v47 = vsel %vm875_vm1, %v773_v27, %v907_v38  ;;  %v2925_v51 = vld [vmem:[#allocation2 + $0x62] sm:$0xff]  ;;  %v1455_v52 = vld [vmem:[#allocation2 + $0x6a] sm:$0xff]  ;;  %v797_v55 = vadd.f32 %v15999_v48, %v16824_v34  ;;  %16126 = vmatprep.subr.bf16.mxu1 %v16216_v13 }
  0xfa   : > { %1165 = vst.msk [vmem:[#allocation4 + $0x60] sm:$0xf] %vm1156_vm6, %v16883_v37  ;;  %v942_v53 = vsel %vm878_vm3, %v784_v33, %v910_v41  ;;  %vm876_vm4 = vcmp.ge.f32.partialorder %v776_v42, 0.0  ;;  %v908_v54 = vmul.f32 0.01, %v776_v42  ;;  %1584 = vrot.lane.b32.xlu1 %v16894_v45, %s16483_s16  ;;  %v16909_v56 = vpack.c.bf16 %v2925_v51, %v2925_v51  ;;  %v1710_v58 = vld [vmem:[#allocation2 + $0x68] sm:$0xff]  ;;  %v788_v59 = vpop.f32.mrf.mxu0 }
  0xfb   : > { %972 = vst.msk [vmem:[#allocation2 + $0x79] sm:$0xff] %vm433_vm2, %v939_v47  ;;  %v16911_v57 = vpack.c.bf16 %v1455_v52, %v1455_v52  ;;  %975 = vst.msk [vmem:[#allocation2 + $0x99] sm:$0xff] %vm433_vm2, %v942_v53  ;;  %v1967_v61 = vld [vmem:[#allocation2 + $0x69] sm:$0xff]  ;;  %v16920_v63 = vpack.c.bf16 %v1710_v58, %v1710_v58  ;;  %vm881_vm8 = vcmp.ge.f32.partialorder %v797_v55, 0.0  ;;  %v913_v3 = vmul.f32 0.01, %v797_v55  ;;  %15576 = vmatpush3.bf16.msra.mxu0 %v16217_v19 }
  0xfc   : > { %2126 = vst.msk [vmem:[#allocation4 + $0x4c] sm:$0xf] %vm1156_vm6, %v14536_v43  ;;  %1163 = vst.msk [vmem:[#allocation4 + $0x48] sm:$0xf] %vm1156_vm6, %v16896_v46  ;;  %v2923_v62 = vld [vmem:[#allocation2 + $0x4a] sm:$0xff]  ;;  %v940_v1 = vsel %vm876_vm4, %v776_v42, %v908_v54  ;;  %v1453_v2 = vld [vmem:[#allocation2 + $0x52] sm:$0xff]  ;;  %2793 = vrot.lane.b32.xlu0 %v16839_v0, %s20810_s20  ;;  %v789_v7 = vadd.f32 %v16824_v34, %v788_v59  ;;  %v16000_v8 = vpop.f32.mrf.mxu0  ;;  %v14537_v14 = vpack.c.bf16 %v1967_v61, %v1967_v61 }
  0xfd   : > { %2124 = vst.msk [vmem:[#allocation4 + $0x34] sm:$0xf] %vm1156_vm6, %v14534_v50  ;;  %3085 = vst.msk [vmem:[#allocation4 + $0x38] sm:$0xf] %vm1156_vm6, %v16909_v56  ;;  %v16927_v4 = vpack.c.bf16 %v2923_v62, %v2923_v62  ;;  %v16930_v5 = vpack.c.bf16 %v1453_v2, %v1453_v2  ;;  %v1708_v6 = vld [vmem:[#allocation2 + $0x50] sm:$0xff]  ;;  %v945_v0 = vsel %vm881_vm8, %v797_v55, %v913_v3  ;;  %v16218_v36 = vld [vmem:[%s20799_s4 + $0x68] sm:$0xff]   ;;  %16134 = vmatpush3.bf16.msra.mxu1 %v16217_v19 }
  0xfe   : > { %973 = vst.msk [vmem:[#allocation2 + $0x81] sm:$0xff] %vm433_vm2, %v940_v1  ;;  %v1965_v10 = vld [vmem:[#allocation2 + $0x51] sm:$0xff]  ;;  %v16935_v11 = vpack.c.bf16 %v1708_v6, %v1708_v6  ;;  %v800_v12 = vadd.f32 %v16000_v8, %v16824_v34  ;;  %1837 = vrot.lane.b32.xlu1 %v16864_v21, %s20810_s20  ;;  %978 = vst.msk [vmem:[#allocation2 + $0xc1] sm:$0xff] %vm433_vm2, %v945_v0  ;;  %vm879_vm9 = vcmp.ge.f32.partialorder %v789_v7, 0.0  ;;  %v911_v15 = vmul.f32 0.01, %v789_v7  ;;  %v791_v18 = vpop.f32.mrf.mxu0 }
  0xff   : > { %3086 = vst.msk [vmem:[#allocation4 + $0x44] sm:$0xf] %vm1156_vm6, %v16911_v57  ;;  %1166 = vst.msk [vmem:[#allocation4 + $0x6c] sm:$0xf] %vm1156_vm6, %v16920_v63  ;;  %v792_v22 = vadd.f32 %v16824_v34, %v791_v18  ;;  %v1008_v23 = vld [vmem:[#allocation2 + $0x90] sm:$0xff]  ;;  %v14535_v24 = vpack.c.bf16 %v1965_v10, %v1965_v10  ;;  %v16219_v38 = vld [vmem:[%s20799_s4 + $0x28] sm:$0xff]   ;;  %15577 = vmatprep.subr.bf16.mxu0 %v16218_v36  ;;  %16127 = vmatprep.subr.bf16.mxu1 %v16218_v36 }
 0x100   : > { %3083 = vst.msk [vmem:[#allocation4 + $0x20] sm:$0xf] %vm1156_vm6, %v16927_v4  ;;  %3084 = vst.msk [vmem:[#allocation4 + $0x2c] sm:$0xf] %vm1156_vm6, %v16930_v5  ;;  %vm882_vm10 = vcmp.ge.f32.partialorder %v800_v12, 0.0  ;;  %1831 = vrot.lane.b32.xlu0 %v16847_v9, %s20810_s20  ;;  %v943_v26 = vsel %vm879_vm9, %v789_v7, %v911_v15  ;;  %v14414_v27 = vpack.c.bf16 %v1008_v23, %v1008_v23  ;;  %15578 = vmatpush3.bf16.msra.mxu0 %v16219_v38  ;;  %v16221_v47 = vld [vmem:[%s20799_s4 + $0x20] sm:$0xff]   ;;  %v16003_v36 = vpop.f32.mrf.mxu0 }
 0x101   : > { %v914_v20 = vmul.f32 0.01, %v800_v12  ;;  %2127 = vst.msk [vmem:[#allocation4 + $0x58] sm:$0xf] %vm1156_vm6, %v14537_v14  ;;  %1164 = vst.msk [vmem:[#allocation4 + $0x54] sm:$0xf] %vm1156_vm6, %v16935_v11  ;;  %15579 = vmatprep.subr.bf16.mxu0 %v16220_v44  ;;  %16135 = vmatpush3.bf16.msra.mxu1 %v16219_v38 }
 0x102   : > { %v1006_v28 = vld [vmem:[#allocation2 + $0x78] sm:$0xff]  ;;  %976 = vst.msk [vmem:[#allocation2 + $0xa9] sm:$0xff] %vm433_vm2, %v943_v26  ;;  %vm880_vm11 = vcmp.ge.f32.partialorder %v792_v22, 0.0  ;;  %2539 = vrot.lane.b32.xlu1 %v16864_v21, %s16483_s16  ;;  %v912_v35 = vmul.f32 0.01, %v792_v22  ;;  %16128 = vmatprep.subr.bf16.mxu1 %v16220_v44  ;;  %v1449_v60 = vld [vmem:[#allocation2 + $0x22] sm:$0xff] }
 0x103   : > { %v2929_v29 = vld [vmem:[#allocation2 + $0x92] sm:$0xff]  ;;  %v1459_v31 = vld [vmem:[#allocation2 + $0x9a] sm:$0xff]  ;;  %v946_v32 = vsel %vm882_vm10, %v800_v12, %v914_v20  ;;  %2125 = vst.msk [vmem:[#allocation4 + $0x40] sm:$0xf] %vm1156_vm6, %v14535_v24  ;;  %1169 = vst.msk [vmem:[#allocation4 + $0x90] sm:$0xf] %vm1156_vm6, %v14414_v27  ;;  %v14412_v40 = vpack.c.bf16 %v1006_v28, %v1006_v28  ;;  %v17035_v7 = vpack.c.bf16 %v1449_v60, %v1449_v60 }
 0x104   : > { %v16965_v33 = vpack.c.bf16 %v2929_v29, %v2929_v29  ;;  %v16967_v9 = vpack.c.bf16 %v1459_v31, %v1459_v31  ;;  %979 = vst.msk [vmem:[#allocation2 + $0xc9] sm:$0xff] %vm433_vm2, %v946_v32  ;;  %1582 = vrot.lane.b32.xlu0 %v16855_v16, %s16483_s16  ;;  %v944_v42 = vsel %vm880_vm11, %v792_v22, %v912_v35  ;;  %v1448_v48 = vld [vmem:[#allocation2 + $0x1a] sm:$0xff]  ;;  %v16224_v2 = vld [vmem:[%s20799_s4 + $0x50] sm:$0xff]   ;;  %v16226_v20 = vld [vmem:[%s20799_s4 + $0x48] sm:$0xff]  }
 0x105   : > { %v2927_v39 = vld [vmem:[#allocation2 + $0x7a] sm:$0xff]  ;;  %v1457_v21 = vld [vmem:[#allocation2 + $0x82] sm:$0xff]  ;;  %977 = vst.msk [vmem:[#allocation2 + $0xb1] sm:$0xff] %vm433_vm2, %v944_v42  ;;  %v14468_v54 = vpack.c.bf16 %v1448_v48, %v1448_v48  ;;  %15580 = vmatpush3.bf16.msra.mxu0 %v16221_v47  ;;  %16136 = vmatpush3.bf16.msra.mxu1 %v16221_v47  ;;  %v16225_v6 = vld [vmem:[%s20799_s4 + $0x10] sm:$0xff]   ;;  %v804_v42 = vpop.f32.mrf.mxu0 }
 0x106   : > { %3089 = vst.msk [vmem:[#allocation4 + $0x68] sm:$0xf] %vm1156_vm6, %v16965_v33  ;;  %v16981_v41 = vpack.c.bf16 %v2927_v39, %v2927_v39  ;;  %v16984_v43 = vpack.c.bf16 %v1457_v21, %v1457_v21  ;;  %3090 = vst.msk [vmem:[#allocation4 + $0x74] sm:$0xf] %vm1156_vm6, %v16967_v9  ;;  %2795 = vrot.lane.b32.xlu1 %v16858_v17, %s20810_s20  ;;  %v1009_v49 = vld [vmem:[#allocation2 + $0x98] sm:$0xff]  ;;  %v1007_v10 = vld [vmem:[#allocation2 + $0x80] sm:$0xff] }
 0x107   : > { %1167 = vst.msk [vmem:[#allocation4 + $0x78] sm:$0xf] %vm1156_vm6, %v14412_v40  ;;  %v14415_v17 = vpack.c.bf16 %v1009_v49, %v1009_v49  ;;  %v1971_v50 = vld [vmem:[#allocation2 + $0x99] sm:$0xff]  ;;  %v1970_v0 = vld [vmem:[#allocation2 + $0x91] sm:$0xff]  ;;  %v14413_v12 = vpack.c.bf16 %v1007_v10, %v1007_v10  ;;  %v1969_v18 = vld [vmem:[#allocation2 + $0x81] sm:$0xff]  ;;  %v813_v49 = vadd.f32 %v16003_v36, %v16824_v34 }
 0x108   : > { %3087 = vst.msk [vmem:[#allocation4 + $0x50] sm:$0xf] %vm1156_vm6, %v16981_v41  ;;  %3088 = vst.msk [vmem:[#allocation4 + $0x5c] sm:$0xf] %vm1156_vm6, %v16984_v43  ;;  %2284 = vrot.lane.b32.xlu0 %v16855_v16, %s20808_s15  ;;  %v14541_v53 = vpack.c.bf16 %v1971_v50, %v1971_v50  ;;  %v16222_v59 = vld [vmem:[%s20799_s4 + $0x58] sm:$0xff]   ;;  %v14540_v13 = vpack.c.bf16 %v1970_v0, %v1970_v0  ;;  %v1012_v15 = vld [vmem:[#allocation2 + $0xc0] sm:$0xff]  ;;  %v14539_v23 = vpack.c.bf16 %v1969_v18, %v1969_v18 }
 0x109   : > { %v16223_v16 = vld [vmem:[%s20799_s4 + $0x18] sm:$0xff]   ;;  %1170 = vst.msk [vmem:[#allocation4 + $0x9c] sm:$0xf] %vm1156_vm6, %v14415_v17  ;;  %15581 = vmatprep.subr.bf16.mxu0 %v16222_v59  ;;  %16129 = vmatprep.subr.bf16.mxu1 %v16222_v59  ;;  %v14418_v22 = vpack.c.bf16 %v1012_v15, %v1012_v15  ;;  %v1010_v26 = vld [vmem:[#allocation2 + $0xa8] sm:$0xff]  ;;  %1168 = vst.msk [vmem:[#allocation4 + $0x84] sm:$0xf] %vm1156_vm6, %v14413_v12  ;;  %v805_v17 = vadd.f32 %v16824_v34, %v804_v42 }
 0x10a   : > { %2286 = vrot.lane.b32.xlu1 %v16894_v45, %s20808_s15  ;;  %2131 = vst.msk [vmem:[#allocation4 + $0x88] sm:$0xf] %vm1156_vm6, %v14541_v53  ;;  %v1197_v45 = vld [vmem:[#allocation2 + $0x61] sm:$0xff]  ;;  %15582 = vmatpush3.bf16.msra.mxu0 %v16223_v16  ;;  %2130 = vst.msk [vmem:[#allocation4 + $0x7c] sm:$0xf] %vm1156_vm6, %v14540_v13  ;;  %v14416_v29 = vpack.c.bf16 %v1010_v26, %v1010_v26  ;;  %v1972_v21 = vld [vmem:[#allocation2 + $0xa9] sm:$0xff] }
 0x10b   : > { %v2933_v51 = vld [vmem:[#allocation2 + $0xc2] sm:$0xff]  ;;  %v1463_v52 = vld [vmem:[#allocation2 + $0xca] sm:$0xff]  ;;  %v17037_v8 = vpack.c.bf16 %v1197_v45, %v1197_v45  ;;  %15583 = vmatprep.subr.bf16.mxu0 %v16224_v2  ;;  %16137 = vmatpush3.bf16.msra.mxu1 %v16223_v16  ;;  %1173 = vst.msk [vmem:[#allocation4 + $0xc0] sm:$0xf] %vm1156_vm6, %v14418_v22  ;;  %2129 = vst.msk [vmem:[#allocation4 + $0x70] sm:$0xf] %vm1156_vm6, %v14539_v23  ;;  %v14542_v47 = vpack.c.bf16 %v1972_v21, %v1972_v21 }
 0x10c   : > { %v17006_v55 = vpack.c.bf16 %v2933_v51, %v2933_v51  ;;  %v17008_v58 = vpack.c.bf16 %v1463_v52, %v1463_v52  ;;  %1578 = vrot.lane.b32.xlu0 %v14468_v54, %s16483_s16  ;;  %v2931_v61 = vld [vmem:[#allocation2 + $0xaa] sm:$0xff]  ;;  %v1461_v62 = vld [vmem:[#allocation2 + $0xb2] sm:$0xff]  ;;  %16130 = vmatprep.subr.bf16.mxu1 %v16224_v2  ;;  %v1974_v35 = vld [vmem:[#allocation2 + $0xc1] sm:$0xff]  ;;  %1171 = vst.msk [vmem:[#allocation4 + $0xa8] sm:$0xf] %vm1156_vm6, %v14416_v29  ;;  %v16004_v51 = vpop.f32.mrf.mxu0  ;;  %vm885_vm12 = vcmp.ge.f32.partialorder %v813_v49, 0.0 }
 0x10d   : > { %v17023_v1 = vpack.c.bf16 %v2931_v61, %v2931_v61  ;;  %v17028_v3 = vpack.c.bf16 %v1461_v62, %v1461_v62  ;;  %v1013_v19 = vld [vmem:[#allocation2 + $0xc8] sm:$0xff]  ;;  %v1011_v32 = vld [vmem:[#allocation2 + $0xb0] sm:$0xff]  ;;  %v14544_v39 = vpack.c.bf16 %v1974_v35, %v1974_v35  ;;  %v16228_v44 = vld [vmem:[%s20799_s4 + $0x40] sm:$0xff]   ;;  %2132 = vst.msk [vmem:[#allocation4 + $0x94] sm:$0xf] %vm1156_vm6, %v14542_v47  ;;  %vm883_vm13 = vcmp.ge.f32.partialorder %v805_v17, 0.0 }
 0x10e   : > { %3093 = vst.msk [vmem:[#allocation4 + $0x98] sm:$0xf] %vm1156_vm6, %v17006_v55  ;;  %3094 = vst.msk [vmem:[#allocation4 + $0xa4] sm:$0xf] %vm1156_vm6, %v17008_v58  ;;  %1323 = vrot.lane.b32.xlu1 %v16871_v25, %s20808_s15  ;;  %v1968_v25 = vld [vmem:[#allocation2 + $0x79] sm:$0xff]  ;;  %v14419_v24 = vpack.c.bf16 %v1013_v19, %v1013_v19  ;;  %v1975_v27 = vld [vmem:[#allocation2 + $0xc9] sm:$0xff]  ;;  %15584 = vmatpush3.bf16.msra.mxu0 %v16225_v6  ;;  %v14417_v38 = vpack.c.bf16 %v1011_v32, %v1011_v32  ;;  %v807_v59 = vpop.f32.mrf.mxu0 }
 0x10f   : > { %3091 = vst.msk [vmem:[#allocation4 + $0x80] sm:$0xf] %vm1156_vm6, %v17023_v1  ;;  %3092 = vst.msk [vmem:[#allocation4 + $0x8c] sm:$0xf] %vm1156_vm6, %v17028_v3  ;;  %v14538_v14 = vpack.c.bf16 %v1968_v25, %v1968_v25  ;;  %v16227_v28 = vld [vmem:[%s20799_s4 + $0x8] sm:$0xff]   ;;  %v14545_v31 = vpack.c.bf16 %v1975_v27, %v1975_v27  ;;  %15585 = vmatprep.subr.bf16.mxu0 %v16226_v20  ;;  %16138 = vmatpush3.bf16.msra.mxu1 %v16225_v6  ;;  %v1973_v40 = vld [vmem:[#allocation2 + $0xb1] sm:$0xff] }
 0x110   : > { %2280 = vrot.lane.b32.xlu0 %v14468_v54, %s20808_s15  ;;  %1174 = vst.msk [vmem:[#allocation4 + $0xcc] sm:$0xf] %vm1156_vm6, %v14419_v24  ;;  %16131 = vmatprep.subr.bf16.mxu1 %v16226_v20  ;;  %1172 = vst.msk [vmem:[#allocation4 + $0xb4] sm:$0xf] %vm1156_vm6, %v14417_v38  ;;  %v14543_v48 = vpack.c.bf16 %v1973_v40, %v1973_v40  ;;  %v16229_v50 = vld [vmem:[%s20799_s4] sm:$0xff]   ;;  %v1198_v53 = vld [vmem:[#allocation2 + $0x69] sm:$0xff]  ;;  %v816_v54 = vadd.f32 %v16004_v51, %v16824_v34  ;;  %v16007_v20 = vpop.f32.mrf.mxu0 }
 0x111   : > { %2128 = vst.msk [vmem:[#allocation4 + $0x64] sm:$0xf] %vm1156_vm6, %v14538_v14  ;;  %2135 = vst.msk [vmem:[#allocation4 + $0xb8] sm:$0xf] %vm1156_vm6, %v14545_v31  ;;  %v915_v52 = vmul.f32 0.01, %v805_v17  ;;  %v808_v61 = vadd.f32 %v16824_v34, %v807_v59  ;;  %v14443_v2 = vpack.c.bf16 %v1198_v53, %v1198_v53  ;;  %v829_v24 = vadd.f32 %v16007_v20, %v16824_v34 }
 0x112   : > { %1580 = vrot.lane.b32.xlu1 %v17035_v7, %s16483_s16  ;;  %2134 = vst.msk [vmem:[#allocation4 + $0xac] sm:$0xf] %vm1156_vm6, %v14544_v39  ;;  %15586 = vmatpush3.bf16.msra.mxu0 %v16227_v28  ;;  %2133 = vst.msk [vmem:[#allocation4 + $0xa0] sm:$0xf] %vm1156_vm6, %v14543_v48  ;;  %v17082_v16 = vld [vmem:[%s20799_s4 + $0x88] sm:$0xff]   ;;  %vm886_vm14 = vcmp.ge.f32.partialorder %v816_v54, 0.0  ;;  %v820_v31 = vpop.f32.mrf.mxu0 }
 0x113   : > { %15587 = vmatprep.subr.bf16.mxu0 %v16228_v44  ;;  %16139 = vmatpush3.bf16.msra.mxu1 %v16227_v28  ;;  %v947_v45 = vsel %vm883_vm13, %v805_v17, %v915_v52  ;;  %v918_v62 = vmul.f32 0.01, %v816_v54  ;;  %vm884_vm15 = vcmp.ge.f32.partialorder %v808_v61, 0.0  ;;  %v916_v6 = vmul.f32 0.01, %v808_v61  ;;  %v1195_v0 = vld [vmem:[#allocation2 + $0x49] sm:$0xff] }
 0x114   : > { %1333 = vrot.lane.b32.xlu0 %v17037_v8, %s20808_s15  ;;  %16132 = vmatprep.subr.bf16.mxu1 %v16228_v44  ;;  %980 = vst.msk [vmem:[#allocation2 + $0xd9] sm:$0xff] %vm433_vm2, %v947_v45  ;;  %v14440_v25 = vpack.c.bf16 %v1195_v0, %v1195_v0  ;;  %vm889_vm0 = vcmp.ge.f32.partialorder %v829_v24, 0.0  ;;  %v921_v36 = vmul.f32 0.01, %v829_v24  ;;  %v821_v38 = vadd.f32 %v16824_v34, %v820_v31 }
 0x115   : > { %v948_v10 = vsel %vm884_vm15, %v808_v61, %v916_v6 }
 0x116   : > { %1833 = vrot.lane.b32.xlu1 %v16876_v30, %s20810_s20  ;;  %v917_v30 = vmul.f32 0.01, %v813_v49  ;;  %15588 = vmatpush3.bf16.msra.mxu0 %v16229_v50  ;;  %981 = vst.msk [vmem:[#allocation2 + $0xe1] sm:$0xff] %vm433_vm2, %v948_v10  ;;  %v953_v47 = vsel %vm889_vm0, %v829_v24, %v921_v36  ;;  %vm887_vm1 = vcmp.ge.f32.partialorder %v821_v38, 0.0  ;;  %v919_v48 = vmul.f32 0.01, %v821_v38 }
 0x117   : > { %16017 = vmatprep.subr.bf16.mxu0 %v17082_v16  ;;  %16140 = vmatpush3.bf16.msra.mxu1 %v16229_v50  ;;  %986 = vst.msk [vmem:[#allocation2 + $0x121] sm:$0xff] %vm433_vm2, %v953_v47  ;;  %vm1927_vm0 = vcmask 1044224  }
 0x118   : > { %1843 = vrot.lane.b32.xlu0 %v16883_v37, %s20810_s20  ;;  %v949_v60 = vsel %vm885_vm12, %v813_v49, %v917_v30  ;;  %v1196_v30 = vld [vmem:[#allocation2 + $0x51] sm:$0xff]  ;;  %v951_v52 = vsel %vm887_vm1, %v821_v38, %v919_v48  ;;  %v1202_v38 = vld [vmem:[#allocation2 + $0x99] sm:$0xff] }
 0x119   : > { %982 = vst.msk [vmem:[#allocation2 + $0xf1] sm:$0xff] %vm433_vm2, %v949_v60  ;;  %984 = vst.msk [vmem:[#allocation2 + $0x109] sm:$0xff] %vm433_vm2, %v951_v52  ;;  %v14441_v45 = vpack.c.bf16 %v1196_v30, %v1196_v30 }
 0x11a   : > { %2282 = vrot.lane.b32.xlu1 %v17035_v7, %s20808_s15  ;;  %v950_v7 = vsel %vm886_vm14, %v816_v54, %v918_v62 }
 0x11b   : > { %983 = vst.msk [vmem:[#allocation2 + $0xf9] sm:$0xff] %vm433_vm2, %v950_v7  ;;  %v1719_v22 = vld [vmem:[#allocation2 + $0xd8] sm:$0xff] }
 0x11c   : > { %2545 = vrot.lane.b32.xlu0 %v16883_v37, %s16483_s16  ;;  %v17123_v26 = vpack.c.bf16 %v1719_v22, %v1719_v22  ;;  %v1976_v39 = vld [vmem:[#allocation2 + $0xd9] sm:$0xff]  ;;  %v1201_v7 = vld [vmem:[#allocation2 + $0x91] sm:$0xff] }
 0x11d   : > { %v2935_v15 = vld [vmem:[#allocation2 + $0xda] sm:$0xff]  ;;  %v2936_v18 = vld [vmem:[#allocation2 + $0xe2] sm:$0xff]  ;;  %v14546_v42 = vpack.c.bf16 %v1976_v39, %v1976_v39 }
 0x11e   : > { %1335 = vrot.lane.b32.xlu1 %v14443_v2, %s20808_s15  ;;  %v17106_v19 = vpack.c.bf16 %v2935_v15, %v2935_v15  ;;  %v1720_v28 = vld [vmem:[#allocation2 + $0xe0] sm:$0xff]  ;;  %1175 = vst.msk [vmem:[#allocation4 + $0xd8] sm:$0xf] %vm1156_vm6, %v17123_v26 }
 0x11f   : > { %v17129_v32 = vpack.c.bf16 %v1720_v28, %v1720_v28  ;;  %v1977_v21 = vld [vmem:[#allocation2 + $0xe1] sm:$0xff]  ;;  %2136 = vst.msk [vmem:[#allocation4 + $0xc4] sm:$0xf] %vm1156_vm6, %v14546_v42 }
 0x120   : > { %2801 = vrot.lane.b32.xlu0 %v17037_v8, %s20810_s20  ;;  %v17108_v8 = vpack.c.bf16 %v2936_v18, %v2936_v18  ;;  %3095 = vst.msk [vmem:[#allocation4 + $0xb0] sm:$0xf] %vm1156_vm6, %v17106_v19  ;;  %v2681_v29 = vld [vmem:[#allocation2 + $0xf1] sm:$0xff]  ;;  %v14547_v50 = vpack.c.bf16 %v1977_v21, %v1977_v21  ;;  %v1725_v20 = vld [vmem:[#allocation2 + $0x120] sm:$0xff]  ;;  %v1723_v24 = vld [vmem:[#allocation2 + $0x108] sm:$0xff] }
 0x121   : > { %v17131_v35 = vpack.c.bf16 %v2681_v29, %v2681_v29  ;;  %1176 = vst.msk [vmem:[#allocation4 + $0xe4] sm:$0xf] %vm1156_vm6, %v17129_v32  ;;  %v17193_v29 = vpack.c.bf16 %v1723_v24, %v1723_v24  ;;  %v1980_v47 = vld [vmem:[#allocation2 + $0x109] sm:$0xff] }
 0x122   : > { %1592 = vrot.lane.b32.xlu1 %v16911_v57, %s16483_s16  ;;  %v2937_v37 = vld [vmem:[#allocation2 + $0xf2] sm:$0xff]  ;;  %v2938_v12 = vld [vmem:[#allocation2 + $0xfa] sm:$0xff]  ;;  %3096 = vst.msk [vmem:[#allocation4 + $0xbc] sm:$0xf] %vm1156_vm6, %v17108_v8  ;;  %2137 = vst.msk [vmem:[#allocation4 + $0xd0] sm:$0xf] %vm1156_vm6, %v14547_v50  ;;  %v14550_v52 = vpack.c.bf16 %v1980_v47, %v1980_v47 }
 0x123   : > { %v17102_v13 = vpack.c.bf16 %v2937_v37, %v2937_v37  ;;  %v17104_v14 = vpack.c.bf16 %v2938_v12, %v2938_v12  ;;  %v1722_v23 = vld [vmem:[#allocation2 + $0xf8] sm:$0xff]  ;;  %2138 = vst.msk [vmem:[#allocation4 + $0xdc] sm:$0xf] %vm1156_vm6, %v17131_v35  ;;  %v14446_v37 = vpack.c.bf16 %v1201_v7, %v1201_v7  ;;  %v1713_v12 = vld [vmem:[#allocation2 + $0x90] sm:$0xff]  ;;  %1179 = vst.msk [vmem:[#allocation4 + $0x108] sm:$0xf] %vm1156_vm6, %v17193_v29 }
 0x124   : > { %1329 = vrot.lane.b32.xlu0 %v14440_v25, %s20808_s15  ;;  %v17125_v27 = vpack.c.bf16 %v1722_v23, %v1722_v23  ;;  %v1979_v44 = vld [vmem:[#allocation2 + $0xf9] sm:$0xff]  ;;  %v14508_v15 = vpack.c.bf16 %v1713_v12, %v1713_v12  ;;  %v17190_v23 = vpack.c.bf16 %v1725_v20, %v1725_v20  ;;  %2140 = vst.msk [vmem:[#allocation4 + $0xf4] sm:$0xf] %vm1156_vm6, %v14550_v52 }
 0x125   : > { %3097 = vst.msk [vmem:[#allocation4 + $0xc8] sm:$0xf] %vm1156_vm6, %v17102_v13  ;;  %3098 = vst.msk [vmem:[#allocation4 + $0xd4] sm:$0xf] %vm1156_vm6, %v17104_v14  ;;  %v14549_v51 = vpack.c.bf16 %v1979_v44, %v1979_v44  ;;  %v1711_v7 = vld [vmem:[#allocation2 + $0x78] sm:$0xff] }
 0x126   : > { %1845 = vrot.lane.b32.xlu1 %v16920_v63, %s20810_s20  ;;  %1178 = vst.msk [vmem:[#allocation4 + $0xfc] sm:$0xf] %vm1156_vm6, %v17125_v27  ;;  %1181 = vst.msk [vmem:[#allocation4 + $0x120] sm:$0xf] %vm1156_vm6, %v17190_v23 }
 0x127   : > { %2139 = vst.msk [vmem:[#allocation4 + $0xe8] sm:$0xf] %vm1156_vm6, %v14549_v51  ;;  %v1982_v51 = vld [vmem:[#allocation2 + $0x121] sm:$0xff] }
 0x128   : > { %1839 = vrot.lane.b32.xlu0 %v16896_v46, %s20810_s20 }
 0x12a   : > { %2547 = vrot.lane.b32.xlu1 %v16920_v63, %s16483_s16  ;;  %v1016_v63 = vld [vmem:[#allocation2 + $0xf0] sm:$0xff] }
 0x12b   : > { %v14422_v40 = vpack.c.bf16 %v1016_v63, %v1016_v63 }
 0x12c   : > { %2541 = vrot.lane.b32.xlu0 %v16896_v46, %s16483_s16  ;;  %v16008_v46 = vpop.f32.mrf.mxu0 }
 0x12d   : > { %v832_v49 = vadd.f32 %v16008_v46, %v16824_v34  ;;  %1177 = vst.msk [vmem:[#allocation4 + $0xf0] sm:$0xf] %vm1156_vm6, %v14422_v40 }
 0x12e   : > { %2803 = vrot.lane.b32.xlu1 %v14443_v2, %s20810_s20  ;;  %v823_v17 = vpop.f32.mrf.mxu0 }
 0x12f   : > { %vm890_vm3 = vcmp.ge.f32.partialorder %v832_v49, 0.0  ;;  %v922_v53 = vmul.f32 0.01, %v832_v49  ;;  %v824_v54 = vadd.f32 %v16824_v34, %v823_v17 }
 0x130   : > { %2797 = vrot.lane.b32.xlu0 %v14440_v25, %s20810_s20  ;;  %v16011_v18 = vpop.f32.mrf.mxu0 }
 0x131   : > { %v954_v59 = vsel %vm890_vm3, %v832_v49, %v922_v53  ;;  %vm888_vm4 = vcmp.ge.f32.partialorder %v824_v54, 0.0  ;;  %v920_v60 = vmul.f32 0.01, %v824_v54 }
 0x132   : > { %2294 = vrot.lane.b32.xlu1 %v16911_v57, %s20808_s15  ;;  %987 = vst.msk [vmem:[#allocation2 + $0x129] sm:$0xff] %vm433_vm2, %v954_v59  ;;  %v836_v22 = vpop.f32.mrf.mxu0 }
 0x133   : > { %v952_v61 = vsel %vm888_vm4, %v824_v54, %v920_v60  ;;  %v837_v28 = vadd.f32 %v16824_v34, %v836_v22  ;;  %v14552_v54 = vpack.c.bf16 %v1982_v51, %v1982_v51 }
 0x134   : > { %1590 = vrot.lane.b32.xlu0 %v16909_v56, %s16483_s16  ;;  %985 = vst.msk [vmem:[#allocation2 + $0x111] sm:$0xff] %vm433_vm2, %v952_v61  ;;  %v16012_v63 = vpop.f32.mrf.mxu0 }
 0x135   : > { %vm891_vm9 = vcmp.ge.f32.partialorder %v837_v28, 0.0  ;;  %v923_v39 = vmul.f32 0.01, %v837_v28  ;;  %v848_v21 = vadd.f32 %v16012_v63, %v16824_v34  ;;  %2142 = vst.msk [vmem:[#allocation4 + $0x10c] sm:$0xf] %vm1156_vm6, %v14552_v54 }
 0x136   : > { %1331 = vrot.lane.b32.xlu1 %v14441_v45, %s20808_s15  ;;  %v839_v42 = vpop.f32.mrf.mxu0 }
 0x137   : > { %v955_v49 = vsel %vm891_vm9, %v837_v28, %v923_v39  ;;  %vm894_vm10 = vcmp.ge.f32.partialorder %v848_v21, 0.0  ;;  %v926_v17 = vmul.f32 0.01, %v848_v21  ;;  %v840_v50 = vadd.f32 %v16824_v34, %v839_v42 }
 0x138   : > { %2292 = vrot.lane.b32.xlu0 %v16909_v56, %s20808_s15  ;;  %988 = vst.msk [vmem:[#allocation2 + $0x139] sm:$0xff] %vm433_vm2, %v955_v49  ;;  %v16015_v28 = vpop.f32.mrf.mxu0 }
 0x139   : > { %v2941_v57 = vld [vmem:[#allocation2 + $0x122] sm:$0xff]  ;;  %v2942_v62 = vld [vmem:[#allocation2 + $0x12a] sm:$0xff]  ;;  %v958_v59 = vsel %vm894_vm10, %v848_v21, %v926_v17  ;;  %vm892_vm11 = vcmp.ge.f32.partialorder %v840_v50, 0.0  ;;  %v924_v60 = vmul.f32 0.01, %v840_v50 }
 0x13a   : > { %1588 = vrot.lane.b32.xlu1 %v16930_v5, %s16483_s16  ;;  %v17165_v2 = vpack.c.bf16 %v2941_v57, %v2941_v57  ;;  %v17167_v6 = vpack.c.bf16 %v2942_v62, %v2942_v62  ;;  %v1726_v31 = vld [vmem:[#allocation2 + $0x128] sm:$0xff]  ;;  %991 = vst.msk [vmem:[#allocation2 + $0x159] sm:$0xff] %vm433_vm2, %v958_v59  ;;  %v1714_v57 = vld [vmem:[#allocation2 + $0x98] sm:$0xff] }
 0x13b   : > { %v2939_v10 = vld [vmem:[#allocation2 + $0x10a] sm:$0xff]  ;;  %v2940_v0 = vld [vmem:[#allocation2 + $0x112] sm:$0xff]  ;;  %v17196_v36 = vpack.c.bf16 %v1726_v31, %v1726_v31  ;;  %v956_v61 = vsel %vm892_vm11, %v840_v50, %v924_v60  ;;  %v16412_v31 = vld [vmem:[%s20798_s3] ss:$0 sm:$0xff] }
 0x13c   : > { %1586 = vrot.lane.b32.xlu0 %v16927_v4, %s16483_s16  ;;  %3101 = vst.msk [vmem:[#allocation4 + $0xf8] sm:$0xf] %vm1156_vm6, %v17165_v2  ;;  %3102 = vst.msk [vmem:[#allocation4 + $0x104] sm:$0xf] %vm1156_vm6, %v17167_v6  ;;  %v17175_v56 = vpack.c.bf16 %v2939_v10, %v2939_v10  ;;  %v17177_v25 = vpack.c.bf16 %v2940_v0, %v2940_v0  ;;  %v1724_v46 = vld [vmem:[#allocation2 + $0x110] sm:$0xff]  ;;  %v14509_v10 = vpack.c.bf16 %v1714_v57, %v1714_v57  ;;  %v1200_v17 = vld [vmem:[#allocation2 + $0x81] sm:$0xff] }
 0x13d   : > { %v17205_v44 = vpack.c.bf16 %v1724_v46, %v1724_v46  ;;  %1182 = vst.msk [vmem:[#allocation4 + $0x12c] sm:$0xf] %vm1156_vm6, %v17196_v36  ;;  %v1981_v48 = vld [vmem:[#allocation2 + $0x111] sm:$0xff]  ;;  %v1983_v30 = vld [vmem:[#allocation2 + $0x129] sm:$0xff] }
 0x13e   : > { %1841 = vrot.lane.b32.xlu1 %v16935_v11, %s20810_s20  ;;  %3100 = vst.msk [vmem:[#allocation4 + $0xec] sm:$0xf] %vm1156_vm6, %v17177_v25  ;;  %3099 = vst.msk [vmem:[#allocation4 + $0xe0] sm:$0xf] %vm1156_vm6, %v17175_v56  ;;  %v14551_v53 = vpack.c.bf16 %v1981_v48, %v1981_v48 }
 0x13f   : > { %1180 = vst.msk [vmem:[#allocation4 + $0x114] sm:$0xf] %vm1156_vm6, %v17205_v44  ;;  %v1984_v54 = vld [vmem:[#allocation2 + $0x139] sm:$0xff] }
 0x140   : > { %2288 = vrot.lane.b32.xlu0 %v16927_v4, %s20808_s15  ;;  %v845_v4 = vadd.f32 %v16011_v18, %v16824_v34  ;;  %2141 = vst.msk [vmem:[#allocation4 + $0x100] sm:$0xf] %vm1156_vm6, %v14551_v53  ;;  %v1199_v34 = vld [vmem:[#allocation2 + $0x79] sm:$0xff] }
 0x141   : > { %989 = vst.msk [vmem:[#allocation2 + $0x141] sm:$0xff] %vm433_vm2, %v956_v61  ;;  %v14444_v62 = vpack.c.bf16 %v1199_v34, %v1199_v34  ;;  %v2946_v12 = vld [vmem:[#allocation2 + $0x15a] sm:$0xff] }
 0x142   : > { %2543 = vrot.lane.b32.xlu1 %v16935_v11, %s16483_s16  ;;  %vm893_vm8 = vcmp.ge.f32.partialorder %v845_v4, 0.0  ;;  %v925_v11 = vmul.f32 0.01, %v845_v4  ;;  %v17229_v20 = vpack.c.bf16 %v2946_v12, %v2946_v12 }
 0x144   : > { %1341 = vrot.lane.b32.xlu0 %v14446_v37, %s20808_s15  ;;  %v957_v40 = vsel %vm893_vm8, %v845_v4, %v925_v11  ;;  %3106 = vst.msk [vmem:[#allocation4 + $0x134] sm:$0xf] %vm1156_vm6, %v17229_v20  ;;  %v861_v11 = vadd.f32 %v16412_v31, %v16015_v28 }
 0x145   : > { %990 = vst.msk [vmem:[#allocation2 + $0x151] sm:$0xff] %vm433_vm2, %v957_v40  ;;  %v1727_v40 = vld [vmem:[#allocation2 + $0x138] sm:$0xff] }
 0x146   : > { %2799 = vrot.lane.b32.xlu1 %v14441_v45, %s20810_s20  ;;  %v14553_v45 = vpack.c.bf16 %v1983_v30, %v1983_v30  ;;  %vm897_vm12 = vcmp.ge.f32.partialorder %v861_v11, 0.0  ;;  %v929_v21 = vmul.f32 0.01, %v861_v11  ;;  %v17252_v47 = vpack.c.bf16 %v1727_v40, %v1727_v40 }
 0x148   : > { %1851 = vrot.lane.b32.xlu0 %v14508_v15, %s20810_s20  ;;  %2143 = vst.msk [vmem:[#allocation4 + $0x118] sm:$0xf] %vm1156_vm6, %v14553_v45  ;;  %v2944_v4 = vld [vmem:[#allocation2 + $0x142] sm:$0xff]  ;;  %v961_v50 = vsel %vm897_vm12, %v861_v11, %v929_v21  ;;  %1183 = vst.msk [vmem:[#allocation4 + $0x138] sm:$0xf] %vm1156_vm6, %v17252_v47 }
 0x149   : > { %v17238_v24 = vpack.c.bf16 %v2944_v4, %v2944_v4  ;;  %v1728_v49 = vld [vmem:[#allocation2 + $0x140] sm:$0xff]  ;;  %994 = vst.msk [vmem:[#allocation2 + $0x181] sm:$0xff] %vm433_vm2, %v961_v50  ;;  %v14445_v4 = vpack.c.bf16 %v1200_v17, %v1200_v17 }
 0x14a   : > { %2290 = vrot.lane.b32.xlu1 %v16930_v5, %s20808_s15  ;;  %v14447_v5 = vpack.c.bf16 %v1202_v38, %v1202_v38  ;;  %v852_v38 = vpop.f32.mrf.mxu0  ;;  %v1985_v59 = vld [vmem:[#allocation2 + $0x141] sm:$0xff] }
 0x14b   : > { %3104 = vst.msk [vmem:[#allocation4 + $0x11c] sm:$0xf] %vm1156_vm6, %v17238_v24  ;;  %v853_v46 = vadd.f32 %v16412_v31, %v852_v38 }
 0x14c   : > { %2553 = vrot.lane.b32.xlu0 %v14508_v15, %s16483_s16  ;;  %v2945_v0 = vld [vmem:[#allocation2 + $0x152] sm:$0xff]  ;;  %v14506_v15 = vpack.c.bf16 %v1711_v7, %v1711_v7  ;;  %v16016_v42 = vpop.f32.mrf.mxu0  ;;  %v14555_v7 = vpack.c.bf16 %v1985_v59, %v1985_v59 }
 0x14d   : > { %v17227_v18 = vpack.c.bf16 %v2945_v0, %v2945_v0  ;;  %v1729_v63 = vld [vmem:[#allocation2 + $0x150] sm:$0xff]  ;;  %v1730_v48 = vld [vmem:[#allocation2 + $0x158] sm:$0xff]  ;;  %vm895_vm13 = vcmp.ge.f32.partialorder %v853_v46, 0.0  ;;  %v927_v51 = vmul.f32 0.01, %v853_v46  ;;  %v864_v30 = vadd.f32 %v16412_v31, %v16016_v42 }
 0x14e   : > { %1343 = vrot.lane.b32.xlu1 %v14447_v5, %s20808_s15  ;;  %v17249_v39 = vpack.c.bf16 %v1729_v63, %v1729_v63  ;;  %v855_v52 = vpop.f32.mrf.mxu0  ;;  %v17258_v53 = vpack.c.bf16 %v1730_v48, %v1730_v48  ;;  %v1986_v61 = vld [vmem:[#allocation2 + $0x151] sm:$0xff]  ;;  %v1987_v0 = vld [vmem:[#allocation2 + $0x159] sm:$0xff]  ;;  %2145 = vst.msk [vmem:[#allocation4 + $0x130] sm:$0xf] %vm1156_vm6, %v14555_v7 }
 0x14f   : > { %3105 = vst.msk [vmem:[#allocation4 + $0x128] sm:$0xf] %vm1156_vm6, %v17227_v18  ;;  %v959_v60 = vsel %vm895_vm13, %v853_v46, %v927_v51  ;;  %vm898_vm14 = vcmp.ge.f32.partialorder %v864_v30, 0.0  ;;  %v930_v45 = vmul.f32 0.01, %v864_v30  ;;  %v856_v34 = vadd.f32 %v16412_v31, %v855_v52  ;;  %v1712_v63 = vld [vmem:[#allocation2 + $0x80] sm:$0xff] }
 0x150   : > { %2809 = vrot.lane.b32.xlu0 %v14446_v37, %s20810_s20  ;;  %v2943_v37 = vld [vmem:[#allocation2 + $0x13a] sm:$0xff]  ;;  %1185 = vst.msk [vmem:[#allocation4 + $0x150] sm:$0xf] %vm1156_vm6, %v17249_v39  ;;  %1186 = vst.msk [vmem:[#allocation4 + $0x15c] sm:$0xf] %vm1156_vm6, %v17258_v53  ;;  %v14507_v42 = vpack.c.bf16 %v1712_v63, %v1712_v63 }
 0x151   : > { %v17236_v22 = vpack.c.bf16 %v2943_v37, %v2943_v37  ;;  %992 = vst.msk [vmem:[#allocation2 + $0x169] sm:$0xff] %vm433_vm2, %v959_v60  ;;  %v962_v12 = vsel %vm898_vm14, %v864_v30, %v930_v45  ;;  %vm896_vm15 = vcmp.ge.f32.partialorder %v856_v34, 0.0  ;;  %v14557_v37 = vpack.c.bf16 %v1987_v0, %v1987_v0  ;;  %v1717_v60 = vld [vmem:[#allocation2 + $0xc0] sm:$0xff] }
 0x152   : > { %1600 = vrot.lane.b32.xlu1 %v16967_v9, %s16483_s16  ;;  %995 = vst.msk [vmem:[#allocation2 + $0x189] sm:$0xff] %vm433_vm2, %v962_v12  ;;  %v2693_v12 = vld [vmem:[#allocation2 + $0x181] sm:$0xff] }
 0x153   : > { %3103 = vst.msk [vmem:[#allocation4 + $0x110] sm:$0xf] %vm1156_vm6, %v17236_v22  ;;  %2147 = vst.msk [vmem:[#allocation4 + $0x148] sm:$0xf] %vm1156_vm6, %v14557_v37  ;;  %v1206_v37 = vld [vmem:[#allocation2 + $0xc9] sm:$0xff] }
 0x154   : > { %1337 = vrot.lane.b32.xlu0 %v14444_v62, %s20808_s15 }
 0x156   : > { %1853 = vrot.lane.b32.xlu1 %v14509_v10, %s20810_s20 }
 0x158   : > { %1847 = vrot.lane.b32.xlu0 %v14506_v15, %s20810_s20 }
 0x159   : > { %v2949_v21 = vld [vmem:[#allocation2 + $0x182] sm:$0xff]  ;;  %v2950_v46 = vld [vmem:[#allocation2 + $0x18a] sm:$0xff] }
 0x15a   : > { %2555 = vrot.lane.b32.xlu1 %v14509_v10, %s16483_s16  ;;  %v14556_v10 = vpack.c.bf16 %v1986_v61, %v1986_v61  ;;  %v17293_v48 = vpack.c.bf16 %v2949_v21, %v2949_v21  ;;  %v1731_v61 = vld [vmem:[#allocation2 + $0x168] sm:$0xff] }
 0x15c   : > { %2549 = vrot.lane.b32.xlu0 %v14506_v15, %s16483_s16  ;;  %v928_v15 = vmul.f32 0.01, %v856_v34  ;;  %2146 = vst.msk [vmem:[#allocation4 + $0x13c] sm:$0xf] %vm1156_vm6, %v14556_v10  ;;  %3109 = vst.msk [vmem:[#allocation4 + $0x158] sm:$0xf] %vm1156_vm6, %v17293_v48 }
 0x15e   : > { %2811 = vrot.lane.b32.xlu1 %v14447_v5, %s20810_s20  ;;  %v17260_v5 = vpack.c.bf16 %v1728_v49, %v1728_v49  ;;  %v960_v28 = vsel %vm896_vm15, %v856_v34, %v928_v15  ;;  %v17295_v49 = vpack.c.bf16 %v2950_v46, %v2950_v46  ;;  %v2694_v15 = vld [vmem:[#allocation2 + $0x189] sm:$0xff] }
 0x15f   : > { %993 = vst.msk [vmem:[#allocation2 + $0x171] sm:$0xff] %vm433_vm2, %v960_v28  ;;  %v17333_v28 = vpack.c.bf16 %v2694_v15, %v2694_v15  ;;  %v1204_v15 = vld [vmem:[#allocation2 + $0xb1] sm:$0xff] }
 0x160   : > { %2805 = vrot.lane.b32.xlu0 %v14444_v62, %s20810_s20  ;;  %1184 = vst.msk [vmem:[#allocation4 + $0x144] sm:$0xf] %vm1156_vm6, %v17260_v5  ;;  %v14554_v62 = vpack.c.bf16 %v1984_v54, %v1984_v54  ;;  %3110 = vst.msk [vmem:[#allocation4 + $0x164] sm:$0xf] %vm1156_vm6, %v17295_v49 }
 0x161   : > { %2151 = vst.msk [vmem:[#allocation4 + $0x178] sm:$0xf] %vm1156_vm6, %v17333_v28 }
 0x162   : > { %v1326_v57 = vpop.permute.xlu0 %1325  ;;  %2302 = vrot.lane.b32.xlu1 %v16967_v9, %s20808_s15  ;;  %2144 = vst.msk [vmem:[#allocation4 + $0x124] sm:$0xf] %vm1156_vm6, %v14554_v62  ;;  %v17323_v62 = vpack.c.bf16 %v1731_v61, %v1731_v61 }
 0x163   : > { %1418 = vst.msk [vmem:[#allocation4 + $0x30] sm:$0xf] %vm1413_vm5, %v1326_v57 }
 0x164   : > { %1598 = vrot.lane.b32.xlu0 %v16965_v33, %s16483_s16  ;;  %v1322_v9 = vpop.permute.xlu1 %1321  ;;  %1187 = vst.msk [vmem:[#allocation4 + $0x168] sm:$0xf] %vm1156_vm6, %v17323_v62 }
 0x165   : > { %1416 = vst.msk [vmem:[#allocation4 + $0x18] sm:$0xf] %vm1413_vm5, %v1322_v9  ;;  %v17331_v9 = vpack.c.bf16 %v2693_v12, %v2693_v12 }
 0x166   : > { %v17280_v31 = vpop.permute.xlu0 %1835  ;;  %1339 = vrot.lane.b32.xlu1 %v14445_v4, %s20808_s15  ;;  %v2947_v17 = vld [vmem:[#allocation2 + $0x16a] sm:$0xff]  ;;  %v2948_v50 = vld [vmem:[#allocation2 + $0x172] sm:$0xff] }
 0x167   : > { %v17305_v30 = vpack.c.bf16 %v2947_v17, %v2947_v17  ;;  %v17307_v52 = vpack.c.bf16 %v2948_v50, %v2948_v50  ;;  %v1732_v7 = vld [vmem:[#allocation2 + $0x170] sm:$0xff]  ;;  %2150 = vst.msk [vmem:[#allocation4 + $0x16c] sm:$0xf] %vm1156_vm6, %v17331_v9  ;;  %v1718_v50 = vld [vmem:[#allocation2 + $0xc8] sm:$0xff] }
 0x168   : > { %2300 = vrot.lane.b32.xlu0 %v16965_v33, %s20808_s15  ;;  %v1328_v11 = vpop.permute.xlu1 %1327  ;;  %v1205_v33 = vld [vmem:[#allocation2 + $0xc1] sm:$0xff]  ;;  %v17327_v0 = vpack.c.bf16 %v1732_v7, %v1732_v7  ;;  %v14513_v61 = vpack.c.bf16 %v1718_v50, %v1718_v50  ;;  %v1209_v50 = vld [vmem:[#allocation2 + $0xf1] sm:$0xff] }
 0x169   : > { %1419 = vst.msk [vmem:[#allocation4 + $0x3c] sm:$0xf] %vm1413_vm5, %v1328_v11  ;;  %v14450_v59 = vpack.c.bf16 %v1205_v33, %v1205_v33  ;;  %v1989_v11 = vld [vmem:[#allocation2 + $0x171] sm:$0xff]  ;;  %v1203_v33 = vld [vmem:[#allocation2 + $0xa9] sm:$0xff] }
 0x16a   : > { %v17287_v38 = vpop.permute.xlu0 %2537  ;;  %1596 = vrot.lane.b32.xlu1 %v16984_v43, %s16483_s16  ;;  %3108 = vst.msk [vmem:[#allocation4 + $0x14c] sm:$0xf] %vm1156_vm6, %v17307_v52  ;;  %3107 = vst.msk [vmem:[#allocation4 + $0x140] sm:$0xf] %vm1156_vm6, %v17305_v30  ;;  %v14559_v46 = vpack.c.bf16 %v1989_v11, %v1989_v11 }
 0x16b   : > { %1188 = vst.msk [vmem:[#allocation4 + $0x174] sm:$0xf] %vm1156_vm6, %v17327_v0 }
 0x16c   : > { %1594 = vrot.lane.b32.xlu0 %v16981_v41, %s16483_s16  ;;  %v1585_v40 = vpop.permute.xlu1 %1584  ;;  %2149 = vst.msk [vmem:[#allocation4 + $0x160] sm:$0xf] %vm1156_vm6, %v14559_v46 }
 0x16d   : > { %1676 = vst.msk [vmem:[#allocation4 + $0x3c] sm:$0xf] %vm1670_vm7, %v1585_v40 }
 0x16e   : > { %v17298_v51 = vpop.permute.xlu0 %2793  ;;  %1849 = vrot.lane.b32.xlu1 %v14507_v42, %s20810_s20 }
 0x170   : > { %2296 = vrot.lane.b32.xlu0 %v16981_v41, %s20808_s15  ;;  %v17311_v54 = vpop.permute.xlu1 %1837  ;;  %v14512_v41 = vpack.c.bf16 %v1717_v60, %v1717_v60 }
 0x172   : > { %v1832_v45 = vpop.permute.xlu0 %1831  ;;  %2551 = vrot.lane.b32.xlu1 %v14507_v42, %s16483_s16  ;;  %v14451_v42 = vpack.c.bf16 %v1206_v37, %v1206_v37 }
 0x173   : > { %1928 = vst.msk [vmem:[#allocation4] sm:$0xf] %vm1927_vm0, %v1832_v45  ;;  %v14448_v45 = vpack.c.bf16 %v1203_v33, %v1203_v33 }
 0x174   : > { %1349 = vrot.lane.b32.xlu0 %v14450_v59, %s20808_s15  ;;  %v17320_v34 = vpop.permute.xlu1 %2539 }
 0x176   : > { %v1583_v57 = vpop.permute.xlu0 %1582  ;;  %2807 = vrot.lane.b32.xlu1 %v14445_v4, %s20810_s20  ;;  %v1988_v4 = vld [vmem:[#allocation2 + $0x169] sm:$0xff] }
 0x177   : > { %1675 = vst.msk [vmem:[#allocation4 + $0x30] sm:$0xf] %vm1670_vm7, %v1583_v57  ;;  %v14558_v21 = vpack.c.bf16 %v1988_v4, %v1988_v4  ;;  %v14449_v4 = vpack.c.bf16 %v1204_v15, %v1204_v15  ;;  %v16235_v15 = vld [vmem:[#allocation4 + $0x50] ss:$12 sps:$4 sm:$0xff]  }
 0x178   : > { %1859 = vrot.lane.b32.xlu0 %v14512_v41, %s20810_s20  ;;  %v2796_v10 = vpop.permute.xlu1 %2795 }
 0x179   : > { %2148 = vst.msk [vmem:[#allocation4 + $0x154] sm:$0xf] %vm1156_vm6, %v14558_v21 }
 0x17a   : > { %v2285_v63 = vpop.permute.xlu0 %2284  ;;  %2298 = vrot.lane.b32.xlu1 %v16984_v43, %s20808_s15 }
 0x17b   : > { %2378 = vst.msk [vmem:[#allocation4 + $0x1c] sm:$0xf] %vm1413_vm5, %v2285_v63 }
 0x17c   : > { %2561 = vrot.lane.b32.xlu0 %v14512_v41, %s16483_s16  ;;  %v2287_v40 = vpop.permute.xlu1 %2286  ;;  %v1715_v41 = vld [vmem:[#allocation2 + $0xa8] sm:$0xff] }
 0x17d   : > { %2379 = vst.msk [vmem:[#allocation4 + $0x28] sm:$0xf] %vm1413_vm5, %v2287_v40  ;;  %v14510_v57 = vpack.c.bf16 %v1715_v41, %v1715_v41  ;;  %v16232_v40 = vld [vmem:[%s20799_s4 + $0x80] sm:$0xff]   ;;  %v14454_v41 = vpack.c.bf16 %v1209_v50, %v1209_v50 }
 0x17e   : > { %v1579_v43 = vpop.permute.xlu0 %1578  ;;  %1351 = vrot.lane.b32.xlu1 %v14451_v42, %s20808_s15 }
 0x17f   : > { %1673 = vst.msk [vmem:[#allocation4 + $0x18] sm:$0xf] %vm1670_vm7, %v1579_v43  ;;  %v1716_v43 = vld [vmem:[#allocation2 + $0xb0] sm:$0xff] }
 0x180   : > { %1930 = vst.msk [vmem:[#allocation4 + $0x18] sm:$0xf] %vm1927_vm0, %v17280_v31  ;;  %2817 = vrot.lane.b32.xlu0 %v14450_v59, %s20810_s20  ;;  %v1324_v17 = vpop.permute.xlu1 %1323 }
 0x181   : > { %1417 = vst.msk [vmem:[#allocation4 + $0x24] sm:$0xf] %vm1413_vm5, %v1324_v17  ;;  %v14511_v17 = vpack.c.bf16 %v1716_v43, %v1716_v43 }
 0x182   : > { %v2281_v60 = vpop.permute.xlu0 %2280  ;;  %1608 = vrot.lane.b32.xlu1 %v17008_v58, %s16483_s16 }
 0x183   : > { %2376 = vst.msk [vmem:[#allocation4 + $0x4] sm:$0xf] %vm1413_vm5, %v2281_v60 }
 0x184   : > { %2633 = vst.msk [vmem:[#allocation4 + $0x4] sm:$0xf] %vm1670_vm7, %v17287_v38  ;;  %1345 = vrot.lane.b32.xlu0 %v14448_v45, %s20808_s15  ;;  %v1581_v31 = vpop.permute.xlu1 %1580 }
 0x185   : > { %2889 = vst.msk [vmem:[#allocation4 + $0x4] sm:$0xf] %vm1927_vm0, %v17298_v51 }
 0x186   : > { %1674 = vst.msk [vmem:[#allocation4 + $0x24] sm:$0xf] %vm1670_vm7, %v1581_v31  ;;  %v1334_v59 = vpop.permute.xlu0 %1333  ;;  %1861 = vrot.lane.b32.xlu1 %v14513_v61, %s20810_s20  ;;  %v16234_v31 = vld [vmem:[#allocation4 + $0x38] ss:$12 sps:$4 sm:$0xff]  }
 0x187   : > { %1931 = vst.msk [vmem:[#allocation4 + $0x24] sm:$0xf] %vm1927_vm0, %v17311_v54 }
 0x188   : > { %1422 = vst.msk [vmem:[#allocation4 + $0x60] sm:$0xf] %vm1413_vm5, %v1334_v59  ;;  %1855 = vrot.lane.b32.xlu0 %v14510_v57, %s20810_s20  ;;  %v1834_v38 = vpop.permute.xlu1 %1833 }
 0x189   : > { %1929 = vst.msk [vmem:[#allocation4 + $0xc] sm:$0xf] %vm1927_vm0, %v1834_v38 }
 0x18a   : > { %v17369_v7 = vpop.permute.xlu0 %1843  ;;  %2563 = vrot.lane.b32.xlu1 %v14513_v61, %s16483_s16  ;;  %v1721_v61 = vld [vmem:[#allocation2 + $0xf0] sm:$0xff] }
 0x18b   : > { %v17416_v38 = vpack.c.bf16 %v1721_v61, %v1721_v61 }
 0x18c   : > { %2557 = vrot.lane.b32.xlu0 %v14510_v57, %s16483_s16  ;;  %v2283_v51 = vpop.permute.xlu1 %2282  ;;  %v3113_v11 = vld [vmem:[#allocation4] sm:$0xff] }
 0x18d   : > { %2377 = vst.msk [vmem:[#allocation4 + $0x10] sm:$0xf] %vm1413_vm5, %v2283_v51  ;;  %v1207_v51 = vld [vmem:[#allocation2 + $0xd9] sm:$0xff] }
 0x18e   : > { %2634 = vst.msk [vmem:[#allocation4 + $0x10] sm:$0xf] %vm1670_vm7, %v17320_v34  ;;  %v17376_v54 = vpop.permute.xlu0 %2545  ;;  %2819 = vrot.lane.b32.xlu1 %v14451_v42, %s20810_s20  ;;  %v16231_v42 = vld [vmem:[#allocation4 + $0x8] ss:$12 sps:$4 sm:$0xff]  }
 0x18f   : > { %2890 = vst.msk [vmem:[#allocation4 + $0x10] sm:$0xf] %vm1927_vm0, %v2796_v10 }
 0x190   : > { %2813 = vrot.lane.b32.xlu0 %v14448_v45, %s20810_s20  ;;  %v1336_v12 = vpop.permute.xlu1 %1335  ;;  %v16233_v45 = vld [vmem:[#allocation4 + $0x20] ss:$12 sps:$4 sm:$0xff]  }
 0x191   : > { %1423 = vst.msk [vmem:[#allocation4 + $0x6c] sm:$0xf] %vm1413_vm5, %v1336_v12 }
 0x192   : > { %v17382_v37 = vpop.permute.xlu0 %2801  ;;  %2310 = vrot.lane.b32.xlu1 %v17008_v58, %s20808_s15 }
 0x194   : > { %1606 = vrot.lane.b32.xlu0 %v17006_v55, %s16483_s16  ;;  %v1593_v34 = vpop.permute.xlu1 %1592 }
 0x195   : > { %1680 = vst.msk [vmem:[#allocation4 + $0x6c] sm:$0xf] %vm1670_vm7, %v1593_v34  ;;  %v16236_v34 = vld [vmem:[#allocation4 + $0x68] ss:$12 sps:$4 sm:$0xff]  }
 0x196   : > { %v3115_v10 = vld [vmem:[#allocation4 + $0xc] sm:$0xff]  ;;  %v1330_v63 = vpop.permute.xlu0 %1329  ;;  %1347 = vrot.lane.b32.xlu1 %v14449_v4, %s20808_s15 }
 0x197   : > { %1420 = vst.msk [vmem:[#allocation4 + $0x48] sm:$0xf] %vm1413_vm5, %v1330_v63  ;;  %v13232_v21 = vcombine.high %v3113_v11, %v3115_v10  ;;  %v13231_v46 = vcombine.low %v3113_v11, %v3115_v10  ;;  %v1210_v11 = vld [vmem:[#allocation2 + $0xf9] sm:$0xff]  ;;  %v17427_v63 = vpack.c.bf16 %v1207_v51, %v1207_v51  ;;  %v1214_v51 = vld [vmem:[#allocation2 + $0x129] sm:$0xff] }
 0x198   : > { %2308 = vrot.lane.b32.xlu0 %v17006_v55, %s20808_s15  ;;  %v1846_v58 = vpop.permute.xlu1 %1845 }
 0x199   : > { %3648 = vmatprep.mubr.bf16.mxu0 %v13232_v21  ;;  %v17433_v21 = vpack.c.bf16 %v1210_v11, %v1210_v11 }
 0x19a   : > { %v1840_v33 = vpop.permute.xlu0 %1839  ;;  %1604 = vrot.lane.b32.xlu1 %v17028_v3, %s16483_s16  ;;  %3649 = vmatmul.mubr.bf16.vlgmr.msra.gmra.mxu0 %v13231_v46 }
 0x19b   : > { %1932 = vst.msk [vmem:[#allocation4 + $0x30] sm:$0xf] %vm1927_vm0, %v1840_v33  ;;  %16018 = vmatpush3.bf16.msra.mxu0 %v17082_v16  ;;  %16021 = vmatprep.mubr.msk.bf16.mxu0 %vm433_vm2, %v16231_v42  ;;  %v16238_v42 = vld [vmem:[#allocation4 + $0x98] ss:$12 sps:$4 sm:$0xff]  }
 0x19c   : > { %1602 = vrot.lane.b32.xlu0 %v17023_v1, %s16483_s16  ;;  %v17403_v55 = vpop.permute.xlu1 %2547  ;;  %16019 = vmatprep.subr.bf16.mxu0 %v16232_v40 }
 0x19e   : > { %v2542_v60 = vpop.permute.xlu0 %2541  ;;  %1857 = vrot.lane.b32.xlu1 %v14511_v17, %s20810_s20 }
 0x19f   : > { %2635 = vst.msk [vmem:[#allocation4 + $0x1c] sm:$0xf] %vm1670_vm7, %v2542_v60  ;;  %16020 = vmatpush3.bf16.msra.mxu0 %v16232_v40  ;;  %v16237_v40 = vld [vmem:[#allocation4 + $0x80] ss:$12 sps:$4 sm:$0xff]  }
 0x1a0   : > { %2304 = vrot.lane.b32.xlu0 %v17023_v1, %s20808_s15  ;;  %v17409_v16 = vpop.permute.xlu1 %2803 }
 0x1a2   : > { %v2798_v59 = vpop.permute.xlu0 %2797  ;;  %2559 = vrot.lane.b32.xlu1 %v14511_v17, %s16483_s16  ;;  %16022 = vmatmul.mubr.msk.bf16.vlgmr.msra.gmra.mxu0 %vm433_vm2, %v16233_v45  ;;  %v16240_v17 = vld [vmem:[#allocation4 + $0xc8] ss:$12 sps:$4 sm:$0xff]  }
 0x1a3   : > { %2891 = vst.msk [vmem:[#allocation4 + $0x1c] sm:$0xf] %vm1927_vm0, %v2798_v59  ;;  %16025 = vmatprep.mubr.msk.bf16.mxu0 %vm433_vm2, %v16234_v31  ;;  %v16242_v31 = vld [vmem:[#allocation4 + $0xf8] ss:$12 sps:$4 sm:$0xff]  }
 0x1a4   : > { %1357 = vrot.lane.b32.xlu0 %v14454_v41, %s20808_s15  ;;  %v2295_v57 = vpop.permute.xlu1 %2294  ;;  %v16241_v41 = vld [vmem:[#allocation4 + $0xe0] ss:$12 sps:$4 sm:$0xff]  }
 0x1a5   : > { %2383 = vst.msk [vmem:[#allocation4 + $0x58] sm:$0xf] %vm1413_vm5, %v2295_v57 }
 0x1a6   : > { %v1591_v1 = vpop.permute.xlu0 %1590  ;;  %2815 = vrot.lane.b32.xlu1 %v14449_v4, %s20810_s20 }
 0x1a7   : > { %1679 = vst.msk [vmem:[#allocation4 + $0x60] sm:$0xf] %vm1670_vm7, %v1591_v1 }
 0x1a8   : > { %1867 = vrot.lane.b32.xlu0 %v17416_v38, %s20810_s20  ;;  %v1332_v12 = vpop.permute.xlu1 %1331 }
 0x1a9   : > { %1421 = vst.msk [vmem:[#allocation4 + $0x54] sm:$0xf] %vm1413_vm5, %v1332_v12 }
 0x1aa   : > { %v2293_v10 = vpop.permute.xlu0 %2292  ;;  %2306 = vrot.lane.b32.xlu1 %v17028_v3, %s20808_s15  ;;  %16026 = vmatmul.mubr.msk.bf16.gmra.mxu0 %vm433_vm2, %v16235_v15  ;;  %v3117_v61 = vld [vmem:[#allocation4 + $0x18] sm:$0xff] }
 0x1ab   : > { %2382 = vst.msk [vmem:[#allocation4 + $0x4c] sm:$0xf] %vm1413_vm5, %v2293_v10  ;;  %16029 = vmatprep.mubr.msk.bf16.mxu0 %vm433_vm2, %v16236_v34  ;;  %v16243_v10 = vld [vmem:[#allocation4 + $0x110] ss:$12 sps:$4 sm:$0xff]  }
 0x1ac   : > { %1353 = vrot.lane.b32.xlu0 %v17427_v63, %s20808_s15  ;;  %v1589_v4 = vpop.permute.xlu1 %1588 }
 0x1ad   : > { %1678 = vst.msk [vmem:[#allocation4 + $0x54] sm:$0xf] %vm1670_vm7, %v1589_v4 }
 0x1ae   : > { %1935 = vst.msk [vmem:[#allocation4 + $0x54] sm:$0xf] %vm1927_vm0, %v1846_v58  ;;  %v1587_v46 = vpop.permute.xlu0 %1586  ;;  %1359 = vrot.lane.b32.xlu1 %v17433_v21, %s20808_s15  ;;  %v1208_v58 = vld [vmem:[#allocation2 + $0xe1] sm:$0xff] }
 0x1af   : > { %1677 = vst.msk [vmem:[#allocation4 + $0x48] sm:$0xf] %vm1670_vm7, %v1587_v46  ;;  %v17462_v33 = vpack.c.bf16 %v1208_v58, %v1208_v58  ;;  %v16244_v46 = vld [vmem:[#allocation4 + $0x128] ss:$12 sps:$4 sm:$0xff]   ;;  %v16245_v58 = vld [vmem:[#allocation4 + $0x140] ss:$12 sps:$4 sm:$0xff]  }
 0x1b0   : > { %1934 = vst.msk [vmem:[#allocation4 + $0x48] sm:$0xf] %vm1927_vm0, %v17369_v7  ;;  %1863 = vrot.lane.b32.xlu0 %v17123_v26, %s20810_s20  ;;  %v1842_v3 = vpop.permute.xlu1 %1841 }
 0x1b1   : > { %1933 = vst.msk [vmem:[#allocation4 + $0x3c] sm:$0xf] %vm1927_vm0, %v1842_v3 }
 0x1b2   : > { %v2289_v43 = vpop.permute.xlu0 %2288  ;;  %1616 = vrot.lane.b32.xlu1 %v17104_v14, %s16483_s16  ;;  %16030 = vmatmul.mubr.msk.bf16.gmra.mxu0 %vm433_vm2, %v16237_v40  ;;  %v17503_v40 = vpack.c.bf16 %v1214_v51, %v1214_v51 }
 0x1b3   : > { %2380 = vst.msk [vmem:[#allocation4 + $0x34] sm:$0xf] %vm1413_vm5, %v2289_v43  ;;  %16033 = vmatprep.mubr.msk.bf16.mxu0 %vm433_vm2, %v16238_v42 }
 0x1b4   : > { %2637 = vst.msk [vmem:[#allocation4 + $0x34] sm:$0xf] %vm1670_vm7, %v17376_v54  ;;  %2565 = vrot.lane.b32.xlu0 %v17123_v26, %s16483_s16  ;;  %v2544_v7 = vpop.permute.xlu1 %2543  ;;  %v16239_v26 = vld [vmem:[#allocation4 + $0xb0] ss:$12 sps:$4 sm:$0xff]  }
 0x1b5   : > { %2893 = vst.msk [vmem:[#allocation4 + $0x34] sm:$0xf] %vm1927_vm0, %v17382_v37  ;;  %v1213_v37 = vld [vmem:[#allocation2 + $0x121] sm:$0xff] }
 0x1b6   : > { %2636 = vst.msk [vmem:[#allocation4 + $0x28] sm:$0xf] %vm1670_vm7, %v2544_v7  ;;  %v1342_v14 = vpop.permute.xlu0 %1341  ;;  %1869 = vrot.lane.b32.xlu1 %v17125_v27, %s20810_s20  ;;  %v17473_v60 = vpack.c.bf16 %v1213_v37, %v1213_v37 }
 0x1b7   : > { %1426 = vst.msk [vmem:[#allocation4 + $0x90] sm:$0xf] %vm1413_vm5, %v1342_v14  ;;  %v16246_v14 = vld [vmem:[#allocation4 + $0x158] ss:$12 sps:$4 sm:$0xff]  }
 0x1b8   : > { %1614 = vrot.lane.b32.xlu0 %v17102_v13, %s16483_s16  ;;  %v2800_v54 = vpop.permute.xlu1 %2799 }
 0x1b9   : > { %2892 = vst.msk [vmem:[#allocation4 + $0x28] sm:$0xf] %vm1927_vm0, %v2800_v54 }
 0x1ba   : > { %v17465_v50 = vpop.permute.xlu0 %1851  ;;  %1355 = vrot.lane.b32.xlu1 %v17462_v33, %s20808_s15  ;;  %16034 = vmatmul.mubr.msk.bf16.gmra.mxu0 %vm433_vm2, %v16239_v26  ;;  %v1212_v26 = vld [vmem:[#allocation2 + $0x111] sm:$0xff] }
 0x1bb   : > { %16037 = vmatprep.mubr.msk.bf16.mxu0 %vm433_vm2, %v16240_v17  ;;  %v1217_v17 = vld [vmem:[#allocation2 + $0x151] sm:$0xff] }
 0x1bc   : > { %1610 = vrot.lane.b32.xlu0 %v17106_v19, %s16483_s16  ;;  %v2291_v13 = vpop.permute.xlu1 %2290  ;;  %v3121_v12 = vld [vmem:[#allocation4 + $0x30] sm:$0xff] }
 0x1bd   : > { %2381 = vst.msk [vmem:[#allocation4 + $0x40] sm:$0xf] %vm1413_vm5, %v2291_v13  ;;  %v17528_v13 = vpack.c.bf16 %v1212_v26, %v1212_v26 }
 0x1be   : > { %2638 = vst.msk [vmem:[#allocation4 + $0x40] sm:$0xf] %vm1670_vm7, %v17403_v55  ;;  %v17478_v45 = vpop.permute.xlu0 %2553  ;;  %1612 = vrot.lane.b32.xlu1 %v17108_v8, %s16483_s16  ;;  %v1211_v8 = vld [vmem:[#allocation2 + $0x109] sm:$0xff] }
 0x1bf   : > { %2894 = vst.msk [vmem:[#allocation4 + $0x40] sm:$0xf] %vm1927_vm0, %v17409_v16  ;;  %v17498_v11 = vpack.c.bf16 %v1211_v8, %v1211_v8 }
 0x1c0   : > { %v3119_v19 = vld [vmem:[#allocation4 + $0x24] sm:$0xff]  ;;  %1365 = vrot.lane.b32.xlu0 %v17473_v60, %s20808_s15  ;;  %v1344_v59 = vpop.permute.xlu1 %1343 }
 0x1c1   : > { %1427 = vst.msk [vmem:[#allocation4 + $0x9c] sm:$0xf] %vm1413_vm5, %v1344_v59  ;;  %v13235_v57 = vcombine.high %v3117_v61, %v3119_v19  ;;  %v13234_v55 = vcombine.low %v3117_v61, %v3119_v19  ;;  %v1215_v19 = vld [vmem:[#allocation2 + $0x139] sm:$0xff] }
 0x1c2   : > { %v17487_v1 = vpop.permute.xlu0 %2809  ;;  %1865 = vrot.lane.b32.xlu1 %v17129_v32, %s20810_s20  ;;  %16038 = vmatmul.mubr.msk.bf16.gmra.mxu0 %vm433_vm2, %v16241_v41  ;;  %v17548_v8 = vpack.c.bf16 %v1215_v19, %v1215_v19 }
 0x1c3   : > { %3656 = vmatprep.mubr.bf16.mxu1 %v13235_v57  ;;  %16041 = vmatprep.mubr.msk.bf16.mxu0 %vm433_vm2, %v16242_v31  ;;  %v1218_v57 = vld [vmem:[#allocation2 + $0x159] sm:$0xff] }
 0x1c4   : > { %1875 = vrot.lane.b32.xlu0 %v17190_v23, %s20810_s20  ;;  %v1601_v16 = vpop.permute.xlu1 %1600  ;;  %3657 = vmatmul.mubr.bf16.vlgmr.msra.gmra.mxu1 %v13234_v55 }
 0x1c5   : > { %1684 = vst.msk [vmem:[#allocation4 + $0x9c] sm:$0xf] %vm1670_vm7, %v1601_v16  ;;  %v17555_v16 = vpack.c.bf16 %v1218_v57, %v1218_v57 }
 0x1c6   : > { %v3123_v15 = vld [vmem:[#allocation4 + $0x3c] sm:$0xff]  ;;  %v1338_v34 = vpop.permute.xlu0 %1337  ;;  %2567 = vrot.lane.b32.xlu1 %v17129_v32, %s16483_s16 }
 0x1c7   : > { %1424 = vst.msk [vmem:[#allocation4 + $0x78] sm:$0xf] %vm1413_vm5, %v1338_v34  ;;  %v13238_v4 = vcombine.high %v3121_v12, %v3123_v15  ;;  %v13237_v43 = vcombine.low %v3121_v12, %v3123_v15  ;;  %v1733_v34 = vld [vmem:[#allocation2 + $0x180] sm:$0xff] }
 0x1c8   : > { %1361 = vrot.lane.b32.xlu0 %v17498_v11, %s20808_s15  ;;  %v1854_v3 = vpop.permute.xlu1 %1853 }
 0x1c9   : > { %3664 = vmatprep.mubr.bf16.mxu1 %v13238_v4  ;;  %v17582_v4 = vpack.c.bf16 %v1733_v34, %v1733_v34 }
 0x1ca   : > { %v1848_v42 = vpop.permute.xlu0 %1847  ;;  %1367 = vrot.lane.b32.xlu1 %v17503_v40, %s20808_s15  ;;  %16042 = vmatmul.mubr.msk.bf16.gmra.mxu0 %vm433_vm2, %v16243_v10 }
 0x1cb   : > { %1936 = vst.msk [vmem:[#allocation4 + $0x60] sm:$0xf] %vm1927_vm0, %v1848_v42  ;;  %16045 = vmatprep.mubr.msk.bf16.mxu0 %vm433_vm2, %v16244_v46  ;;  %v1219_v46 = vld [vmem:[#allocation2 + $0x169] sm:$0xff] }
 0x1cc   : > { %1871 = vrot.lane.b32.xlu0 %v17193_v29, %s20810_s20  ;;  %v17512_v32 = vpop.permute.xlu1 %2555  ;;  %3665 = vmatmul.mubr.bf16.gmra.mxu1 %v13237_v43 }
 0x1ce   : > { %v2550_v7 = vpop.permute.xlu0 %2549  ;;  %1624 = vrot.lane.b32.xlu1 %v17167_v6, %s16483_s16 }
 0x1cf   : > { %2639 = vst.msk [vmem:[#allocation4 + $0x4c] sm:$0xf] %vm1670_vm7, %v2550_v7 }
 0x1d0   : > { %1622 = vrot.lane.b32.xlu0 %v17165_v2, %s16483_s16  ;;  %v17519_v54 = vpop.permute.xlu1 %2811  ;;  %v17530_v2 = vpack.c.bf16 %v1217_v17, %v1217_v17  ;;  %v1734_v17 = vld [vmem:[#allocation2 + $0x188] sm:$0xff] }
 0x1d1   : > { %v17610_v19 = vpack.c.bf16 %v1734_v17, %v1734_v17 }
 0x1d2   : > { %v2806_v37 = vpop.permute.xlu0 %2805  ;;  %1877 = vrot.lane.b32.xlu1 %v17196_v36, %s20810_s20  ;;  %16046 = vmatmul.mubr.msk.bf16.gmra.mxu0 %vm433_vm2, %v16245_v58  ;;  %v17595_v58 = vpack.c.bf16 %v1219_v46, %v1219_v46 }
 0x1d3   : > { %2895 = vst.msk [vmem:[#allocation4 + $0x4c] sm:$0xf] %vm1927_vm0, %v2806_v37  ;;  %16049 = vmatprep.mubr.msk.bf16.mxu0 %vm433_vm2, %v16246_v14 }
 0x1d4   : > { %1618 = vrot.lane.b32.xlu0 %v17175_v56, %s16483_s16  ;;  %v2303_v6 = vpop.permute.xlu1 %2302 }
 0x1d5   : > { %2387 = vst.msk [vmem:[#allocation4 + $0x88] sm:$0xf] %vm1413_vm5, %v2303_v6 }
 0x1d6   : > { %v1599_v41 = vpop.permute.xlu0 %1598  ;;  %1363 = vrot.lane.b32.xlu1 %v17528_v13, %s20808_s15 }
 0x1d7   : > { %1683 = vst.msk [vmem:[#allocation4 + $0x90] sm:$0xf] %vm1670_vm7, %v1599_v41 }
 0x1d8   : > { %1373 = vrot.lane.b32.xlu0 %v17530_v2, %s20808_s15  ;;  %v1340_v31 = vpop.permute.xlu1 %1339 }
 0x1d9   : > { %1425 = vst.msk [vmem:[#allocation4 + $0x84] sm:$0xf] %vm1413_vm5, %v1340_v31 }
 0x1da   : > { %v2301_v61 = vpop.permute.xlu0 %2300  ;;  %1620 = vrot.lane.b32.xlu1 %v17177_v25, %s16483_s16  ;;  %v3125_v42 = vld [vmem:[#allocation4 + $0x48] sm:$0xff] }
 0x1db   : > { %2386 = vst.msk [vmem:[#allocation4 + $0x7c] sm:$0xf] %vm1413_vm5, %v2301_v61 }
 0x1dc   : > { %1883 = vrot.lane.b32.xlu0 %v17249_v39, %s20810_s20  ;;  %v1597_v59 = vpop.permute.xlu1 %1596 }
 0x1dd   : > { %1682 = vst.msk [vmem:[#allocation4 + $0x84] sm:$0xf] %vm1670_vm7, %v1597_v59  ;;  %v1220_v59 = vld [vmem:[#allocation2 + $0x171] sm:$0xff] }
 0x1de   : > { %1939 = vst.msk [vmem:[#allocation4 + $0x84] sm:$0xf] %vm1927_vm0, %v1854_v3  ;;  %v1595_v55 = vpop.permute.xlu0 %1594  ;;  %1873 = vrot.lane.b32.xlu1 %v17205_v44, %s20810_s20 }
 0x1df   : > { %1681 = vst.msk [vmem:[#allocation4 + $0x78] sm:$0xf] %vm1670_vm7, %v1595_v55 }
 0x1e0   : > { %1938 = vst.msk [vmem:[#allocation4 + $0x78] sm:$0xf] %vm1927_vm0, %v17465_v50  ;;  %1369 = vrot.lane.b32.xlu0 %v17548_v8, %s20808_s15  ;;  %v1850_v25 = vpop.permute.xlu1 %1849 }
 0x1e1   : > { %1937 = vst.msk [vmem:[#allocation4 + $0x6c] sm:$0xf] %vm1927_vm0, %v1850_v25 }
 0x1e2   : > { %v2297_v51 = vpop.permute.xlu0 %2296  ;;  %1375 = vrot.lane.b32.xlu1 %v17555_v16, %s20808_s15 }
 0x1e3   : > { %2384 = vst.msk [vmem:[#allocation4 + $0x64] sm:$0xf] %vm1413_vm5, %v2297_v51  ;;  %v17617_v51 = vpack.c.bf16 %v1220_v59, %v1220_v59 }
 0x1e4   : > { %2641 = vst.msk [vmem:[#allocation4 + $0x64] sm:$0xf] %vm1670_vm7, %v17478_v45  ;;  %1879 = vrot.lane.b32.xlu0 %v17252_v47, %s20810_s20  ;;  %v2552_v50 = vpop.permute.xlu1 %2551  ;;  %v1216_v45 = vld [vmem:[#allocation2 + $0x141] sm:$0xff] }
 0x1e5   : > { %2897 = vst.msk [vmem:[#allocation4 + $0x64] sm:$0xf] %vm1927_vm0, %v17487_v1 }
 0x1e6   : > { %2640 = vst.msk [vmem:[#allocation4 + $0x58] sm:$0xf] %vm1670_vm7, %v2552_v50  ;;  %v1350_v12 = vpop.permute.xlu0 %1349  ;;  %1632 = vrot.lane.b32.xlu1 %v17229_v20, %s16483_s16  ;;  %v17580_v20 = vpack.c.bf16 %v1216_v45, %v1216_v45 }
 0x1e7   : > { %1430 = vst.msk [vmem:[#allocation4 + $0xc0] sm:$0xf] %vm1413_vm5, %v1350_v12  ;;  %v2168_v12 = vld [vmem:[#allocation2 + $0xda] sm:$0xff] }
 0x1e8   : > { %1630 = vrot.lane.b32.xlu0 %v17227_v18, %s16483_s16  ;;  %v2808_v15 = vpop.permute.xlu1 %2807  ;;  %v14578_v34 = vpack.c.bf16 %v2168_v12, %v2168_v12 }
 0x1e9   : > { %2896 = vst.msk [vmem:[#allocation4 + $0x58] sm:$0xf] %vm1927_vm0, %v2808_v15 }
 0x1ea   : > { %v17574_v10 = vpop.permute.xlu0 %1859  ;;  %1885 = vrot.lane.b32.xlu1 %v17258_v53, %s20810_s20 }
 0x1ec   : > { %1626 = vrot.lane.b32.xlu0 %v17236_v22, %s16483_s16  ;;  %v2299_v1 = vpop.permute.xlu1 %2298  ;;  %v3129_v37 = vld [vmem:[#allocation4 + $0x60] sm:$0xff] }
 0x1ed   : > { %2385 = vst.msk [vmem:[#allocation4 + $0x70] sm:$0xf] %vm1413_vm5, %v2299_v1 }
 0x1ee   : > { %2642 = vst.msk [vmem:[#allocation4 + $0x70] sm:$0xf] %vm1670_vm7, %v17512_v32  ;;  %v17587_v3 = vpop.permute.xlu0 %2561  ;;  %1371 = vrot.lane.b32.xlu1 %v17580_v20, %s20808_s15 }
 0x1ef   : > { %2898 = vst.msk [vmem:[#allocation4 + $0x70] sm:$0xf] %vm1927_vm0, %v17519_v54 }
 0x1f0   : > { %v3127_v43 = vld [vmem:[#allocation4 + $0x54] sm:$0xff]  ;;  %1891 = vrot.lane.b32.xlu0 %v17582_v4, %s20810_s20  ;;  %v1352_v7 = vpop.permute.xlu1 %1351 }
 0x1f1   : > { %1431 = vst.msk [vmem:[#allocation4 + $0xcc] sm:$0xf] %vm1413_vm5, %v1352_v7  ;;  %v13241_v14 = vcombine.high %v3125_v42, %v3127_v43  ;;  %v13240_v32 = vcombine.low %v3125_v42, %v3127_v43  ;;  %v2169_v42 = vld [vmem:[#allocation2 + $0xe2] sm:$0xff]  ;;  %v2170_v7 = vld [vmem:[#allocation2 + $0xf2] sm:$0xff] }
 0x1f2   : > { %v17598_v26 = vpop.permute.xlu0 %2817  ;;  %1628 = vrot.lane.b32.xlu1 %v17238_v24, %s16483_s16 }
 0x1f3   : > { %3672 = vmatprep.mubr.bf16.mxu1 %v13241_v14 }
 0x1f4   : > { %1377 = vrot.lane.b32.xlu0 %v17595_v58, %s20808_s15  ;;  %v1609_v54 = vpop.permute.xlu1 %1608  ;;  %3673 = vmatmul.mubr.bf16.gmra.mxu1 %v13240_v32  ;;  %v14579_v32 = vpack.c.bf16 %v2169_v42, %v2169_v42 }
 0x1f5   : > { %1688 = vst.msk [vmem:[#allocation4 + $0xcc] sm:$0xf] %vm1670_vm7, %v1609_v54  ;;  %v14580_v54 = vpack.c.bf16 %v2170_v7, %v2170_v7 }
 0x1f6   : > { %v3131_v6 = vld [vmem:[#allocation4 + $0x6c] sm:$0xff]  ;;  %v1346_v41 = vpop.permute.xlu0 %1345  ;;  %1881 = vrot.lane.b32.xlu1 %v17260_v5, %s20810_s20 }
 0x1f7   : > { %1428 = vst.msk [vmem:[#allocation4 + $0xa8] sm:$0xf] %vm1413_vm5, %v1346_v41  ;;  %v13244_v31 = vcombine.high %v3129_v37, %v3131_v6  ;;  %v13243_v55 = vcombine.low %v3129_v37, %v3131_v6 }
 0x1f8   : > { %1887 = vrot.lane.b32.xlu0 %v17323_v62, %s20810_s20  ;;  %v1862_v61 = vpop.permute.xlu1 %1861 }
 0x1f9   : > { %3680 = vmatprep.mubr.bf16.mxu1 %v13244_v31 }
 0x1fa   : > { %v1856_v57 = vpop.permute.xlu0 %1855  ;;  %1893 = vrot.lane.b32.xlu1 %v17610_v19, %s20810_s20 }
 0x1fb   : > { %1940 = vst.msk [vmem:[#allocation4 + $0x90] sm:$0xf] %vm1927_vm0, %v1856_v57 }
 0x1fc   : > { %1634 = vrot.lane.b32.xlu0 %v17305_v30, %s16483_s16  ;;  %v2564_v25 = vpop.permute.xlu1 %2563  ;;  %3681 = vmatmul.mubr.bf16.gmra.mxu1 %v13243_v55 }
 0x1fe   : > { %v2558_v50 = vpop.permute.xlu0 %2557  ;;  %1379 = vrot.lane.b32.xlu1 %v17617_v51, %s20808_s15 }
 0x1ff   : > { %2643 = vst.msk [vmem:[#allocation4 + $0x7c] sm:$0xf] %vm1670_vm7, %v2558_v50 }
 0x200   : > { %2821 = vrot.lane.b32.xlu0 %v17427_v63, %s20810_s20  ;;  %v2820_v15 = vpop.permute.xlu1 %2819 }
 0x202   : > { %v2814_v45 = vpop.permute.xlu0 %2813  ;;  %1636 = vrot.lane.b32.xlu1 %v17307_v52, %s16483_s16 }
 0x203   : > { %2899 = vst.msk [vmem:[#allocation4 + $0x7c] sm:$0xf] %vm1927_vm0, %v2814_v45 }
 0x204   : > { %2312 = vrot.lane.b32.xlu0 %v14578_v34, %s20808_s15  ;;  %v2311_v1 = vpop.permute.xlu1 %2310 }
 0x205   : > { %2391 = vst.msk [vmem:[#allocation4 + $0xb8] sm:$0xf] %vm1413_vm5, %v2311_v1  ;;  %v2175_v1 = vld [vmem:[#allocation2 + $0x12a] sm:$0xff] }
 0x206   : > { %v1607_v46 = vpop.permute.xlu0 %1606  ;;  %1889 = vrot.lane.b32.xlu1 %v17327_v0, %s20810_s20 }
 0x207   : > { %1687 = vst.msk [vmem:[#allocation4 + $0xc0] sm:$0xf] %vm1670_vm7, %v1607_v46 }
 0x208   : > { %2569 = vrot.lane.b32.xlu0 %v17416_v38, %s16483_s16  ;;  %v1348_v63 = vpop.permute.xlu1 %1347 }
 0x209   : > { %1429 = vst.msk [vmem:[#allocation4 + $0xb4] sm:$0xf] %vm1413_vm5, %v1348_v63  ;;  %v14585_v63 = vpack.c.bf16 %v2175_v1, %v2175_v1 }
 0x20a   : > { %v2309_v43 = vpop.permute.xlu0 %2308  ;;  %2823 = vrot.lane.b32.xlu1 %v17462_v33, %s20810_s20 }
 0x20b   : > { %2390 = vst.msk [vmem:[#allocation4 + $0xac] sm:$0xf] %vm1413_vm5, %v2309_v43 }
 0x20c   : > { %2825 = vrot.lane.b32.xlu0 %v17131_v35, %s20810_s20  ;;  %v1605_v14 = vpop.permute.xlu1 %1604 }
 0x20d   : > { %1686 = vst.msk [vmem:[#allocation4 + $0xb4] sm:$0xf] %vm1670_vm7, %v1605_v14 }
 0x20e   : > { %1943 = vst.msk [vmem:[#allocation4 + $0xb4] sm:$0xf] %vm1927_vm0, %v1862_v61  ;;  %v1603_v38 = vpop.permute.xlu0 %1602  ;;  %2314 = vrot.lane.b32.xlu1 %v14579_v32, %s20808_s15  ;;  %v2173_v61 = vld [vmem:[#allocation2 + $0x112] sm:$0xff] }
 0x20f   : > { %1685 = vst.msk [vmem:[#allocation4 + $0xa8] sm:$0xf] %vm1670_vm7, %v1603_v38  ;;  %v2439_v38 = vld [vmem:[#allocation2 + $0x198] sm:$0xff] }
 0x210   : > { %1942 = vst.msk [vmem:[#allocation4 + $0xa8] sm:$0xf] %vm1927_vm0, %v17574_v10  ;;  %2316 = vrot.lane.b32.xlu0 %v14580_v54, %s20808_s15  ;;  %v1858_v33 = vpop.permute.xlu1 %1857  ;;  %v2171_v10 = vld [vmem:[#allocation2 + $0xfa] sm:$0xff] }
 0x211   : > { %1941 = vst.msk [vmem:[#allocation4 + $0x9c] sm:$0xf] %vm1927_vm0, %v1858_v33  ;;  %v2951_v54 = vld [vmem:[#allocation2 + $0x19a] sm:$0xff]  ;;  %v2952_v33 = vld [vmem:[#allocation2 + $0x1a2] sm:$0xff] }
 0x212   : > { %v2305_v35 = vpop.permute.xlu0 %2304  ;;  %2571 = vrot.lane.b32.xlu1 %v17125_v27, %s16483_s16 }
 0x213   : > { %2388 = vst.msk [vmem:[#allocation4 + $0x94] sm:$0xf] %vm1413_vm5, %v2305_v35  ;;  %v14688_v35 = vpack.c.bf16 %v2951_v54, %v2951_v54 }
 0x214   : > { %2645 = vst.msk [vmem:[#allocation4 + $0x94] sm:$0xf] %vm1670_vm7, %v17587_v3  ;;  %2573 = vrot.lane.b32.xlu0 %v17193_v29, %s16483_s16  ;;  %v2560_v17 = vpop.permute.xlu1 %2559  ;;  %v14581_v3 = vpack.c.bf16 %v2171_v10, %v2171_v10 }
 0x215   : > { %2901 = vst.msk [vmem:[#allocation4 + $0x94] sm:$0xf] %vm1927_vm0, %v17598_v26 }
 0x216   : > { %2644 = vst.msk [vmem:[#allocation4 + $0x88] sm:$0xf] %vm1670_vm7, %v2560_v17  ;;  %v1358_v37 = vpop.permute.xlu0 %1357  ;;  %2827 = vrot.lane.b32.xlu1 %v17433_v21, %s20810_s20  ;;  %v14689_v17 = vpack.c.bf16 %v2952_v33, %v2952_v33 }
 0x217   : > { %1434 = vst.msk [vmem:[#allocation4 + $0xf0] sm:$0xf] %vm1413_vm5, %v1358_v37 }
 0x218   : > { %2829 = vrot.lane.b32.xlu0 %v17498_v11, %s20810_s20  ;;  %v2816_v27 = vpop.permute.xlu1 %2815  ;;  %v3133_v11 = vld [vmem:[#allocation4 + $0x78] sm:$0xff]  ;;  %3111 = vst.msk [vmem:[#allocation4 + $0x170] sm:$0xf] %vm1156_vm6, %v14688_v35  ;;  %3112 = vst.msk [vmem:[#allocation4 + $0x17c] sm:$0xf] %vm1156_vm6, %v14689_v17 }
 0x219   : > { %2900 = vst.msk [vmem:[#allocation4 + $0x88] sm:$0xf] %vm1927_vm0, %v2816_v27 }
 0x21a   : > { %v1868_v29 = vpop.permute.xlu0 %1867  ;;  %2318 = vrot.lane.b32.xlu1 %v14581_v3, %s20808_s15  ;;  %v4259_v3 = vld [vmem:[#allocation3 + $0x1] sm:$0xff] }
 0x21c   : > { %2320 = vrot.lane.b32.xlu0 %v17175_v56, %s20808_s15  ;;  %v2307_v26 = vpop.permute.xlu1 %2306  ;;  %v3137_v55 = vld [vmem:[#allocation4 + $0x90] sm:$0xff] }
 0x21d   : > { %2389 = vst.msk [vmem:[#allocation4 + $0xa0] sm:$0xf] %vm1413_vm5, %v2307_v26 }
 0x21e   : > { %2646 = vst.msk [vmem:[#allocation4 + $0xa0] sm:$0xf] %vm1670_vm7, %v2564_v25  ;;  %v1354_v21 = vpop.permute.xlu0 %1353  ;;  %2575 = vrot.lane.b32.xlu1 %v17205_v44, %s16483_s16  ;;  %v2174_v44 = vld [vmem:[#allocation2 + $0x122] sm:$0xff] }
 0x21f   : > { %2902 = vst.msk [vmem:[#allocation4 + $0xa0] sm:$0xf] %vm1927_vm0, %v2820_v15  ;;  %v14584_v12 = vpack.c.bf16 %v2174_v44, %v2174_v44  ;;  %v16247_v44 = vld [vmem:[#allocation4 + $0x170] ss:$12 sps:$4 sm:$0xff]  }
 0x220   : > { %1432 = vst.msk [vmem:[#allocation4 + $0xd8] sm:$0xf] %vm1413_vm5, %v1354_v21  ;;  %v3135_v6 = vld [vmem:[#allocation4 + $0x84] sm:$0xff]  ;;  %2577 = vrot.lane.b32.xlu0 %v17190_v23, %s16483_s16  ;;  %v1360_v41 = vpop.permute.xlu1 %1359  ;;  %v14583_v23 = vpack.c.bf16 %v2173_v61, %v2173_v61  ;;  %16050 = vmatmul.mubr.msk.bf16.gmra.mxu0 %vm433_vm2, %v16247_v44 }
 0x221   : > { %1435 = vst.msk [vmem:[#allocation4 + $0xfc] sm:$0xf] %vm1413_vm5, %v1360_v41  ;;  %v13247_v56 = vcombine.high %v3133_v11, %v3135_v6  ;;  %v13246_v31 = vcombine.low %v3133_v11, %v3135_v6  ;;  %v17770_v41 = vld [vmem:[%s20800_s5] ss:$0 sm:$0xff] }
 0x222   : > { %v1864_v59 = vpop.permute.xlu0 %1863  ;;  %2831 = vrot.lane.b32.xlu1 %v17528_v13, %s20810_s20 }
 0x223   : > { %1944 = vst.msk [vmem:[#allocation4 + $0xc0] sm:$0xf] %vm1927_vm0, %v1864_v59  ;;  %3688 = vmatprep.mubr.bf16.mxu1 %v13247_v56  ;;  %v14722_v56 = vpack.c.bf16 %v4259_v3, %v4259_v3 }
 0x224   : > { %2833 = vrot.lane.b32.xlu0 %v17473_v60, %s20810_s20  ;;  %v1617_v57 = vpop.permute.xlu1 %1616  ;;  %3689 = vmatmul.mubr.bf16.gmra.mxu1 %v13246_v31  ;;  %v4515_v31 = vld [vmem:[#allocation3 + $0x2] sm:$0xff] }
 0x225   : > { %1692 = vst.msk [vmem:[#allocation4 + $0xfc] sm:$0xf] %vm1670_vm7, %v1617_v57 }
 0x226   : > { %v3139_v25 = vld [vmem:[#allocation4 + $0x9c] sm:$0xff]  ;;  %v2566_v50 = vpop.permute.xlu0 %2565  ;;  %2322 = vrot.lane.b32.xlu1 %v14583_v23, %s20808_s15 }
 0x227   : > { %2647 = vst.msk [vmem:[#allocation4 + $0xac] sm:$0xf] %vm1670_vm7, %v2566_v50  ;;  %v13250_v13 = vcombine.high %v3137_v55, %v3139_v25  ;;  %v13249_v60 = vcombine.low %v3137_v55, %v3139_v25  ;;  %v2696_v55 = vld [vmem:[#allocation2 + $0x1a1] sm:$0xff] }
 0x228   : > { %2324 = vrot.lane.b32.xlu0 %v14584_v12, %s20808_s15  ;;  %v1870_v15 = vpop.permute.xlu1 %1869  ;;  %v14754_v12 = vpack.c.bf16 %v4515_v31, %v4515_v31 }
 0x229   : > { %3696 = vmatprep.mubr.bf16.mxu1 %v13250_v13  ;;  %v4067_v13 = vld [vmem:[#allocation3] sm:$0xff] }
 0x22a   : > { %v1615_v45 = vpop.permute.xlu0 %1614  ;;  %2579 = vrot.lane.b32.xlu1 %v17196_v36, %s16483_s16 }
 0x22b   : > { %1691 = vst.msk [vmem:[#allocation4 + $0xf0] sm:$0xf] %vm1670_vm7, %v1615_v45  ;;  %v6019_v45 = vld [vmem:[#allocation3 + $0x1a2] sm:$0xff] }
 0x22c   : > { %2581 = vrot.lane.b32.xlu0 %v17252_v47, %s16483_s16  ;;  %v1356_v34 = vpop.permute.xlu1 %1355  ;;  %3697 = vmatmul.mubr.bf16.gmra.mxu1 %v13249_v60  ;;  %v14977_v1 = vpack.c.bf16 %v6019_v45, %v6019_v45 }
 0x22d   : > { %1433 = vst.msk [vmem:[#allocation4 + $0xe4] sm:$0xf] %vm1413_vm5, %v1356_v34 }
 0x22e   : > { %v1611_v46 = vpop.permute.xlu0 %1610  ;;  %2835 = vrot.lane.b32.xlu1 %v17503_v40, %s20810_s20  ;;  %6179 = vst.msk [vmem:[#allocation4 + $0x17c] sm:$0xf] %vm1156_vm6, %v14977_v1 }
 0x22f   : > { %1689 = vst.msk [vmem:[#allocation4 + $0xd8] sm:$0xf] %vm1670_vm7, %v1611_v46  ;;  %v4068_v46 = vld [vmem:[#allocation3 + $0x8] sm:$0xff] }
 0x230   : > { %1946 = vst.msk [vmem:[#allocation4 + $0xd8] sm:$0xf] %vm1927_vm0, %v1868_v29  ;;  %2837 = vrot.lane.b32.xlu0 %v17548_v8, %s20810_s20  ;;  %v1613_v36 = vpop.permute.xlu1 %1612 }
 0x231   : > { %1690 = vst.msk [vmem:[#allocation4 + $0xe4] sm:$0xf] %vm1670_vm7, %v1613_v36 }
 0x232   : > { %1947 = vst.msk [vmem:[#allocation4 + $0xe4] sm:$0xf] %vm1927_vm0, %v1870_v15  ;;  %v1366_v47 = vpop.permute.xlu0 %1365  ;;  %2326 = vrot.lane.b32.xlu1 %v14585_v63, %s20808_s15  ;;  %v6018_v15 = vld [vmem:[#allocation3 + $0x19a] sm:$0xff] }
 0x233   : > { %1438 = vst.msk [vmem:[#allocation4 + $0x120] sm:$0xf] %vm1413_vm5, %v1366_v47  ;;  %v14976_v34 = vpack.c.bf16 %v6018_v15, %v6018_v15  ;;  %v14657_v47 = vpack.c.bf16 %v2696_v55, %v2696_v55 }
 0x234   : > { %2328 = vrot.lane.b32.xlu0 %v17236_v22, %s20808_s15  ;;  %v1866_v40 = vpop.permute.xlu1 %1865 }
 0x235   : > { %1945 = vst.msk [vmem:[#allocation4 + $0xcc] sm:$0xf] %vm1927_vm0, %v1866_v40  ;;  %v14691_v40 = vpack.c.bf16 %v4068_v46, %v4068_v46 }
 0x236   : > { %v1876_v42 = vpop.permute.xlu0 %1875  ;;  %2583 = vrot.lane.b32.xlu1 %v17260_v5, %s16483_s16  ;;  %6178 = vst.msk [vmem:[#allocation4 + $0x170] sm:$0xf] %vm1156_vm6, %v14976_v34 }
 0x237   : > { %4228 = vst.msk [vmem:[#allocation4 + $0xc] sm:$0xf] %vm1156_vm6, %v14691_v40 }
 0x238   : > { %2585 = vrot.lane.b32.xlu0 %v17249_v39, %s16483_s16  ;;  %v2568_v8 = vpop.permute.xlu1 %2567 }
 0x239   : > { %2648 = vst.msk [vmem:[#allocation4 + $0xb8] sm:$0xf] %vm1670_vm7, %v2568_v8 }
 0x23a   : > { %v1362_v43 = vpop.permute.xlu0 %1361  ;;  %2839 = vrot.lane.b32.xlu1 %v17580_v20, %s20810_s20  ;;  %v2179_v20 = vld [vmem:[#allocation2 + $0x15a] sm:$0xff] }
 0x23b   : > { %1436 = vst.msk [vmem:[#allocation4 + $0x108] sm:$0xf] %vm1413_vm5, %v1362_v43  ;;  %v4260_v43 = vld [vmem:[#allocation3 + $0x9] sm:$0xff] }
 0x23c   : > { %2841 = vrot.lane.b32.xlu0 %v17530_v2, %s20810_s20  ;;  %v1368_v22 = vpop.permute.xlu1 %1367 }
 0x23d   : > { %1439 = vst.msk [vmem:[#allocation4 + $0x12c] sm:$0xf] %vm1413_vm5, %v1368_v22 }
 0x23e   : > { %v1872_v7 = vpop.permute.xlu0 %1871  ;;  %2330 = vrot.lane.b32.xlu1 %v17238_v24, %s20808_s15 }
 0x23f   : > { %1948 = vst.msk [vmem:[#allocation4 + $0xf0] sm:$0xf] %vm1927_vm0, %v1872_v7 }
 0x240   : > { %2332 = vrot.lane.b32.xlu0 %v17227_v18, %s20808_s15  ;;  %v1625_v39 = vpop.permute.xlu1 %1624 }
 0x241   : > { %1696 = vst.msk [vmem:[#allocation4 + $0x12c] sm:$0xf] %vm1670_vm7, %v1625_v39 }
 0x242   : > { %v1623_v5 = vpop.permute.xlu0 %1622  ;;  %2587 = vrot.lane.b32.xlu1 %v17258_v53, %s16483_s16  ;;  %v14589_v53 = vpack.c.bf16 %v2179_v20, %v2179_v20  ;;  %v14723_v20 = vpack.c.bf16 %v4260_v43, %v4260_v43  ;;  %v16255_v43 = vld [vmem:[%s20801_s6 + $0x78] sm:$0xff]  }
 0x243   : > { %1695 = vst.msk [vmem:[#allocation4 + $0x120] sm:$0xf] %vm1670_vm7, %v1623_v5  ;;  %15703 = vmatprep.subr.bf16.mxu0 %v16255_v43 }
 0x244   : > { %2589 = vrot.lane.b32.xlu0 %v17323_v62, %s16483_s16  ;;  %v1878_v2 = vpop.permute.xlu1 %1877 }
 0x246   : > { %v1619_v24 = vpop.permute.xlu0 %1618  ;;  %2843 = vrot.lane.b32.xlu1 %v17555_v16, %s20810_s20 }
 0x247   : > { %1693 = vst.msk [vmem:[#allocation4 + $0x108] sm:$0xf] %vm1670_vm7, %v1619_v24  ;;  %v16248_v24 = vld [vmem:[%s20801_s6 + $0x88] sm:$0xff]  }
 0x248   : > { %1950 = vst.msk [vmem:[#allocation4 + $0x108] sm:$0xf] %vm1927_vm0, %v1876_v42  ;;  %2845 = vrot.lane.b32.xlu0 %v17595_v58, %s20810_s20  ;;  %v1364_v18 = vpop.permute.xlu1 %1363  ;;  %16053 = vmatprep.subr.bf16.mxu1 %v16248_v24 }
 0x249   : > { %1437 = vst.msk [vmem:[#allocation4 + $0x114] sm:$0xf] %vm1413_vm5, %v1364_v18  ;;  %16054 = vmatpush3.bf16.msra.mxu1 %v16248_v24 }
 0x24a   : > { %v1374_v14 = vpop.permute.xlu0 %1373  ;;  %2334 = vrot.lane.b32.xlu1 %v14589_v53, %s20808_s15  ;;  %v4516_v53 = vld [vmem:[#allocation3 + $0xa] sm:$0xff] }
 0x24b   : > { %1442 = vst.msk [vmem:[#allocation4 + $0x150] sm:$0xf] %vm1413_vm5, %v1374_v14 }
 0x24c   : > { %2336 = vrot.lane.b32.xlu0 %v17305_v30, %s20808_s15  ;;  %v1621_v62 = vpop.permute.xlu1 %1620 }
 0x24d   : > { %1694 = vst.msk [vmem:[#allocation4 + $0x114] sm:$0xf] %vm1670_vm7, %v1621_v62 }
 0x24e   : > { %1951 = vst.msk [vmem:[#allocation4 + $0x114] sm:$0xf] %vm1927_vm0, %v1878_v2  ;;  %v1884_v16 = vpop.permute.xlu0 %1883  ;;  %2591 = vrot.lane.b32.xlu1 %v17327_v0, %s16483_s16 }
 0x250   : > { %2593 = vrot.lane.b32.xlu0 %v17582_v4, %s16483_s16  ;;  %v1874_v58 = vpop.permute.xlu1 %1873 }
 0x251   : > { %1949 = vst.msk [vmem:[#allocation4 + $0xfc] sm:$0xf] %vm1927_vm0, %v1874_v58  ;;  %v14755_v58 = vpack.c.bf16 %v4516_v53, %v4516_v53 }
 0x252   : > { %v1370_v32 = vpop.permute.xlu0 %1369  ;;  %2847 = vrot.lane.b32.xlu1 %v17617_v51, %s20810_s20  ;;  %v14624_v51 = vpack.c.bf16 %v2439_v38, %v2439_v38 }
 0x253   : > { %1440 = vst.msk [vmem:[#allocation4 + $0x138] sm:$0xf] %vm1413_vm5, %v1370_v32  ;;  %v16250_v32 = vld [vmem:[%s20801_s6 + $0x80] sm:$0xff]  }
 0x254   : > { %2849 = vrot.lane.b32.xlu0 %v17331_v9, %s20810_s20  ;;  %v1376_v30 = vpop.permute.xlu1 %1375  ;;  %v2695_v9 = vld [vmem:[#allocation2 + $0x199] sm:$0xff]  ;;  %16055 = vmatprep.subr.bf16.mxu1 %v16250_v32 }
 0x255   : > { %1443 = vst.msk [vmem:[#allocation4 + $0x15c] sm:$0xf] %vm1413_vm5, %v1376_v30  ;;  %v14656_v27 = vpack.c.bf16 %v2695_v9, %v2695_v9  ;;  %16056 = vmatpush3.bf16.msra.mxu1 %v16250_v32 }
 0x256   : > { %v1880_v0 = vpop.permute.xlu0 %1879  ;;  %2338 = vrot.lane.b32.xlu1 %v17307_v52, %s20808_s15 }
 0x257   : > { %1952 = vst.msk [vmem:[#allocation4 + $0x120] sm:$0xf] %vm1927_vm0, %v1880_v0 }
 0x258   : > { %2340 = vrot.lane.b32.xlu0 %v17293_v48, %s20808_s15  ;;  %v1633_v4 = vpop.permute.xlu1 %1632 }
 0x259   : > { %1700 = vst.msk [vmem:[#allocation4 + $0x15c] sm:$0xf] %vm1670_vm7, %v1633_v4 }
 0x25a   : > { %v1631_v10 = vpop.permute.xlu0 %1630  ;;  %v15589_v37 = vpop.f32.mrf.mxu0  ;;  %2595 = vrot.lane.b32.xlu1 %v17610_v19, %s16483_s16  ;;  %v2440_v19 = vld [vmem:[#allocation2 + $0x1a0] sm:$0xff] }
 0x25b   : > { %1699 = vst.msk [vmem:[#allocation4 + $0x150] sm:$0xf] %vm1670_vm7, %v1631_v10  ;;  %v14625_v59 = vpack.c.bf16 %v2440_v19, %v2440_v19 }
 0x25c   : > { %2597 = vrot.lane.b32.xlu0 %v14624_v51, %s16483_s16  ;;  %v15590_v48 = vpop.f32.mrf.mxu0  ;;  %v1886_v52 = vpop.permute.xlu1 %1885 }
 0x25d   : > { %v15591_v21 = vadd.f32 %v15590_v48, %v15589_v37 }
 0x25e   : > { %v1627_v29 = vpop.permute.xlu0 %1626  ;;  %v15592_v26 = vpop.f32.mrf.mxu0  ;;  %2851 = vrot.lane.b32.xlu1 %v17333_v28, %s20810_s20 }
 0x25f   : > { %1697 = vst.msk [vmem:[#allocation4 + $0x138] sm:$0xf] %vm1670_vm7, %v1627_v29  ;;  %v3651_v23 = vadd.f32 %v15591_v21, %v17770_v41 }
 0x260   : > { %1954 = vst.msk [vmem:[#allocation4 + $0x138] sm:$0xf] %vm1927_vm0, %v1884_v16  ;;  %2853 = vrot.lane.b32.xlu0 %v14656_v27, %s20810_s20  ;;  %v15593_v11 = vpop.f32.mrf.mxu0  ;;  %v1372_v6 = vpop.permute.xlu1 %1371 }
 0x261   : > { %1441 = vst.msk [vmem:[#allocation4 + $0x144] sm:$0xf] %vm1413_vm5, %v1372_v6  ;;  %v15594_v57 = vadd.f32 %v15593_v11, %v15592_v26 }
 0x262   : > { %v1892_v28 = vpop.permute.xlu0 %1891  ;;  %v17773_v61 = vpop.f32.mrf.mxu0  ;;  %2342 = vrot.lane.b32.xlu1 %v17295_v49, %s20808_s15  ;;  %v14690_v49 = vpack.c.bf16 %v4067_v13, %v4067_v13 }
 0x263   : > { %v3654_v8 = vadd.f32 %v15594_v57, %v17770_v41 }
 0x264   : > { %v3811_v25 = vpop.f32.mrf.mxu0  ;;  %v1629_v50 = vpop.permute.xlu1 %1628  ;;  %4387 = vrot.lane.b32.xlu0 %v14722_v56, %s20808_s15  ;;  %4227 = vst.msk [vmem:[#allocation4] sm:$0xf] %vm1156_vm6, %v14690_v49 }
 0x265   : > { %v3812_v60 = vadd.f32 %v3811_v25, %v3651_v23  ;;  %1698 = vst.msk [vmem:[#allocation4 + $0x144] sm:$0xf] %vm1670_vm7, %v1629_v50 }
 0x266   : > { %1955 = vst.msk [vmem:[#allocation4 + $0x144] sm:$0xf] %vm1927_vm0, %v1886_v52  ;;  %v1378_v36 = vpop.permute.xlu0 %1377  ;;  %v17782_v63 = vpop.f32.mrf.mxu0  ;;  %2599 = vrot.lane.b32.xlu1 %v14625_v59, %s16483_s16 }
 0x267   : > { %vm3938_vm1 = vcmp.ge.f32.partialorder %v3812_v60, 0.0  ;;  %v3970_v42 = vmul.f32 0.01, %v3812_v60  ;;  %1444 = vst.msk [vmem:[#allocation4 + $0x168] sm:$0xf] %vm1413_vm5, %v1378_v36 }
 0x268   : > { %v3814_v22 = vpop.f32.mrf.mxu0  ;;  %v1882_v7 = vpop.permute.xlu1 %1881  ;;  %4643 = vrot.lane.b32.xlu0 %v14754_v12, %s16483_s16 }
 0x269   : > { %v4002_v39 = vsel %vm3938_vm1, %v3812_v60, %v3970_v42  ;;  %v3815_v5 = vadd.f32 %v3814_v22, %v3654_v8  ;;  %1953 = vst.msk [vmem:[#allocation4 + $0x12c] sm:$0xf] %vm1927_vm0, %v1882_v7 }
 0x26a   : > { %4035 = vst.msk [vmem:[#allocation3 + $0x19] sm:$0xff] %vm433_vm2, %v4002_v39  ;;  %v1888_v2 = vpop.permute.xlu0 %1887  ;;  %2855 = vrot.lane.b32.xlu1 %v14657_v47, %s20810_s20  ;;  %v17830_v45 = vpop.f32.mrf.mxu0 }
 0x26b   : > { %vm3939_vm3 = vcmp.ge.f32.partialorder %v3815_v5, 0.0  ;;  %v3971_v18 = vmul.f32 0.01, %v3815_v5  ;;  %1956 = vst.msk [vmem:[#allocation4 + $0x150] sm:$0xf] %vm1927_vm0, %v1888_v2  ;;  %v16256_v2 = vld [vmem:[%s20801_s6 + $0x38] sm:$0xff]  }
 0x26c   : > { %v1894_v14 = vpop.permute.xlu1 %1893  ;;  %v3827_v40 = vpop.f32.mrf.mxu0  ;;  %15704 = vmatpush3.bf16.msra.mxu0 %v16256_v2 }
 0x26d   : > { %v4003_v62 = vsel %vm3939_vm3, %v3815_v5, %v3971_v18 }
 0x26e   : > { %4036 = vst.msk [vmem:[#allocation3 + $0x21] sm:$0xff] %vm433_vm2, %v4003_v62  ;;  %v1635_v16 = vpop.permute.xlu0 %1634  ;;  %4389 = vrot.lane.b32.xlu1 %v14723_v20, %s20808_s15 }
 0x26f   : > { %1701 = vst.msk [vmem:[#allocation4 + $0x168] sm:$0xf] %vm1670_vm7, %v1635_v16 }
 0x270   : > { %1958 = vst.msk [vmem:[#allocation4 + $0x168] sm:$0xf] %vm1927_vm0, %v1892_v28  ;;  %v1380_v30 = vpop.permute.xlu1 %1379 }
 0x271   : > { %1445 = vst.msk [vmem:[#allocation4 + $0x174] sm:$0xf] %vm1413_vm5, %v1380_v30  ;;  %v4261_v38 = vld [vmem:[#allocation3 + $0x19] sm:$0xff] }
 0x272   : > { %v4771_v0 = vld [vmem:[#allocation3 + $0x18] sm:$0xff]  ;;  %v2822_v51 = vpop.permute.xlu0 %2821  ;;  %v14724_v54 = vpack.c.bf16 %v4261_v38, %v4261_v38  ;;  %4645 = vrot.lane.b32.xlu1 %v14755_v58, %s16483_s16  ;;  %v16258_v58 = vld [vmem:[%s20801_s6 + $0x70] sm:$0xff]  }
 0x273   : > { %v5027_v4 = vld [vmem:[#allocation3 + $0x19] sm:$0xff]  ;;  %v14786_v33 = vpack.c.bf16 %v4771_v0, %v4771_v0  ;;  %2903 = vst.msk [vmem:[#allocation4 + $0xac] sm:$0xf] %vm1927_vm0, %v2822_v51  ;;  %15705 = vmatprep.subr.bf16.mxu0 %v16258_v58 }
 0x274   : > { %v14818_v9 = vpack.c.bf16 %v5027_v4, %v5027_v4  ;;  %4391 = vrot.lane.b32.xlu0 %v14724_v54, %s20808_s15  ;;  %v1637_v35 = vpop.permute.xlu1 %1636  ;;  %v16259_v54 = vld [vmem:[%s20801_s6 + $0x30] sm:$0xff]  }
 0x275   : > { %4229 = vst.msk [vmem:[#allocation4 + $0x18] sm:$0xf] %vm1156_vm6, %v14786_v33  ;;  %v4262_v17 = vld [vmem:[#allocation3 + $0x21] sm:$0xff]  ;;  %15706 = vmatpush3.bf16.msra.mxu0 %v16259_v54 }
 0x276   : > { %5187 = vst.msk [vmem:[#allocation4 + $0x4] sm:$0xf] %vm1156_vm6, %v14818_v9  ;;  %v4772_v10 = vld [vmem:[#allocation3 + $0x20] sm:$0xff]  ;;  %v2313_v37 = vpop.permute.xlu0 %2312  ;;  %v14725_v48 = vpack.c.bf16 %v4262_v17, %v4262_v17  ;;  %v16260_v17 = vld [vmem:[%s20801_s6 + $0x68] sm:$0xff]  }
 0x277   : > { %1702 = vst.msk [vmem:[#allocation4 + $0x174] sm:$0xf] %vm1670_vm7, %v1637_v35  ;;  %v14787_v52 = vpack.c.bf16 %v4772_v10, %v4772_v10  ;;  %v5028_v27 = vld [vmem:[#allocation3 + $0x21] sm:$0xff]  ;;  %15707 = vmatprep.subr.bf16.mxu0 %v16260_v17 }
 0x278   : > { %1959 = vst.msk [vmem:[#allocation4 + $0x174] sm:$0xf] %vm1927_vm0, %v1894_v14  ;;  %v4518_v3 = vld [vmem:[#allocation3 + $0x22] sm:$0xff]  ;;  %v14819_v29 = vpack.c.bf16 %v5028_v27, %v5028_v27  ;;  %4899 = vrot.lane.b32.xlu0 %v14786_v33, %s20810_s20  ;;  %4393 = vrot.lane.b32.xlu1 %v14725_v48, %s20808_s15  ;;  %v1890_v26 = vpop.permute.xlu1 %1889  ;;  %v17847_v14 = vpop.f32.mrf.mxu0  ;;  %v4517_v58 = vld [vmem:[#allocation3 + $0x1a] sm:$0xff] }
 0x279   : > { %2392 = vst.msk [vmem:[#allocation4 + $0xc4] sm:$0xf] %vm1413_vm5, %v2313_v37  ;;  %v14757_v19 = vpack.c.bf16 %v4518_v3, %v4518_v3 }
 0x27a   : > { %4230 = vst.msk [vmem:[#allocation4 + $0x24] sm:$0xf] %vm1156_vm6, %v14787_v52  ;;  %5188 = vst.msk [vmem:[#allocation4 + $0x10] sm:$0xf] %vm1156_vm6, %v14819_v29  ;;  %v2570_v21 = vpop.permute.xlu0 %2569  ;;  %v3141_v28 = vld [vmem:[#allocation4 + $0xa8] sm:$0xff]  ;;  %v3830_v10 = vpop.f32.mrf.mxu0 }
 0x27b   : > { %1957 = vst.msk [vmem:[#allocation4 + $0x15c] sm:$0xf] %vm1927_vm0, %v1890_v26  ;;  %v16261_v29 = vld [vmem:[%s20801_s6 + $0x28] sm:$0xff]  }
 0x27c   : > { %2649 = vst.msk [vmem:[#allocation4 + $0xc4] sm:$0xf] %vm1670_vm7, %v2570_v21  ;;  %4649 = vrot.lane.b32.xlu1 %v14757_v19, %s16483_s16  ;;  %v2824_v11 = vpop.permute.xlu1 %2823  ;;  %15708 = vmatpush3.bf16.msra.mxu0 %v16261_v29 }
 0x27d   : > { %2904 = vst.msk [vmem:[#allocation4 + $0xb8] sm:$0xf] %vm1927_vm0, %v2824_v11 }
 0x27e   : > { %v2826_v6 = vpop.permute.xlu0 %2825 }
 0x27f   : > { %2905 = vst.msk [vmem:[#allocation4 + $0xc4] sm:$0xf] %vm1927_vm0, %v2826_v6 }
 0x280   : > { %5349 = vrot.lane.b32.xlu1 %v14757_v19, %s20808_s15  ;;  %v2315_v56 = vpop.permute.xlu1 %2314 }
 0x281   : > { %2393 = vst.msk [vmem:[#allocation4 + $0xd0] sm:$0xf] %vm1413_vm5, %v2315_v56  ;;  %v16262_v56 = vld [vmem:[%s20801_s6 + $0x60] sm:$0xff]  }
 0x282   : > { %v2317_v31 = vpop.permute.xlu0 %2316  ;;  %15709 = vmatprep.subr.bf16.mxu0 %v16262_v56 }
 0x283   : > { %2394 = vst.msk [vmem:[#allocation4 + $0xdc] sm:$0xf] %vm1413_vm5, %v2317_v31 }
 0x284   : > { %v3143_v59 = vld [vmem:[#allocation4 + $0xb4] sm:$0xff]  ;;  %4901 = vrot.lane.b32.xlu1 %v14787_v52, %s20810_s20  ;;  %v2572_v44 = vpop.permute.xlu1 %2571  ;;  %v15595_v57 = vpop.f32.mrf.mxu1 }
 0x285   : > { %2650 = vst.msk [vmem:[#allocation4 + $0xd0] sm:$0xf] %vm1670_vm7, %v2572_v44  ;;  %v13253_v23 = vcombine.high %v3141_v28, %v3143_v59  ;;  %v13252_v55 = vcombine.low %v3141_v28, %v3143_v59 }
 0x286   : > { %v2574_v25 = vpop.permute.xlu0 %2573  ;;  %v15596_v50 = vpop.f32.mrf.mxu1  ;;  %v3145_v20 = vld [vmem:[#allocation4 + $0xc0] sm:$0xff] }
 0x287   : > { %2651 = vst.msk [vmem:[#allocation4 + $0xdc] sm:$0xf] %vm1670_vm7, %v2574_v25  ;;  %v15597_v12 = vadd.f32 %v15596_v50, %v15595_v57  ;;  %3704 = vmatprep.mubr.bf16.mxu1 %v13253_v23 }
 0x288   : > { %v2828_v13 = vpop.permute.xlu1 %2827  ;;  %v15598_v15 = vpop.f32.mrf.mxu1  ;;  %3705 = vmatmul.mubr.bf16.gmra.mxu1 %v13252_v55 }
 0x289   : > { %v3659_v60 = vadd.f32 %v15597_v12, %v17770_v41  ;;  %2906 = vst.msk [vmem:[#allocation4 + $0xd0] sm:$0xf] %vm1927_vm0, %v2828_v13 }
 0x28a   : > { %v2830_v49 = vpop.permute.xlu0 %2829  ;;  %v15599_v34 = vpop.f32.mrf.mxu1 }
 0x28b   : > { %v3820_v1 = vadd.f32 %v17773_v61, %v3659_v60  ;;  %2907 = vst.msk [vmem:[#allocation4 + $0xdc] sm:$0xf] %vm1927_vm0, %v2830_v49  ;;  %v15600_v46 = vadd.f32 %v15599_v34, %v15598_v15  ;;  %v16263_v49 = vld [vmem:[%s20801_s6 + $0x20] sm:$0xff]  }
 0x28c   : > { %v2319_v36 = vpop.permute.xlu1 %2318  ;;  %v15601_v47 = vpop.f32.mrf.mxu1  ;;  %15710 = vmatpush3.bf16.msra.mxu0 %v16263_v49 }
 0x28d   : > { %vm3940_vm4 = vcmp.ge.f32.partialorder %v3820_v1, 0.0  ;;  %v3972_v42 = vmul.f32 0.01, %v3820_v1  ;;  %v3662_v8 = vadd.f32 %v15600_v46, %v17770_v41  ;;  %2395 = vst.msk [vmem:[#allocation4 + $0xe8] sm:$0xf] %vm1413_vm5, %v2319_v36 }
 0x28e   : > { %v2321_v22 = vpop.permute.xlu0 %2320  ;;  %v15602_v7 = vpop.f32.mrf.mxu1 }
 0x28f   : > { %v4004_v39 = vsel %vm3940_vm4, %v3820_v1, %v3972_v42  ;;  %v3823_v61 = vadd.f32 %v17782_v63, %v3662_v8  ;;  %2396 = vst.msk [vmem:[#allocation4 + $0xf4] sm:$0xf] %vm1413_vm5, %v2321_v22  ;;  %v15603_v5 = vadd.f32 %v15602_v7, %v15601_v47  ;;  %v16264_v7 = vld [vmem:[%s20801_s6 + $0x58] sm:$0xff]  }
 0x290   : > { %4037 = vst.msk [vmem:[#allocation3 + $0x31] sm:$0xff] %vm433_vm2, %v4004_v39  ;;  %v3147_v24 = vld [vmem:[#allocation4 + $0xcc] sm:$0xff]  ;;  %v2576_v18 = vpop.permute.xlu1 %2575  ;;  %v15604_v53 = vpop.f32.mrf.mxu1  ;;  %15711 = vmatprep.subr.bf16.mxu0 %v16264_v7 }
 0x291   : > { %vm3941_vm8 = vcmp.ge.f32.partialorder %v3823_v61, 0.0  ;;  %v3973_v62 = vmul.f32 0.01, %v3823_v61  ;;  %v3667_v63 = vadd.f32 %v15603_v5, %v17770_v41  ;;  %2652 = vst.msk [vmem:[#allocation4 + $0xe8] sm:$0xf] %vm1670_vm7, %v2576_v18  ;;  %v13256_v16 = vcombine.high %v3145_v20, %v3147_v24 }
 0x292   : > { %v2578_v32 = vpop.permute.xlu0 %2577  ;;  %v15605_v30 = vpop.f32.mrf.mxu1  ;;  %v13255_v38 = vcombine.low %v3145_v20, %v3147_v24  ;;  %v3149_v28 = vld [vmem:[#allocation4 + $0xd8] sm:$0xff] }
 0x293   : > { %v4005_v0 = vsel %vm3941_vm8, %v3823_v61, %v3973_v62  ;;  %v3828_v4 = vadd.f32 %v3827_v40, %v3667_v63  ;;  %2653 = vst.msk [vmem:[#allocation4 + $0xf4] sm:$0xf] %vm1670_vm7, %v2578_v32  ;;  %v15606_v51 = vadd.f32 %v15605_v30, %v15604_v53  ;;  %3712 = vmatprep.mubr.bf16.mxu1 %v13256_v16  ;;  %v16265_v61 = vld [vmem:[%s20801_s6 + $0x18] sm:$0xff]   ;;  %v16266_v63 = vld [vmem:[%s20801_s6 + $0x50] sm:$0xff]  }
 0x294   : > { %4038 = vst.msk [vmem:[#allocation3 + $0x39] sm:$0xff] %vm433_vm2, %v4005_v0  ;;  %v2832_v33 = vpop.permute.xlu1 %2831  ;;  %3713 = vmatmul.mubr.bf16.gmra.mxu1 %v13255_v38  ;;  %15712 = vmatpush3.bf16.msra.mxu0 %v16265_v61  ;;  %v16267_v0 = vld [vmem:[%s20801_s6 + $0x10] sm:$0xff]  }
 0x295   : > { %vm3942_vm9 = vcmp.ge.f32.partialorder %v3828_v4, 0.0  ;;  %v3974_v9 = vmul.f32 0.01, %v3828_v4  ;;  %v3670_v35 = vadd.f32 %v15606_v51, %v17770_v41  ;;  %2908 = vst.msk [vmem:[#allocation4 + $0xe8] sm:$0xf] %vm1927_vm0, %v2832_v33  ;;  %15713 = vmatprep.subr.bf16.mxu0 %v16266_v63  ;;  %v14756_v33 = vpack.c.bf16 %v4517_v58, %v4517_v58 }
 0x296   : > { %v2834_v37 = vpop.permute.xlu0 %2833 }
 0x297   : > { %v4006_v48 = vsel %vm3942_vm9, %v3828_v4, %v3974_v9  ;;  %v3831_v52 = vadd.f32 %v3830_v10, %v3670_v35  ;;  %2909 = vst.msk [vmem:[#allocation4 + $0xf4] sm:$0xf] %vm1927_vm0, %v2834_v37  ;;  %v4263_v27 = vld [vmem:[#allocation3 + $0x31] sm:$0xff] }
 0x298   : > { %v5476_v3 = vld [vmem:[#allocation3 + $0x30] sm:$0xff]  ;;  %4039 = vst.msk [vmem:[#allocation3 + $0x49] sm:$0xff] %vm433_vm2, %v4006_v48  ;;  %v2323_v26 = vpop.permute.xlu1 %2322  ;;  %v14726_v21 = vpack.c.bf16 %v4263_v27, %v4263_v27  ;;  %15714 = vmatpush3.bf16.msra.mxu0 %v16267_v0  ;;  %v16268_v9 = vld [vmem:[%s20801_s6 + $0x48] sm:$0xff]  }
 0x299   : > { %v17869_v19 = vpack.c.bf16 %v5476_v3, %v5476_v3  ;;  %v5029_v11 = vld [vmem:[#allocation3 + $0x31] sm:$0xff]  ;;  %vm3943_vm10 = vcmp.ge.f32.partialorder %v3831_v52, 0.0  ;;  %v3975_v6 = vmul.f32 0.01, %v3831_v52  ;;  %2397 = vst.msk [vmem:[#allocation4 + $0x100] sm:$0xf] %vm1413_vm5, %v2323_v26  ;;  %15715 = vmatprep.subr.bf16.mxu0 %v16268_v9 }
 0x29a   : > { %v14820_v31 = vpack.c.bf16 %v5029_v11, %v5029_v11  ;;  %v2325_v59 = vpop.permute.xlu0 %2324  ;;  %4395 = vrot.lane.b32.xlu0 %v14726_v21, %s20808_s15  ;;  %v16269_v10 = vld [vmem:[%s20801_s6 + $0x8] sm:$0xff]   ;;  %v16270_v48 = vld [vmem:[%s20801_s6 + $0x40] sm:$0xff]  }
 0x29b   : > { %4231 = vst.msk [vmem:[#allocation4 + $0x30] sm:$0xf] %vm1156_vm6, %v17869_v19  ;;  %v5988_v44 = vld [vmem:[#allocation3 + $0x32] sm:$0xff]  ;;  %v4007_v57 = vsel %vm3943_vm10, %v3831_v52, %v3975_v6  ;;  %v4520_v55 = vld [vmem:[#allocation3 + $0x3a] sm:$0xff] }
 0x29c   : > { %2398 = vst.msk [vmem:[#allocation4 + $0x10c] sm:$0xf] %vm1413_vm5, %v2325_v59  ;;  %v4264_v23 = vld [vmem:[#allocation3 + $0x39] sm:$0xff]  ;;  %v17880_v25 = vpack.c.bf16 %v5988_v44, %v5988_v44  ;;  %v2580_v12 = vpop.permute.xlu1 %2579  ;;  %v17885_v15 = vpack.c.bf16 %v4520_v55, %v4520_v55  ;;  %15716 = vmatpush3.bf16.msra.mxu0 %v16269_v10  ;;  %v16271_v27 = vld [vmem:[%s20801_s6] sm:$0xff]  }
 0x29d   : > { %5189 = vst.msk [vmem:[#allocation4 + $0x1c] sm:$0xf] %vm1156_vm6, %v14820_v31  ;;  %v3151_v50 = vld [vmem:[#allocation4 + $0xe4] sm:$0xff]  ;;  %v17883_v13 = vpack.c.bf16 %v4264_v23, %v4264_v23  ;;  %15717 = vmatprep.subr.bf16.mxu0 %v16270_v48 }
 0x29e   : > { %4040 = vst.msk [vmem:[#allocation3 + $0x51] sm:$0xff] %vm433_vm2, %v4007_v57  ;;  %v5477_v60 = vld [vmem:[#allocation3 + $0x38] sm:$0xff]  ;;  %v13259_v34 = vcombine.high %v3149_v28, %v3151_v50  ;;  %v13258_v1 = vcombine.low %v3149_v28, %v3151_v50  ;;  %v2582_v47 = vpop.permute.xlu0 %2581  ;;  %5604 = vrot.lane.b32.xlu0 %v17869_v19, %s16483_s16  ;;  %v3153_v4 = vld [vmem:[#allocation4 + $0xf0] sm:$0xff] }
 0x29f   : > { %2654 = vst.msk [vmem:[#allocation4 + $0x100] sm:$0xf] %vm1670_vm7, %v2580_v12  ;;  %v17891_v46 = vpack.c.bf16 %v5477_v60, %v5477_v60  ;;  %v5030_v36 = vld [vmem:[#allocation3 + $0x39] sm:$0xff]  ;;  %4397 = vrot.lane.b32.xlu1 %v17883_v13, %s20808_s15  ;;  %2655 = vst.msk [vmem:[#allocation4 + $0x10c] sm:$0xf] %vm1670_vm7, %v2582_v47  ;;  %v5478_v42 = vld [vmem:[#allocation3 + $0x48] sm:$0xff] }
 0x2a0   : > { %6148 = vst.msk [vmem:[#allocation4 + $0x8] sm:$0xf] %vm1156_vm6, %v17880_v25  ;;  %6149 = vst.msk [vmem:[#allocation4 + $0x14] sm:$0xf] %vm1156_vm6, %v17885_v15  ;;  %v14821_v40 = vpack.c.bf16 %v5030_v36, %v5030_v36  ;;  %3720 = vmatprep.mubr.bf16.mxu1 %v13259_v34  ;;  %v5031_v8 = vld [vmem:[#allocation3 + $0x49] sm:$0xff]  ;;  %v2836_v43 = vpop.permute.xlu1 %2835  ;;  %v17904_v22 = vpack.c.bf16 %v5478_v42, %v5478_v42  ;;  %15718 = vmatpush3.bf16.msra.mxu0 %v16271_v27 }
 0x2a1   : > { %4232 = vst.msk [vmem:[#allocation4 + $0x3c] sm:$0xf] %vm1156_vm6, %v17891_v46  ;;  %3721 = vmatmul.mubr.bf16.gmra.mxu1 %v13258_v1  ;;  %v14822_v39 = vpack.c.bf16 %v5031_v8, %v5031_v8  ;;  %v4265_v44 = vld [vmem:[#allocation3 + $0x49] sm:$0xff] }
 0x2a2   : > { %5190 = vst.msk [vmem:[#allocation4 + $0x28] sm:$0xf] %vm1156_vm6, %v14821_v40  ;;  %v2838_v5 = vpop.permute.xlu0 %2837  ;;  %5860 = vrot.lane.b32.xlu0 %v14726_v21, %s20810_s20  ;;  %4233 = vst.msk [vmem:[#allocation4 + $0x48] sm:$0xf] %vm1156_vm6, %v17904_v22 }
 0x2a3   : > { %2910 = vst.msk [vmem:[#allocation4 + $0x100] sm:$0xf] %vm1927_vm0, %v2836_v43  ;;  %4653 = vrot.lane.b32.xlu1 %v17885_v15, %s16483_s16  ;;  %2911 = vst.msk [vmem:[#allocation4 + $0x10c] sm:$0xf] %vm1927_vm0, %v2838_v5 }
 0x2a4   : > { %5191 = vst.msk [vmem:[#allocation4 + $0x34] sm:$0xf] %vm1156_vm6, %v14822_v39  ;;  %v2327_v18 = vpop.permute.xlu1 %2326 }
 0x2a5   : > { %v5990_v2 = vld [vmem:[#allocation3 + $0x4a] sm:$0xff]  ;;  %v4522_v20 = vld [vmem:[#allocation3 + $0x52] sm:$0xff]  ;;  %2399 = vst.msk [vmem:[#allocation4 + $0x118] sm:$0xf] %vm1413_vm5, %v2327_v18 }
 0x2a6   : > { %v17921_v24 = vpack.c.bf16 %v5990_v2, %v5990_v2  ;;  %v17923_v53 = vpack.c.bf16 %v4522_v20, %v4522_v20  ;;  %v5479_v62 = vld [vmem:[#allocation3 + $0x50] sm:$0xff]  ;;  %v2329_v38 = vpop.permute.xlu0 %2328  ;;  %4903 = vrot.lane.b32.xlu0 %v17869_v19, %s20810_s20 }
 0x2a7   : > { %v5032_v16 = vld [vmem:[#allocation3 + $0x51] sm:$0xff]  ;;  %v17929_v32 = vpack.c.bf16 %v5479_v62, %v5479_v62  ;;  %5606 = vrot.lane.b32.xlu1 %v17891_v46, %s16483_s16  ;;  %2400 = vst.msk [vmem:[#allocation4 + $0x124] sm:$0xf] %vm1413_vm5, %v2329_v38 }
 0x2a8   : > { %v14823_v30 = vpack.c.bf16 %v5032_v16, %v5032_v16  ;;  %6150 = vst.msk [vmem:[#allocation4 + $0x20] sm:$0xf] %vm1156_vm6, %v17921_v24  ;;  %6151 = vst.msk [vmem:[#allocation4 + $0x2c] sm:$0xf] %vm1156_vm6, %v17923_v53  ;;  %v2584_v54 = vpop.permute.xlu1 %2583  ;;  %v4266_v26 = vld [vmem:[#allocation3 + $0x51] sm:$0xff] }
 0x2a9   : > { %4234 = vst.msk [vmem:[#allocation4 + $0x54] sm:$0xf] %vm1156_vm6, %v17929_v32  ;;  %v14729_v31 = vpack.c.bf16 %v4266_v26, %v4266_v26 }
 0x2aa   : > { %5192 = vst.msk [vmem:[#allocation4 + $0x40] sm:$0xf] %vm1156_vm6, %v14823_v30  ;;  %v3155_v51 = vld [vmem:[#allocation4 + $0xfc] sm:$0xff]  ;;  %v2586_v37 = vpop.permute.xlu0 %2585  ;;  %4647 = vrot.lane.b32.xlu0 %v14756_v33, %s16483_s16  ;;  %v3157_v19 = vld [vmem:[#allocation4 + $0x108] sm:$0xff] }
 0x2ab   : > { %2656 = vst.msk [vmem:[#allocation4 + $0x118] sm:$0xf] %vm1670_vm7, %v2584_v54  ;;  %v13262_v35 = vcombine.high %v3153_v4, %v3155_v51  ;;  %v13261_v17 = vcombine.low %v3153_v4, %v3155_v51  ;;  %5862 = vrot.lane.b32.xlu1 %v17883_v13, %s20810_s20  ;;  %2657 = vst.msk [vmem:[#allocation4 + $0x124] sm:$0xf] %vm1670_vm7, %v2586_v37  ;;  %v14728_v13 = vpack.c.bf16 %v4265_v44, %v4265_v44 }
 0x2ac   : > { %v2840_v52 = vpop.permute.xlu1 %2839 }
 0x2ad   : > { %3728 = vmatprep.mubr.bf16.mxu1 %v13262_v35  ;;  %2912 = vst.msk [vmem:[#allocation4 + $0x118] sm:$0xf] %vm1927_vm0, %v2840_v52 }
 0x2ae   : > { %3729 = vmatmul.mubr.bf16.gmra.mxu1 %v13261_v17  ;;  %v2842_v3 = vpop.permute.xlu0 %2841  ;;  %5347 = vrot.lane.b32.xlu0 %v14756_v33, %s20819_s26 }
 0x2af   : > { %5353 = vrot.lane.b32.xlu1 %v17885_v15, %s20819_s26  ;;  %2913 = vst.msk [vmem:[#allocation4 + $0x124] sm:$0xf] %vm1927_vm0, %v2842_v3  ;;  %v17979_v15 = vpop.f32.mrf.mxu0 }
 0x2b0   : > { %v2331_v29 = vpop.permute.xlu1 %2330 }
 0x2b1   : > { %2401 = vst.msk [vmem:[#allocation4 + $0x130] sm:$0xf] %vm1413_vm5, %v2331_v29  ;;  %v3843_v47 = vpop.f32.mrf.mxu0 }
 0x2b2   : > { %v2333_v21 = vpop.permute.xlu0 %2332  ;;  %4651 = vrot.lane.b32.xlu0 %v17880_v25, %s16483_s16 }
 0x2b3   : > { %4905 = vrot.lane.b32.xlu1 %v17891_v46, %s20810_s20  ;;  %2402 = vst.msk [vmem:[#allocation4 + $0x13c] sm:$0xf] %vm1413_vm5, %v2333_v21  ;;  %v17997_v18 = vpop.f32.mrf.mxu0 }
 0x2b4   : > { %v3159_v11 = vld [vmem:[#allocation4 + $0x114] sm:$0xff]  ;;  %v2588_v6 = vpop.permute.xlu1 %2587  ;;  %v15607_v56 = vpop.f32.mrf.mxu1 }
 0x2b5   : > { %2658 = vst.msk [vmem:[#allocation4 + $0x130] sm:$0xf] %vm1670_vm7, %v2588_v6  ;;  %v13265_v28 = vcombine.high %v3157_v19, %v3159_v11  ;;  %v13264_v59 = vcombine.low %v3157_v19, %v3159_v11  ;;  %v3846_v9 = vpop.f32.mrf.mxu0 }
 0x2b6   : > { %v2590_v57 = vpop.permute.xlu0 %2589  ;;  %v15608_v23 = vpop.f32.mrf.mxu1  ;;  %5351 = vrot.lane.b32.xlu0 %v17880_v25, %s20819_s26  ;;  %v3161_v61 = vld [vmem:[#allocation4 + $0x120] sm:$0xff] }
 0x2b7   : > { %4401 = vrot.lane.b32.xlu1 %v14729_v31, %s20819_s26  ;;  %2659 = vst.msk [vmem:[#allocation4 + $0x13c] sm:$0xf] %vm1670_vm7, %v2590_v57  ;;  %v15609_v55 = vadd.f32 %v15608_v23, %v15607_v56  ;;  %3736 = vmatprep.mubr.bf16.mxu1 %v13265_v28 }
 0x2b8   : > { %v2844_v50 = vpop.permute.xlu1 %2843  ;;  %v15610_v12 = vpop.f32.mrf.mxu1  ;;  %3737 = vmatmul.mubr.bf16.gmra.mxu1 %v13264_v59 }
 0x2b9   : > { %v3675_v60 = vadd.f32 %v15609_v55, %v17770_v41  ;;  %2914 = vst.msk [vmem:[#allocation4 + $0x130] sm:$0xf] %vm1927_vm0, %v2844_v50 }
 0x2ba   : > { %v2846_v49 = vpop.permute.xlu0 %2845  ;;  %v15611_v34 = vpop.f32.mrf.mxu1  ;;  %4399 = vrot.lane.b32.xlu0 %v14728_v13, %s20819_s26 }
 0x2bb   : > { %4657 = vrot.lane.b32.xlu1 %v17923_v53, %s16483_s16  ;;  %v3836_v25 = vadd.f32 %v17830_v45, %v3675_v60  ;;  %2915 = vst.msk [vmem:[#allocation4 + $0x13c] sm:$0xf] %vm1927_vm0, %v2846_v49  ;;  %v15612_v1 = vadd.f32 %v15611_v34, %v15610_v12 }
 0x2bc   : > { %v2335_v46 = vpop.permute.xlu1 %2334  ;;  %v15613_v36 = vpop.f32.mrf.mxu1 }
 0x2bd   : > { %vm3944_vm11 = vcmp.ge.f32.partialorder %v3836_v25, 0.0  ;;  %v3976_v40 = vmul.f32 0.01, %v3836_v25  ;;  %v3678_v42 = vadd.f32 %v15612_v1, %v17770_v41  ;;  %2403 = vst.msk [vmem:[#allocation4 + $0x148] sm:$0xf] %vm1413_vm5, %v2335_v46 }
 0x2be   : > { %v2337_v8 = vpop.permute.xlu0 %2336  ;;  %v15614_v43 = vpop.f32.mrf.mxu1  ;;  %5608 = vrot.lane.b32.xlu0 %v17904_v22, %s16483_s16 }
 0x2bf   : > { %5610 = vrot.lane.b32.xlu1 %v17929_v32, %s16483_s16  ;;  %v4008_v45 = vsel %vm3944_vm11, %v3836_v25, %v3976_v40  ;;  %v3839_v7 = vadd.f32 %v17847_v14, %v3678_v42  ;;  %2404 = vst.msk [vmem:[#allocation4 + $0x154] sm:$0xf] %vm1413_vm5, %v2337_v8  ;;  %v15615_v39 = vadd.f32 %v15614_v43, %v15613_v36 }
 0x2c0   : > { %4041 = vst.msk [vmem:[#allocation3 + $0x61] sm:$0xff] %vm433_vm2, %v4008_v45  ;;  %v3163_v5 = vld [vmem:[#allocation4 + $0x12c] sm:$0xff]  ;;  %v2592_v2 = vpop.permute.xlu1 %2591  ;;  %v15616_v20 = vpop.f32.mrf.mxu1 }
 0x2c1   : > { %vm3945_vm12 = vcmp.ge.f32.partialorder %v3839_v7, 0.0  ;;  %v3977_v62 = vmul.f32 0.01, %v3839_v7  ;;  %v3683_v63 = vadd.f32 %v15615_v39, %v17770_v41  ;;  %2660 = vst.msk [vmem:[#allocation4 + $0x148] sm:$0xf] %vm1670_vm7, %v2592_v2  ;;  %v13268_v16 = vcombine.high %v3161_v61, %v3163_v5 }
 0x2c2   : > { %v2594_v58 = vpop.permute.xlu0 %2593  ;;  %v15617_v14 = vpop.f32.mrf.mxu1  ;;  %5864 = vrot.lane.b32.xlu0 %v14728_v13, %s20810_s20  ;;  %v13267_v30 = vcombine.low %v3161_v61, %v3163_v5 }
 0x2c3   : > { %5866 = vrot.lane.b32.xlu1 %v14729_v31, %s20810_s20  ;;  %v4009_v38 = vsel %vm3945_vm12, %v3839_v7, %v3977_v62  ;;  %v3844_v0 = vadd.f32 %v3843_v47, %v3683_v63  ;;  %2661 = vst.msk [vmem:[#allocation4 + $0x154] sm:$0xf] %vm1670_vm7, %v2594_v58  ;;  %v15618_v4 = vadd.f32 %v15617_v14, %v15616_v20 }
 0x2c4   : > { %3744 = vmatprep.mubr.bf16.mxu1 %v13268_v16  ;;  %4042 = vst.msk [vmem:[#allocation3 + $0x69] sm:$0xff] %vm433_vm2, %v4009_v38  ;;  %v2848_v51 = vpop.permute.xlu1 %2847 }
 0x2c5   : > { %3745 = vmatmul.mubr.bf16.gmra.mxu1 %v13267_v30  ;;  %vm3946_vm13 = vcmp.ge.f32.partialorder %v3844_v0, 0.0  ;;  %v3978_v54 = vmul.f32 0.01, %v3844_v0  ;;  %v3686_v33 = vadd.f32 %v15618_v4, %v17770_v41  ;;  %2916 = vst.msk [vmem:[#allocation4 + $0x148] sm:$0xf] %vm1927_vm0, %v2848_v51 }
 0x2c6   : > { %v2850_v35 = vpop.permute.xlu0 %2849  ;;  %4907 = vrot.lane.b32.xlu0 %v17904_v22, %s20810_s20 }
 0x2c7   : > { %5357 = vrot.lane.b32.xlu1 %v17923_v53, %s20819_s26  ;;  %v4010_v17 = vsel %vm3946_vm13, %v3844_v0, %v3978_v54  ;;  %v3847_v10 = vadd.f32 %v3846_v9, %v3686_v33  ;;  %2917 = vst.msk [vmem:[#allocation4 + $0x154] sm:$0xf] %vm1927_vm0, %v2850_v35  ;;  %v5480_v37 = vld [vmem:[#allocation3 + $0x60] sm:$0xff]  ;;  %v3165_v53 = vld [vmem:[#allocation4 + $0x138] sm:$0xff] }
 0x2c8   : > { %v5033_v48 = vld [vmem:[#allocation3 + $0x61] sm:$0xff]  ;;  %4043 = vst.msk [vmem:[#allocation3 + $0x79] sm:$0xff] %vm433_vm2, %v4010_v17  ;;  %v2339_v52 = vpop.permute.xlu1 %2338  ;;  %v18013_v41 = vpack.c.bf16 %v5480_v37, %v5480_v37 }
 0x2c9   : > { %v14824_v27 = vpack.c.bf16 %v5033_v48, %v5033_v48  ;;  %vm3947_vm14 = vcmp.ge.f32.partialorder %v3847_v10, 0.0  ;;  %v3979_v3 = vmul.f32 0.01, %v3847_v10  ;;  %2405 = vst.msk [vmem:[#allocation4 + $0x160] sm:$0xf] %vm1413_vm5, %v2339_v52  ;;  %v4267_v23 = vld [vmem:[#allocation3 + $0x61] sm:$0xff] }
 0x2ca   : > { %v2341_v29 = vpop.permute.xlu0 %2340  ;;  %4655 = vrot.lane.b32.xlu0 %v17921_v24, %s16483_s16  ;;  %4235 = vst.msk [vmem:[#allocation4 + $0x60] sm:$0xf] %vm1156_vm6, %v18013_v41  ;;  %v14730_v34 = vpack.c.bf16 %v4267_v23, %v4267_v23  ;;  %v16249_v37 = vld [vmem:[#allocation4 + $0x8] ss:$12 sps:$4 sm:$0xff]  }
 0x2cb   : > { %4909 = vrot.lane.b32.xlu1 %v17929_v32, %s20810_s20  ;;  %5193 = vst.msk [vmem:[#allocation4 + $0x4c] sm:$0xf] %vm1156_vm6, %v14824_v27  ;;  %v5992_v22 = vld [vmem:[#allocation3 + $0x62] sm:$0xff]  ;;  %v4011_v26 = vsel %vm3947_vm14, %v3847_v10, %v3979_v3  ;;  %v4524_v19 = vld [vmem:[#allocation3 + $0x6a] sm:$0xff] }
 0x2cc   : > { %2406 = vst.msk [vmem:[#allocation4 + $0x16c] sm:$0xf] %vm1413_vm5, %v2341_v29  ;;  %v4268_v21 = vld [vmem:[#allocation3 + $0x69] sm:$0xff]  ;;  %v18024_v11 = vpack.c.bf16 %v5992_v22, %v5992_v22  ;;  %v3167_v6 = vld [vmem:[#allocation4 + $0x144] sm:$0xff]  ;;  %v2596_v32 = vpop.permute.xlu1 %2595  ;;  %v18027_v31 = vpack.c.bf16 %v4524_v19, %v4524_v19  ;;  %v18096_v29 = vpop.f32.mrf.mxu0 }
 0x2cd   : > { %4044 = vst.msk [vmem:[#allocation3 + $0x81] sm:$0xff] %vm433_vm2, %v4011_v26  ;;  %v14731_v56 = vpack.c.bf16 %v4268_v21, %v4268_v21  ;;  %v5481_v28 = vld [vmem:[#allocation3 + $0x68] sm:$0xff]  ;;  %v13271_v44 = vcombine.high %v3165_v53, %v3167_v6  ;;  %v13270_v57 = vcombine.low %v3165_v53, %v3167_v6 }
 0x2ce   : > { %v5034_v59 = vld [vmem:[#allocation3 + $0x69] sm:$0xff]  ;;  %2662 = vst.msk [vmem:[#allocation4 + $0x160] sm:$0xf] %vm1670_vm7, %v2596_v32  ;;  %v14887_v55 = vpack.c.bf16 %v5481_v28, %v5481_v28  ;;  %v2598_v12 = vpop.permute.xlu0 %2597  ;;  %5355 = vrot.lane.b32.xlu0 %v17921_v24, %s20819_s26  ;;  %v3169_v61 = vld [vmem:[#allocation4 + $0x150] sm:$0xff] }
 0x2cf   : > { %v14825_v50 = vpack.c.bf16 %v5034_v59, %v5034_v59  ;;  %6152 = vst.msk [vmem:[#allocation4 + $0x38] sm:$0xf] %vm1156_vm6, %v18024_v11  ;;  %4405 = vrot.lane.b32.xlu1 %v14731_v56, %s20819_s26  ;;  %6153 = vst.msk [vmem:[#allocation4 + $0x44] sm:$0xf] %vm1156_vm6, %v18027_v31  ;;  %3752 = vmatprep.mubr.bf16.mxu1 %v13271_v44  ;;  %v5482_v13 = vld [vmem:[#allocation3 + $0x78] sm:$0xff] }
 0x2d0   : > { %2663 = vst.msk [vmem:[#allocation4 + $0x16c] sm:$0xf] %vm1670_vm7, %v2598_v12  ;;  %v5035_v60 = vld [vmem:[#allocation3 + $0x79] sm:$0xff]  ;;  %v2852_v49 = vpop.permute.xlu1 %2851  ;;  %3753 = vmatmul.mubr.bf16.gmra.mxu1 %v13270_v57  ;;  %v18040_v25 = vpack.c.bf16 %v5482_v13, %v5482_v13 }
 0x2d1   : > { %4236 = vst.msk [vmem:[#allocation4 + $0x6c] sm:$0xf] %vm1156_vm6, %v14887_v55  ;;  %5194 = vst.msk [vmem:[#allocation4 + $0x58] sm:$0xf] %vm1156_vm6, %v14825_v50  ;;  %v14826_v1 = vpack.c.bf16 %v5035_v60, %v5035_v60  ;;  %v4269_v9 = vld [vmem:[#allocation3 + $0x79] sm:$0xff] }
 0x2d2   : > { %2918 = vst.msk [vmem:[#allocation4 + $0x160] sm:$0xf] %vm1927_vm0, %v2852_v49  ;;  %v2854_v24 = vpop.permute.xlu0 %2853  ;;  %4403 = vrot.lane.b32.xlu0 %v14730_v34, %s20819_s26  ;;  %v14732_v52 = vpack.c.bf16 %v4269_v9, %v4269_v9 }
 0x2d3   : > { %4661 = vrot.lane.b32.xlu1 %v18027_v31, %s16483_s16  ;;  %4237 = vst.msk [vmem:[#allocation4 + $0x78] sm:$0xf] %vm1156_vm6, %v18040_v25  ;;  %5195 = vst.msk [vmem:[#allocation4 + $0x64] sm:$0xf] %vm1156_vm6, %v14826_v1 }
 0x2d4   : > { %v5994_v46 = vld [vmem:[#allocation3 + $0x7a] sm:$0xff]  ;;  %2919 = vst.msk [vmem:[#allocation4 + $0x16c] sm:$0xf] %vm1927_vm0, %v2854_v24  ;;  %v4526_v36 = vld [vmem:[#allocation3 + $0x82] sm:$0xff]  ;;  %v2343_v40 = vpop.permute.xlu1 %2342 }
 0x2d5   : > { %v18050_v47 = vpack.c.bf16 %v5994_v46, %v5994_v46  ;;  %v18052_v42 = vpack.c.bf16 %v4526_v36, %v4526_v36  ;;  %v5483_v8 = vld [vmem:[#allocation3 + $0x80] sm:$0xff]  ;;  %2407 = vst.msk [vmem:[#allocation4 + $0x178] sm:$0xf] %vm1413_vm5, %v2343_v40 }
 0x2d6   : > { %v5036_v43 = vld [vmem:[#allocation3 + $0x81] sm:$0xff]  ;;  %v18055_v45 = vpack.c.bf16 %v5483_v8, %v5483_v8  ;;  %5612 = vrot.lane.b32.xlu0 %v18013_v41, %s16483_s16  ;;  %v4388_v39 = vpop.permute.xlu0 %4387 }
 0x2d7   : > { %v14827_v7 = vpack.c.bf16 %v5036_v43, %v5036_v43  ;;  %6154 = vst.msk [vmem:[#allocation4 + $0x50] sm:$0xf] %vm1156_vm6, %v18050_v47  ;;  %5614 = vrot.lane.b32.xlu1 %v14887_v55, %s16483_s16  ;;  %6155 = vst.msk [vmem:[#allocation4 + $0x5c] sm:$0xf] %vm1156_vm6, %v18052_v42  ;;  %v4270_v14 = vld [vmem:[#allocation3 + $0x81] sm:$0xff] }
 0x2d8   : > { %4483 = vst.msk [vmem:[#allocation4] sm:$0xf] %vm1413_vm5, %v4388_v39  ;;  %v2600_v2 = vpop.permute.xlu1 %2599  ;;  %v14733_v51 = vpack.c.bf16 %v4270_v14, %v4270_v14  ;;  %v16252_v59 = vld [vmem:[#allocation4 + $0x38] ss:$12 sps:$4 sm:$0xff]  }
 0x2d9   : > { %4238 = vst.msk [vmem:[#allocation4 + $0x84] sm:$0xf] %vm1156_vm6, %v18055_v45  ;;  %5196 = vst.msk [vmem:[#allocation4 + $0x70] sm:$0xf] %vm1156_vm6, %v14827_v7  ;;  %v3171_v5 = vld [vmem:[#allocation4 + $0x15c] sm:$0xff] }
 0x2da   : > { %2664 = vst.msk [vmem:[#allocation4 + $0x178] sm:$0xf] %vm1670_vm7, %v2600_v2  ;;  %v13274_v20 = vcombine.high %v3169_v61, %v3171_v5  ;;  %v13273_v62 = vcombine.low %v3169_v61, %v3171_v5  ;;  %5868 = vrot.lane.b32.xlu0 %v14730_v34, %s20810_s20  ;;  %v4644_v63 = vpop.permute.xlu0 %4643 }
 0x2db   : > { %5870 = vrot.lane.b32.xlu1 %v14731_v56, %s20810_s20  ;;  %4739 = vst.msk [vmem:[#allocation4] sm:$0xf] %vm1670_vm7, %v4644_v63  ;;  %v3173_v30 = vld [vmem:[#allocation4 + $0x168] sm:$0xff] }
 0x2dc   : > { %3760 = vmatprep.mubr.bf16.mxu1 %v13274_v20  ;;  %v2856_v16 = vpop.permute.xlu1 %2855  ;;  %v16251_v56 = vld [vmem:[#allocation4 + $0x20] ss:$12 sps:$4 sm:$0xff]  }
 0x2dd   : > { %3761 = vmatmul.mubr.bf16.gmra.mxu1 %v13273_v62  ;;  %2920 = vst.msk [vmem:[#allocation4 + $0x178] sm:$0xf] %vm1927_vm0, %v2856_v16 }
 0x2de   : > { %4911 = vrot.lane.b32.xlu0 %v18013_v41, %s20810_s20  ;;  %v18089_v41 = vld [vmem:[%s20800_s5] ss:$0 sm:$0xff]  ;;  %v16253_v36 = vld [vmem:[#allocation4 + $0x50] ss:$12 sps:$4 sm:$0xff]  }
 0x2df   : > { %5361 = vrot.lane.b32.xlu1 %v18027_v31, %s20819_s26 }
 0x2e0   : > { %v4390_v58 = vpop.permute.xlu1 %4389 }
 0x2e1   : > { %4484 = vst.msk [vmem:[#allocation4 + $0xc] sm:$0xf] %vm1413_vm5, %v4390_v58 }
 0x2e2   : > { %4659 = vrot.lane.b32.xlu0 %v18024_v11, %s16483_s16 }
 0x2e3   : > { %4913 = vrot.lane.b32.xlu1 %v14887_v55, %s20810_s20 }
 0x2e4   : > { %v3175_v38 = vld [vmem:[#allocation4 + $0x174] sm:$0xff]  ;;  %v15619_v0 = vpop.f32.mrf.mxu1  ;;  %v4646_v4 = vpop.permute.xlu1 %4645 }
 0x2e5   : > { %4740 = vst.msk [vmem:[#allocation4 + $0xc] sm:$0xf] %vm1670_vm7, %v4646_v4  ;;  %v13277_v54 = vcombine.high %v3173_v30, %v3175_v38  ;;  %v13276_v33 = vcombine.low %v3173_v30, %v3175_v38 }
 0x2e6   : > { %v4392_v35 = vpop.permute.xlu0 %4391  ;;  %v15620_v17 = vpop.f32.mrf.mxu1  ;;  %5359 = vrot.lane.b32.xlu0 %v18024_v11, %s20819_s26 }
 0x2e7   : > { %4409 = vrot.lane.b32.xlu1 %v14733_v51, %s20819_s26  ;;  %4485 = vst.msk [vmem:[#allocation4 + $0x18] sm:$0xf] %vm1413_vm5, %v4392_v35  ;;  %v15621_v10 = vadd.f32 %v15620_v17, %v15619_v0  ;;  %3768 = vmatprep.mubr.bf16.mxu1 %v13277_v54 }
 0x2e8   : > { %v15622_v48 = vpop.f32.mrf.mxu1  ;;  %3769 = vmatmul.mubr.bf16.gmra.mxu1 %v13276_v33 }
 0x2e9   : > { %v3691_v27 = vadd.f32 %v18089_v41, %v15621_v10  ;;  %16057 = vmatprep.mubr.msk.bf16.mxu1 %vm433_vm2, %v16249_v37 }
 0x2ea   : > { %v4900_v3 = vpop.permute.xlu0 %4899  ;;  %v4394_v53 = vpop.permute.xlu1 %4393  ;;  %4407 = vrot.lane.b32.xlu0 %v14732_v52, %s20819_s26 }
 0x2eb   : > { %4665 = vrot.lane.b32.xlu1 %v18052_v42, %s16483_s16  ;;  %v3852_v22 = vadd.f32 %v17979_v15, %v3691_v27  ;;  %4995 = vst.msk [vmem:[#allocation4] sm:$0xf] %vm1927_vm0, %v4900_v3  ;;  %v15623_v26 = vpop.f32.mrf.mxu1  ;;  %v3859_v15 = vpop.f32.mrf.mxu0 }
 0x2ec   : > { %4486 = vst.msk [vmem:[#allocation4 + $0x24] sm:$0xf] %vm1413_vm5, %v4394_v53  ;;  %v15624_v21 = vadd.f32 %v15623_v26, %v15622_v48 }
 0x2ed   : > { %vm3948_vm15 = vcmp.ge.f32.partialorder %v3852_v22, 0.0  ;;  %v3980_v19 = vmul.f32 0.01, %v3852_v22  ;;  %v15625_v11 = vpop.f32.mrf.mxu1  ;;  %v18114_v13 = vpop.f32.mrf.mxu0 }
 0x2ee   : > { %v3694_v6 = vadd.f32 %v18089_v41, %v15624_v21  ;;  %v4650_v32 = vpop.permute.xlu1 %4649  ;;  %5616 = vrot.lane.b32.xlu0 %v18040_v25, %s16483_s16 }
 0x2ef   : > { %5618 = vrot.lane.b32.xlu1 %v18055_v45, %s16483_s16  ;;  %v4012_v31 = vsel %vm3948_vm15, %v3852_v22, %v3980_v19  ;;  %4742 = vst.msk [vmem:[#allocation4 + $0x24] sm:$0xf] %vm1670_vm7, %v4650_v32  ;;  %v15626_v28 = vpop.f32.mrf.mxu1  ;;  %v3862_v40 = vpop.f32.mrf.mxu0 }
 0x2f0   : > { %4045 = vst.msk [vmem:[#allocation3 + $0x91] sm:$0xff] %vm433_vm2, %v4012_v31  ;;  %v3855_v44 = vadd.f32 %v17997_v18, %v3694_v6  ;;  %v15627_v57 = vadd.f32 %v15626_v28, %v15625_v11  ;;  %16058 = vmatmul.mubr.msk.bf16.vlgmr.msra.gmra.mxu1 %vm433_vm2, %v16251_v56 }
 0x2f1   : > { %v15628_v23 = vpop.f32.mrf.mxu1  ;;  %16061 = vmatprep.mubr.msk.bf16.mxu1 %vm433_vm2, %v16252_v59 }
 0x2f2   : > { %vm3949_vm1 = vcmp.ge.f32.partialorder %v3855_v44, 0.0  ;;  %v3981_v55 = vmul.f32 0.01, %v3855_v44  ;;  %v3699_v50 = vadd.f32 %v18089_v41, %v15627_v57  ;;  %v5350_v12 = vpop.permute.xlu1 %5349  ;;  %5872 = vrot.lane.b32.xlu0 %v14732_v52, %s20810_s20 }
 0x2f3   : > { %5874 = vrot.lane.b32.xlu1 %v14733_v51, %s20810_s20  ;;  %5444 = vst.msk [vmem:[#allocation4 + $0x10] sm:$0xf] %vm1413_vm5, %v5350_v12  ;;  %v15629_v18 = vpop.f32.mrf.mxu1 }
 0x2f4   : > { %v4013_v60 = vsel %vm3949_vm1, %v3855_v44, %v3981_v55  ;;  %v3860_v49 = vadd.f32 %v3859_v15, %v3699_v50  ;;  %v15630_v34 = vadd.f32 %v15629_v18, %v15628_v23 }
 0x2f5   : > { %4046 = vst.msk [vmem:[#allocation3 + $0x99] sm:$0xff] %vm433_vm2, %v4013_v60 }
 0x2f6   : > { %vm3950_vm3 = vcmp.ge.f32.partialorder %v3860_v49, 0.0  ;;  %v3982_v1 = vmul.f32 0.01, %v3860_v49  ;;  %v3702_v24 = vadd.f32 %v18089_v41, %v15630_v34  ;;  %v4902_v46 = vpop.permute.xlu1 %4901  ;;  %4915 = vrot.lane.b32.xlu0 %v18040_v25, %s20810_s20 }
 0x2f7   : > { %5365 = vrot.lane.b32.xlu1 %v18052_v42, %s20819_s26  ;;  %4996 = vst.msk [vmem:[#allocation4 + $0xc] sm:$0xf] %vm1927_vm0, %v4902_v46  ;;  %v5484_v8 = vld [vmem:[#allocation3 + $0x90] sm:$0xff] }
 0x2f8   : > { %v5037_v43 = vld [vmem:[#allocation3 + $0x91] sm:$0xff]  ;;  %v4014_v7 = vsel %vm3950_vm3, %v3860_v49, %v3982_v1  ;;  %v3863_v39 = vadd.f32 %v3862_v40, %v3702_v24  ;;  %16062 = vmatmul.mubr.msk.bf16.gmra.mxu1 %vm433_vm2, %v16253_v36  ;;  %v14890_v61 = vpack.c.bf16 %v5484_v8, %v5484_v8 }
 0x2f9   : > { %4047 = vst.msk [vmem:[#allocation3 + $0xa9] sm:$0xff] %vm433_vm2, %v4014_v7  ;;  %v14828_v5 = vpack.c.bf16 %v5037_v43, %v5037_v43  ;;  %v4271_v14 = vld [vmem:[#allocation3 + $0x91] sm:$0xff] }
 0x2fa   : > { %vm3951_vm4 = vcmp.ge.f32.partialorder %v3863_v39, 0.0  ;;  %v3983_v2 = vmul.f32 0.01, %v3863_v39  ;;  %4663 = vrot.lane.b32.xlu0 %v18050_v47, %s16483_s16  ;;  %4239 = vst.msk [vmem:[#allocation4 + $0x90] sm:$0xf] %vm1156_vm6, %v14890_v61  ;;  %v14734_v4 = vpack.c.bf16 %v4271_v14, %v4271_v14 }
 0x2fb   : > { %4917 = vrot.lane.b32.xlu1 %v18055_v45, %s20810_s20  ;;  %5197 = vst.msk [vmem:[#allocation4 + $0x7c] sm:$0xf] %vm1156_vm6, %v14828_v5 }
 0x2fc   : > { %v5996_v25 = vld [vmem:[#allocation3 + $0x92] sm:$0xff]  ;;  %v4015_v42 = vsel %vm3951_vm4, %v3863_v39, %v3983_v2  ;;  %v4528_v62 = vld [vmem:[#allocation3 + $0x9a] sm:$0xff] }
 0x2fd   : > { %v4272_v20 = vld [vmem:[#allocation3 + $0x99] sm:$0xff]  ;;  %v14954_v63 = vpack.c.bf16 %v5996_v25, %v5996_v25  ;;  %4048 = vst.msk [vmem:[#allocation3 + $0xb1] sm:$0xff] %vm433_vm2, %v4015_v42  ;;  %v14767_v58 = vpack.c.bf16 %v4528_v62, %v4528_v62 }
 0x2fe   : > { %v14735_v16 = vpack.c.bf16 %v4272_v20, %v4272_v20  ;;  %v5485_v30 = vld [vmem:[#allocation3 + $0x98] sm:$0xff]  ;;  %5363 = vrot.lane.b32.xlu0 %v18050_v47, %s20819_s26 }
 0x2ff   : > { %v5038_v38 = vld [vmem:[#allocation3 + $0x99] sm:$0xff]  ;;  %v14891_v45 = vpack.c.bf16 %v5485_v30, %v5485_v30  ;;  %6156 = vst.msk [vmem:[#allocation4 + $0x68] sm:$0xf] %vm1156_vm6, %v14954_v63  ;;  %6157 = vst.msk [vmem:[#allocation4 + $0x74] sm:$0xf] %vm1156_vm6, %v14767_v58 }
 0x300   : > { %v14829_v0 = vpack.c.bf16 %v5038_v38, %v5038_v38  ;;  %4413 = vrot.lane.b32.xlu1 %v14735_v16, %s20819_s26  ;;  %v5486_v51 = vld [vmem:[#allocation3 + $0xa8] sm:$0xff] }
 0x301   : > { %4240 = vst.msk [vmem:[#allocation4 + $0x9c] sm:$0xf] %vm1156_vm6, %v14891_v45  ;;  %v5039_v54 = vld [vmem:[#allocation3 + $0xa9] sm:$0xff]  ;;  %v18140_v33 = vpack.c.bf16 %v5486_v51, %v5486_v51 }
 0x302   : > { %5198 = vst.msk [vmem:[#allocation4 + $0x88] sm:$0xf] %vm1156_vm6, %v14829_v0  ;;  %v14830_v9 = vpack.c.bf16 %v5039_v54, %v5039_v54  ;;  %4411 = vrot.lane.b32.xlu0 %v14734_v4, %s20819_s26  ;;  %v4273_v56 = vld [vmem:[#allocation3 + $0xa9] sm:$0xff] }
 0x303   : > { %4241 = vst.msk [vmem:[#allocation4 + $0xa8] sm:$0xf] %vm1156_vm6, %v18140_v33  ;;  %v14736_v28 = vpack.c.bf16 %v4273_v56, %v4273_v56 }
 0x304   : > { %4669 = vrot.lane.b32.xlu1 %v14767_v58, %s16483_s16  ;;  %5199 = vst.msk [vmem:[#allocation4 + $0x94] sm:$0xf] %vm1156_vm6, %v14830_v9  ;;  %v5998_v47 = vld [vmem:[#allocation3 + $0xaa] sm:$0xff]  ;;  %v5999_v35 = vld [vmem:[#allocation3 + $0xb2] sm:$0xff] }
 0x305   : > { %v18147_v17 = vpack.c.bf16 %v5998_v47, %v5998_v47  ;;  %v14957_v10 = vpack.c.bf16 %v5999_v35, %v5999_v35  ;;  %v5487_v37 = vld [vmem:[#allocation3 + $0xb0] sm:$0xff] }
 0x306   : > { %v5040_v48 = vld [vmem:[#allocation3 + $0xb1] sm:$0xff]  ;;  %5620 = vrot.lane.b32.xlu0 %v14890_v61, %s16483_s16  ;;  %v14893_v27 = vpack.c.bf16 %v5487_v37, %v5487_v37 }
 0x307   : > { %v16254_v52 = vld [vmem:[#allocation4 + $0x68] ss:$12 sps:$4 sm:$0xff]   ;;  %v14831_v3 = vpack.c.bf16 %v5040_v48, %v5040_v48  ;;  %6158 = vst.msk [vmem:[#allocation4 + $0x80] sm:$0xf] %vm1156_vm6, %v18147_v17  ;;  %6159 = vst.msk [vmem:[#allocation4 + $0x8c] sm:$0xf] %vm1156_vm6, %v14957_v10 }
 0x308   : > { %5622 = vrot.lane.b32.xlu1 %v14891_v45, %s16483_s16  ;;  %16065 = vmatprep.mubr.msk.bf16.mxu1 %vm433_vm2, %v16254_v52  ;;  %4242 = vst.msk [vmem:[#allocation4 + $0xb4] sm:$0xf] %vm1156_vm6, %v14893_v27  ;;  %v4274_v19 = vld [vmem:[#allocation3 + $0xb1] sm:$0xff]  ;;  %v18218_v52 = vpop.f32.mrf.mxu0 }
 0x309   : > { %5200 = vst.msk [vmem:[#allocation4 + $0xa0] sm:$0xf] %vm1156_vm6, %v14831_v3  ;;  %v14737_v32 = vpack.c.bf16 %v4274_v19, %v4274_v19 }
 0x30a   : > { %5876 = vrot.lane.b32.xlu0 %v14734_v4, %s20810_s20 }
 0x30c   : > { %5878 = vrot.lane.b32.xlu1 %v14735_v16, %s20810_s20  ;;  %v4396_v53 = vpop.permute.xlu0 %4395 }
 0x30d   : > { %4487 = vst.msk [vmem:[#allocation4 + $0x30] sm:$0xf] %vm1413_vm5, %v4396_v53 }
 0x30e   : > { %4919 = vrot.lane.b32.xlu0 %v14890_v61, %s20810_s20  ;;  %v16257_v22 = vld [vmem:[#allocation4 + $0x80] ss:$12 sps:$4 sm:$0xff]  }
 0x30f   : > { %16066 = vmatmul.mubr.msk.bf16.gmra.mxu1 %vm433_vm2, %v16257_v22 }
 0x310   : > { %5369 = vrot.lane.b32.xlu1 %v14767_v58, %s20819_s26  ;;  %v5605_v21 = vpop.permute.xlu0 %5604 }
 0x311   : > { %v4398_v26 = vpop.permute.xlu1 %4397 }
 0x312   : > { %4488 = vst.msk [vmem:[#allocation4 + $0x3c] sm:$0xf] %vm1413_vm5, %v4398_v26  ;;  %4667 = vrot.lane.b32.xlu0 %v14954_v63, %s16483_s16 }
 0x314   : > { %4921 = vrot.lane.b32.xlu1 %v14891_v45, %s20810_s20  ;;  %v5861_v6 = vpop.permute.xlu0 %5860 }
 0x315   : > { %v4654_v11 = vpop.permute.xlu1 %4653 }
 0x316   : > { %4744 = vst.msk [vmem:[#allocation4 + $0x3c] sm:$0xf] %vm1670_vm7, %v4654_v11  ;;  %5367 = vrot.lane.b32.xlu0 %v14954_v63, %s20819_s26  ;;  %v3875_v11 = vpop.f32.mrf.mxu0 }
 0x318   : > { %4417 = vrot.lane.b32.xlu1 %v14737_v32, %s20819_s26  ;;  %v4904_v31 = vpop.permute.xlu0 %4903 }
 0x319   : > { %v5607_v15 = vpop.permute.xlu1 %5606 }
 0x31a   : > { %5701 = vst.msk [vmem:[#allocation4 + $0x10] sm:$0xf] %vm1670_vm7, %v5607_v15  ;;  %4415 = vrot.lane.b32.xlu0 %v14736_v28, %s20819_s26 }
 0x31c   : > { %4673 = vrot.lane.b32.xlu1 %v14957_v10, %s16483_s16  ;;  %v4648_v44 = vpop.permute.xlu0 %4647 }
 0x31d   : > { %v5863_v59 = vpop.permute.xlu1 %5862  ;;  %4741 = vst.msk [vmem:[#allocation4 + $0x18] sm:$0xf] %vm1670_vm7, %v4648_v44 }
 0x31e   : > { %5957 = vst.msk [vmem:[#allocation4 + $0x10] sm:$0xf] %vm1927_vm0, %v5863_v59  ;;  %4997 = vst.msk [vmem:[#allocation4 + $0x18] sm:$0xf] %vm1927_vm0, %v4904_v31  ;;  %5624 = vrot.lane.b32.xlu0 %v18140_v33, %s16483_s16 }
 0x320   : > { %5626 = vrot.lane.b32.xlu1 %v14893_v27, %s16483_s16  ;;  %v5348_v23 = vpop.permute.xlu0 %5347 }
 0x321   : > { %v5354_v57 = vpop.permute.xlu1 %5353  ;;  %5443 = vst.msk [vmem:[#allocation4 + $0x4] sm:$0xf] %vm1413_vm5, %v5348_v23 }
 0x322   : > { %5446 = vst.msk [vmem:[#allocation4 + $0x28] sm:$0xf] %vm1413_vm5, %v5354_v57  ;;  %5880 = vrot.lane.b32.xlu0 %v14736_v28, %s20810_s20  ;;  %v18228_v57 = vpop.f32.mrf.mxu0 }
 0x323   : > { %5700 = vst.msk [vmem:[#allocation4 + $0x4] sm:$0xf] %vm1670_vm7, %v5605_v21 }
 0x324   : > { %5956 = vst.msk [vmem:[#allocation4 + $0x4] sm:$0xf] %vm1927_vm0, %v5861_v6  ;;  %5882 = vrot.lane.b32.xlu1 %v14737_v32, %s20810_s20  ;;  %v4652_v50 = vpop.permute.xlu0 %4651 }
 0x325   : > { %v4906_v55 = vpop.permute.xlu1 %4905  ;;  %4743 = vst.msk [vmem:[#allocation4 + $0x30] sm:$0xf] %vm1670_vm7, %v4652_v50  ;;  %v6182_v60 = vld [vmem:[#allocation4 + $0xc] sm:$0xff] }
 0x326   : > { %4998 = vst.msk [vmem:[#allocation4 + $0x24] sm:$0xf] %vm1927_vm0, %v4906_v55  ;;  %4923 = vrot.lane.b32.xlu0 %v18140_v33, %s20810_s20 }
 0x328   : > { %5373 = vrot.lane.b32.xlu1 %v14957_v10, %s20819_s26  ;;  %v5352_v18 = vpop.permute.xlu0 %5351 }
 0x329   : > { %v4402_v12 = vpop.permute.xlu1 %4401  ;;  %5445 = vst.msk [vmem:[#allocation4 + $0x1c] sm:$0xf] %vm1413_vm5, %v5352_v18 }
 0x32a   : > { %4490 = vst.msk [vmem:[#allocation4 + $0x54] sm:$0xf] %vm1413_vm5, %v4402_v12  ;;  %4671 = vrot.lane.b32.xlu0 %v18147_v17, %s16483_s16 }
 0x32b   : > { %v6180_v49 = vld [vmem:[#allocation4] sm:$0xff] }
 0x32c   : > { %4925 = vrot.lane.b32.xlu1 %v14893_v27, %s20810_s20  ;;  %v13603_v34 = vcombine.high %v6180_v49, %v6182_v60  ;;  %v13602_v1 = vcombine.low %v6180_v49, %v6182_v60  ;;  %v4400_v46 = vpop.permute.xlu0 %4399 }
 0x32d   : > { %v4658_v24 = vpop.permute.xlu1 %4657  ;;  %4489 = vst.msk [vmem:[#allocation4 + $0x48] sm:$0xf] %vm1413_vm5, %v4400_v46 }
 0x32e   : > { %4746 = vst.msk [vmem:[#allocation4 + $0x54] sm:$0xf] %vm1670_vm7, %v4658_v24  ;;  %6715 = vmatprep.mubr.bf16.mxu0 %v13603_v34  ;;  %5371 = vrot.lane.b32.xlu0 %v18147_v17, %s20819_s26 }
 0x32f   : > { %6716 = vmatmul.mubr.bf16.vlgmr.msra.gmra.mxu0 %v13602_v1 }
 0x330   : > { %v5609_v40 = vpop.permute.xlu0 %5608 }
 0x331   : > { %v5611_v36 = vpop.permute.xlu1 %5610  ;;  %5702 = vst.msk [vmem:[#allocation4 + $0x1c] sm:$0xf] %vm1670_vm7, %v5609_v40 }
 0x332   : > { %5703 = vst.msk [vmem:[#allocation4 + $0x28] sm:$0xf] %vm1670_vm7, %v5611_v36 }
 0x334   : > { %v5865_v43 = vpop.permute.xlu0 %5864 }
 0x335   : > { %v5867_v8 = vpop.permute.xlu1 %5866  ;;  %5958 = vst.msk [vmem:[#allocation4 + $0x1c] sm:$0xf] %vm1927_vm0, %v5865_v43 }
 0x336   : > { %5959 = vst.msk [vmem:[#allocation4 + $0x28] sm:$0xf] %vm1927_vm0, %v5867_v8  ;;  %v3878_v8 = vpop.f32.mrf.mxu0 }
 0x338   : > { %v4908_v39 = vpop.permute.xlu0 %4907 }
 0x339   : > { %v5358_v7 = vpop.permute.xlu1 %5357  ;;  %4999 = vst.msk [vmem:[#allocation4 + $0x30] sm:$0xf] %vm1927_vm0, %v4908_v39 }
 0x33a   : > { %5448 = vst.msk [vmem:[#allocation4 + $0x40] sm:$0xf] %vm1413_vm5, %v5358_v7 }
 0x33c   : > { %v6184_v5 = vld [vmem:[#allocation4 + $0x18] sm:$0xff]  ;;  %v4656_v25 = vpop.permute.xlu0 %4655 }
 0x33d   : > { %v6186_v61 = vld [vmem:[#allocation4 + $0x24] sm:$0xff]  ;;  %v4910_v2 = vpop.permute.xlu1 %4909  ;;  %4745 = vst.msk [vmem:[#allocation4 + $0x48] sm:$0xf] %vm1670_vm7, %v4656_v25 }
 0x33e   : > { %5000 = vst.msk [vmem:[#allocation4 + $0x3c] sm:$0xf] %vm1927_vm0, %v4910_v2  ;;  %v13606_v42 = vcombine.high %v6184_v5, %v6186_v61  ;;  %v13605_v20 = vcombine.low %v6184_v5, %v6186_v61 }
 0x340   : > { %6723 = vmatprep.mubr.bf16.mxu0 %v13606_v42  ;;  %v5356_v63 = vpop.permute.xlu0 %5355 }
 0x341   : > { %v4406_v62 = vpop.permute.xlu1 %4405  ;;  %6724 = vmatmul.mubr.bf16.gmra.mxu0 %v13605_v20  ;;  %5447 = vst.msk [vmem:[#allocation4 + $0x34] sm:$0xf] %vm1413_vm5, %v5356_v63 }
 0x342   : > { %4492 = vst.msk [vmem:[#allocation4 + $0x6c] sm:$0xf] %vm1413_vm5, %v4406_v62 }
 0x344   : > { %v4404_v58 = vpop.permute.xlu0 %4403 }
 0x345   : > { %v4662_v16 = vpop.permute.xlu1 %4661  ;;  %4491 = vst.msk [vmem:[#allocation4 + $0x60] sm:$0xf] %vm1413_vm5, %v4404_v58 }
 0x346   : > { %4748 = vst.msk [vmem:[#allocation4 + $0x6c] sm:$0xf] %vm1670_vm7, %v4662_v16 }
 0x348   : > { %v15631_v14 = vpop.f32.mrf.mxu1  ;;  %v5613_v38 = vpop.permute.xlu0 %5612 }
 0x349   : > { %v5615_v30 = vpop.permute.xlu1 %5614  ;;  %5704 = vst.msk [vmem:[#allocation4 + $0x34] sm:$0xf] %vm1670_vm7, %v5613_v38 }
 0x34a   : > { %5705 = vst.msk [vmem:[#allocation4 + $0x40] sm:$0xf] %vm1670_vm7, %v5615_v30  ;;  %v15632_v45 = vpop.f32.mrf.mxu1 }
 0x34b   : > { %v15633_v0 = vadd.f32 %v15632_v45, %v15631_v14 }
 0x34c   : > { %v15634_v4 = vpop.f32.mrf.mxu1  ;;  %v5869_v33 = vpop.permute.xlu0 %5868 }
 0x34d   : > { %v5871_v51 = vpop.permute.xlu1 %5870  ;;  %v3707_v54 = vadd.f32 %v18089_v41, %v15633_v0  ;;  %5960 = vst.msk [vmem:[#allocation4 + $0x34] sm:$0xf] %vm1927_vm0, %v5869_v33 }
 0x34e   : > { %5961 = vst.msk [vmem:[#allocation4 + $0x40] sm:$0xf] %vm1927_vm0, %v5871_v51  ;;  %v15635_v9 = vpop.f32.mrf.mxu1 }
 0x34f   : > { %v3868_v47 = vadd.f32 %v18096_v29, %v3707_v54  ;;  %v15636_v35 = vadd.f32 %v15635_v9, %v15634_v4 }
 0x350   : > { %v4912_v48 = vpop.permute.xlu0 %4911 }
 0x351   : > { %v5362_v17 = vpop.permute.xlu1 %5361  ;;  %vm3952_vm8 = vcmp.ge.f32.partialorder %v3868_v47, 0.0  ;;  %v3984_v10 = vmul.f32 0.01, %v3868_v47  ;;  %v3710_v37 = vadd.f32 %v18089_v41, %v15636_v35  ;;  %5001 = vst.msk [vmem:[#allocation4 + $0x48] sm:$0xf] %vm1927_vm0, %v4912_v48 }
 0x352   : > { %5450 = vst.msk [vmem:[#allocation4 + $0x58] sm:$0xf] %vm1413_vm5, %v5362_v17 }
 0x353   : > { %v4016_v27 = vsel %vm3952_vm8, %v3868_v47, %v3984_v10  ;;  %v3871_v3 = vadd.f32 %v18114_v13, %v3710_v37 }
 0x354   : > { %4049 = vst.msk [vmem:[#allocation3 + $0xc1] sm:$0xff] %vm433_vm2, %v4016_v27  ;;  %v15637_v29 = vpop.f32.mrf.mxu1  ;;  %v6188_v26 = vld [vmem:[#allocation4 + $0x30] sm:$0xff]  ;;  %v4660_v19 = vpop.permute.xlu0 %4659 }
 0x355   : > { %v6190_v53 = vld [vmem:[#allocation4 + $0x3c] sm:$0xff]  ;;  %v4914_v22 = vpop.permute.xlu1 %4913  ;;  %vm3953_vm9 = vcmp.ge.f32.partialorder %v3871_v3, 0.0  ;;  %v3985_v21 = vmul.f32 0.01, %v3871_v3  ;;  %4747 = vst.msk [vmem:[#allocation4 + $0x60] sm:$0xf] %vm1670_vm7, %v4660_v19 }
 0x356   : > { %5002 = vst.msk [vmem:[#allocation4 + $0x54] sm:$0xf] %vm1927_vm0, %v4914_v22  ;;  %v15638_v6 = vpop.f32.mrf.mxu1  ;;  %v13609_v32 = vcombine.high %v6188_v26, %v6190_v53  ;;  %v13608_v56 = vcombine.low %v6188_v26, %v6190_v53  ;;  %v18274_v26 = vpop.f32.mrf.mxu0 }
 0x357   : > { %v4017_v15 = vsel %vm3953_vm9, %v3871_v3, %v3985_v21  ;;  %v15639_v31 = vadd.f32 %v15638_v6, %v15637_v29 }
 0x358   : > { %4050 = vst.msk [vmem:[#allocation3 + $0xc9] sm:$0xff] %vm433_vm2, %v4017_v15  ;;  %6731 = vmatprep.mubr.bf16.mxu0 %v13609_v32  ;;  %v15640_v13 = vpop.f32.mrf.mxu1  ;;  %v5360_v44 = vpop.permute.xlu0 %5359 }
 0x359   : > { %v4410_v28 = vpop.permute.xlu1 %4409  ;;  %v3715_v59 = vadd.f32 %v18089_v41, %v15639_v31  ;;  %6732 = vmatmul.mubr.bf16.gmra.mxu0 %v13608_v56  ;;  %5449 = vst.msk [vmem:[#allocation4 + $0x4c] sm:$0xf] %vm1413_vm5, %v5360_v44 }
 0x35a   : > { %4494 = vst.msk [vmem:[#allocation4 + $0x84] sm:$0xf] %vm1413_vm5, %v4410_v28  ;;  %v15641_v23 = vpop.f32.mrf.mxu1 }
 0x35b   : > { %v3876_v55 = vadd.f32 %v3875_v11, %v3715_v59  ;;  %v15642_v50 = vadd.f32 %v15641_v23, %v15640_v13  ;;  %v4275_v12 = vld [vmem:[#allocation3 + $0xc1] sm:$0xff] }
 0x35c   : > { %v5488_v18 = vld [vmem:[#allocation3 + $0xc0] sm:$0xff]  ;;  %v14738_v34 = vpack.c.bf16 %v4275_v12, %v4275_v12  ;;  %v4408_v40 = vpop.permute.xlu0 %4407  ;;  %v3891_v12 = vpop.f32.mrf.mxu0 }
 0x35d   : > { %v5041_v60 = vld [vmem:[#allocation3 + $0xc1] sm:$0xff]  ;;  %v4666_v49 = vpop.permute.xlu1 %4665  ;;  %v18231_v1 = vpack.c.bf16 %v5488_v18, %v5488_v18  ;;  %vm3954_vm10 = vcmp.ge.f32.partialorder %v3876_v55, 0.0  ;;  %v3986_v46 = vmul.f32 0.01, %v3876_v55  ;;  %v3718_v36 = vadd.f32 %v18089_v41, %v15642_v50  ;;  %4493 = vst.msk [vmem:[#allocation4 + $0x78] sm:$0xf] %vm1413_vm5, %v4408_v40 }
 0x35e   : > { %v14832_v24 = vpack.c.bf16 %v5041_v60, %v5041_v60  ;;  %4750 = vst.msk [vmem:[#allocation4 + $0x84] sm:$0xf] %vm1670_vm7, %v4666_v49  ;;  %4419 = vrot.lane.b32.xlu0 %v14738_v34, %s20819_s26 }
 0x35f   : > { %4243 = vst.msk [vmem:[#allocation4 + $0xc0] sm:$0xf] %vm1156_vm6, %v18231_v1  ;;  %v6000_v43 = vld [vmem:[#allocation3 + $0xc2] sm:$0xff]  ;;  %v4018_v7 = vsel %vm3954_vm10, %v3876_v55, %v3986_v46  ;;  %v3879_v39 = vadd.f32 %v3878_v8, %v3718_v36  ;;  %v4532_v5 = vld [vmem:[#allocation3 + $0xca] sm:$0xff] }
 0x360   : > { %5201 = vst.msk [vmem:[#allocation4 + $0xac] sm:$0xf] %vm1156_vm6, %v14832_v24  ;;  %v4276_v61 = vld [vmem:[#allocation3 + $0xc9] sm:$0xff]  ;;  %v18240_v2 = vpack.c.bf16 %v6000_v43, %v6000_v43  ;;  %v18245_v62 = vpack.c.bf16 %v4532_v5, %v4532_v5  ;;  %v5617_v14 = vpop.permute.xlu0 %5616  ;;  %v18311_v43 = vpop.f32.mrf.mxu0 }
 0x361   : > { %4051 = vst.msk [vmem:[#allocation3 + $0xd9] sm:$0xff] %vm433_vm2, %v4018_v7  ;;  %v15643_v25 = vpop.f32.mrf.mxu1  ;;  %v5619_v42 = vpop.permute.xlu1 %5618  ;;  %v18243_v20 = vpack.c.bf16 %v4276_v61, %v4276_v61  ;;  %v5489_v63 = vld [vmem:[#allocation3 + $0xc8] sm:$0xff]  ;;  %vm3955_vm11 = vcmp.ge.f32.partialorder %v3879_v39, 0.0  ;;  %v3987_v58 = vmul.f32 0.01, %v3879_v39 }
 0x362   : > { %v5042_v16 = vld [vmem:[#allocation3 + $0xc9] sm:$0xff]  ;;  %5707 = vst.msk [vmem:[#allocation4 + $0x58] sm:$0xf] %vm1670_vm7, %v5619_v42  ;;  %v18248_v30 = vpack.c.bf16 %v5489_v63, %v5489_v63  ;;  %5706 = vst.msk [vmem:[#allocation4 + $0x4c] sm:$0xf] %vm1670_vm7, %v5617_v14  ;;  %5628 = vrot.lane.b32.xlu0 %v18231_v1, %s16483_s16 }
 0x363   : > { %v14833_v38 = vpack.c.bf16 %v5042_v16, %v5042_v16  ;;  %6160 = vst.msk [vmem:[#allocation4 + $0x98] sm:$0xf] %vm1156_vm6, %v18240_v2  ;;  %v15644_v45 = vpop.f32.mrf.mxu1  ;;  %4421 = vrot.lane.b32.xlu1 %v18243_v20, %s20819_s26  ;;  %6161 = vst.msk [vmem:[#allocation4 + $0xa4] sm:$0xf] %vm1156_vm6, %v18245_v62  ;;  %v4019_v0 = vsel %vm3955_vm11, %v3879_v39, %v3987_v58 }
 0x364   : > { %v15645_v4 = vadd.f32 %v15644_v45, %v15643_v25  ;;  %4244 = vst.msk [vmem:[#allocation4 + $0xcc] sm:$0xf] %vm1156_vm6, %v18248_v30  ;;  %v5873_v9 = vpop.permute.xlu0 %5872  ;;  %v3894_v45 = vpop.f32.mrf.mxu0 }
 0x365   : > { %5202 = vst.msk [vmem:[#allocation4 + $0xb8] sm:$0xf] %vm1156_vm6, %v14833_v38  ;;  %v15646_v51 = vpop.f32.mrf.mxu1  ;;  %v5875_v54 = vpop.permute.xlu1 %5874 }
 0x366   : > { %4052 = vst.msk [vmem:[#allocation3 + $0xe1] sm:$0xff] %vm433_vm2, %v4019_v0  ;;  %v3723_v33 = vadd.f32 %v18089_v41, %v15645_v4  ;;  %5884 = vrot.lane.b32.xlu0 %v14738_v34, %s20810_s20 }
 0x367   : > { %5963 = vst.msk [vmem:[#allocation4 + $0x58] sm:$0xf] %vm1927_vm0, %v5875_v54  ;;  %5962 = vst.msk [vmem:[#allocation4 + $0x4c] sm:$0xf] %vm1927_vm0, %v5873_v9  ;;  %v15647_v47 = vpop.f32.mrf.mxu1  ;;  %4677 = vrot.lane.b32.xlu1 %v18245_v62, %s16483_s16 }
 0x368   : > { %v3884_v35 = vadd.f32 %v18218_v52, %v3723_v33  ;;  %v15648_v17 = vadd.f32 %v15647_v47, %v15646_v51  ;;  %v5490_v10 = vld [vmem:[#allocation3 + $0xd8] sm:$0xff]  ;;  %v4916_v22 = vpop.permute.xlu0 %4915 }
 0x369   : > { %v5043_v37 = vld [vmem:[#allocation3 + $0xd9] sm:$0xff]  ;;  %v5366_v48 = vpop.permute.xlu1 %5365  ;;  %v18270_v27 = vpack.c.bf16 %v5490_v10, %v5490_v10  ;;  %5003 = vst.msk [vmem:[#allocation4 + $0x60] sm:$0xf] %vm1927_vm0, %v4916_v22 }
 0x36a   : > { %v14834_v3 = vpack.c.bf16 %v5043_v37, %v5043_v37  ;;  %vm3956_vm12 = vcmp.ge.f32.partialorder %v3884_v35, 0.0  ;;  %v3988_v53 = vmul.f32 0.01, %v3884_v35  ;;  %v3726_v29 = vadd.f32 %v18089_v41, %v15648_v17  ;;  %5452 = vst.msk [vmem:[#allocation4 + $0x70] sm:$0xf] %vm1413_vm5, %v5366_v48  ;;  %4927 = vrot.lane.b32.xlu0 %v18231_v1, %s20810_s20  ;;  %v4277_v8 = vld [vmem:[#allocation3 + $0xd9] sm:$0xff] }
 0x36b   : > { %5630 = vrot.lane.b32.xlu1 %v18248_v30, %s16483_s16  ;;  %v16272_v52 = vld [vmem:[#allocation4 + $0x98] ss:$12 sps:$4 sm:$0xff]   ;;  %4245 = vst.msk [vmem:[#allocation4 + $0xd8] sm:$0xf] %vm1156_vm6, %v18270_v27  ;;  %v14740_v42 = vpack.c.bf16 %v4277_v8, %v4277_v8 }
 0x36c   : > { %5203 = vst.msk [vmem:[#allocation4 + $0xc4] sm:$0xf] %vm1156_vm6, %v14834_v3  ;;  %v4020_v11 = vsel %vm3956_vm12, %v3884_v35, %v3988_v53  ;;  %v3887_v6 = vadd.f32 %v18228_v57, %v3726_v29  ;;  %16069 = vmatprep.mubr.msk.bf16.mxu1 %vm433_vm2, %v16272_v52  ;;  %v4664_v57 = vpop.permute.xlu0 %4663 }
 0x36d   : > { %v6002_v21 = vld [vmem:[#allocation3 + $0xda] sm:$0xff]  ;;  %v6003_v19 = vld [vmem:[#allocation3 + $0xe2] sm:$0xff]  ;;  %4053 = vst.msk [vmem:[#allocation3 + $0xf1] sm:$0xff] %vm433_vm2, %v4020_v11  ;;  %v4918_v28 = vpop.permute.xlu1 %4917 }
 0x36e   : > { %v4278_v32 = vld [vmem:[#allocation3 + $0xe1] sm:$0xff]  ;;  %v18285_v56 = vpack.c.bf16 %v6002_v21, %v6002_v21  ;;  %v18287_v15 = vpack.c.bf16 %v6003_v19, %v6003_v19  ;;  %v15649_v13 = vpop.f32.mrf.mxu1  ;;  %v6192_v23 = vld [vmem:[#allocation4 + $0x48] sm:$0xff]  ;;  %vm3957_vm13 = vcmp.ge.f32.partialorder %v3887_v6, 0.0  ;;  %v3989_v55 = vmul.f32 0.01, %v3887_v6  ;;  %4675 = vrot.lane.b32.xlu0 %v18240_v2, %s16483_s16 }
 0x36f   : > { %v6194_v31 = vld [vmem:[#allocation4 + $0x54] sm:$0xff]  ;;  %v18291_v59 = vpack.c.bf16 %v4278_v32, %v4278_v32  ;;  %5004 = vst.msk [vmem:[#allocation4 + $0x6c] sm:$0xf] %vm1927_vm0, %v4918_v28  ;;  %5886 = vrot.lane.b32.xlu1 %v18243_v20, %s20810_s20 }
 0x370   : > { %v5491_v44 = vld [vmem:[#allocation3 + $0xe0] sm:$0xff]  ;;  %6162 = vst.msk [vmem:[#allocation4 + $0xb0] sm:$0xf] %vm1156_vm6, %v18285_v56  ;;  %6163 = vst.msk [vmem:[#allocation4 + $0xbc] sm:$0xf] %vm1156_vm6, %v18287_v15  ;;  %v15650_v18 = vpop.f32.mrf.mxu1  ;;  %v13612_v60 = vcombine.high %v6192_v23, %v6194_v31  ;;  %v13611_v49 = vcombine.low %v6192_v23, %v6194_v31  ;;  %v4021_v34 = vsel %vm3957_vm13, %v3887_v6, %v3989_v55  ;;  %v5364_v40 = vpop.permute.xlu0 %5363 }
 0x371   : > { %v18294_v50 = vpack.c.bf16 %v5491_v44, %v5491_v44  ;;  %4749 = vst.msk [vmem:[#allocation4 + $0x78] sm:$0xf] %vm1670_vm7, %v4664_v57  ;;  %v15651_v1 = vadd.f32 %v15650_v18, %v15649_v13  ;;  %v18370_v18 = vpop.f32.mrf.mxu0 }
 0x372   : > { %5204 = vst.msk [vmem:[#allocation4 + $0xd0] sm:$0xf] %vm1156_vm6, %v18291_v59  ;;  %6739 = vmatprep.mubr.bf16.mxu0 %v13612_v60  ;;  %v15652_v24 = vpop.f32.mrf.mxu1  ;;  %v4414_v36 = vpop.permute.xlu1 %4413  ;;  %5375 = vrot.lane.b32.xlu0 %v18240_v2, %s20819_s26 }
 0x373   : > { %4246 = vst.msk [vmem:[#allocation4 + $0xe4] sm:$0xf] %vm1156_vm6, %v18294_v50  ;;  %v3731_v46 = vadd.f32 %v18089_v41, %v15651_v1  ;;  %6740 = vmatmul.mubr.bf16.gmra.mxu0 %v13611_v49  ;;  %5377 = vrot.lane.b32.xlu1 %v18245_v62, %s20819_s26 }
 0x374   : > { %4054 = vst.msk [vmem:[#allocation3 + $0xf9] sm:$0xff] %vm433_vm2, %v4021_v34  ;;  %v15653_v7 = vpop.f32.mrf.mxu1  ;;  %v4279_v5 = vld [vmem:[#allocation3 + $0xf1] sm:$0xff]  ;;  %v4412_v38 = vpop.permute.xlu0 %4411 }
 0x375   : > { %4496 = vst.msk [vmem:[#allocation4 + $0x9c] sm:$0xf] %vm1413_vm5, %v4414_v36  ;;  %5451 = vst.msk [vmem:[#allocation4 + $0x64] sm:$0xf] %vm1413_vm5, %v5364_v40  ;;  %v3892_v39 = vadd.f32 %v3891_v12, %v3731_v46  ;;  %v15654_v61 = vadd.f32 %v15653_v7, %v15652_v24  ;;  %v5492_v25 = vld [vmem:[#allocation3 + $0xf0] sm:$0xff]  ;;  %v18319_v20 = vpack.c.bf16 %v4279_v5, %v4279_v5 }
 0x376   : > { %v18321_v63 = vpack.c.bf16 %v5492_v25, %v5492_v25  ;;  %v4670_v14 = vpop.permute.xlu1 %4669  ;;  %4495 = vst.msk [vmem:[#allocation4 + $0x90] sm:$0xf] %vm1413_vm5, %v4412_v38  ;;  %4423 = vrot.lane.b32.xlu0 %v14740_v42, %s20819_s26 }
 0x377   : > { %vm3958_vm14 = vcmp.ge.f32.partialorder %v3892_v39, 0.0  ;;  %v3990_v16 = vmul.f32 0.01, %v3892_v39  ;;  %v3734_v58 = vadd.f32 %v18089_v41, %v15654_v61  ;;  %4752 = vst.msk [vmem:[#allocation4 + $0x9c] sm:$0xf] %vm1670_vm7, %v4670_v14  ;;  %4929 = vrot.lane.b32.xlu1 %v18248_v30, %s20810_s20 }
 0x378   : > { %v16273_v2 = vld [vmem:[#allocation4 + $0xb0] ss:$12 sps:$4 sm:$0xff]   ;;  %4247 = vst.msk [vmem:[#allocation4 + $0xf0] sm:$0xf] %vm1156_vm6, %v18321_v63  ;;  %5205 = vst.msk [vmem:[#allocation4 + $0xdc] sm:$0xf] %vm1156_vm6, %v18319_v20  ;;  %v15655_v30 = vpop.f32.mrf.mxu1  ;;  %v5621_v37 = vpop.permute.xlu0 %5620 }
 0x379   : > { %v4022_v4 = vsel %vm3958_vm14, %v3892_v39, %v3990_v16  ;;  %v3895_v51 = vadd.f32 %v3894_v45, %v3734_v58  ;;  %16070 = vmatmul.mubr.msk.bf16.gmra.mxu1 %vm433_vm2, %v16273_v2  ;;  %5708 = vst.msk [vmem:[#allocation4 + $0x64] sm:$0xf] %vm1670_vm7, %v5621_v37 }
 0x37a   : > { %4055 = vst.msk [vmem:[#allocation3 + $0x109] sm:$0xff] %vm433_vm2, %v4022_v4  ;;  %v5623_v10 = vpop.permute.xlu1 %5622  ;;  %v15656_v3 = vpop.f32.mrf.mxu1  ;;  %5632 = vrot.lane.b32.xlu0 %v18270_v27, %s16483_s16 }
 0x37b   : > { %v6004_v62 = vld [vmem:[#allocation3 + $0xf2] sm:$0xff]  ;;  %v6005_v0 = vld [vmem:[#allocation3 + $0xfa] sm:$0xff]  ;;  %vm3959_vm15 = vcmp.ge.f32.partialorder %v3895_v51, 0.0  ;;  %v3991_v17 = vmul.f32 0.01, %v3895_v51  ;;  %4425 = vrot.lane.b32.xlu1 %v18291_v59, %s20819_s26  ;;  %v15657_v29 = vadd.f32 %v15656_v3, %v15655_v30 }
 0x37c   : > { %v4280_v54 = vld [vmem:[#allocation3 + $0xf9] sm:$0xff]  ;;  %v18333_v33 = vpack.c.bf16 %v6004_v62, %v6004_v62  ;;  %v18335_v9 = vpack.c.bf16 %v6005_v0, %v6005_v0  ;;  %5709 = vst.msk [vmem:[#allocation4 + $0x70] sm:$0xf] %vm1670_vm7, %v5623_v10  ;;  %v15658_v22 = vpop.f32.mrf.mxu1  ;;  %v5877_v19 = vpop.permute.xlu0 %5876  ;;  %v18425_v3 = vld [vmem:[%s20800_s5] ss:$0 sm:$0xff] }
 0x37d   : > { %v18339_v47 = vpack.c.bf16 %v4280_v54, %v4280_v54  ;;  %v5493_v35 = vld [vmem:[#allocation3 + $0xf8] sm:$0xff]  ;;  %v4023_v53 = vsel %vm3959_vm15, %v3895_v51, %v3991_v17  ;;  %v3739_v52 = vadd.f32 %v18089_v41, %v15657_v29  ;;  %5964 = vst.msk [vmem:[#allocation4 + $0x64] sm:$0xf] %vm1927_vm0, %v5877_v19 }
 0x37e   : > { %v18341_v48 = vpack.c.bf16 %v5493_v35, %v5493_v35  ;;  %6164 = vst.msk [vmem:[#allocation4 + $0xc8] sm:$0xf] %vm1156_vm6, %v18333_v33  ;;  %6165 = vst.msk [vmem:[#allocation4 + $0xd4] sm:$0xf] %vm1156_vm6, %v18335_v9  ;;  %v5879_v21 = vpop.permute.xlu1 %5878  ;;  %v15659_v11 = vpop.f32.mrf.mxu1  ;;  %5888 = vrot.lane.b32.xlu0 %v14740_v42, %s20810_s20 }
 0x37f   : > { %5206 = vst.msk [vmem:[#allocation4 + $0xe8] sm:$0xf] %vm1156_vm6, %v18339_v47  ;;  %4681 = vrot.lane.b32.xlu1 %v18287_v15, %s16483_s16  ;;  %v3900_v6 = vadd.f32 %v18274_v26, %v3739_v52  ;;  %v15660_v32 = vadd.f32 %v15659_v11, %v15658_v22  ;;  %v3907_v42 = vpop.f32.mrf.mxu0 }
 0x380   : > { %4248 = vst.msk [vmem:[#allocation4 + $0xfc] sm:$0xf] %vm1156_vm6, %v18341_v48  ;;  %v4920_v12 = vpop.permute.xlu0 %4919 }
 0x381   : > { %4056 = vst.msk [vmem:[#allocation3 + $0x111] sm:$0xff] %vm433_vm2, %v4023_v53  ;;  %v4281_v31 = vld [vmem:[#allocation3 + $0x109] sm:$0xff]  ;;  %vm3960_vm1 = vcmp.ge.f32.partialorder %v3900_v6, 0.0  ;;  %v3992_v23 = vmul.f32 0.01, %v3900_v6  ;;  %v3742_v55 = vadd.f32 %v18089_v41, %v15660_v32  ;;  %v18410_v4 = vpop.f32.mrf.mxu0 }
 0x382   : > { %5965 = vst.msk [vmem:[#allocation4 + $0x70] sm:$0xf] %vm1927_vm0, %v5879_v21  ;;  %v5494_v13 = vld [vmem:[#allocation3 + $0x108] sm:$0xff]  ;;  %v18365_v28 = vpack.c.bf16 %v4281_v31, %v4281_v31  ;;  %v5370_v57 = vpop.permute.xlu1 %5369  ;;  %5005 = vst.msk [vmem:[#allocation4 + $0x78] sm:$0xf] %vm1927_vm0, %v4920_v12  ;;  %4931 = vrot.lane.b32.xlu0 %v18270_v27, %s20810_s20 }
 0x383   : > { %v18367_v44 = vpack.c.bf16 %v5494_v13, %v5494_v13  ;;  %5454 = vst.msk [vmem:[#allocation4 + $0x88] sm:$0xf] %vm1413_vm5, %v5370_v57  ;;  %5634 = vrot.lane.b32.xlu1 %v18294_v50, %s16483_s16  ;;  %v4024_v34 = vsel %vm3960_vm1, %v3900_v6, %v3992_v23  ;;  %v3903_v1 = vadd.f32 %v18311_v43, %v3742_v55 }
 0x384   : > { %5207 = vst.msk [vmem:[#allocation4 + $0xf4] sm:$0xf] %vm1156_vm6, %v18365_v28  ;;  %v6196_v39 = vld [vmem:[#allocation4 + $0x60] sm:$0xff]  ;;  %v4668_v25 = vpop.permute.xlu0 %4667 }
 0x385   : > { %v16274_v26 = vld [vmem:[#allocation4 + $0xc8] ss:$12 sps:$4 sm:$0xff]   ;;  %4249 = vst.msk [vmem:[#allocation4 + $0x108] sm:$0xf] %vm1156_vm6, %v18367_v44  ;;  %v15661_v27 = vpop.f32.mrf.mxu1  ;;  %vm3961_vm3 = vcmp.ge.f32.partialorder %v3903_v1, 0.0 }
 0x386   : > { %4057 = vst.msk [vmem:[#allocation3 + $0x121] sm:$0xff] %vm433_vm2, %v4024_v34  ;;  %16073 = vmatprep.mubr.msk.bf16.mxu1 %vm433_vm2, %v16274_v26  ;;  %v3993_v61 = vmul.f32 0.01, %v3903_v1  ;;  %v4922_v5 = vpop.permute.xlu1 %4921  ;;  %4679 = vrot.lane.b32.xlu0 %v18285_v56, %s16483_s16 }
 0x387   : > { %5006 = vst.msk [vmem:[#allocation4 + $0x84] sm:$0xf] %vm1927_vm0, %v4922_v5  ;;  %v15662_v16 = vpop.f32.mrf.mxu1  ;;  %5890 = vrot.lane.b32.xlu1 %v18291_v59, %s20810_s20 }
 0x388   : > { %v6006_v60 = vld [vmem:[#allocation3 + $0x10a] sm:$0xff]  ;;  %v6007_v49 = vld [vmem:[#allocation3 + $0x112] sm:$0xff]  ;;  %4751 = vst.msk [vmem:[#allocation4 + $0x90] sm:$0xf] %vm1670_vm7, %v4668_v25  ;;  %v4025_v38 = vsel %vm3961_vm3, %v3903_v1, %v3993_v61  ;;  %v15663_v45 = vadd.f32 %v15662_v16, %v15661_v27  ;;  %v5368_v0 = vpop.permute.xlu0 %5367 }
 0x389   : > { %v4282_v24 = vld [vmem:[#allocation3 + $0x111] sm:$0xff]  ;;  %v18383_v46 = vpack.c.bf16 %v6006_v60, %v6006_v60  ;;  %v18385_v36 = vpack.c.bf16 %v6007_v49, %v6007_v49  ;;  %v6198_v7 = vld [vmem:[#allocation4 + $0x6c] sm:$0xff]  ;;  %4058 = vst.msk [vmem:[#allocation3 + $0x129] sm:$0xff] %vm433_vm2, %v4025_v38  ;;  %v15664_v2 = vpop.f32.mrf.mxu1 }
 0x38a   : > { %v18389_v40 = vpack.c.bf16 %v4282_v24, %v4282_v24  ;;  %v5495_v8 = vld [vmem:[#allocation3 + $0x110] sm:$0xff]  ;;  %v13615_v58 = vcombine.high %v6196_v39, %v6198_v7  ;;  %v13614_v14 = vcombine.low %v6196_v39, %v6198_v7  ;;  %v3747_v59 = vadd.f32 %v18089_v41, %v15663_v45  ;;  %v4418_v62 = vpop.permute.xlu1 %4417  ;;  %5453 = vst.msk [vmem:[#allocation4 + $0x7c] sm:$0xf] %vm1413_vm5, %v5368_v0 }
 0x38b   : > { %v18391_v43 = vpack.c.bf16 %v5495_v8, %v5495_v8  ;;  %6166 = vst.msk [vmem:[#allocation4 + $0xe0] sm:$0xf] %vm1156_vm6, %v18383_v46  ;;  %6167 = vst.msk [vmem:[#allocation4 + $0xec] sm:$0xf] %vm1156_vm6, %v18385_v36  ;;  %v15665_v51 = vpop.f32.mrf.mxu1  ;;  %5381 = vrot.lane.b32.xlu1 %v18287_v15, %s20819_s26  ;;  %5379 = vrot.lane.b32.xlu0 %v18285_v56, %s20819_s26  ;;  %v3910_v56 = vpop.f32.mrf.mxu0 }
 0x38c   : > { %5208 = vst.msk [vmem:[#allocation4 + $0x100] sm:$0xf] %vm1156_vm6, %v18389_v40  ;;  %6747 = vmatprep.mubr.bf16.mxu0 %v13615_v58  ;;  %v3908_v54 = vadd.f32 %v3907_v42, %v3747_v59  ;;  %v15666_v30 = vadd.f32 %v15665_v51, %v15664_v2  ;;  %v4416_v29 = vpop.permute.xlu0 %4415 }
 0x38d   : > { %4250 = vst.msk [vmem:[#allocation4 + $0x114] sm:$0xf] %vm1156_vm6, %v18391_v43  ;;  %6748 = vmatmul.mubr.bf16.gmra.mxu0 %v13614_v14  ;;  %v4283_v35 = vld [vmem:[#allocation3 + $0x121] sm:$0xff]  ;;  %v18472_v42 = vpop.f32.mrf.mxu0 }
 0x38e   : > { %4498 = vst.msk [vmem:[#allocation4 + $0xb4] sm:$0xf] %vm1413_vm5, %v4418_v62  ;;  %v5496_v41 = vld [vmem:[#allocation3 + $0x120] sm:$0xff]  ;;  %v18418_v17 = vpack.c.bf16 %v4283_v35, %v4283_v35  ;;  %vm3962_vm4 = vcmp.ge.f32.partialorder %v3908_v54, 0.0  ;;  %v3994_v37 = vmul.f32 0.01, %v3908_v54  ;;  %v3750_v15 = vadd.f32 %v18425_v3, %v15666_v30  ;;  %v4674_v53 = vpop.permute.xlu1 %4673 }
 0x38f   : > { %v18420_v10 = vpack.c.bf16 %v5496_v41, %v5496_v41  ;;  %4754 = vst.msk [vmem:[#allocation4 + $0xb4] sm:$0xf] %vm1670_vm7, %v4674_v53  ;;  %4933 = vrot.lane.b32.xlu1 %v18294_v50, %s20810_s20  ;;  %4427 = vrot.lane.b32.xlu0 %v18319_v20, %s20819_s26 }
 0x390   : > { %4497 = vst.msk [vmem:[#allocation4 + $0xa8] sm:$0xf] %vm1413_vm5, %v4416_v29  ;;  %v6008_v52 = vld [vmem:[#allocation3 + $0x122] sm:$0xff]  ;;  %v6009_v21 = vld [vmem:[#allocation3 + $0x12a] sm:$0xff]  ;;  %v4026_v19 = vsel %vm3962_vm4, %v3908_v54, %v3994_v37  ;;  %v3911_v11 = vadd.f32 %v3910_v56, %v3750_v15  ;;  %v15667_v50 = vpop.f32.mrf.mxu1  ;;  %v5625_v12 = vpop.permute.xlu0 %5624 }
 0x391   : > { %4251 = vst.msk [vmem:[#allocation4 + $0x120] sm:$0xf] %vm1156_vm6, %v18420_v10  ;;  %5209 = vst.msk [vmem:[#allocation4 + $0x10c] sm:$0xf] %vm1156_vm6, %v18418_v17  ;;  %v4284_v6 = vld [vmem:[#allocation3 + $0x129] sm:$0xff]  ;;  %v18439_v32 = vpack.c.bf16 %v6008_v52, %v6008_v52  ;;  %v18441_v31 = vpack.c.bf16 %v6009_v21, %v6009_v21 }
 0x392   : > { %v16275_v22 = vld [vmem:[#allocation4 + $0xe0] ss:$12 sps:$4 sm:$0xff]   ;;  %4059 = vst.msk [vmem:[#allocation3 + $0x139] sm:$0xff] %vm433_vm2, %v4026_v19  ;;  %v18445_v13 = vpack.c.bf16 %v4284_v6, %v4284_v6  ;;  %v5497_v23 = vld [vmem:[#allocation3 + $0x128] sm:$0xff]  ;;  %vm3963_vm8 = vcmp.ge.f32.partialorder %v3911_v11, 0.0  ;;  %v5627_v57 = vpop.permute.xlu1 %5626  ;;  %v15668_v60 = vpop.f32.mrf.mxu1 }
 0x393   : > { %16074 = vmatmul.mubr.msk.bf16.gmra.mxu1 %vm433_vm2, %v16275_v22  ;;  %v3995_v55 = vmul.f32 0.01, %v3911_v11  ;;  %v18447_v26 = vpack.c.bf16 %v5497_v23, %v5497_v23  ;;  %6168 = vst.msk [vmem:[#allocation4 + $0xf8] sm:$0xf] %vm1156_vm6, %v18439_v32  ;;  %6169 = vst.msk [vmem:[#allocation4 + $0x104] sm:$0xf] %vm1156_vm6, %v18441_v31  ;;  %4429 = vrot.lane.b32.xlu1 %v18339_v47, %s20819_s26  ;;  %v15669_v34 = vadd.f32 %v15668_v60, %v15667_v50 }
 0x394   : > { %5711 = vst.msk [vmem:[#allocation4 + $0x88] sm:$0xf] %vm1670_vm7, %v5627_v57  ;;  %5710 = vst.msk [vmem:[#allocation4 + $0x7c] sm:$0xf] %vm1670_vm7, %v5625_v12  ;;  %5636 = vrot.lane.b32.xlu0 %v18321_v63, %s16483_s16  ;;  %v15670_v1 = vpop.f32.mrf.mxu1  ;;  %v5881_v8 = vpop.permute.xlu0 %5880 }
 0x395   : > { %5210 = vst.msk [vmem:[#allocation4 + $0x118] sm:$0xf] %vm1156_vm6, %v18445_v13  ;;  %v4027_v49 = vsel %vm3963_vm8, %v3911_v11, %v3995_v55  ;;  %4252 = vst.msk [vmem:[#allocation4 + $0x12c] sm:$0xf] %vm1156_vm6, %v18447_v26  ;;  %v3755_v24 = vadd.f32 %v18425_v3, %v15669_v34 }
 0x396   : > { %4060 = vst.msk [vmem:[#allocation3 + $0x141] sm:$0xff] %vm433_vm2, %v4027_v49  ;;  %v5883_v27 = vpop.permute.xlu1 %5882  ;;  %v15671_v7 = vpop.f32.mrf.mxu1 }
 0x397   : > { %5967 = vst.msk [vmem:[#allocation4 + $0x88] sm:$0xf] %vm1927_vm0, %v5883_v27  ;;  %5966 = vst.msk [vmem:[#allocation4 + $0x7c] sm:$0xf] %vm1927_vm0, %v5881_v8  ;;  %5638 = vrot.lane.b32.xlu1 %v18341_v48, %s16483_s16  ;;  %v3916_v39 = vadd.f32 %v18370_v18, %v3755_v24  ;;  %v15672_v61 = vadd.f32 %v15671_v7, %v15670_v1 }
 0x398   : > { %5892 = vrot.lane.b32.xlu0 %v18319_v20, %s20810_s20  ;;  %v4924_v2 = vpop.permute.xlu0 %4923 }
 0x399   : > { %v5498_v5 = vld [vmem:[#allocation3 + $0x138] sm:$0xff]  ;;  %vm3964_vm9 = vcmp.ge.f32.partialorder %v3916_v39, 0.0  ;;  %v3996_v14 = vmul.f32 0.01, %v3916_v39  ;;  %v3758_v38 = vadd.f32 %v18425_v3, %v15672_v61  ;;  %5007 = vst.msk [vmem:[#allocation4 + $0x90] sm:$0xf] %vm1927_vm0, %v4924_v2 }
 0x39a   : > { %v5051_v25 = vld [vmem:[#allocation3 + $0x139] sm:$0xff]  ;;  %v18474_v16 = vpack.c.bf16 %v5498_v5, %v5498_v5  ;;  %v5374_v45 = vpop.permute.xlu1 %5373  ;;  %v16276_v20 = vld [vmem:[#allocation4 + $0xf8] ss:$12 sps:$4 sm:$0xff]  }
 0x39b   : > { %v14842_v58 = vpack.c.bf16 %v5051_v25, %v5051_v25  ;;  %5456 = vst.msk [vmem:[#allocation4 + $0xa0] sm:$0xf] %vm1413_vm5, %v5374_v45  ;;  %5894 = vrot.lane.b32.xlu1 %v18339_v47, %s20810_s20  ;;  %v4028_v62 = vsel %vm3964_vm9, %v3916_v39, %v3996_v14  ;;  %v3919_v0 = vadd.f32 %v18410_v4, %v3758_v38 }
 0x39c   : > { %4935 = vrot.lane.b32.xlu0 %v18321_v63, %s20810_s20  ;;  %4253 = vst.msk [vmem:[#allocation4 + $0x138] sm:$0xf] %vm1156_vm6, %v18474_v16  ;;  %16077 = vmatprep.mubr.msk.bf16.mxu1 %vm433_vm2, %v16276_v20  ;;  %v3923_v63 = vpop.f32.mrf.mxu0  ;;  %v4672_v29 = vpop.permute.xlu0 %4671 }
 0x39d   : > { %5211 = vst.msk [vmem:[#allocation4 + $0x124] sm:$0xf] %vm1156_vm6, %v14842_v58  ;;  %v6010_v18 = vld [vmem:[#allocation3 + $0x13a] sm:$0xff]  ;;  %v6011_v59 = vld [vmem:[#allocation3 + $0x142] sm:$0xff]  ;;  %v15673_v47 = vpop.f32.mrf.mxu1  ;;  %vm3965_vm10 = vcmp.ge.f32.partialorder %v3919_v0, 0.0 }
 0x39e   : > { %v18487_v51 = vpack.c.bf16 %v6010_v18, %v6010_v18  ;;  %v18489_v54 = vpack.c.bf16 %v6011_v59, %v6011_v59  ;;  %4061 = vst.msk [vmem:[#allocation3 + $0x151] sm:$0xff] %vm433_vm2, %v4028_v62  ;;  %v5499_v30 = vld [vmem:[#allocation3 + $0x140] sm:$0xff]  ;;  %v6202_v41 = vld [vmem:[#allocation4 + $0x84] sm:$0xff]  ;;  %v6200_v37 = vld [vmem:[#allocation4 + $0x78] sm:$0xff]  ;;  %v3997_v15 = vmul.f32 0.01, %v3919_v0  ;;  %v4926_v53 = vpop.permute.xlu1 %4925  ;;  %v18509_v50 = vpop.f32.mrf.mxu0 }
 0x39f   : > { %v5052_v35 = vld [vmem:[#allocation3 + $0x141] sm:$0xff]  ;;  %v18493_v56 = vpack.c.bf16 %v5499_v30, %v5499_v30  ;;  %5008 = vst.msk [vmem:[#allocation4 + $0x9c] sm:$0xf] %vm1927_vm0, %v4926_v53  ;;  %v15674_v22 = vpop.f32.mrf.mxu1  ;;  %5385 = vrot.lane.b32.xlu1 %v18335_v9, %s20819_s26  ;;  %v13618_v52 = vcombine.high %v6200_v37, %v6202_v41  ;;  %v13617_v21 = vcombine.low %v6200_v37, %v6202_v41 }
 0x3a0   : > { %v14843_v4 = vpack.c.bf16 %v5052_v35, %v5052_v35  ;;  %6170 = vst.msk [vmem:[#allocation4 + $0x110] sm:$0xf] %vm1156_vm6, %v18487_v51  ;;  %6171 = vst.msk [vmem:[#allocation4 + $0x11c] sm:$0xf] %vm1156_vm6, %v18489_v54  ;;  %5383 = vrot.lane.b32.xlu0 %v18333_v33, %s20819_s26  ;;  %v4029_v19 = vsel %vm3965_vm10, %v3919_v0, %v3997_v15  ;;  %v15675_v11 = vadd.f32 %v15674_v22, %v15673_v47  ;;  %v5372_v23 = vpop.permute.xlu0 %5371  ;;  %v3926_v1 = vpop.f32.mrf.mxu0 }
 0x3a1   : > { %4753 = vst.msk [vmem:[#allocation4 + $0xa8] sm:$0xf] %vm1670_vm7, %v4672_v29  ;;  %6755 = vmatprep.mubr.bf16.mxu0 %v13618_v52  ;;  %v15676_v6 = vpop.f32.mrf.mxu1 }
 0x3a2   : > { %4254 = vst.msk [vmem:[#allocation4 + $0x144] sm:$0xf] %vm1156_vm6, %v18493_v56  ;;  %5212 = vst.msk [vmem:[#allocation4 + $0x130] sm:$0xf] %vm1156_vm6, %v14843_v4  ;;  %6756 = vmatmul.mubr.bf16.gmra.mxu0 %v13617_v21  ;;  %v3763_v55 = vadd.f32 %v18425_v3, %v15675_v11 }
 0x3a3   : > { %4062 = vst.msk [vmem:[#allocation3 + $0x159] sm:$0xff] %vm433_vm2, %v4029_v19  ;;  %v15677_v57 = vpop.f32.mrf.mxu1  ;;  %4937 = vrot.lane.b32.xlu1 %v18341_v48, %s20810_s20 }
 0x3a4   : > { %5455 = vst.msk [vmem:[#allocation4 + $0x94] sm:$0xf] %vm1413_vm5, %v5372_v23  ;;  %4683 = vrot.lane.b32.xlu0 %v18333_v33, %s16483_s16  ;;  %v15678_v12 = vadd.f32 %v15677_v57, %v15676_v6  ;;  %v3924_v60 = vadd.f32 %v3923_v63, %v3763_v55 }
 0x3a5   : > { %v5500_v49 = vld [vmem:[#allocation3 + $0x150] sm:$0xff] }
 0x3a6   : > { %v5053_v34 = vld [vmem:[#allocation3 + $0x151] sm:$0xff]  ;;  %v18517_v24 = vpack.c.bf16 %v5500_v49, %v5500_v49  ;;  %vm3966_vm11 = vcmp.ge.f32.partialorder %v3924_v60, 0.0  ;;  %v3998_v8 = vmul.f32 0.01, %v3924_v60  ;;  %v3766_v7 = vadd.f32 %v18425_v3, %v15678_v12 }
 0x3a7   : > { %v14844_v27 = vpack.c.bf16 %v5053_v34, %v5053_v34  ;;  %4685 = vrot.lane.b32.xlu1 %v18335_v9, %s16483_s16  ;;  %v16277_v48 = vld [vmem:[#allocation4 + $0x110] ss:$12 sps:$4 sm:$0xff]  }
 0x3a8   : > { %4431 = vrot.lane.b32.xlu0 %v18365_v28, %s20819_s26  ;;  %4255 = vst.msk [vmem:[#allocation4 + $0x150] sm:$0xf] %vm1156_vm6, %v18517_v24  ;;  %v4030_v61 = vsel %vm3966_vm11, %v3924_v60, %v3998_v8  ;;  %v3927_v5 = vadd.f32 %v3926_v1, %v3766_v7  ;;  %v15679_v9 = vpop.f32.mrf.mxu1  ;;  %16078 = vmatmul.mubr.msk.bf16.gmra.mxu1 %vm433_vm2, %v16277_v48  ;;  %v4285_v8 = vld [vmem:[#allocation3 + $0x139] sm:$0xff] }
 0x3a9   : > { %5213 = vst.msk [vmem:[#allocation4 + $0x13c] sm:$0xf] %vm1156_vm6, %v14844_v27  ;;  %v14748_v7 = vpack.c.bf16 %v4285_v8, %v4285_v8 }
 0x3aa   : > { %v6012_v33 = vld [vmem:[#allocation3 + $0x152] sm:$0xff]  ;;  %v6013_v39 = vld [vmem:[#allocation3 + $0x15a] sm:$0xff]  ;;  %4063 = vst.msk [vmem:[#allocation3 + $0x169] sm:$0xff] %vm433_vm2, %v4030_v61  ;;  %vm3967_vm12 = vcmp.ge.f32.partialorder %v3927_v5, 0.0  ;;  %v3999_v45 = vmul.f32 0.01, %v3927_v5  ;;  %v15680_v18 = vpop.f32.mrf.mxu1 }
 0x3ab   : > { %v18527_v25 = vpack.c.bf16 %v6012_v33, %v6012_v33  ;;  %v18529_v58 = vpack.c.bf16 %v6013_v39, %v6013_v39  ;;  %v5501_v14 = vld [vmem:[#allocation3 + $0x158] sm:$0xff]  ;;  %4433 = vrot.lane.b32.xlu1 %v18389_v40, %s20819_s26  ;;  %v15681_v62 = vadd.f32 %v15680_v18, %v15679_v9 }
 0x3ac   : > { %v5054_v38 = vld [vmem:[#allocation3 + $0x159] sm:$0xff]  ;;  %v18533_v2 = vpack.c.bf16 %v5501_v14, %v5501_v14  ;;  %5640 = vrot.lane.b32.xlu0 %v18367_v44, %s16483_s16  ;;  %v4031_v59 = vsel %vm3967_vm12, %v3927_v5, %v3999_v45  ;;  %v15682_v0 = vpop.f32.mrf.mxu1  ;;  %v4287_v33 = vld [vmem:[#allocation3 + $0x151] sm:$0xff] }
 0x3ad   : > { %v14845_v20 = vpack.c.bf16 %v5054_v38, %v5054_v38  ;;  %6172 = vst.msk [vmem:[#allocation4 + $0x128] sm:$0xf] %vm1156_vm6, %v18527_v25  ;;  %6173 = vst.msk [vmem:[#allocation4 + $0x134] sm:$0xf] %vm1156_vm6, %v18529_v58  ;;  %v3771_v47 = vadd.f32 %v18425_v3, %v15681_v62  ;;  %v18625_v61 = vpack.c.bf16 %v4287_v33, %v4287_v33  ;;  %v4288_v14 = vld [vmem:[#allocation3 + $0x159] sm:$0xff] }
 0x3ae   : > { %4256 = vst.msk [vmem:[#allocation4 + $0x15c] sm:$0xf] %vm1156_vm6, %v18533_v2  ;;  %v15683_v63 = vpop.f32.mrf.mxu1  ;;  %v18637_v38 = vpack.c.bf16 %v4288_v14, %v4288_v14 }
 0x3af   : > { %5214 = vst.msk [vmem:[#allocation4 + $0x148] sm:$0xf] %vm1156_vm6, %v14845_v20  ;;  %5642 = vrot.lane.b32.xlu1 %v18391_v43, %s16483_s16  ;;  %v3932_v30 = vadd.f32 %v18472_v42, %v3771_v47  ;;  %v15684_v35 = vadd.f32 %v15683_v63, %v15682_v0 }
 0x3b0   : > { %4064 = vst.msk [vmem:[#allocation3 + $0x171] sm:$0xff] %vm433_vm2, %v4031_v59  ;;  %5896 = vrot.lane.b32.xlu0 %v18365_v28, %s20810_s20 }
 0x3b1   : > { %v5502_v41 = vld [vmem:[#allocation3 + $0x168] sm:$0xff]  ;;  %vm3968_vm13 = vcmp.ge.f32.partialorder %v3932_v30, 0.0  ;;  %v4000_v29 = vmul.f32 0.01, %v3932_v30  ;;  %v3774_v4 = vadd.f32 %v18425_v3, %v15684_v35 }
 0x3b2   : > { %v5055_v37 = vld [vmem:[#allocation3 + $0x169] sm:$0xff]  ;;  %v18553_v15 = vpack.c.bf16 %v5502_v41, %v5502_v41 }
 0x3b3   : > { %v14846_v53 = vpack.c.bf16 %v5055_v37, %v5055_v37  ;;  %5898 = vrot.lane.b32.xlu1 %v18389_v40, %s20810_s20  ;;  %v4032_v52 = vsel %vm3968_vm13, %v3932_v30, %v4000_v29  ;;  %v3935_v21 = vadd.f32 %v18509_v50, %v3774_v4  ;;  %v18671_v4 = vpop.f32.mrf.mxu1 }
 0x3b4   : > { %4939 = vrot.lane.b32.xlu0 %v18367_v44, %s20810_s20  ;;  %v16278_v22 = vld [vmem:[#allocation4 + $0x128] ss:$12 sps:$4 sm:$0xff]   ;;  %4257 = vst.msk [vmem:[#allocation4 + $0x168] sm:$0xf] %vm1156_vm6, %v18553_v15 }
 0x3b5   : > { %5215 = vst.msk [vmem:[#allocation4 + $0x154] sm:$0xf] %vm1156_vm6, %v14846_v53  ;;  %16081 = vmatprep.mubr.msk.bf16.mxu1 %vm433_vm2, %v16278_v22  ;;  %vm3969_vm14 = vcmp.ge.f32.partialorder %v3935_v21, 0.0  ;;  %v4001_v11 = vmul.f32 0.01, %v3935_v21 }
 0x3b6   : > { %4065 = vst.msk [vmem:[#allocation3 + $0x181] sm:$0xff] %vm433_vm2, %v4032_v52  ;;  %v6878_v52 = vpop.f32.mrf.mxu1 }
 0x3b7   : > { %v6014_v28 = vld [vmem:[#allocation3 + $0x16a] sm:$0xff]  ;;  %v6015_v42 = vld [vmem:[#allocation3 + $0x172] sm:$0xff]  ;;  %5389 = vrot.lane.b32.xlu1 %v18385_v36, %s20819_s26  ;;  %v4033_v50 = vsel %vm3969_vm14, %v3935_v21, %v4001_v11 }
 0x3b8   : > { %v18564_v19 = vpack.c.bf16 %v6014_v28, %v6014_v28  ;;  %v18566_v3 = vpack.c.bf16 %v6015_v42, %v6015_v42  ;;  %v5503_v44 = vld [vmem:[#allocation3 + $0x170] sm:$0xff]  ;;  %5387 = vrot.lane.b32.xlu0 %v18383_v46, %s20819_s26  ;;  %4066 = vst.msk [vmem:[#allocation3 + $0x189] sm:$0xff] %vm433_vm2, %v4033_v50 }
 0x3b9   : > { %v5056_v40 = vld [vmem:[#allocation3 + $0x171] sm:$0xff]  ;;  %v18570_v6 = vpack.c.bf16 %v5503_v44, %v5503_v44 }
 0x3ba   : > { %v14847_v23 = vpack.c.bf16 %v5056_v40, %v5056_v40  ;;  %6174 = vst.msk [vmem:[#allocation4 + $0x140] sm:$0xf] %vm1156_vm6, %v18564_v19  ;;  %6175 = vst.msk [vmem:[#allocation4 + $0x14c] sm:$0xf] %vm1156_vm6, %v18566_v3  ;;  %v4290_v62 = vld [vmem:[#allocation3 + $0x171] sm:$0xff] }
 0x3bb   : > { %4258 = vst.msk [vmem:[#allocation4 + $0x174] sm:$0xf] %vm1156_vm6, %v18570_v6  ;;  %4941 = vrot.lane.b32.xlu1 %v18391_v43, %s20810_s20  ;;  %v18653_v47 = vpack.c.bf16 %v4290_v62, %v4290_v62 }
 0x3bc   : > { %5216 = vst.msk [vmem:[#allocation4 + $0x160] sm:$0xf] %vm1156_vm6, %v14847_v23  ;;  %4435 = vrot.lane.b32.xlu0 %v18418_v17, %s20819_s26  ;;  %v18690_v23 = vpop.f32.mrf.mxu1 }
 0x3bd   : > { %v5760_v55 = vld [vmem:[#allocation3 + $0x181] sm:$0xff] }
 0x3be   : > { %v18588_v57 = vpack.c.bf16 %v5760_v55, %v5760_v55 }
 0x3bf   : > { %4437 = vrot.lane.b32.xlu1 %v18445_v13, %s20819_s26  ;;  %v6016_v60 = vld [vmem:[#allocation3 + $0x182] sm:$0xff]  ;;  %v6017_v49 = vld [vmem:[#allocation3 + $0x18a] sm:$0xff] }
 0x3c0   : > { %5644 = vrot.lane.b32.xlu0 %v18420_v10, %s16483_s16  ;;  %5217 = vst.msk [vmem:[#allocation4 + $0x16c] sm:$0xf] %vm1156_vm6, %v18588_v57  ;;  %v18597_v43 = vpack.c.bf16 %v6016_v60, %v6016_v60  ;;  %v18599_v34 = vpack.c.bf16 %v6017_v49, %v6017_v49  ;;  %v5761_v1 = vld [vmem:[#allocation3 + $0x189] sm:$0xff] }
 0x3c1   : > { %v16279_v12 = vld [vmem:[#allocation4 + $0x140] ss:$12 sps:$4 sm:$0xff]   ;;  %v18601_v27 = vpack.c.bf16 %v5761_v1, %v5761_v1 }
 0x3c2   : > { %16082 = vmatmul.mubr.msk.bf16.gmra.mxu1 %vm433_vm2, %v16279_v12  ;;  %6176 = vst.msk [vmem:[#allocation4 + $0x158] sm:$0xf] %vm1156_vm6, %v18597_v43  ;;  %6177 = vst.msk [vmem:[#allocation4 + $0x164] sm:$0xf] %vm1156_vm6, %v18599_v34 }
 0x3c3   : > { %5646 = vrot.lane.b32.xlu1 %v18447_v26, %s16483_s16  ;;  %5218 = vst.msk [vmem:[#allocation4 + $0x178] sm:$0xf] %vm1156_vm6, %v18601_v27 }
 0x3c4   : > { %5900 = vrot.lane.b32.xlu0 %v18418_v17, %s20810_s20  ;;  %v4286_v17 = vld [vmem:[#allocation3 + $0x141] sm:$0xff] }
 0x3c5   : > { %v14749_v39 = vpack.c.bf16 %v4286_v17, %v4286_v17 }
 0x3c7   : > { %5902 = vrot.lane.b32.xlu1 %v18445_v13, %s20810_s20 }
 0x3c8   : > { %5391 = vrot.lane.b32.xlu0 %v18439_v32, %s20819_s26 }
 0x3c9   : > { %v16280_v48 = vld [vmem:[#allocation4 + $0x158] ss:$12 sps:$4 sm:$0xff]  }
 0x3ca   : > { %16085 = vmatprep.mubr.msk.bf16.mxu1 %vm433_vm2, %v16280_v48 }
 0x3cb   : > { %5393 = vrot.lane.b32.xlu1 %v18441_v31, %s20819_s26 }
 0x3cc   : > { %4439 = vrot.lane.b32.xlu0 %v14748_v7, %s20819_s26 }
 0x3cf   : > { %4689 = vrot.lane.b32.xlu1 %v18385_v36, %s16483_s16  ;;  %v4289_v36 = vld [vmem:[#allocation3 + $0x169] sm:$0xff] }
 0x3d0   : > { %4687 = vrot.lane.b32.xlu0 %v18383_v46, %s16483_s16  ;;  %v4420_v13 = vpop.permute.xlu0 %4419  ;;  %v18639_v45 = vpack.c.bf16 %v4289_v36, %v4289_v36 }
 0x3d1   : > { %4499 = vst.msk [vmem:[#allocation4 + $0xc0] sm:$0xf] %vm1413_vm5, %v4420_v13 }
 0x3d3   : > { %4441 = vrot.lane.b32.xlu1 %v14749_v39, %s20819_s26 }
 0x3d4   : > { %4443 = vrot.lane.b32.xlu0 %v18625_v61, %s20819_s26  ;;  %v5629_v9 = vpop.permute.xlu0 %5628 }
 0x3d5   : > { %v4422_v5 = vpop.permute.xlu1 %4421  ;;  %5712 = vst.msk [vmem:[#allocation4 + $0x94] sm:$0xf] %vm1670_vm7, %v5629_v9 }
 0x3d6   : > { %4500 = vst.msk [vmem:[#allocation4 + $0xcc] sm:$0xf] %vm1413_vm5, %v4422_v5 }
 0x3d7   : > { %5650 = vrot.lane.b32.xlu1 %v18493_v56, %s16483_s16 }
 0x3d8   : > { %5648 = vrot.lane.b32.xlu0 %v18474_v16, %s16483_s16  ;;  %v5885_v20 = vpop.permute.xlu0 %5884 }
 0x3d9   : > { %v4678_v46 = vpop.permute.xlu1 %4677  ;;  %5968 = vst.msk [vmem:[#allocation4 + $0x94] sm:$0xf] %vm1927_vm0, %v5885_v20 }
 0x3da   : > { %4756 = vst.msk [vmem:[#allocation4 + $0xcc] sm:$0xf] %vm1670_vm7, %v4678_v46 }
 0x3db   : > { %4445 = vrot.lane.b32.xlu1 %v18637_v38, %s20819_s26 }
 0x3dc   : > { %4447 = vrot.lane.b32.xlu0 %v18639_v45, %s20819_s26  ;;  %v4928_v59 = vpop.permute.xlu0 %4927 }
 0x3dd   : > { %v5631_v18 = vpop.permute.xlu1 %5630  ;;  %5009 = vst.msk [vmem:[#allocation4 + $0xa8] sm:$0xf] %vm1927_vm0, %v4928_v59 }
 0x3de   : > { %5713 = vst.msk [vmem:[#allocation4 + $0xa0] sm:$0xf] %vm1670_vm7, %v5631_v18 }
 0x3df   : > { %4945 = vrot.lane.b32.xlu1 %v18447_v26, %s20810_s20 }
 0x3e0   : > { %4943 = vrot.lane.b32.xlu0 %v18420_v10, %s20810_s20  ;;  %v4676_v63 = vpop.permute.xlu0 %4675  ;;  %v6204_v10 = vld [vmem:[#allocation4 + $0x90] sm:$0xff] }
 0x3e1   : > { %v5887_v0 = vpop.permute.xlu1 %5886  ;;  %4755 = vst.msk [vmem:[#allocation4 + $0xc0] sm:$0xf] %vm1670_vm7, %v4676_v63 }
 0x3e2   : > { %5969 = vst.msk [vmem:[#allocation4 + $0xa0] sm:$0xf] %vm1927_vm0, %v5887_v0 }
 0x3e3   : > { %4449 = vrot.lane.b32.xlu1 %v18653_v47, %s20819_s26 }
 0x3e4   : > { %5904 = vrot.lane.b32.xlu0 %v14748_v7, %s20810_s20  ;;  %v5376_v26 = vpop.permute.xlu0 %5375  ;;  %v6881_v7 = vpop.f32.mrf.mxu1 }
 0x3e5   : > { %v5378_v30 = vpop.permute.xlu1 %5377  ;;  %5457 = vst.msk [vmem:[#allocation4 + $0xac] sm:$0xf] %vm1413_vm5, %v5376_v26 }
 0x3e6   : > { %5458 = vst.msk [vmem:[#allocation4 + $0xb8] sm:$0xf] %vm1413_vm5, %v5378_v30 }
 0x3e7   : > { %5906 = vrot.lane.b32.xlu1 %v14749_v39, %s20810_s20 }
 0x3e8   : > { %5395 = vrot.lane.b32.xlu0 %v18487_v51, %s20819_s26  ;;  %v4424_v37 = vpop.permute.xlu0 %4423 }
 0x3e9   : > { %v6206_v35 = vld [vmem:[#allocation4 + $0x9c] sm:$0xff]  ;;  %v4930_v41 = vpop.permute.xlu1 %4929  ;;  %4501 = vst.msk [vmem:[#allocation4 + $0xd8] sm:$0xf] %vm1413_vm5, %v4424_v37 }
 0x3ea   : > { %5010 = vst.msk [vmem:[#allocation4 + $0xb4] sm:$0xf] %vm1927_vm0, %v4930_v41  ;;  %v13621_v53 = vcombine.high %v6204_v10, %v6206_v35  ;;  %v13620_v29 = vcombine.low %v6204_v10, %v6206_v35 }
 0x3eb   : > { %5397 = vrot.lane.b32.xlu1 %v18489_v54, %s20819_s26 }
 0x3ec   : > { %4691 = vrot.lane.b32.xlu0 %v18439_v32, %s16483_s16  ;;  %6763 = vmatprep.mubr.bf16.mxu0 %v13621_v53  ;;  %v5633_v28 = vpop.permute.xlu0 %5632  ;;  %v18682_v32 = vld [vmem:[%s20802_s7] ss:$0 sm:$0xff] }
 0x3ed   : > { %v4426_v22 = vpop.permute.xlu1 %4425  ;;  %6764 = vmatmul.mubr.bf16.gmra.mxu0 %v13620_v29  ;;  %5714 = vst.msk [vmem:[#allocation4 + $0xac] sm:$0xf] %vm1670_vm7, %v5633_v28 }
 0x3ee   : > { %4502 = vst.msk [vmem:[#allocation4 + $0xe4] sm:$0xf] %vm1413_vm5, %v4426_v22 }
 0x3ef   : > { %4693 = vrot.lane.b32.xlu1 %v18441_v31, %s16483_s16  ;;  %v15719_v42 = vpop.f32.mrf.mxu0 }
 0x3f0   : > { %5652 = vrot.lane.b32.xlu0 %v18517_v24, %s16483_s16  ;;  %v5889_v11 = vpop.permute.xlu0 %5888 }
 0x3f1   : > { %v4682_v21 = vpop.permute.xlu1 %4681  ;;  %v15720_v44 = vpop.f32.mrf.mxu0  ;;  %5970 = vst.msk [vmem:[#allocation4 + $0xac] sm:$0xf] %vm1927_vm0, %v5889_v11 }
 0x3f2   : > { %4758 = vst.msk [vmem:[#allocation4 + $0xe4] sm:$0xf] %vm1670_vm7, %v4682_v21  ;;  %v15721_v40 = vadd.f32 %v15720_v44, %v15719_v42 }
 0x3f3   : > { %5654 = vrot.lane.b32.xlu1 %v18533_v2, %s16483_s16  ;;  %v15722_v31 = vpop.f32.mrf.mxu0 }
 0x3f4   : > { %4947 = vrot.lane.b32.xlu0 %v18474_v16, %s20810_s20  ;;  %v6718_v50 = vadd.f32 %v15721_v40, %v18682_v32  ;;  %v4932_v1 = vpop.permute.xlu0 %4931 }
 0x3f5   : > { %v5635_v55 = vpop.permute.xlu1 %5634  ;;  %v15723_v12 = vpop.f32.mrf.mxu0  ;;  %5011 = vst.msk [vmem:[#allocation4 + $0xc0] sm:$0xf] %vm1927_vm0, %v4932_v1 }
 0x3f6   : > { %v6879_v60 = vadd.f32 %v6878_v52, %v6718_v50  ;;  %5715 = vst.msk [vmem:[#allocation4 + $0xb8] sm:$0xf] %vm1670_vm7, %v5635_v55  ;;  %v15724_v49 = vadd.f32 %v15723_v12, %v15722_v31  ;;  %v5504_v55 = vld [vmem:[#allocation3 + $0x180] sm:$0xff] }
 0x3f7   : > { %4949 = vrot.lane.b32.xlu1 %v18493_v56, %s20810_s20 }
 0x3f8   : > { %5908 = vrot.lane.b32.xlu0 %v18625_v61, %s20810_s20  ;;  %vm7005_vm15 = vcmp.ge.f32.partialorder %v6879_v60, 0.0  ;;  %v7037_v16 = vmul.f32 0.01, %v6879_v60  ;;  %v6721_v8 = vadd.f32 %v15724_v49, %v18682_v32  ;;  %v4680_v13 = vpop.permute.xlu0 %4679  ;;  %v6208_v9 = vld [vmem:[#allocation4 + $0xa8] sm:$0xff] }
 0x3f9   : > { %v5891_v48 = vpop.permute.xlu1 %5890  ;;  %4757 = vst.msk [vmem:[#allocation4 + $0xd8] sm:$0xf] %vm1670_vm7, %v4680_v13  ;;  %v5505_v13 = vld [vmem:[#allocation3 + $0x188] sm:$0xff] }
 0x3fa   : > { %v7069_v17 = vsel %vm7005_vm15, %v6879_v60, %v7037_v16  ;;  %v6882_v33 = vadd.f32 %v6881_v7, %v6721_v8  ;;  %5971 = vst.msk [vmem:[#allocation4 + $0xb8] sm:$0xf] %vm1927_vm0, %v5891_v48  ;;  %v18766_v16 = vpack.c.bf16 %v5504_v55, %v5504_v55 }
 0x3fb   : > { %7101 = vst.msk [vmem:[#allocation2 + $0x19] sm:$0xff] %vm433_vm2, %v7069_v17  ;;  %5910 = vrot.lane.b32.xlu1 %v18637_v38, %s20810_s20 }
 0x3fc   : > { %5399 = vrot.lane.b32.xlu0 %v18527_v25, %s20819_s26  ;;  %vm7006_vm1 = vcmp.ge.f32.partialorder %v6882_v33, 0.0  ;;  %v7038_v56 = vmul.f32 0.01, %v6882_v33 }
 0x3fd   : > { %v5382_v39 = vpop.permute.xlu1 %5381  ;;  %v5380_v5 = vpop.permute.xlu0 %5379 }
 0x3fe   : > { %v7070_v61 = vsel %vm7006_vm1, %v6882_v33, %v7038_v56  ;;  %5460 = vst.msk [vmem:[#allocation4 + $0xd0] sm:$0xf] %vm1413_vm5, %v5382_v39  ;;  %5459 = vst.msk [vmem:[#allocation4 + $0xc4] sm:$0xf] %vm1413_vm5, %v5380_v5  ;;  %v18781_v5 = vpack.c.bf16 %v5505_v13, %v5505_v13  ;;  %v5763_v13 = vld [vmem:[#allocation3 + $0x1a1] sm:$0xff] }
 0x3ff   : > { %7102 = vst.msk [vmem:[#allocation2 + $0x21] sm:$0xff] %vm433_vm2, %v7070_v61  ;;  %5401 = vrot.lane.b32.xlu1 %v18529_v58, %s20819_s26 }
 0x400   : > { %4695 = vrot.lane.b32.xlu0 %v18487_v51, %s16483_s16 }
 0x401   : > { %v6210_v14 = vld [vmem:[#allocation4 + $0xb4] sm:$0xff]  ;;  %v4934_v36 = vpop.permute.xlu1 %4933  ;;  %v15725_v46 = vpop.f32.mrf.mxu0 }
 0x402   : > { %5012 = vst.msk [vmem:[#allocation4 + $0xcc] sm:$0xf] %vm1927_vm0, %v4934_v36  ;;  %v4428_v38 = vpop.permute.xlu0 %4427  ;;  %v13624_v20 = vcombine.high %v6208_v9, %v6210_v14  ;;  %v13623_v18 = vcombine.low %v6208_v9, %v6210_v14  ;;  %v7327_v59 = vld [vmem:[#allocation2 + $0x19] sm:$0xff] }
 0x403   : > { %v7837_v62 = vld [vmem:[#allocation2 + $0x18] sm:$0xff]  ;;  %4503 = vst.msk [vmem:[#allocation4 + $0xf0] sm:$0xf] %vm1413_vm5, %v4428_v38  ;;  %4697 = vrot.lane.b32.xlu1 %v18489_v54, %s16483_s16  ;;  %v15726_v0 = vpop.f32.mrf.mxu0  ;;  %v18720_v51 = vpack.c.bf16 %v7327_v59, %v7327_v59 }
 0x404   : > { %5656 = vrot.lane.b32.xlu0 %v18553_v15, %s16483_s16  ;;  %v18722_v63 = vpack.c.bf16 %v7837_v62, %v7837_v62  ;;  %v15727_v30 = vadd.f32 %v15726_v0, %v15725_v46  ;;  %6771 = vmatprep.mubr.bf16.mxu0 %v13624_v20 }
 0x405   : > { %v4430_v26 = vpop.permute.xlu1 %4429  ;;  %v15728_v10 = vpop.f32.mrf.mxu0  ;;  %6772 = vmatmul.mubr.bf16.gmra.mxu0 %v13623_v18  ;;  %8253 = vst.msk [vmem:[#allocation4 + $0x4] sm:$0xf] %vm1156_vm6, %v18720_v51 }
 0x406   : > { %7295 = vst.msk [vmem:[#allocation4 + $0x18] sm:$0xf] %vm1156_vm6, %v18722_v63  ;;  %v6726_v54 = vadd.f32 %v15727_v30, %v18682_v32  ;;  %v5637_v35 = vpop.permute.xlu0 %5636  ;;  %v7328_v41 = vld [vmem:[#allocation2 + $0x21] sm:$0xff] }
 0x407   : > { %4504 = vst.msk [vmem:[#allocation4 + $0xfc] sm:$0xf] %vm1413_vm5, %v4430_v26  ;;  %5658 = vrot.lane.b32.xlu1 %v18570_v6, %s16483_s16  ;;  %v15729_v37 = vpop.f32.mrf.mxu0  ;;  %v18735_v53 = vpack.c.bf16 %v7328_v41, %v7328_v41  ;;  %v7838_v29 = vld [vmem:[#allocation2 + $0x20] sm:$0xff] }
 0x408   : > { %5716 = vst.msk [vmem:[#allocation4 + $0xc4] sm:$0xf] %vm1670_vm7, %v5637_v35  ;;  %4951 = vrot.lane.b32.xlu0 %v18517_v24, %s20810_s20  ;;  %v6887_v22 = vadd.f32 %v18671_v4, %v6726_v54  ;;  %v15730_v28 = vadd.f32 %v15729_v37, %v15728_v10  ;;  %v18738_v42 = vpack.c.bf16 %v7838_v29, %v7838_v29 }
 0x409   : > { %v5639_v52 = vpop.permute.xlu1 %5638  ;;  %8254 = vst.msk [vmem:[#allocation4 + $0x10] sm:$0xf] %vm1156_vm6, %v18735_v53 }
 0x40a   : > { %vm7007_vm3 = vcmp.ge.f32.partialorder %v6887_v22, 0.0  ;;  %v7039_v21 = vmul.f32 0.01, %v6887_v22  ;;  %v6729_v44 = vadd.f32 %v15730_v28, %v18682_v32  ;;  %5717 = vst.msk [vmem:[#allocation4 + $0xd0] sm:$0xf] %vm1670_vm7, %v5639_v52  ;;  %v5893_v40 = vpop.permute.xlu0 %5892 }
 0x40b   : > { %7296 = vst.msk [vmem:[#allocation4 + $0x24] sm:$0xf] %vm1156_vm6, %v18738_v42  ;;  %4953 = vrot.lane.b32.xlu1 %v18533_v2, %s20810_s20 }
 0x40c   : > { %5972 = vst.msk [vmem:[#allocation4 + $0xc4] sm:$0xf] %vm1927_vm0, %v5893_v40  ;;  %5912 = vrot.lane.b32.xlu0 %v18639_v45, %s20810_s20  ;;  %v7071_v24 = vsel %vm7007_vm3, %v6887_v22, %v7039_v21  ;;  %v6890_v4 = vadd.f32 %v18690_v23, %v6729_v44  ;;  %v5506_v44 = vld [vmem:[#allocation3 + $0x198] sm:$0xff] }
 0x40d   : > { %7103 = vst.msk [vmem:[#allocation2 + $0x31] sm:$0xff] %vm433_vm2, %v7071_v24  ;;  %v5895_v11 = vpop.permute.xlu1 %5894  ;;  %v9084_v40 = vld [vmem:[#allocation2 + $0x1a2] sm:$0xff] }
 0x40e   : > { %vm7008_vm4 = vcmp.ge.f32.partialorder %v6890_v4, 0.0  ;;  %v7040_v31 = vmul.f32 0.01, %v6890_v4  ;;  %5973 = vst.msk [vmem:[#allocation4 + $0xd0] sm:$0xf] %vm1927_vm0, %v5895_v11  ;;  %v4936_v50 = vpop.permute.xlu0 %4935 }
 0x40f   : > { %5013 = vst.msk [vmem:[#allocation4 + $0xd8] sm:$0xf] %vm1927_vm0, %v4936_v50  ;;  %5914 = vrot.lane.b32.xlu1 %v18653_v47, %s20810_s20  ;;  %v15265_v50 = vpack.c.bf16 %v9084_v40, %v9084_v40 }
 0x410   : > { %5403 = vrot.lane.b32.xlu0 %v18564_v19, %s20819_s26  ;;  %v7072_v2 = vsel %vm7008_vm4, %v6890_v4, %v7040_v31 }
 0x411   : > { %7104 = vst.msk [vmem:[#allocation2 + $0x39] sm:$0xff] %vm433_vm2, %v7072_v2  ;;  %v5386_v45 = vpop.permute.xlu1 %5385  ;;  %v14912_v2 = vpack.c.bf16 %v5506_v44, %v5506_v44 }
 0x412   : > { %5462 = vst.msk [vmem:[#allocation4 + $0xe8] sm:$0xf] %vm1413_vm5, %v5386_v45  ;;  %v5384_v23 = vpop.permute.xlu0 %5383  ;;  %v5507_v45 = vld [vmem:[#allocation3 + $0x1a0] sm:$0xff] }
 0x413   : > { %5461 = vst.msk [vmem:[#allocation4 + $0xdc] sm:$0xf] %vm1413_vm5, %v5384_v23  ;;  %5405 = vrot.lane.b32.xlu1 %v18566_v3, %s20819_s26  ;;  %v6212_v60 = vld [vmem:[#allocation4 + $0xc0] sm:$0xff] }
 0x414   : > { %4699 = vrot.lane.b32.xlu0 %v18527_v25, %s16483_s16  ;;  %v8541_v47 = vld [vmem:[#allocation2 + $0x30] sm:$0xff]  ;;  %v18779_v25 = vpop.f32.mrf.mxu1 }
 0x415   : > { %v8095_v12 = vld [vmem:[#allocation2 + $0x31] sm:$0xff]  ;;  %v4938_v1 = vpop.permute.xlu1 %4937  ;;  %v18768_v8 = vpack.c.bf16 %v8541_v47, %v8541_v47 }
 0x416   : > { %v6214_v49 = vld [vmem:[#allocation4 + $0xcc] sm:$0xff]  ;;  %v15108_v7 = vpack.c.bf16 %v8095_v12, %v8095_v12  ;;  %5014 = vst.msk [vmem:[#allocation4 + $0xe4] sm:$0xf] %vm1927_vm0, %v4938_v1  ;;  %v4684_v48 = vpop.permute.xlu0 %4683  ;;  %v6894_v59 = vpop.f32.mrf.mxu1 }
 0x417   : > { %v13627_v17 = vcombine.high %v6212_v60, %v6214_v49  ;;  %v13626_v33 = vcombine.low %v6212_v60, %v6214_v49  ;;  %4759 = vst.msk [vmem:[#allocation4 + $0xf0] sm:$0xf] %vm1670_vm7, %v4684_v48  ;;  %4701 = vrot.lane.b32.xlu1 %v18529_v58, %s16483_s16 }
 0x418   : > { %5660 = vrot.lane.b32.xlu0 %v18766_v16, %s16483_s16  ;;  %7297 = vst.msk [vmem:[#allocation4 + $0x30] sm:$0xf] %vm1156_vm6, %v18768_v8  ;;  %8255 = vst.msk [vmem:[#allocation4 + $0x1c] sm:$0xf] %vm1156_vm6, %v15108_v7  ;;  %v8542_v56 = vld [vmem:[#allocation2 + $0x38] sm:$0xff]  ;;  %v18809_v54 = vpop.f32.mrf.mxu1 }
 0x419   : > { %6779 = vmatprep.mubr.bf16.mxu0 %v13627_v17  ;;  %v8288_v39 = vld [vmem:[#allocation2 + $0x3a] sm:$0xff]  ;;  %v4686_v61 = vpop.permute.xlu1 %4685  ;;  %v18783_v9 = vpack.c.bf16 %v8542_v56, %v8542_v56  ;;  %v8287_v14 = vld [vmem:[#allocation2 + $0x32] sm:$0xff]  ;;  %v15731_v38 = vpop.f32.mrf.mxu0 }
 0x41a   : > { %6780 = vmatmul.mubr.bf16.gmra.mxu0 %v13626_v33  ;;  %v18785_v58 = vpack.c.bf16 %v8288_v39, %v8288_v39  ;;  %v8096_v36 = vld [vmem:[#allocation2 + $0x39] sm:$0xff]  ;;  %4760 = vst.msk [vmem:[#allocation4 + $0xfc] sm:$0xf] %vm1670_vm7, %v4686_v61  ;;  %v4432_v46 = vpop.permute.xlu0 %4431  ;;  %v18788_v20 = vpack.c.bf16 %v8287_v14, %v8287_v14  ;;  %v6897_v21 = vpop.f32.mrf.mxu1  ;;  %v7325_v56 = vld [vmem:[#allocation2 + $0x1] sm:$0xff] }
 0x41b   : > { %v15109_v18 = vpack.c.bf16 %v8096_v36, %v8096_v36  ;;  %4505 = vst.msk [vmem:[#allocation4 + $0x108] sm:$0xf] %vm1413_vm5, %v4432_v46  ;;  %5662 = vrot.lane.b32.xlu1 %v18781_v5, %s16483_s16  ;;  %v15732_v62 = vpop.f32.mrf.mxu0 }
 0x41c   : > { %4955 = vrot.lane.b32.xlu0 %v18553_v15, %s20810_s20  ;;  %9214 = vst.msk [vmem:[#allocation4 + $0x14] sm:$0xf] %vm1156_vm6, %v18785_v58  ;;  %7298 = vst.msk [vmem:[#allocation4 + $0x3c] sm:$0xf] %vm1156_vm6, %v18783_v9  ;;  %v15733_v0 = vadd.f32 %v15732_v62, %v15731_v38 }
 0x41d   : > { %9213 = vst.msk [vmem:[#allocation4 + $0x8] sm:$0xf] %vm1156_vm6, %v18788_v20  ;;  %8256 = vst.msk [vmem:[#allocation4 + $0x28] sm:$0xf] %vm1156_vm6, %v15109_v18  ;;  %v4434_v30 = vpop.permute.xlu1 %4433  ;;  %v15734_v10 = vpop.f32.mrf.mxu0  ;;  %v14945_v18 = vpack.c.bf16 %v5763_v13, %v5763_v13 }
 0x41e   : > { %4506 = vst.msk [vmem:[#allocation4 + $0x114] sm:$0xf] %vm1413_vm5, %v4434_v30  ;;  %v5641_v26 = vpop.permute.xlu0 %5640  ;;  %v6734_v15 = vadd.f32 %v15733_v0, %v18682_v32  ;;  %v7133_v0 = vld [vmem:[#allocation2] sm:$0xff]  ;;  %v7134_v30 = vld [vmem:[#allocation2 + $0x8] sm:$0xff] }
 0x41f   : > { %5718 = vst.msk [vmem:[#allocation4 + $0xdc] sm:$0xf] %vm1670_vm7, %v5641_v26  ;;  %4957 = vrot.lane.b32.xlu1 %v18570_v6, %s20810_s20  ;;  %v15735_v35 = vpop.f32.mrf.mxu0  ;;  %v16281_v6 = vld [vmem:[#allocation4 + $0x170] ss:$12 sps:$4 sm:$0xff]  }
 0x420   : > { %5916 = vrot.lane.b32.xlu0 %v18588_v57, %s20810_s20  ;;  %v6895_v41 = vadd.f32 %v6894_v59, %v6734_v15  ;;  %v15736_v37 = vadd.f32 %v15735_v35, %v15734_v10  ;;  %v9083_v57 = vld [vmem:[#allocation2 + $0x19a] sm:$0xff]  ;;  %16086 = vmatmul.mubr.msk.bf16.gmra.mxu1 %vm433_vm2, %v16281_v6  ;;  %9244 = vst.msk [vmem:[#allocation4 + $0x17c] sm:$0xf] %vm1156_vm6, %v15265_v50 }
 0x421   : > { %v5643_v29 = vpop.permute.xlu1 %5642  ;;  %v15264_v24 = vpack.c.bf16 %v9083_v57, %v9083_v57  ;;  %v15010_v59 = vpack.c.bf16 %v7325_v56, %v7325_v56  ;;  %v14978_v10 = vpack.c.bf16 %v7133_v0, %v7133_v0  ;;  %v14979_v15 = vpack.c.bf16 %v7134_v30, %v7134_v30  ;;  %v16295_v30 = vld [vmem:[%s20803_s8 + $0x20] sm:$0xff]  }
 0x422   : > { %5719 = vst.msk [vmem:[#allocation4 + $0xe8] sm:$0xf] %vm1670_vm7, %v5643_v29  ;;  %v5897_v22 = vpop.permute.xlu0 %5896  ;;  %vm7009_vm8 = vcmp.ge.f32.partialorder %v6895_v41, 0.0  ;;  %v7041_v28 = vmul.f32 0.01, %v6895_v41  ;;  %v6737_v52 = vadd.f32 %v15736_v37, %v18682_v32  ;;  %v7326_v29 = vld [vmem:[#allocation2 + $0x9] sm:$0xff] }
 0x423   : > { %5974 = vst.msk [vmem:[#allocation4 + $0xdc] sm:$0xf] %vm1927_vm0, %v5897_v22  ;;  %5918 = vrot.lane.b32.xlu1 %v18601_v27, %s20810_s20  ;;  %v7581_v22 = vld [vmem:[#allocation2 + $0x2] sm:$0xff]  ;;  %v15011_v40 = vpack.c.bf16 %v7326_v29, %v7326_v29 }
 0x424   : > { %5407 = vrot.lane.b32.xlu0 %v18597_v43, %s20819_s26  ;;  %v7073_v4 = vsel %vm7009_vm8, %v6895_v41, %v7041_v28  ;;  %v6898_v11 = vadd.f32 %v6897_v21, %v6737_v52  ;;  %9243 = vst.msk [vmem:[#allocation4 + $0x170] sm:$0xf] %vm1156_vm6, %v15264_v24  ;;  %7293 = vst.msk [vmem:[#allocation4] sm:$0xf] %vm1156_vm6, %v14978_v10  ;;  %v15042_v24 = vpack.c.bf16 %v7581_v22, %v7581_v22 }
 0x425   : > { %v5899_v31 = vpop.permute.xlu1 %5898  ;;  %7105 = vst.msk [vmem:[#allocation2 + $0x49] sm:$0xff] %vm433_vm2, %v7073_v4  ;;  %v16282_v4 = vld [vmem:[%s20803_s8 + $0x88] sm:$0xff]  }
 0x426   : > { %5975 = vst.msk [vmem:[#allocation4 + $0xe8] sm:$0xf] %vm1927_vm0, %v5899_v31  ;;  %v4940_v27 = vpop.permute.xlu0 %4939  ;;  %vm7010_vm9 = vcmp.ge.f32.partialorder %v6898_v11, 0.0  ;;  %v7042_v43 = vmul.f32 0.01, %v6898_v11  ;;  %v7582_v31 = vld [vmem:[#allocation2 + $0xa] sm:$0xff]  ;;  %16089 = vmatprep.subr.bf16.mxu0 %v16282_v4 }
 0x427   : > { %5015 = vst.msk [vmem:[#allocation4 + $0xf0] sm:$0xf] %vm1927_vm0, %v4940_v27  ;;  %5409 = vrot.lane.b32.xlu1 %v18599_v34, %s20819_s26  ;;  %v14913_v34 = vpack.c.bf16 %v5507_v45, %v5507_v45  ;;  %16090 = vmatpush3.bf16.msra.mxu0 %v16282_v4  ;;  %v16284_v45 = vld [vmem:[%s20803_s8 + $0x78] sm:$0xff]  }
 0x428   : > { %4703 = vrot.lane.b32.xlu0 %v18564_v19, %s16483_s16  ;;  %v7074_v23 = vsel %vm7010_vm9, %v6898_v11, %v7042_v43  ;;  %v5762_v19 = vld [vmem:[#allocation3 + $0x199] sm:$0xff]  ;;  %7294 = vst.msk [vmem:[#allocation4 + $0xc] sm:$0xf] %vm1156_vm6, %v14979_v15  ;;  %15833 = vmatprep.subr.bf16.mxu1 %v16284_v45  ;;  %v18917_v15 = vpop.f32.mrf.mxu1 }
 0x429   : > { %v5390_v55 = vpop.permute.xlu1 %5389  ;;  %7106 = vst.msk [vmem:[#allocation2 + $0x51] sm:$0xff] %vm433_vm2, %v7074_v23  ;;  %v16299_v45 = vld [vmem:[%s20803_s8 + $0x50] sm:$0xff]  }
 0x42a   : > { %5464 = vst.msk [vmem:[#allocation4 + $0x100] sm:$0xf] %vm1413_vm5, %v5390_v55  ;;  %v5388_v47 = vpop.permute.xlu0 %5387  ;;  %v6216_v12 = vld [vmem:[#allocation4 + $0xd8] sm:$0xff] }
 0x42b   : > { %5463 = vst.msk [vmem:[#allocation4 + $0xf4] sm:$0xf] %vm1413_vm5, %v5388_v47  ;;  %4705 = vrot.lane.b32.xlu1 %v18566_v3, %s16483_s16  ;;  %v14944_v3 = vpack.c.bf16 %v5762_v19, %v5762_v19  ;;  %v16285_v47 = vld [vmem:[%s20803_s8 + $0x80] sm:$0xff]  }
 0x42c   : > { %5664 = vrot.lane.b32.xlu0 %v14912_v2, %s16483_s16  ;;  %v7139_v17 = vld [vmem:[#allocation2 + $0x48] sm:$0xff]  ;;  %16091 = vmatprep.subr.bf16.mxu0 %v16285_v47 }
 0x42d   : > { %v6218_v60 = vld [vmem:[#allocation4 + $0xe4] sm:$0xff]  ;;  %v4942_v49 = vpop.permute.xlu1 %4941  ;;  %v14984_v39 = vpack.c.bf16 %v7139_v17, %v7139_v17  ;;  %16092 = vmatpush3.bf16.msra.mxu0 %v16285_v47 }
 0x42e   : > { %5016 = vst.msk [vmem:[#allocation4 + $0xfc] sm:$0xf] %vm1927_vm0, %v4942_v49  ;;  %v4436_v1 = vpop.permute.xlu0 %4435  ;;  %v13630_v7 = vcombine.high %v6216_v12, %v6218_v60  ;;  %v13629_v48 = vcombine.low %v6216_v12, %v6218_v60  ;;  %v8097_v33 = vld [vmem:[#allocation2 + $0x49] sm:$0xff] }
 0x42f   : > { %4507 = vst.msk [vmem:[#allocation4 + $0x120] sm:$0xf] %vm1413_vm5, %v4436_v1  ;;  %5666 = vrot.lane.b32.xlu1 %v14913_v34, %s16483_s16  ;;  %v15110_v61 = vpack.c.bf16 %v8097_v33, %v8097_v33  ;;  %v16286_v34 = vld [vmem:[%s20803_s8 + $0x38] sm:$0xff]   ;;  %v16287_v49 = vld [vmem:[%s20803_s8 + $0x70] sm:$0xff]  }
 0x430   : > { %4959 = vrot.lane.b32.xlu0 %v18766_v16, %s20810_s20  ;;  %6787 = vmatprep.mubr.bf16.mxu0 %v13630_v7  ;;  %v8290_v36 = vld [vmem:[#allocation2 + $0x52] sm:$0xff]  ;;  %7299 = vst.msk [vmem:[#allocation4 + $0x48] sm:$0xf] %vm1156_vm6, %v14984_v39  ;;  %v8289_v62 = vld [vmem:[#allocation2 + $0x4a] sm:$0xff] }
 0x431   : > { %v4438_v14 = vpop.permute.xlu1 %4437  ;;  %6788 = vmatmul.mubr.bf16.gmra.mxu0 %v13629_v48  ;;  %8257 = vst.msk [vmem:[#allocation4 + $0x34] sm:$0xf] %vm1156_vm6, %v15110_v61  ;;  %v18842_v16 = vpack.c.bf16 %v8290_v36, %v8290_v36  ;;  %v18848_v26 = vpack.c.bf16 %v8289_v62, %v8289_v62  ;;  %v7140_v35 = vld [vmem:[#allocation2 + $0x50] sm:$0xff]  ;;  %15834 = vmatpush3.bf16.msra.mxu1 %v16286_v34  ;;  %v16291_v48 = vld [vmem:[%s20803_s8 + $0x68] sm:$0xff]  }
 0x432   : > { %4508 = vst.msk [vmem:[#allocation4 + $0x12c] sm:$0xf] %vm1413_vm5, %v4438_v14  ;;  %v5645_v46 = vpop.permute.xlu0 %5644  ;;  %v8098_v41 = vld [vmem:[#allocation2 + $0x51] sm:$0xff]  ;;  %v14985_v28 = vpack.c.bf16 %v7140_v35, %v7140_v35  ;;  %15835 = vmatprep.subr.bf16.mxu1 %v16287_v49  ;;  %v8286_v61 = vld [vmem:[#allocation2 + $0x22] sm:$0xff]  ;;  %v8285_v14 = vld [vmem:[#allocation2 + $0x1a] sm:$0xff] }
 0x433   : > { %v15737_v38 = vpop.f32.mrf.mxu0  ;;  %5720 = vst.msk [vmem:[#allocation4 + $0xf4] sm:$0xf] %vm1670_vm7, %v5645_v46  ;;  %4961 = vrot.lane.b32.xlu1 %v18781_v5, %s20810_s20  ;;  %v15111_v52 = vpack.c.bf16 %v8098_v41, %v8098_v41  ;;  %v16292_v36 = vld [vmem:[%s20803_s8 + $0x28] sm:$0xff]   ;;  %v16293_v46 = vld [vmem:[%s20803_s8 + $0x60] sm:$0xff]   ;;  %v7329_v41 = vld [vmem:[#allocation2 + $0x31] sm:$0xff] }
 0x434   : > { %5920 = vrot.lane.b32.xlu0 %v14944_v3, %s20810_s20  ;;  %9216 = vst.msk [vmem:[#allocation4 + $0x2c] sm:$0xf] %vm1156_vm6, %v18842_v16  ;;  %9215 = vst.msk [vmem:[#allocation4 + $0x20] sm:$0xf] %vm1156_vm6, %v18848_v26 }
 0x435   : > { %v15738_v37 = vpop.f32.mrf.mxu0  ;;  %v5647_v57 = vpop.permute.xlu1 %5646  ;;  %7300 = vst.msk [vmem:[#allocation4 + $0x54] sm:$0xf] %vm1156_vm6, %v14985_v28  ;;  %8258 = vst.msk [vmem:[#allocation4 + $0x40] sm:$0xf] %vm1156_vm6, %v15111_v52 }
 0x436   : > { %v15739_v6 = vadd.f32 %v15738_v37, %v15737_v38  ;;  %5721 = vst.msk [vmem:[#allocation4 + $0x100] sm:$0xf] %vm1670_vm7, %v5647_v57  ;;  %v5901_v5 = vpop.permute.xlu0 %5900 }
 0x437   : > { %v15740_v21 = vpop.f32.mrf.mxu0  ;;  %5976 = vst.msk [vmem:[#allocation4 + $0xf4] sm:$0xf] %vm1927_vm0, %v5901_v5  ;;  %5922 = vrot.lane.b32.xlu1 %v14945_v18, %s20810_s20  ;;  %v15139_v18 = vpack.c.bf16 %v8286_v61, %v8286_v61  ;;  %v16305_v61 = vld [vmem:[%s20803_s8] sm:$0xff]   ;;  %s431_s20 = scalar_lea.vmem %s20821_s1, %s14401_s28  ;;  %s16487_s1 = smov [#allocation5]  }
 0x438   : > { %v6742_v44 = vadd.f32 %v15739_v6, %v18682_v32  ;;  %7453 = vrot.lane.b32.xlu0 %v15010_v59, %s20819_s26  ;;  %v15138_v59 = vpack.c.bf16 %v8285_v14, %v8285_v14  ;;  %v16297_v6 = vld [vmem:[%s20803_s8 + $0x58] sm:$0xff]   ;;  %s16423_s2 = sshll.u32 %s16487_s1, 4  ;;  %s16424_s2 = int_to_ptr.vmem [resolvable:$false] %s16423_s2 }
 0x439   : > { %v15741_v11 = vpop.f32.mrf.mxu0  ;;  %v5903_v43 = vpop.permute.xlu1 %5902  ;;  %s16425_s25 = scalar_lea.vmem %s16424_s2, 128 }
 0x43a   : > { %v6903_v50 = vadd.f32 %v18779_v25, %v6742_v44  ;;  %v15742_v27 = vadd.f32 %v15741_v11, %v15740_v21  ;;  %5977 = vst.msk [vmem:[#allocation4 + $0x100] sm:$0xf] %vm1927_vm0, %v5903_v43  ;;  %v5392_v2 = vpop.permute.xlu0 %5391  ;;  %v15043_v25 = vpack.c.bf16 %v7582_v31, %v7582_v31  ;;  %v16298_v21 = vld [vmem:[%s20803_s8 + $0x18] sm:$0xff]  }
 0x43b   : > { %5465 = vst.msk [vmem:[#allocation4 + $0x10c] sm:$0xf] %vm1413_vm5, %v5392_v2  ;;  %7455 = vrot.lane.b32.xlu1 %v15011_v40, %s20819_s26  ;;  %v7330_v2 = vld [vmem:[#allocation2 + $0x39] sm:$0xff] }
 0x43c   : > { %vm7011_vm10 = vcmp.ge.f32.partialorder %v6903_v50, 0.0  ;;  %v7043_v23 = vmul.f32 0.01, %v6903_v50  ;;  %v6745_v55 = vadd.f32 %v15742_v27, %v18682_v32  ;;  %7709 = vrot.lane.b32.xlu0 %v15042_v24, %s16483_s16  ;;  %v6910_v24 = vpop.f32.mrf.mxu1 }
 0x43d   : > { %v5394_v60 = vpop.permute.xlu1 %5393 }
 0x43e   : > { %v7075_v19 = vsel %vm7011_vm10, %v6903_v50, %v7043_v23  ;;  %v6906_v12 = vadd.f32 %v18809_v54, %v6745_v55  ;;  %5466 = vst.msk [vmem:[#allocation4 + $0x118] sm:$0xf] %vm1413_vm5, %v5394_v60  ;;  %v4440_v1 = vpop.permute.xlu0 %4439  ;;  %v16289_v54 = vld [vmem:[%s20803_s8 + $0x30] sm:$0xff]   ;;  %v15015_v60 = vpack.c.bf16 %v7330_v2, %v7330_v2 }
 0x43f   : > { %7107 = vst.msk [vmem:[#allocation2 + $0x61] sm:$0xff] %vm433_vm2, %v7075_v19  ;;  %7711 = vrot.lane.b32.xlu1 %v15043_v25, %s16483_s16  ;;  %v6220_v17 = vld [vmem:[#allocation4 + $0xf0] sm:$0xff]  ;;  %15836 = vmatpush3.bf16.msra.mxu1 %v16289_v54  ;;  %v18953_v25 = vpop.f32.mrf.mxu1 }
 0x440   : > { %vm7012_vm11 = vcmp.ge.f32.partialorder %v6906_v12, 0.0  ;;  %v7044_v7 = vmul.f32 0.01, %v6906_v12  ;;  %4509 = vst.msk [vmem:[#allocation4 + $0x138] sm:$0xf] %vm1413_vm5, %v4440_v1  ;;  %7457 = vrot.lane.b32.xlu0 %v18720_v51, %s20819_s26  ;;  %15837 = vmatprep.subr.bf16.mxu1 %v16291_v48  ;;  %v16300_v55 = vld [vmem:[%s20803_s8 + $0x10] sm:$0xff]  }
 0x441   : > { %v6222_v3 = vld [vmem:[#allocation4 + $0xfc] sm:$0xff]  ;;  %v4690_v13 = vpop.permute.xlu1 %4689  ;;  %v16301_v1 = vld [vmem:[%s20803_s8 + $0x48] sm:$0xff]  }
 0x442   : > { %v7076_v33 = vsel %vm7012_vm11, %v6906_v12, %v7044_v7  ;;  %4762 = vst.msk [vmem:[#allocation4 + $0x114] sm:$0xf] %vm1670_vm7, %v4690_v13  ;;  %v4688_v56 = vpop.permute.xlu0 %4687  ;;  %v13633_v51 = vcombine.high %v6220_v17, %v6222_v3  ;;  %v13632_v39 = vcombine.low %v6220_v17, %v6222_v3  ;;  %v16303_v48 = vld [vmem:[%s20803_s8 + $0x8] sm:$0xff]   ;;  %v6913_v17 = vpop.f32.mrf.mxu1 }
 0x443   : > { %7108 = vst.msk [vmem:[#allocation2 + $0x69] sm:$0xff] %vm433_vm2, %v7076_v33  ;;  %7459 = vrot.lane.b32.xlu1 %v18735_v53, %s20819_s26  ;;  %15838 = vmatpush3.bf16.msra.mxu1 %v16292_v36 }
 0x444   : > { %4761 = vst.msk [vmem:[#allocation4 + $0x108] sm:$0xf] %vm1670_vm7, %v4688_v56  ;;  %7965 = vrot.lane.b32.xlu0 %v18722_v63, %s20820_s17  ;;  %6795 = vmatprep.mubr.bf16.mxu0 %v13633_v51  ;;  %v16304_v56 = vld [vmem:[%s20803_s8 + $0x40] sm:$0xff]  }
 0x445   : > { %v4442_v38 = vpop.permute.xlu1 %4441  ;;  %6796 = vmatmul.mubr.bf16.gmra.mxu0 %v13632_v39  ;;  %15839 = vmatprep.subr.bf16.mxu1 %v16293_v46 }
 0x446   : > { %v7141_v62 = vld [vmem:[#allocation2 + $0x60] sm:$0xff]  ;;  %4510 = vst.msk [vmem:[#allocation4 + $0x144] sm:$0xf] %vm1413_vm5, %v4442_v38  ;;  %v4444_v53 = vpop.permute.xlu0 %4443 }
 0x447   : > { %v14986_v63 = vpack.c.bf16 %v7141_v62, %v7141_v62  ;;  %v8099_v0 = vld [vmem:[#allocation2 + $0x61] sm:$0xff]  ;;  %4511 = vst.msk [vmem:[#allocation4 + $0x150] sm:$0xf] %vm1413_vm5, %v4444_v53  ;;  %8415 = vrot.lane.b32.xlu1 %v15139_v18, %s20819_s26  ;;  %15840 = vmatpush3.bf16.msra.mxu1 %v16295_v30 }
 0x448   : > { %8413 = vrot.lane.b32.xlu0 %v15138_v59, %s20819_s26  ;;  %v15112_v10 = vpack.c.bf16 %v8099_v0, %v8099_v0  ;;  %15841 = vmatprep.subr.bf16.mxu1 %v16297_v6 }
 0x449   : > { %7301 = vst.msk [vmem:[#allocation4 + $0x60] sm:$0xf] %vm1156_vm6, %v14986_v63  ;;  %v5651_v35 = vpop.permute.xlu1 %5650 }
 0x44a   : > { %v8292_v37 = vld [vmem:[#allocation2 + $0x6a] sm:$0xff]  ;;  %8259 = vst.msk [vmem:[#allocation4 + $0x4c] sm:$0xf] %vm1156_vm6, %v15112_v10  ;;  %v5649_v29 = vpop.permute.xlu0 %5648  ;;  %v8291_v52 = vld [vmem:[#allocation2 + $0x62] sm:$0xff] }
 0x44b   : > { %5723 = vst.msk [vmem:[#allocation4 + $0x118] sm:$0xf] %vm1670_vm7, %v5651_v35  ;;  %v18922_v28 = vpack.c.bf16 %v8292_v37, %v8292_v37  ;;  %v8100_v57 = vld [vmem:[#allocation2 + $0x69] sm:$0xff]  ;;  %5722 = vst.msk [vmem:[#allocation4 + $0x10c] sm:$0xf] %vm1670_vm7, %v5649_v29  ;;  %7967 = vrot.lane.b32.xlu1 %v18738_v42, %s20820_s17  ;;  %v18931_v5 = vpack.c.bf16 %v8291_v52, %v8291_v52  ;;  %v15014_v42 = vpack.c.bf16 %v7329_v41, %v7329_v41 }
 0x44c   : > { %7713 = vrot.lane.b32.xlu0 %v15138_v59, %s16483_s16  ;;  %v15113_v44 = vpack.c.bf16 %v8100_v57, %v8100_v57  ;;  %v7142_v40 = vld [vmem:[#allocation2 + $0x68] sm:$0xff]  ;;  %15842 = vmatpush3.bf16.msra.mxu1 %v16298_v21 }
 0x44d   : > { %v15743_v22 = vpop.f32.mrf.mxu0  ;;  %9218 = vst.msk [vmem:[#allocation4 + $0x44] sm:$0xf] %vm1156_vm6, %v18922_v28  ;;  %v14987_v11 = vpack.c.bf16 %v7142_v40, %v7142_v40  ;;  %v4446_v50 = vpop.permute.xlu1 %4445  ;;  %9217 = vst.msk [vmem:[#allocation4 + $0x38] sm:$0xf] %vm1156_vm6, %v18931_v5  ;;  %15843 = vmatprep.subr.bf16.mxu1 %v16299_v45  ;;  %v7331_v10 = vld [vmem:[#allocation2 + $0x49] sm:$0xff] }
 0x44e   : > { %8260 = vst.msk [vmem:[#allocation4 + $0x58] sm:$0xf] %vm1156_vm6, %v15113_v44  ;;  %v4448_v27 = vpop.permute.xlu0 %4447 }
 0x44f   : > { %v15744_v4 = vpop.f32.mrf.mxu0  ;;  %4512 = vst.msk [vmem:[#allocation4 + $0x15c] sm:$0xf] %vm1413_vm5, %v4446_v50  ;;  %4513 = vst.msk [vmem:[#allocation4 + $0x168] sm:$0xf] %vm1413_vm5, %v4448_v27  ;;  %7715 = vrot.lane.b32.xlu1 %v15139_v18, %s16483_s16  ;;  %v15016_v50 = vpack.c.bf16 %v7331_v10, %v7331_v10  ;;  %v8543_v27 = vld [vmem:[#allocation2 + $0x48] sm:$0xff] }
 0x450   : > { %v15745_v31 = vadd.f32 %v15744_v4, %v15743_v22  ;;  %7302 = vst.msk [vmem:[#allocation4 + $0x6c] sm:$0xf] %vm1156_vm6, %v14987_v11  ;;  %7461 = vrot.lane.b32.xlu0 %v15014_v42, %s20819_s26  ;;  %15844 = vmatpush3.bf16.msra.mxu1 %v16300_v55 }
 0x451   : > { %v15746_v43 = vpop.f32.mrf.mxu0  ;;  %v4946_v12 = vpop.permute.xlu1 %4945  ;;  %15845 = vmatprep.subr.bf16.mxu1 %v16301_v1 }
 0x452   : > { %v6750_v23 = vadd.f32 %v15745_v31, %v18682_v32  ;;  %5018 = vst.msk [vmem:[#allocation4 + $0x114] sm:$0xf] %vm1927_vm0, %v4946_v12  ;;  %v4944_v49 = vpop.permute.xlu0 %4943  ;;  %v8544_v12 = vld [vmem:[#allocation2 + $0x50] sm:$0xff] }
 0x453   : > { %v15747_v47 = vpop.f32.mrf.mxu0  ;;  %5017 = vst.msk [vmem:[#allocation4 + $0x108] sm:$0xf] %vm1927_vm0, %v4944_v49  ;;  %7463 = vrot.lane.b32.xlu1 %v15015_v60, %s20819_s26 }
 0x454   : > { %v6911_v34 = vadd.f32 %v6910_v24, %v6750_v23  ;;  %v15748_v19 = vadd.f32 %v15747_v47, %v15746_v43  ;;  %8669 = vrot.lane.b32.xlu0 %v18768_v8, %s16483_s16  ;;  %15846 = vmatpush3.bf16.msra.mxu1 %v16303_v48 }
 0x455   : > { %v4450_v13 = vpop.permute.xlu1 %4449  ;;  %15847 = vmatprep.subr.bf16.mxu1 %v16304_v56 }
 0x456   : > { %vm7013_vm12 = vcmp.ge.f32.partialorder %v6911_v34, 0.0  ;;  %v7045_v7 = vmul.f32 0.01, %v6911_v34  ;;  %v6753_v54 = vadd.f32 %v15748_v19, %v18682_v32  ;;  %4514 = vst.msk [vmem:[#allocation4 + $0x174] sm:$0xf] %vm1413_vm5, %v4450_v13  ;;  %v5905_v51 = vpop.permute.xlu0 %5904 }
 0x457   : > { %5978 = vst.msk [vmem:[#allocation4 + $0x10c] sm:$0xf] %vm1927_vm0, %v5905_v51  ;;  %8671 = vrot.lane.b32.xlu1 %v18783_v9, %s16483_s16 }
 0x458   : > { %v7077_v33 = vsel %vm7013_vm12, %v6911_v34, %v7045_v7  ;;  %v6914_v3 = vadd.f32 %v6913_v17, %v6753_v54  ;;  %8925 = vrot.lane.b32.xlu0 %v15014_v42, %s20820_s17  ;;  %15848 = vmatpush3.bf16.msra.mxu1 %v16305_v61  ;;  %v7332_v42 = vld [vmem:[#allocation2 + $0x51] sm:$0xff]  ;;  %v15172_v34 = vpack.c.bf16 %v8543_v27, %v8543_v27 }
 0x459   : > { %7109 = vst.msk [vmem:[#allocation2 + $0x79] sm:$0xff] %vm433_vm2, %v7077_v33  ;;  %v5907_v36 = vpop.permute.xlu1 %5906  ;;  %v15017_v47 = vpack.c.bf16 %v7332_v42, %v7332_v42  ;;  %v15173_v7 = vpack.c.bf16 %v8544_v12, %v8544_v12 }
 0x45a   : > { %vm7014_vm13 = vcmp.ge.f32.partialorder %v6914_v3, 0.0  ;;  %v7046_v39 = vmul.f32 0.01, %v6914_v3  ;;  %5979 = vst.msk [vmem:[#allocation4 + $0x118] sm:$0xf] %vm1927_vm0, %v5907_v36  ;;  %v5396_v46 = vpop.permute.xlu0 %5395 }
 0x45b   : > { %5467 = vst.msk [vmem:[#allocation4 + $0x124] sm:$0xf] %vm1413_vm5, %v5396_v46  ;;  %8927 = vrot.lane.b32.xlu1 %v15015_v60, %s20820_s17 }
 0x45c   : > { %v7078_v14 = vsel %vm7014_vm13, %v6914_v3, %v7046_v39  ;;  %7969 = vrot.lane.b32.xlu0 %v18768_v8, %s20820_s17 }
 0x45d   : > { %7110 = vst.msk [vmem:[#allocation2 + $0x81] sm:$0xff] %vm433_vm2, %v7078_v14  ;;  %v5398_v38 = vpop.permute.xlu1 %5397 }
 0x45e   : > { %5468 = vst.msk [vmem:[#allocation4 + $0x130] sm:$0xf] %vm1413_vm5, %v5398_v38  ;;  %v4692_v59 = vpop.permute.xlu0 %4691  ;;  %v6224_v0 = vld [vmem:[#allocation4 + $0x108] sm:$0xff] }
 0x45f   : > { %4763 = vst.msk [vmem:[#allocation4 + $0x120] sm:$0xf] %vm1670_vm7, %v4692_v59  ;;  %8419 = vrot.lane.b32.xlu1 %v18785_v58, %s20819_s26 }
 0x460   : > { %v7143_v18 = vld [vmem:[#allocation2 + $0x78] sm:$0xff]  ;;  %8417 = vrot.lane.b32.xlu0 %v18788_v20, %s20819_s26 }
 0x461   : > { %v14988_v62 = vpack.c.bf16 %v7143_v18, %v7143_v18  ;;  %v8101_v53 = vld [vmem:[#allocation2 + $0x79] sm:$0xff]  ;;  %v4694_v30 = vpop.permute.xlu1 %4693 }
 0x462   : > { %v15114_v63 = vpack.c.bf16 %v8101_v53, %v8101_v53  ;;  %v6226_v8 = vld [vmem:[#allocation4 + $0x114] sm:$0xff]  ;;  %4764 = vst.msk [vmem:[#allocation4 + $0x12c] sm:$0xf] %vm1670_vm7, %v4694_v30  ;;  %v5653_v35 = vpop.permute.xlu0 %5652  ;;  %v15749_v41 = vpop.f32.mrf.mxu0  ;;  %v8545_v18 = vld [vmem:[#allocation2 + $0x60] sm:$0xff] }
 0x463   : > { %7303 = vst.msk [vmem:[#allocation4 + $0x78] sm:$0xf] %vm1156_vm6, %v14988_v62  ;;  %v13636_v37 = vcombine.high %v6224_v0, %v6226_v8  ;;  %v13635_v29 = vcombine.low %v6224_v0, %v6226_v8  ;;  %7971 = vrot.lane.b32.xlu1 %v18783_v9, %s20820_s17 }
 0x464   : > { %8261 = vst.msk [vmem:[#allocation4 + $0x64] sm:$0xf] %vm1156_vm6, %v15114_v63  ;;  %v8294_v22 = vld [vmem:[#allocation2 + $0x82] sm:$0xff]  ;;  %v8293_v52 = vld [vmem:[#allocation2 + $0x7a] sm:$0xff]  ;;  %7717 = vrot.lane.b32.xlu0 %v18788_v20, %s16483_s16  ;;  %v15750_v24 = vpop.f32.mrf.mxu0 }
 0x465   : > { %v8102_v6 = vld [vmem:[#allocation2 + $0x81] sm:$0xff]  ;;  %5724 = vst.msk [vmem:[#allocation4 + $0x124] sm:$0xf] %vm1670_vm7, %v5653_v35  ;;  %v18999_v57 = vpack.c.bf16 %v8294_v22, %v8294_v22  ;;  %v19001_v21 = vpack.c.bf16 %v8293_v52, %v8293_v52  ;;  %6803 = vmatprep.mubr.bf16.mxu0 %v13636_v37  ;;  %v15751_v11 = vadd.f32 %v15750_v24, %v15749_v41  ;;  %v5655_v31 = vpop.permute.xlu1 %5654  ;;  %v8802_v24 = vld [vmem:[#allocation2 + $0x69] sm:$0xff] }
 0x466   : > { %v15115_v44 = vpack.c.bf16 %v8102_v6, %v8102_v6  ;;  %v7144_v40 = vld [vmem:[#allocation2 + $0x80] sm:$0xff]  ;;  %6804 = vmatmul.mubr.bf16.gmra.mxu0 %v13635_v29  ;;  %5725 = vst.msk [vmem:[#allocation4 + $0x130] sm:$0xf] %vm1670_vm7, %v5655_v31  ;;  %v4948_v9 = vpop.permute.xlu0 %4947  ;;  %v15752_v20 = vpop.f32.mrf.mxu0  ;;  %v15174_v37 = vpack.c.bf16 %v8545_v18, %v8545_v18 }
 0x467   : > { %v14989_v4 = vpack.c.bf16 %v7144_v40, %v7144_v40  ;;  %9219 = vst.msk [vmem:[#allocation4 + $0x50] sm:$0xf] %vm1156_vm6, %v19001_v21  ;;  %9220 = vst.msk [vmem:[#allocation4 + $0x5c] sm:$0xf] %vm1156_vm6, %v18999_v57  ;;  %v6758_v43 = vadd.f32 %v15751_v11, %v18682_v32  ;;  %7719 = vrot.lane.b32.xlu1 %v18785_v58, %s16483_s16  ;;  %v8801_v22 = vld [vmem:[#allocation2 + $0x61] sm:$0xff]  ;;  %v15207_v11 = vpack.c.bf16 %v8802_v24, %v8802_v24 }
 0x468   : > { %8262 = vst.msk [vmem:[#allocation4 + $0x70] sm:$0xf] %vm1156_vm6, %v15115_v44  ;;  %7465 = vrot.lane.b32.xlu0 %v15016_v50, %s20819_s26  ;;  %v15753_v2 = vpop.f32.mrf.mxu0  ;;  %v15206_v44 = vpack.c.bf16 %v8801_v22, %v8801_v22  ;;  %v8548_v12 = vld [vmem:[#allocation2 + $0x80] sm:$0xff] }
 0x469   : > { %7304 = vst.msk [vmem:[#allocation4 + $0x84] sm:$0xf] %vm1156_vm6, %v14989_v4  ;;  %v6919_v45 = vadd.f32 %v18917_v15, %v6758_v43  ;;  %v15754_v23 = vadd.f32 %v15753_v2, %v15752_v20  ;;  %v4950_v55 = vpop.permute.xlu1 %4949 }
 0x46a   : > { %5019 = vst.msk [vmem:[#allocation4 + $0x120] sm:$0xf] %vm1927_vm0, %v4948_v9  ;;  %5020 = vst.msk [vmem:[#allocation4 + $0x12c] sm:$0xf] %vm1927_vm0, %v4950_v55  ;;  %v5909_v19 = vpop.permute.xlu0 %5908  ;;  %v8547_v55 = vld [vmem:[#allocation2 + $0x78] sm:$0xff] }
 0x46b   : > { %vm7015_vm14 = vcmp.ge.f32.partialorder %v6919_v45, 0.0  ;;  %v7047_v60 = vmul.f32 0.01, %v6919_v45  ;;  %v6761_v49 = vadd.f32 %v15754_v23, %v18682_v32  ;;  %5980 = vst.msk [vmem:[#allocation4 + $0x124] sm:$0xf] %vm1927_vm0, %v5909_v19  ;;  %7467 = vrot.lane.b32.xlu1 %v15017_v47, %s20819_s26 }
 0x46c   : > { %8673 = vrot.lane.b32.xlu0 %v15172_v34, %s16483_s16 }
 0x46d   : > { %v7079_v58 = vsel %vm7015_vm14, %v6919_v45, %v7047_v60  ;;  %v6922_v15 = vadd.f32 %v18953_v25, %v6761_v49  ;;  %v5911_v1 = vpop.permute.xlu1 %5910  ;;  %v8803_v60 = vld [vmem:[#allocation2 + $0x79] sm:$0xff] }
 0x46e   : > { %7111 = vst.msk [vmem:[#allocation2 + $0x91] sm:$0xff] %vm433_vm2, %v7079_v58  ;;  %v5400_v54 = vpop.permute.xlu0 %5399  ;;  %v15177_v58 = vpack.c.bf16 %v8548_v12, %v8548_v12 }
 0x46f   : > { %5981 = vst.msk [vmem:[#allocation4 + $0x130] sm:$0xf] %vm1927_vm0, %v5911_v1  ;;  %vm7016_vm15 = vcmp.ge.f32.partialorder %v6922_v15, 0.0  ;;  %v7048_v48 = vmul.f32 0.01, %v6922_v15  ;;  %8675 = vrot.lane.b32.xlu1 %v15173_v7, %s16483_s16  ;;  %v8804_v1 = vld [vmem:[#allocation2 + $0x81] sm:$0xff] }
 0x470   : > { %5469 = vst.msk [vmem:[#allocation4 + $0x13c] sm:$0xf] %vm1413_vm5, %v5400_v54  ;;  %8929 = vrot.lane.b32.xlu0 %v15016_v50, %s20820_s17 }
 0x471   : > { %v7080_v32 = vsel %vm7016_vm15, %v6922_v15, %v7048_v48  ;;  %v5402_v17 = vpop.permute.xlu1 %5401  ;;  %v15208_v15 = vpack.c.bf16 %v8803_v60, %v8803_v60 }
 0x472   : > { %7112 = vst.msk [vmem:[#allocation2 + $0x99] sm:$0xff] %vm433_vm2, %v7080_v32  ;;  %v4696_v25 = vpop.permute.xlu0 %4695  ;;  %v6228_v33 = vld [vmem:[#allocation4 + $0x120] sm:$0xff]  ;;  %v15209_v32 = vpack.c.bf16 %v8804_v1, %v8804_v1 }
 0x473   : > { %5470 = vst.msk [vmem:[#allocation4 + $0x148] sm:$0xf] %vm1413_vm5, %v5402_v17  ;;  %8931 = vrot.lane.b32.xlu1 %v15017_v47, %s20820_s17 }
 0x474   : > { %4765 = vst.msk [vmem:[#allocation4 + $0x138] sm:$0xf] %vm1670_vm7, %v4696_v25  ;;  %7973 = vrot.lane.b32.xlu0 %v15172_v34, %s20820_s17  ;;  %v15176_v34 = vpack.c.bf16 %v8547_v55, %v8547_v55 }
 0x475   : > { %v4698_v13 = vpop.permute.xlu1 %4697  ;;  %v7145_v61 = vld [vmem:[#allocation2 + $0x90] sm:$0xff] }
 0x476   : > { %v6230_v3 = vld [vmem:[#allocation4 + $0x12c] sm:$0xff]  ;;  %4766 = vst.msk [vmem:[#allocation4 + $0x144] sm:$0xf] %vm1670_vm7, %v4698_v13  ;;  %v5657_v56 = vpop.permute.xlu0 %5656  ;;  %v14990_v36 = vpack.c.bf16 %v7145_v61, %v7145_v61 }
 0x477   : > { %v13639_v51 = vcombine.high %v6228_v33, %v6230_v3  ;;  %v13638_v39 = vcombine.low %v6228_v33, %v6230_v3  ;;  %v8103_v14 = vld [vmem:[#allocation2 + $0x91] sm:$0xff]  ;;  %5726 = vst.msk [vmem:[#allocation4 + $0x13c] sm:$0xf] %vm1670_vm7, %v5657_v56  ;;  %8423 = vrot.lane.b32.xlu1 %v18842_v16, %s20819_s26 }
 0x478   : > { %8421 = vrot.lane.b32.xlu0 %v18848_v26, %s20819_s26  ;;  %v15116_v46 = vpack.c.bf16 %v8103_v14, %v8103_v14  ;;  %7305 = vst.msk [vmem:[#allocation4 + $0x90] sm:$0xf] %vm1156_vm6, %v14990_v36  ;;  %v8549_v61 = vld [vmem:[#allocation2 + $0x90] sm:$0xff]  ;;  %v19107_v14 = vpop.f32.mrf.mxu1 }
 0x479   : > { %6811 = vmatprep.mubr.bf16.mxu0 %v13639_v51  ;;  %v5659_v38 = vpop.permute.xlu1 %5658  ;;  %v8296_v59 = vld [vmem:[#allocation2 + $0x9a] sm:$0xff]  ;;  %v8295_v63 = vld [vmem:[#allocation2 + $0x92] sm:$0xff] }
 0x47a   : > { %6812 = vmatmul.mubr.bf16.gmra.mxu0 %v13638_v39  ;;  %8263 = vst.msk [vmem:[#allocation4 + $0x7c] sm:$0xf] %vm1156_vm6, %v15116_v46  ;;  %v4952_v62 = vpop.permute.xlu0 %4951  ;;  %v19041_v53 = vpack.c.bf16 %v8296_v59, %v8296_v59  ;;  %v8104_v0 = vld [vmem:[#allocation2 + $0x99] sm:$0xff]  ;;  %v19047_v30 = vpack.c.bf16 %v8295_v63, %v8295_v63  ;;  %v6926_v63 = vpop.f32.mrf.mxu1 }
 0x47b   : > { %5727 = vst.msk [vmem:[#allocation4 + $0x148] sm:$0xf] %vm1670_vm7, %v5659_v38  ;;  %v7146_v8 = vld [vmem:[#allocation2 + $0x98] sm:$0xff]  ;;  %7975 = vrot.lane.b32.xlu1 %v15173_v7, %s20820_s17  ;;  %v15117_v10 = vpack.c.bf16 %v8104_v0, %v8104_v0  ;;  %v15178_v38 = vpack.c.bf16 %v8549_v61, %v8549_v61 }
 0x47c   : > { %5021 = vst.msk [vmem:[#allocation4 + $0x138] sm:$0xf] %vm1927_vm0, %v4952_v62  ;;  %7721 = vrot.lane.b32.xlu0 %v18848_v26, %s16483_s16  ;;  %v14991_v35 = vpack.c.bf16 %v7146_v8, %v7146_v8  ;;  %v8546_v26 = vld [vmem:[#allocation2 + $0x68] sm:$0xff]  ;;  %v8550_v59 = vld [vmem:[#allocation2 + $0x98] sm:$0xff] }
 0x47d   : > { %9222 = vst.msk [vmem:[#allocation4 + $0x74] sm:$0xf] %vm1156_vm6, %v19041_v53  ;;  %v4954_v41 = vpop.permute.xlu1 %4953  ;;  %9221 = vst.msk [vmem:[#allocation4 + $0x68] sm:$0xf] %vm1156_vm6, %v19047_v30  ;;  %v15175_v6 = vpack.c.bf16 %v8546_v26, %v8546_v26  ;;  %v8805_v62 = vld [vmem:[#allocation2 + $0x91] sm:$0xff] }
 0x47e   : > { %8264 = vst.msk [vmem:[#allocation4 + $0x88] sm:$0xf] %vm1156_vm6, %v15117_v10  ;;  %7306 = vst.msk [vmem:[#allocation4 + $0x9c] sm:$0xf] %vm1156_vm6, %v14991_v35  ;;  %v5913_v29 = vpop.permute.xlu0 %5912  ;;  %v19121_v26 = vld [vmem:[%s20802_s7] ss:$0 sm:$0xff] }
 0x47f   : > { %5022 = vst.msk [vmem:[#allocation4 + $0x144] sm:$0xf] %vm1927_vm0, %v4954_v41  ;;  %5982 = vst.msk [vmem:[#allocation4 + $0x13c] sm:$0xf] %vm1927_vm0, %v5913_v29  ;;  %7723 = vrot.lane.b32.xlu1 %v18842_v16, %s16483_s16  ;;  %v15210_v29 = vpack.c.bf16 %v8805_v62, %v8805_v62 }
 0x480   : > { %8677 = vrot.lane.b32.xlu0 %v15174_v37, %s16483_s16 }
 0x481   : > { %v5915_v52 = vpop.permute.xlu1 %5914 }
 0x482   : > { %5983 = vst.msk [vmem:[#allocation4 + $0x148] sm:$0xf] %vm1927_vm0, %v5915_v52  ;;  %v5404_v40 = vpop.permute.xlu0 %5403 }
 0x483   : > { %5471 = vst.msk [vmem:[#allocation4 + $0x154] sm:$0xf] %vm1413_vm5, %v5404_v40  ;;  %8679 = vrot.lane.b32.xlu1 %v15175_v6, %s16483_s16  ;;  %v19125_v40 = vpop.f32.mrf.mxu1 }
 0x484   : > { %8933 = vrot.lane.b32.xlu0 %v15206_v44, %s20820_s17 }
 0x485   : > { %v5406_v4 = vpop.permute.xlu1 %5405 }
 0x486   : > { %5472 = vst.msk [vmem:[#allocation4 + $0x160] sm:$0xf] %vm1413_vm5, %v5406_v4  ;;  %v4700_v16 = vpop.permute.xlu0 %4699  ;;  %v6232_v31 = vld [vmem:[#allocation4 + $0x138] sm:$0xff] }
 0x487   : > { %4767 = vst.msk [vmem:[#allocation4 + $0x150] sm:$0xf] %vm1670_vm7, %v4700_v16  ;;  %8935 = vrot.lane.b32.xlu1 %v15207_v11, %s20820_s17  ;;  %v16283_v16 = vld [vmem:[#allocation4 + $0x8] ss:$12 sps:$4 sm:$0xff]  }
 0x488   : > { %7977 = vrot.lane.b32.xlu0 %v15174_v37, %s20820_s17  ;;  %v15179_v37 = vpack.c.bf16 %v8550_v59, %v8550_v59 }
 0x489   : > { %v6234_v50 = vld [vmem:[#allocation4 + $0x144] sm:$0xff]  ;;  %v4702_v9 = vpop.permute.xlu1 %4701 }
 0x48a   : > { %4768 = vst.msk [vmem:[#allocation4 + $0x15c] sm:$0xf] %vm1670_vm7, %v4702_v9  ;;  %v5661_v20 = vpop.permute.xlu0 %5660  ;;  %v13642_v42 = vcombine.high %v6232_v31, %v6234_v50  ;;  %v13641_v27 = vcombine.low %v6232_v31, %v6234_v50 }
 0x48b   : > { %5728 = vst.msk [vmem:[#allocation4 + $0x154] sm:$0xf] %vm1670_vm7, %v5661_v20  ;;  %8427 = vrot.lane.b32.xlu1 %v18922_v28, %s20819_s26 }
 0x48c   : > { %7469 = vrot.lane.b32.xlu0 %v15206_v44, %s20819_s26  ;;  %6819 = vmatprep.mubr.bf16.mxu0 %v13642_v42  ;;  %v8806_v44 = vld [vmem:[#allocation2 + $0x99] sm:$0xff] }
 0x48d   : > { %v5663_v43 = vpop.permute.xlu1 %5662  ;;  %6820 = vmatmul.mubr.bf16.gmra.mxu0 %v13641_v27  ;;  %v15211_v50 = vpack.c.bf16 %v8806_v44, %v8806_v44  ;;  %v6929_v27 = vpop.f32.mrf.mxu1 }
 0x48e   : > { %5729 = vst.msk [vmem:[#allocation4 + $0x160] sm:$0xf] %vm1670_vm7, %v5663_v43  ;;  %v4956_v2 = vpop.permute.xlu0 %4955 }
 0x48f   : > { %5023 = vst.msk [vmem:[#allocation4 + $0x150] sm:$0xf] %vm1927_vm0, %v4956_v2  ;;  %7979 = vrot.lane.b32.xlu1 %v15175_v6, %s20820_s17 }
 0x490   : > { %8425 = vrot.lane.b32.xlu0 %v18931_v5, %s20819_s26 }
 0x491   : > { %v4958_v45 = vpop.permute.xlu1 %4957 }
 0x492   : > { %5024 = vst.msk [vmem:[#allocation4 + $0x15c] sm:$0xf] %vm1927_vm0, %v4958_v45  ;;  %v5917_v23 = vpop.permute.xlu0 %5916 }
 0x493   : > { %5984 = vst.msk [vmem:[#allocation4 + $0x154] sm:$0xf] %vm1927_vm0, %v5917_v23  ;;  %7471 = vrot.lane.b32.xlu1 %v15207_v11, %s20819_s26 }
 0x494   : > { %7725 = vrot.lane.b32.xlu0 %v18931_v5, %s16483_s16 }
 0x495   : > { %v5919_v47 = vpop.permute.xlu1 %5918 }
 0x496   : > { %5985 = vst.msk [vmem:[#allocation4 + $0x160] sm:$0xf] %vm1927_vm0, %v5919_v47  ;;  %v5408_v19 = vpop.permute.xlu0 %5407  ;;  %v16288_v47 = vld [vmem:[#allocation4 + $0x20] ss:$12 sps:$4 sm:$0xff]  }
 0x497   : > { %5473 = vst.msk [vmem:[#allocation4 + $0x16c] sm:$0xf] %vm1413_vm5, %v5408_v19  ;;  %7727 = vrot.lane.b32.xlu1 %v18922_v28, %s16483_s16  ;;  %v16290_v19 = vld [vmem:[#allocation4 + $0x38] ss:$12 sps:$4 sm:$0xff]  }
 0x498   : > { %8681 = vrot.lane.b32.xlu0 %v15176_v34, %s16483_s16 }
 0x499   : > { %v5410_v49 = vpop.permute.xlu1 %5409 }
 0x49a   : > { %5474 = vst.msk [vmem:[#allocation4 + $0x178] sm:$0xf] %vm1413_vm5, %v5410_v49  ;;  %v4704_v5 = vpop.permute.xlu0 %4703  ;;  %v6236_v7 = vld [vmem:[#allocation4 + $0x150] sm:$0xff] }
 0x49b   : > { %4769 = vst.msk [vmem:[#allocation4 + $0x168] sm:$0xf] %vm1670_vm7, %v4704_v5  ;;  %8683 = vrot.lane.b32.xlu1 %v15177_v58, %s16483_s16 }
 0x49c   : > { %8937 = vrot.lane.b32.xlu0 %v15208_v15, %s20820_s17 }
 0x49d   : > { %v6238_v54 = vld [vmem:[#allocation4 + $0x15c] sm:$0xff]  ;;  %v4706_v48 = vpop.permute.xlu1 %4705 }
 0x49e   : > { %4770 = vst.msk [vmem:[#allocation4 + $0x174] sm:$0xf] %vm1670_vm7, %v4706_v48  ;;  %v5665_v28 = vpop.permute.xlu0 %5664  ;;  %v13645_v17 = vcombine.high %v6236_v7, %v6238_v54  ;;  %v13644_v25 = vcombine.low %v6236_v7, %v6238_v54  ;;  %v16294_v48 = vld [vmem:[#allocation4 + $0x50] ss:$12 sps:$4 sm:$0xff]  }
 0x49f   : > { %5730 = vst.msk [vmem:[#allocation4 + $0x16c] sm:$0xf] %vm1670_vm7, %v5665_v28  ;;  %8939 = vrot.lane.b32.xlu1 %v15209_v32, %s20820_s17 }
 0x4a0   : > { %7981 = vrot.lane.b32.xlu0 %v15176_v34, %s20820_s17  ;;  %6827 = vmatprep.mubr.bf16.mxu0 %v13645_v17 }
 0x4a1   : > { %v5667_v33 = vpop.permute.xlu1 %5666  ;;  %6828 = vmatmul.mubr.bf16.gmra.mxu0 %v13644_v25 }
 0x4a2   : > { %5731 = vst.msk [vmem:[#allocation4 + $0x178] sm:$0xf] %vm1670_vm7, %v5667_v33  ;;  %v4960_v3 = vpop.permute.xlu0 %4959 }
 0x4a3   : > { %5025 = vst.msk [vmem:[#allocation4 + $0x168] sm:$0xf] %vm1927_vm0, %v4960_v3  ;;  %8431 = vrot.lane.b32.xlu1 %v18999_v57, %s20819_s26 }
 0x4a4   : > { %7473 = vrot.lane.b32.xlu0 %v15208_v15, %s20819_s26 }
 0x4a5   : > { %v4962_v13 = vpop.permute.xlu1 %4961 }
 0x4a6   : > { %5026 = vst.msk [vmem:[#allocation4 + $0x174] sm:$0xf] %vm1927_vm0, %v4962_v13  ;;  %v5921_v56 = vpop.permute.xlu0 %5920 }
 0x4a7   : > { %5986 = vst.msk [vmem:[#allocation4 + $0x16c] sm:$0xf] %vm1927_vm0, %v5921_v56  ;;  %7983 = vrot.lane.b32.xlu1 %v15177_v58, %s20820_s17 }
 0x4a8   : > { %8429 = vrot.lane.b32.xlu0 %v19001_v21, %s20819_s26 }
 0x4a9   : > { %v5923_v51 = vpop.permute.xlu1 %5922 }
 0x4aa   : > { %5987 = vst.msk [vmem:[#allocation4 + $0x178] sm:$0xf] %vm1927_vm0, %v5923_v51  ;;  %v7454_v39 = vpop.permute.xlu0 %7453 }
 0x4ab   : > { %7549 = vst.msk [vmem:[#allocation4] sm:$0xf] %vm1413_vm5, %v7454_v39  ;;  %7475 = vrot.lane.b32.xlu1 %v15209_v32, %s20819_s26  ;;  %v16296_v32 = vld [vmem:[#allocation4 + $0x68] ss:$12 sps:$4 sm:$0xff]  }
 0x4ac   : > { %7729 = vrot.lane.b32.xlu0 %v19001_v21, %s16483_s16 }
 0x4ad   : > { %v7456_v36 = vpop.permute.xlu1 %7455  ;;  %v15755_v46 = vpop.f32.mrf.mxu0 }
 0x4ae   : > { %7550 = vst.msk [vmem:[#allocation4 + $0xc] sm:$0xf] %vm1413_vm5, %v7456_v36  ;;  %v7710_v18 = vpop.permute.xlu0 %7709  ;;  %v6240_v10 = vld [vmem:[#allocation4 + $0x168] sm:$0xff] }
 0x4af   : > { %7805 = vst.msk [vmem:[#allocation4] sm:$0xf] %vm1670_vm7, %v7710_v18  ;;  %v15756_v0 = vpop.f32.mrf.mxu0  ;;  %7731 = vrot.lane.b32.xlu1 %v18999_v57, %s16483_s16 }
 0x4b0   : > { %8685 = vrot.lane.b32.xlu0 %v15178_v38, %s16483_s16  ;;  %v15757_v8 = vadd.f32 %v15756_v0, %v15755_v46 }
 0x4b1   : > { %v6242_v21 = vld [vmem:[#allocation4 + $0x174] sm:$0xff]  ;;  %v7712_v35 = vpop.permute.xlu1 %7711  ;;  %v15758_v41 = vpop.f32.mrf.mxu0 }
 0x4b2   : > { %v6766_v22 = vadd.f32 %v19121_v26, %v15757_v8  ;;  %7806 = vst.msk [vmem:[#allocation4 + $0xc] sm:$0xf] %vm1670_vm7, %v7712_v35  ;;  %v7458_v52 = vpop.permute.xlu0 %7457  ;;  %v13648_v57 = vcombine.high %v6240_v10, %v6242_v21  ;;  %v13647_v6 = vcombine.low %v6240_v10, %v6242_v21 }
 0x4b3   : > { %7551 = vst.msk [vmem:[#allocation4 + $0x18] sm:$0xf] %vm1413_vm5, %v7458_v52  ;;  %v15759_v24 = vpop.f32.mrf.mxu0  ;;  %8687 = vrot.lane.b32.xlu1 %v15179_v37, %s16483_s16 }
 0x4b4   : > { %8941 = vrot.lane.b32.xlu0 %v15210_v29, %s20820_s17  ;;  %v6927_v4 = vadd.f32 %v6926_v63, %v6766_v22  ;;  %v15760_v11 = vadd.f32 %v15759_v24, %v15758_v41  ;;  %6835 = vmatprep.mubr.bf16.mxu0 %v13648_v57 }
 0x4b5   : > { %v7460_v31 = vpop.permute.xlu1 %7459  ;;  %6836 = vmatmul.mubr.bf16.gmra.mxu0 %v13647_v6 }
 0x4b6   : > { %vm7017_vm1 = vcmp.ge.f32.partialorder %v6927_v4, 0.0  ;;  %v7049_v9 = vmul.f32 0.01, %v6927_v4  ;;  %v6769_v20 = vadd.f32 %v19121_v26, %v15760_v11  ;;  %7552 = vst.msk [vmem:[#allocation4 + $0x24] sm:$0xf] %vm1413_vm5, %v7460_v31  ;;  %v7966_v42 = vpop.permute.xlu0 %7965  ;;  %16093 = vmatprep.mubr.msk.bf16.mxu0 %vm433_vm2, %v16283_v16 }
 0x4b7   : > { %8061 = vst.msk [vmem:[#allocation4] sm:$0xf] %vm1927_vm0, %v7966_v42  ;;  %8943 = vrot.lane.b32.xlu1 %v15211_v50, %s20820_s17 }
 0x4b8   : > { %7985 = vrot.lane.b32.xlu0 %v15178_v38, %s20820_s17  ;;  %v7081_v43 = vsel %vm7017_vm1, %v6927_v4, %v7049_v9  ;;  %v6930_v2 = vadd.f32 %v6929_v27, %v6769_v20 }
 0x4b9   : > { %7113 = vst.msk [vmem:[#allocation2 + $0xa9] sm:$0xff] %vm433_vm2, %v7081_v43  ;;  %v8416_v45 = vpop.permute.xlu1 %8415  ;;  %v19195_v43 = vpop.f32.mrf.mxu1 }
 0x4ba   : > { %vm7018_vm3 = vcmp.ge.f32.partialorder %v6930_v2, 0.0  ;;  %v7050_v23 = vmul.f32 0.01, %v6930_v2  ;;  %8510 = vst.msk [vmem:[#allocation4 + $0x10] sm:$0xf] %vm1413_vm5, %v8416_v45  ;;  %v8414_v55 = vpop.permute.xlu0 %8413 }
 0x4bb   : > { %8509 = vst.msk [vmem:[#allocation4 + $0x4] sm:$0xf] %vm1413_vm5, %v8414_v55  ;;  %8435 = vrot.lane.b32.xlu1 %v19041_v53, %s20819_s26 }
 0x4bc   : > { %7477 = vrot.lane.b32.xlu0 %v15210_v29, %s20819_s26  ;;  %v7082_v34 = vsel %vm7018_vm3, %v6930_v2, %v7050_v23 }
 0x4bd   : > { %7114 = vst.msk [vmem:[#allocation2 + $0xb1] sm:$0xff] %vm433_vm2, %v7082_v34  ;;  %v7968_v12 = vpop.permute.xlu1 %7967  ;;  %16094 = vmatmul.mubr.msk.bf16.vlgmr.msra.gmra.mxu0 %vm433_vm2, %v16288_v47 }
 0x4be   : > { %8062 = vst.msk [vmem:[#allocation4 + $0xc] sm:$0xf] %vm1927_vm0, %v7968_v12  ;;  %v7714_v60 = vpop.permute.xlu0 %7713  ;;  %16097 = vmatprep.mubr.msk.bf16.mxu0 %vm433_vm2, %v16290_v19 }
 0x4bf   : > { %7807 = vst.msk [vmem:[#allocation4 + $0x18] sm:$0xf] %vm1670_vm7, %v7714_v60  ;;  %7987 = vrot.lane.b32.xlu1 %v15179_v37, %s20820_s17  ;;  %v6942_v60 = vpop.f32.mrf.mxu1 }
 0x4c0   : > { %8433 = vrot.lane.b32.xlu0 %v19047_v30, %s20819_s26  ;;  %v7147_v49 = vld [vmem:[#allocation2 + $0xa8] sm:$0xff] }
 0x4c1   : > { %v7716_v58 = vpop.permute.xlu1 %7715  ;;  %v14992_v15 = vpack.c.bf16 %v7147_v49, %v7147_v49  ;;  %v8105_v5 = vld [vmem:[#allocation2 + $0xa9] sm:$0xff] }
 0x4c2   : > { %7808 = vst.msk [vmem:[#allocation4 + $0x24] sm:$0xf] %vm1670_vm7, %v7716_v58  ;;  %v7462_v1 = vpop.permute.xlu0 %7461  ;;  %v8551_v7 = vld [vmem:[#allocation2 + $0xa8] sm:$0xff]  ;;  %v15118_v54 = vpack.c.bf16 %v8105_v5, %v8105_v5 }
 0x4c3   : > { %7553 = vst.msk [vmem:[#allocation4 + $0x30] sm:$0xf] %vm1413_vm5, %v7462_v1  ;;  %7479 = vrot.lane.b32.xlu1 %v15211_v50, %s20819_s26  ;;  %v15180_v33 = vpack.c.bf16 %v8551_v7, %v8551_v7  ;;  %v8807_v61 = vld [vmem:[#allocation2 + $0xa9] sm:$0xff] }
 0x4c4   : > { %7733 = vrot.lane.b32.xlu0 %v19047_v30, %s16483_s16  ;;  %7307 = vst.msk [vmem:[#allocation4 + $0xa8] sm:$0xf] %vm1156_vm6, %v14992_v15  ;;  %v9063_v28 = vld [vmem:[#allocation2 + $0xaa] sm:$0xff]  ;;  %8265 = vst.msk [vmem:[#allocation4 + $0x94] sm:$0xf] %vm1156_vm6, %v15118_v54  ;;  %v9064_v3 = vld [vmem:[#allocation2 + $0xb2] sm:$0xff]  ;;  %v15212_v8 = vpack.c.bf16 %v8807_v61, %v8807_v61 }
 0x4c5   : > { %v7464_v17 = vpop.permute.xlu1 %7463  ;;  %v15761_v25 = vpop.f32.mrf.mxu0  ;;  %16098 = vmatmul.mubr.msk.bf16.gmra.mxu0 %vm433_vm2, %v16294_v48  ;;  %v19158_v13 = vpack.c.bf16 %v9063_v28, %v9063_v28  ;;  %v8106_v56 = vld [vmem:[#allocation2 + $0xb1] sm:$0xff]  ;;  %v19162_v36 = vpack.c.bf16 %v9064_v3, %v9064_v3 }
 0x4c6   : > { %v7148_v51 = vld [vmem:[#allocation2 + $0xb0] sm:$0xff]  ;;  %7554 = vst.msk [vmem:[#allocation4 + $0x3c] sm:$0xf] %vm1413_vm5, %v7464_v17  ;;  %v8670_v30 = vpop.permute.xlu0 %8669  ;;  %16101 = vmatprep.mubr.msk.bf16.mxu0 %vm433_vm2, %v16296_v32  ;;  %v15119_v46 = vpack.c.bf16 %v8106_v56, %v8106_v56 }
 0x4c7   : > { %v8552_v39 = vld [vmem:[#allocation2 + $0xb0] sm:$0xff]  ;;  %v14993_v38 = vpack.c.bf16 %v7148_v51, %v7148_v51  ;;  %8765 = vst.msk [vmem:[#allocation4 + $0x4] sm:$0xf] %vm1670_vm7, %v8670_v30  ;;  %v15762_v18 = vpop.f32.mrf.mxu0  ;;  %7735 = vrot.lane.b32.xlu1 %v19041_v53, %s16483_s16  ;;  %v19214_v30 = vpop.f32.mrf.mxu1 }
 0x4c8   : > { %8689 = vrot.lane.b32.xlu0 %v15180_v33, %s16483_s16  ;;  %9223 = vst.msk [vmem:[#allocation4 + $0x80] sm:$0xf] %vm1156_vm6, %v19158_v13  ;;  %v15763_v59 = vadd.f32 %v15762_v18, %v15761_v25  ;;  %9224 = vst.msk [vmem:[#allocation4 + $0x8c] sm:$0xf] %vm1156_vm6, %v19162_v36  ;;  %v15181_v0 = vpack.c.bf16 %v8552_v39, %v8552_v39  ;;  %v8808_v21 = vld [vmem:[#allocation2 + $0xb1] sm:$0xff] }
 0x4c9   : > { %8266 = vst.msk [vmem:[#allocation4 + $0xa0] sm:$0xf] %vm1156_vm6, %v15119_v46  ;;  %7308 = vst.msk [vmem:[#allocation4 + $0xb4] sm:$0xf] %vm1156_vm6, %v14993_v38  ;;  %v8672_v62 = vpop.permute.xlu1 %8671  ;;  %v15764_v63 = vpop.f32.mrf.mxu0  ;;  %v15213_v22 = vpack.c.bf16 %v8808_v21, %v8808_v21 }
 0x4ca   : > { %v6774_v10 = vadd.f32 %v19121_v26, %v15763_v59  ;;  %8766 = vst.msk [vmem:[#allocation4 + $0x10] sm:$0xf] %vm1670_vm7, %v8672_v62  ;;  %v8926_v53 = vpop.permute.xlu0 %8925 }
 0x4cb   : > { %9021 = vst.msk [vmem:[#allocation4 + $0x4] sm:$0xf] %vm1927_vm0, %v8926_v53  ;;  %v15765_v35 = vpop.f32.mrf.mxu0  ;;  %8691 = vrot.lane.b32.xlu1 %v15181_v0, %s16483_s16 }
 0x4cc   : > { %8945 = vrot.lane.b32.xlu0 %v15212_v8, %s20820_s17  ;;  %v6935_v41 = vadd.f32 %v19107_v14, %v6774_v10  ;;  %v15766_v37 = vadd.f32 %v15765_v35, %v15764_v63 }
 0x4cd   : > { %v8928_v29 = vpop.permute.xlu1 %8927 }
 0x4ce   : > { %vm7019_vm4 = vcmp.ge.f32.partialorder %v6935_v41, 0.0  ;;  %v7051_v52 = vmul.f32 0.01, %v6935_v41  ;;  %v6777_v57 = vadd.f32 %v19121_v26, %v15766_v37  ;;  %9022 = vst.msk [vmem:[#allocation4 + $0x10] sm:$0xf] %vm1927_vm0, %v8928_v29  ;;  %v7970_v6 = vpop.permute.xlu0 %7969 }
 0x4cf   : > { %8063 = vst.msk [vmem:[#allocation4 + $0x18] sm:$0xf] %vm1927_vm0, %v7970_v6  ;;  %8947 = vrot.lane.b32.xlu1 %v15213_v22, %s20820_s17  ;;  %v16302_v44 = vld [vmem:[#allocation4 + $0x80] ss:$12 sps:$4 sm:$0xff]  }
 0x4d0   : > { %7989 = vrot.lane.b32.xlu0 %v15180_v33, %s20820_s17  ;;  %v7083_v24 = vsel %vm7019_vm4, %v6935_v41, %v7051_v52  ;;  %v6938_v14 = vadd.f32 %v19125_v40, %v6777_v57  ;;  %16102 = vmatmul.mubr.msk.bf16.gmra.mxu0 %vm433_vm2, %v16302_v44 }
 0x4d1   : > { %7115 = vst.msk [vmem:[#allocation2 + $0xc1] sm:$0xff] %vm433_vm2, %v7083_v24  ;;  %v8420_v4 = vpop.permute.xlu1 %8419 }
 0x4d2   : > { %vm7020_vm8 = vcmp.ge.f32.partialorder %v6938_v14, 0.0  ;;  %v7052_v11 = vmul.f32 0.01, %v6938_v14  ;;  %8512 = vst.msk [vmem:[#allocation4 + $0x28] sm:$0xf] %vm1413_vm5, %v8420_v4  ;;  %v8418_v16 = vpop.permute.xlu0 %8417  ;;  %v9245_v50 = vld [vmem:[#allocation4] sm:$0xff] }
 0x4d3   : > { %8511 = vst.msk [vmem:[#allocation4 + $0x1c] sm:$0xf] %vm1413_vm5, %v8418_v16  ;;  %8439 = vrot.lane.b32.xlu1 %v19162_v36, %s20819_s26 }
 0x4d4   : > { %7481 = vrot.lane.b32.xlu0 %v15212_v8, %s20819_s26  ;;  %v7084_v31 = vsel %vm7020_vm8, %v6938_v14, %v7052_v11  ;;  %v6945_v8 = vpop.f32.mrf.mxu1 }
 0x4d5   : > { %7116 = vst.msk [vmem:[#allocation2 + $0xc9] sm:$0xff] %vm433_vm2, %v7084_v31  ;;  %v7972_v40 = vpop.permute.xlu1 %7971  ;;  %v9247_v9 = vld [vmem:[#allocation4 + $0xc] sm:$0xff] }
 0x4d6   : > { %v16306_v20 = vld [vmem:[#allocation4 + $0x4] ss:$12 sps:$4 sm:$0xff]   ;;  %8064 = vst.msk [vmem:[#allocation4 + $0x24] sm:$0xf] %vm1927_vm0, %v7972_v40  ;;  %v7718_v42 = vpop.permute.xlu0 %7717  ;;  %v13973_v27 = vcombine.low %v9245_v50, %v9247_v9 }
 0x4d7   : > { %7809 = vst.msk [vmem:[#allocation4 + $0x30] sm:$0xf] %vm1670_vm7, %v7718_v42  ;;  %7991 = vrot.lane.b32.xlu1 %v15181_v0, %s20820_s17  ;;  %9780 = vmatprep.mubr.bf16.mxu1 %v16306_v20 }
 0x4d8   : > { %8437 = vrot.lane.b32.xlu0 %v19158_v13, %s20819_s26  ;;  %v7149_v2 = vld [vmem:[#allocation2 + $0xc0] sm:$0xff]  ;;  %9781 = vmatmul.mubr.bf16.vlgmr.msra.gmra.mxu1 %v13973_v27 }
 0x4d9   : > { %v7720_v45 = vpop.permute.xlu1 %7719  ;;  %v14994_v55 = vpack.c.bf16 %v7149_v2, %v7149_v2  ;;  %v8107_v47 = vld [vmem:[#allocation2 + $0xc1] sm:$0xff] }
 0x4da   : > { %v15767_v23 = vpop.f32.mrf.mxu0  ;;  %7810 = vst.msk [vmem:[#allocation4 + $0x3c] sm:$0xf] %vm1670_vm7, %v7720_v45  ;;  %v7466_v34 = vpop.permute.xlu0 %7465  ;;  %v8553_v19 = vld [vmem:[#allocation2 + $0xc0] sm:$0xff]  ;;  %v15120_v12 = vpack.c.bf16 %v8107_v47, %v8107_v47 }
 0x4db   : > { %7555 = vst.msk [vmem:[#allocation4 + $0x48] sm:$0xf] %vm1413_vm5, %v7466_v34  ;;  %7483 = vrot.lane.b32.xlu1 %v15213_v22, %s20819_s26  ;;  %v15182_v7 = vpack.c.bf16 %v8553_v19, %v8553_v19  ;;  %v8809_v3 = vld [vmem:[#allocation2 + $0xc1] sm:$0xff] }
 0x4dc   : > { %v15768_v49 = vpop.f32.mrf.mxu0  ;;  %7737 = vrot.lane.b32.xlu0 %v19158_v13, %s16483_s16  ;;  %7309 = vst.msk [vmem:[#allocation4 + $0xc0] sm:$0xf] %vm1156_vm6, %v14994_v55  ;;  %v9065_v15 = vld [vmem:[#allocation2 + $0xc2] sm:$0xff]  ;;  %8267 = vst.msk [vmem:[#allocation4 + $0xac] sm:$0xf] %vm1156_vm6, %v15120_v12  ;;  %v9066_v54 = vld [vmem:[#allocation2 + $0xca] sm:$0xff]  ;;  %v15214_v59 = vpack.c.bf16 %v8809_v3, %v8809_v3 }
 0x4dd   : > { %v15769_v58 = vadd.f32 %v15768_v49, %v15767_v23  ;;  %v7468_v1 = vpop.permute.xlu1 %7467  ;;  %v19208_v48 = vpack.c.bf16 %v9065_v15, %v9065_v15  ;;  %v8108_v32 = vld [vmem:[#allocation2 + $0xc9] sm:$0xff]  ;;  %v19212_v13 = vpack.c.bf16 %v9066_v54, %v9066_v54 }
 0x4de   : > { %v15770_v5 = vpop.f32.mrf.mxu0  ;;  %v7150_v28 = vld [vmem:[#allocation2 + $0xc8] sm:$0xff]  ;;  %7556 = vst.msk [vmem:[#allocation4 + $0x54] sm:$0xf] %vm1413_vm5, %v7468_v1  ;;  %v8674_v25 = vpop.permute.xlu0 %8673  ;;  %v15121_v56 = vpack.c.bf16 %v8108_v32, %v8108_v32 }
 0x4df   : > { %v6782_v17 = vadd.f32 %v19121_v26, %v15769_v58  ;;  %v8554_v33 = vld [vmem:[#allocation2 + $0xc8] sm:$0xff]  ;;  %v14995_v51 = vpack.c.bf16 %v7150_v28, %v7150_v28  ;;  %8767 = vst.msk [vmem:[#allocation4 + $0x1c] sm:$0xf] %vm1670_vm7, %v8674_v25  ;;  %7739 = vrot.lane.b32.xlu1 %v19162_v36, %s16483_s16 }
 0x4e0   : > { %v15771_v39 = vpop.f32.mrf.mxu0  ;;  %8693 = vrot.lane.b32.xlu0 %v15182_v7, %s16483_s16  ;;  %9225 = vst.msk [vmem:[#allocation4 + $0x98] sm:$0xf] %vm1156_vm6, %v19208_v48  ;;  %9226 = vst.msk [vmem:[#allocation4 + $0xa4] sm:$0xf] %vm1156_vm6, %v19212_v13  ;;  %v15183_v18 = vpack.c.bf16 %v8554_v33, %v8554_v33  ;;  %v8810_v0 = vld [vmem:[#allocation2 + $0xc9] sm:$0xff] }
 0x4e1   : > { %v6943_v61 = vadd.f32 %v6942_v60, %v6782_v17  ;;  %v15772_v46 = vadd.f32 %v15771_v39, %v15770_v5  ;;  %8268 = vst.msk [vmem:[#allocation4 + $0xb8] sm:$0xf] %vm1156_vm6, %v15121_v56  ;;  %7310 = vst.msk [vmem:[#allocation4 + $0xcc] sm:$0xf] %vm1156_vm6, %v14995_v51  ;;  %v8676_v38 = vpop.permute.xlu1 %8675  ;;  %v15215_v35 = vpack.c.bf16 %v8810_v0, %v8810_v0 }
 0x4e2   : > { %8768 = vst.msk [vmem:[#allocation4 + $0x28] sm:$0xf] %vm1670_vm7, %v8676_v38  ;;  %v8930_v63 = vpop.permute.xlu0 %8929 }
 0x4e3   : > { %vm7021_vm9 = vcmp.ge.f32.partialorder %v6943_v61, 0.0  ;;  %v7053_v62 = vmul.f32 0.01, %v6943_v61  ;;  %v6785_v36 = vadd.f32 %v19121_v26, %v15772_v46  ;;  %9023 = vst.msk [vmem:[#allocation4 + $0x1c] sm:$0xf] %vm1927_vm0, %v8930_v63  ;;  %8695 = vrot.lane.b32.xlu1 %v15183_v18, %s16483_s16 }
 0x4e4   : > { %8949 = vrot.lane.b32.xlu0 %v15214_v59, %s20820_s17 }
 0x4e5   : > { %v7085_v10 = vsel %vm7021_vm9, %v6943_v61, %v7053_v62  ;;  %v6946_v53 = vadd.f32 %v6945_v8, %v6785_v36  ;;  %v8932_v21 = vpop.permute.xlu1 %8931 }
 0x4e6   : > { %7117 = vst.msk [vmem:[#allocation2 + $0xd9] sm:$0xff] %vm433_vm2, %v7085_v10  ;;  %v7974_v37 = vpop.permute.xlu0 %7973 }
 0x4e7   : > { %vm7022_vm10 = vcmp.ge.f32.partialorder %v6946_v53, 0.0  ;;  %v7054_v41 = vmul.f32 0.01, %v6946_v53  ;;  %9024 = vst.msk [vmem:[#allocation4 + $0x28] sm:$0xf] %vm1927_vm0, %v8932_v21  ;;  %8951 = vrot.lane.b32.xlu1 %v15215_v35, %s20820_s17  ;;  %v19286_v21 = vpop.f32.mrf.mxu1 }
 0x4e8   : > { %8065 = vst.msk [vmem:[#allocation4 + $0x30] sm:$0xf] %vm1927_vm0, %v7974_v37  ;;  %7993 = vrot.lane.b32.xlu0 %v15182_v7, %s20820_s17  ;;  %v16308_v29 = vld [vmem:[#allocation4 + $0x98] ss:$12 sps:$4 sm:$0xff]  }
 0x4e9   : > { %v7086_v22 = vsel %vm7022_vm10, %v6946_v53, %v7054_v41  ;;  %16105 = vmatprep.mubr.msk.bf16.mxu0 %vm433_vm2, %v16308_v29  ;;  %v8424_v52 = vpop.permute.xlu1 %8423 }
 0x4ea   : > { %7118 = vst.msk [vmem:[#allocation2 + $0xe1] sm:$0xff] %vm433_vm2, %v7086_v22  ;;  %v8422_v57 = vpop.permute.xlu0 %8421  ;;  %v9249_v6 = vld [vmem:[#allocation4 + $0x18] sm:$0xff] }
 0x4eb   : > { %8514 = vst.msk [vmem:[#allocation4 + $0x40] sm:$0xf] %vm1413_vm5, %v8424_v52  ;;  %8513 = vst.msk [vmem:[#allocation4 + $0x34] sm:$0xf] %vm1413_vm5, %v8422_v57  ;;  %8443 = vrot.lane.b32.xlu1 %v19212_v13, %s20819_s26 }
 0x4ec   : > { %7485 = vrot.lane.b32.xlu0 %v15214_v59, %s20819_s26 }
 0x4ed   : > { %v7151_v44 = vld [vmem:[#allocation2 + $0xd8] sm:$0xff]  ;;  %v7976_v24 = vpop.permute.xlu1 %7975 }
 0x4ee   : > { %v9251_v14 = vld [vmem:[#allocation4 + $0x24] sm:$0xff]  ;;  %v14996_v11 = vpack.c.bf16 %v7151_v44, %v7151_v44  ;;  %v8109_v16 = vld [vmem:[#allocation2 + $0xd9] sm:$0xff]  ;;  %8066 = vst.msk [vmem:[#allocation4 + $0x3c] sm:$0xf] %vm1927_vm0, %v7976_v24  ;;  %v7722_v31 = vpop.permute.xlu0 %7721 }
 0x4ef   : > { %v16309_v4 = vld [vmem:[#allocation4 + $0x1c] ss:$12 sps:$4 sm:$0xff]   ;;  %v13976_v40 = vcombine.low %v9249_v6, %v9251_v14  ;;  %v15122_v50 = vpack.c.bf16 %v8109_v16, %v8109_v16  ;;  %7811 = vst.msk [vmem:[#allocation4 + $0x48] sm:$0xf] %vm1670_vm7, %v7722_v31  ;;  %7995 = vrot.lane.b32.xlu1 %v15183_v18, %s20820_s17  ;;  %v6958_v6 = vpop.f32.mrf.mxu1 }
 0x4f0   : > { %8441 = vrot.lane.b32.xlu0 %v19208_v48, %s20819_s26  ;;  %7311 = vst.msk [vmem:[#allocation4 + $0xd8] sm:$0xf] %vm1156_vm6, %v14996_v11  ;;  %9788 = vmatprep.mubr.bf16.mxu1 %v16309_v4  ;;  %v8555_v34 = vld [vmem:[#allocation2 + $0xd8] sm:$0xff] }
 0x4f1   : > { %v9067_v9 = vld [vmem:[#allocation2 + $0xda] sm:$0xff]  ;;  %v9068_v20 = vld [vmem:[#allocation2 + $0xe2] sm:$0xff]  ;;  %8269 = vst.msk [vmem:[#allocation4 + $0xc4] sm:$0xf] %vm1156_vm6, %v15122_v50  ;;  %v15773_v42 = vpop.f32.mrf.mxu0  ;;  %v7724_v27 = vpop.permute.xlu1 %7723  ;;  %9789 = vmatmul.mubr.bf16.gmra.mxu1 %v13976_v40  ;;  %v15184_v5 = vpack.c.bf16 %v8555_v34, %v8555_v34 }
 0x4f2   : > { %v19250_v2 = vpack.c.bf16 %v9067_v9, %v9067_v9  ;;  %v19252_v45 = vpack.c.bf16 %v9068_v20, %v9068_v20  ;;  %v8110_v23 = vld [vmem:[#allocation2 + $0xe1] sm:$0xff]  ;;  %7812 = vst.msk [vmem:[#allocation4 + $0x54] sm:$0xf] %vm1670_vm7, %v7724_v27  ;;  %v8678_v47 = vpop.permute.xlu0 %8677 }
 0x4f3   : > { %v7152_v55 = vld [vmem:[#allocation2 + $0xe0] sm:$0xff]  ;;  %v15123_v19 = vpack.c.bf16 %v8110_v23, %v8110_v23  ;;  %8769 = vst.msk [vmem:[#allocation4 + $0x34] sm:$0xf] %vm1670_vm7, %v8678_v47  ;;  %v15774_v60 = vpop.f32.mrf.mxu0  ;;  %7487 = vrot.lane.b32.xlu1 %v15215_v35, %s20819_s26  ;;  %v19305_v47 = vpop.f32.mrf.mxu1 }
 0x4f4   : > { %v14997_v12 = vpack.c.bf16 %v7152_v55, %v7152_v55  ;;  %7741 = vrot.lane.b32.xlu0 %v19208_v48, %s16483_s16  ;;  %9227 = vst.msk [vmem:[#allocation4 + $0xb0] sm:$0xf] %vm1156_vm6, %v19250_v2  ;;  %9228 = vst.msk [vmem:[#allocation4 + $0xbc] sm:$0xf] %vm1156_vm6, %v19252_v45  ;;  %v15775_v49 = vadd.f32 %v15774_v60, %v15773_v42  ;;  %v8556_v54 = vld [vmem:[#allocation2 + $0xe0] sm:$0xff] }
 0x4f5   : > { %8270 = vst.msk [vmem:[#allocation4 + $0xd0] sm:$0xf] %vm1156_vm6, %v15123_v19  ;;  %v15776_v58 = vpop.f32.mrf.mxu0  ;;  %v8680_v15 = vpop.permute.xlu1 %8679  ;;  %v8811_v48 = vld [vmem:[#allocation2 + $0xd9] sm:$0xff]  ;;  %v15185_v33 = vpack.c.bf16 %v8556_v54, %v8556_v54  ;;  %v8812_v61 = vld [vmem:[#allocation2 + $0xe1] sm:$0xff] }
 0x4f6   : > { %7312 = vst.msk [vmem:[#allocation4 + $0xe4] sm:$0xf] %vm1156_vm6, %v14997_v12  ;;  %v6790_v1 = vadd.f32 %v19121_v26, %v15775_v49  ;;  %v8934_v7 = vpop.permute.xlu0 %8933  ;;  %v15216_v3 = vpack.c.bf16 %v8811_v48, %v8811_v48  ;;  %v15217_v18 = vpack.c.bf16 %v8812_v61, %v8812_v61 }
 0x4f7   : > { %8770 = vst.msk [vmem:[#allocation4 + $0x40] sm:$0xf] %vm1670_vm7, %v8680_v15  ;;  %v15777_v32 = vpop.f32.mrf.mxu0  ;;  %7743 = vrot.lane.b32.xlu1 %v19212_v13, %s16483_s16 }
 0x4f8   : > { %9025 = vst.msk [vmem:[#allocation4 + $0x34] sm:$0xf] %vm1927_vm0, %v8934_v7  ;;  %8697 = vrot.lane.b32.xlu0 %v15184_v5, %s16483_s16  ;;  %v6951_v28 = vadd.f32 %v19195_v43, %v6790_v1  ;;  %v15778_v17 = vadd.f32 %v15777_v32, %v15776_v58  ;;  %v6961_v7 = vpop.f32.mrf.mxu1 }
 0x4f9   : > { %v8936_v25 = vpop.permute.xlu1 %8935 }
 0x4fa   : > { %vm7023_vm11 = vcmp.ge.f32.partialorder %v6951_v28, 0.0  ;;  %v7055_v56 = vmul.f32 0.01, %v6951_v28  ;;  %v6793_v51 = vadd.f32 %v19121_v26, %v15778_v17  ;;  %9026 = vst.msk [vmem:[#allocation4 + $0x40] sm:$0xf] %vm1927_vm0, %v8936_v25  ;;  %v7978_v39 = vpop.permute.xlu0 %7977 }
 0x4fb   : > { %8067 = vst.msk [vmem:[#allocation4 + $0x48] sm:$0xf] %vm1927_vm0, %v7978_v39  ;;  %8699 = vrot.lane.b32.xlu1 %v15185_v33, %s16483_s16  ;;  %v16311_v13 = vld [vmem:[#allocation4 + $0xb0] ss:$12 sps:$4 sm:$0xff]  }
 0x4fc   : > { %8953 = vrot.lane.b32.xlu0 %v15216_v3, %s20820_s17  ;;  %v7087_v43 = vsel %vm7023_vm11, %v6951_v28, %v7055_v56  ;;  %v6954_v46 = vadd.f32 %v19214_v30, %v6793_v51  ;;  %16106 = vmatmul.mubr.msk.bf16.gmra.mxu0 %vm433_vm2, %v16311_v13 }
 0x4fd   : > { %7119 = vst.msk [vmem:[#allocation2 + $0xf1] sm:$0xff] %vm433_vm2, %v7087_v43  ;;  %v8428_v38 = vpop.permute.xlu1 %8427 }
 0x4fe   : > { %vm7024_vm12 = vcmp.ge.f32.partialorder %v6954_v46, 0.0  ;;  %v7056_v59 = vmul.f32 0.01, %v6954_v46  ;;  %8516 = vst.msk [vmem:[#allocation4 + $0x58] sm:$0xf] %vm1413_vm5, %v8428_v38  ;;  %v7470_v62 = vpop.permute.xlu0 %7469 }
 0x4ff   : > { %7557 = vst.msk [vmem:[#allocation4 + $0x60] sm:$0xf] %vm1413_vm5, %v7470_v62  ;;  %8955 = vrot.lane.b32.xlu1 %v15217_v18, %s20820_s17  ;;  %v9253_v63 = vld [vmem:[#allocation4 + $0x30] sm:$0xff] }
 0x500   : > { %7997 = vrot.lane.b32.xlu0 %v15184_v5, %s20820_s17  ;;  %v7088_v36 = vsel %vm7024_vm12, %v6954_v46, %v7056_v59 }
 0x501   : > { %7120 = vst.msk [vmem:[#allocation2 + $0xf9] sm:$0xff] %vm433_vm2, %v7088_v36  ;;  %v7980_v30 = vpop.permute.xlu1 %7979  ;;  %v9255_v0 = vld [vmem:[#allocation4 + $0x3c] sm:$0xff] }
 0x502   : > { %v16312_v8 = vld [vmem:[#allocation4 + $0x34] ss:$12 sps:$4 sm:$0xff]   ;;  %8068 = vst.msk [vmem:[#allocation4 + $0x54] sm:$0xf] %vm1927_vm0, %v7980_v30  ;;  %v8426_v10 = vpop.permute.xlu0 %8425  ;;  %v13979_v53 = vcombine.low %v9253_v63, %v9255_v0 }
 0x503   : > { %8515 = vst.msk [vmem:[#allocation4 + $0x4c] sm:$0xf] %vm1413_vm5, %v8426_v10  ;;  %8447 = vrot.lane.b32.xlu1 %v19252_v45, %s20819_s26  ;;  %9796 = vmatprep.mubr.bf16.mxu1 %v16312_v8 }
 0x504   : > { %7489 = vrot.lane.b32.xlu0 %v15216_v3, %s20819_s26  ;;  %v8111_v35 = vld [vmem:[#allocation2 + $0xf1] sm:$0xff]  ;;  %9797 = vmatmul.mubr.bf16.gmra.mxu1 %v13979_v53 }
 0x505   : > { %v15779_v41 = vpop.f32.mrf.mxu0  ;;  %v7472_v37 = vpop.permute.xlu1 %7471  ;;  %v15124_v29 = vpack.c.bf16 %v8111_v35, %v8111_v35  ;;  %v7153_v22 = vld [vmem:[#allocation2 + $0xf0] sm:$0xff] }
 0x506   : > { %7558 = vst.msk [vmem:[#allocation4 + $0x6c] sm:$0xf] %vm1413_vm5, %v7472_v37  ;;  %v7726_v52 = vpop.permute.xlu0 %7725  ;;  %v14998_v57 = vpack.c.bf16 %v7153_v22, %v7153_v22  ;;  %v8557_v27 = vld [vmem:[#allocation2 + $0xf0] sm:$0xff] }
 0x507   : > { %7813 = vst.msk [vmem:[#allocation4 + $0x60] sm:$0xf] %vm1670_vm7, %v7726_v52  ;;  %v15780_v44 = vpop.f32.mrf.mxu0  ;;  %7999 = vrot.lane.b32.xlu1 %v15185_v33, %s20820_s17  ;;  %v19317_v49 = vpack.c.bf16 %v8557_v27, %v8557_v27  ;;  %v8813_v1 = vld [vmem:[#allocation2 + $0xf1] sm:$0xff] }
 0x508   : > { %8445 = vrot.lane.b32.xlu0 %v19250_v2, %s20819_s26  ;;  %8271 = vst.msk [vmem:[#allocation4 + $0xdc] sm:$0xf] %vm1156_vm6, %v15124_v29  ;;  %v15781_v24 = vadd.f32 %v15780_v44, %v15779_v41  ;;  %v9069_v14 = vld [vmem:[#allocation2 + $0xf2] sm:$0xff]  ;;  %v9070_v4 = vld [vmem:[#allocation2 + $0xfa] sm:$0xff]  ;;  %7313 = vst.msk [vmem:[#allocation4 + $0xf0] sm:$0xf] %vm1156_vm6, %v14998_v57  ;;  %v19327_v17 = vpack.c.bf16 %v8813_v1, %v8813_v1 }
 0x509   : > { %v15782_v11 = vpop.f32.mrf.mxu0  ;;  %v7728_v16 = vpop.permute.xlu1 %7727  ;;  %v19299_v31 = vpack.c.bf16 %v9069_v14, %v9069_v14  ;;  %v19301_v40 = vpack.c.bf16 %v9070_v4, %v9070_v4  ;;  %v8112_v50 = vld [vmem:[#allocation2 + $0xf9] sm:$0xff] }
 0x50a   : > { %v7154_v9 = vld [vmem:[#allocation2 + $0xf8] sm:$0xff]  ;;  %v6798_v20 = vadd.f32 %v19121_v26, %v15781_v24  ;;  %7814 = vst.msk [vmem:[#allocation4 + $0x6c] sm:$0xf] %vm1670_vm7, %v7728_v16  ;;  %v8682_v42 = vpop.permute.xlu0 %8681  ;;  %v15125_v23 = vpack.c.bf16 %v8112_v50, %v8112_v50 }
 0x50b   : > { %v14999_v55 = vpack.c.bf16 %v7154_v9, %v7154_v9  ;;  %8771 = vst.msk [vmem:[#allocation4 + $0x4c] sm:$0xf] %vm1670_vm7, %v8682_v42  ;;  %v15783_v34 = vpop.f32.mrf.mxu0  ;;  %7491 = vrot.lane.b32.xlu1 %v15217_v18, %s20819_s26  ;;  %v8558_v5 = vld [vmem:[#allocation2 + $0xf8] sm:$0xff] }
 0x50c   : > { %7745 = vrot.lane.b32.xlu0 %v19250_v2, %s16483_s16  ;;  %9229 = vst.msk [vmem:[#allocation4 + $0xc8] sm:$0xf] %vm1156_vm6, %v19299_v31  ;;  %9230 = vst.msk [vmem:[#allocation4 + $0xd4] sm:$0xf] %vm1156_vm6, %v19301_v40  ;;  %v6959_v19 = vadd.f32 %v6958_v6, %v6798_v20  ;;  %v15784_v12 = vadd.f32 %v15783_v34, %v15782_v11  ;;  %v15187_v28 = vpack.c.bf16 %v8558_v5, %v8558_v5  ;;  %v8814_v3 = vld [vmem:[#allocation2 + $0xf9] sm:$0xff] }
 0x50d   : > { %8272 = vst.msk [vmem:[#allocation4 + $0xe8] sm:$0xf] %vm1156_vm6, %v15125_v23  ;;  %7314 = vst.msk [vmem:[#allocation4 + $0xfc] sm:$0xf] %vm1156_vm6, %v14999_v55  ;;  %v8684_v60 = vpop.permute.xlu1 %8683  ;;  %v19336_v39 = vpack.c.bf16 %v8814_v3, %v8814_v3 }
 0x50e   : > { %vm7025_vm13 = vcmp.ge.f32.partialorder %v6959_v19, 0.0  ;;  %v7057_v58 = vmul.f32 0.01, %v6959_v19  ;;  %v6801_v15 = vadd.f32 %v19121_v26, %v15784_v12  ;;  %8772 = vst.msk [vmem:[#allocation4 + $0x58] sm:$0xf] %vm1670_vm7, %v8684_v60  ;;  %v8938_v2 = vpop.permute.xlu0 %8937 }
 0x50f   : > { %9027 = vst.msk [vmem:[#allocation4 + $0x4c] sm:$0xf] %vm1927_vm0, %v8938_v2  ;;  %7747 = vrot.lane.b32.xlu1 %v19252_v45, %s16483_s16 }
 0x510   : > { %8701 = vrot.lane.b32.xlu0 %v19317_v49, %s16483_s16  ;;  %v7089_v54 = vsel %vm7025_vm13, %v6959_v19, %v7057_v58  ;;  %v6962_v48 = vadd.f32 %v6961_v7, %v6801_v15 }
 0x511   : > { %7121 = vst.msk [vmem:[#allocation2 + $0x109] sm:$0xff] %vm433_vm2, %v7089_v54  ;;  %v8940_v32 = vpop.permute.xlu1 %8939 }
 0x512   : > { %vm7026_vm14 = vcmp.ge.f32.partialorder %v6962_v48, 0.0  ;;  %v7058_v25 = vmul.f32 0.01, %v6962_v48  ;;  %9028 = vst.msk [vmem:[#allocation4 + $0x58] sm:$0xf] %vm1927_vm0, %v8940_v32  ;;  %v7982_v33 = vpop.permute.xlu0 %7981 }
 0x513   : > { %8069 = vst.msk [vmem:[#allocation4 + $0x60] sm:$0xf] %vm1927_vm0, %v7982_v33  ;;  %8703 = vrot.lane.b32.xlu1 %v15187_v28, %s16483_s16  ;;  %v16314_v45 = vld [vmem:[#allocation4 + $0xc8] ss:$12 sps:$4 sm:$0xff]  }
 0x514   : > { %8957 = vrot.lane.b32.xlu0 %v19327_v17, %s20820_s17  ;;  %v7090_v56 = vsel %vm7026_vm14, %v6962_v48, %v7058_v25  ;;  %16109 = vmatprep.mubr.msk.bf16.mxu0 %vm433_vm2, %v16314_v45 }
 0x515   : > { %7122 = vst.msk [vmem:[#allocation2 + $0x111] sm:$0xff] %vm433_vm2, %v7090_v56  ;;  %v8432_v51 = vpop.permute.xlu1 %8431  ;;  %v19411_v56 = vpop.f32.mrf.mxu1 }
 0x516   : > { %8518 = vst.msk [vmem:[#allocation4 + $0x70] sm:$0xf] %vm1413_vm5, %v8432_v51  ;;  %v7474_v61 = vpop.permute.xlu0 %7473  ;;  %v9257_v43 = vld [vmem:[#allocation4 + $0x48] sm:$0xff] }
 0x517   : > { %7559 = vst.msk [vmem:[#allocation4 + $0x78] sm:$0xf] %vm1413_vm5, %v7474_v61  ;;  %8959 = vrot.lane.b32.xlu1 %v19336_v39, %s20820_s17 }
 0x518   : > { %8449 = vrot.lane.b32.xlu0 %v19299_v31, %s20819_s26  ;;  %v8559_v13 = vld [vmem:[#allocation2 + $0x108] sm:$0xff] }
 0x519   : > { %v8113_v46 = vld [vmem:[#allocation2 + $0x109] sm:$0xff]  ;;  %v7984_v38 = vpop.permute.xlu1 %7983  ;;  %v19344_v18 = vpack.c.bf16 %v8559_v13, %v8559_v13  ;;  %v9259_v59 = vld [vmem:[#allocation4 + $0x54] sm:$0xff] }
 0x51a   : > { %v16315_v62 = vld [vmem:[#allocation4 + $0x4c] ss:$12 sps:$4 sm:$0xff]   ;;  %v15126_v36 = vpack.c.bf16 %v8113_v46, %v8113_v46  ;;  %8070 = vst.msk [vmem:[#allocation4 + $0x6c] sm:$0xf] %vm1927_vm0, %v7984_v38  ;;  %v8430_v63 = vpop.permute.xlu0 %8429  ;;  %v13982_v0 = vcombine.low %v9257_v43, %v9259_v59 }
 0x51b   : > { %v7155_v30 = vld [vmem:[#allocation2 + $0x108] sm:$0xff]  ;;  %8517 = vst.msk [vmem:[#allocation4 + $0x64] sm:$0xf] %vm1413_vm5, %v8430_v63  ;;  %8451 = vrot.lane.b32.xlu1 %v19301_v40, %s20819_s26  ;;  %9804 = vmatprep.mubr.bf16.mxu1 %v16315_v62  ;;  %v6974_v62 = vpop.f32.mrf.mxu1 }
 0x51c   : > { %v15000_v8 = vpack.c.bf16 %v7155_v30, %v7155_v30  ;;  %8705 = vrot.lane.b32.xlu0 %v19344_v18, %s16483_s16  ;;  %8273 = vst.msk [vmem:[#allocation4 + $0xf4] sm:$0xf] %vm1156_vm6, %v15126_v36  ;;  %v9071_v10 = vld [vmem:[#allocation2 + $0x10a] sm:$0xff]  ;;  %9805 = vmatmul.mubr.bf16.gmra.mxu1 %v13982_v0  ;;  %v9072_v35 = vld [vmem:[#allocation2 + $0x112] sm:$0xff] }
 0x51d   : > { %v7476_v53 = vpop.permute.xlu1 %7475  ;;  %v19354_v41 = vpack.c.bf16 %v9071_v10, %v9071_v10  ;;  %v8114_v37 = vld [vmem:[#allocation2 + $0x111] sm:$0xff]  ;;  %v8815_v57 = vld [vmem:[#allocation2 + $0x109] sm:$0xff]  ;;  %v19357_v6 = vpack.c.bf16 %v9072_v35, %v9072_v35 }
 0x51e   : > { %7315 = vst.msk [vmem:[#allocation4 + $0x108] sm:$0xf] %vm1156_vm6, %v15000_v8  ;;  %v7156_v29 = vld [vmem:[#allocation2 + $0x110] sm:$0xff]  ;;  %v7730_v22 = vpop.permute.xlu0 %7729  ;;  %v15127_v44 = vpack.c.bf16 %v8114_v37, %v8114_v37  ;;  %v19371_v11 = vpack.c.bf16 %v8815_v57, %v8815_v57 }
 0x51f   : > { %7560 = vst.msk [vmem:[#allocation4 + $0x84] sm:$0xf] %vm1413_vm5, %v7476_v53  ;;  %v8560_v52 = vld [vmem:[#allocation2 + $0x110] sm:$0xff]  ;;  %v15001_v24 = vpack.c.bf16 %v7156_v29, %v7156_v29  ;;  %8003 = vrot.lane.b32.xlu1 %v15187_v28, %s20820_s17 }
 0x520   : > { %7815 = vst.msk [vmem:[#allocation4 + $0x78] sm:$0xf] %vm1670_vm7, %v7730_v22  ;;  %8001 = vrot.lane.b32.xlu0 %v19317_v49, %s20820_s17  ;;  %v19369_v4 = vpack.c.bf16 %v8560_v52, %v8560_v52  ;;  %v8816_v50 = vld [vmem:[#allocation2 + $0x111] sm:$0xff]  ;;  %v19429_v22 = vld [vmem:[%s20802_s7] ss:$0 sm:$0xff] }
 0x521   : > { %9231 = vst.msk [vmem:[#allocation4 + $0xe0] sm:$0xf] %vm1156_vm6, %v19354_v41  ;;  %9232 = vst.msk [vmem:[#allocation4 + $0xec] sm:$0xf] %vm1156_vm6, %v19357_v6  ;;  %v7732_v14 = vpop.permute.xlu1 %7731  ;;  %v19379_v42 = vpack.c.bf16 %v8816_v50, %v8816_v50  ;;  %v19435_v50 = vpop.f32.mrf.mxu1 }
 0x522   : > { %8274 = vst.msk [vmem:[#allocation4 + $0x100] sm:$0xf] %vm1156_vm6, %v15127_v44  ;;  %7316 = vst.msk [vmem:[#allocation4 + $0x114] sm:$0xf] %vm1156_vm6, %v15001_v24  ;;  %v8686_v16 = vpop.permute.xlu0 %8685 }
 0x523   : > { %7816 = vst.msk [vmem:[#allocation4 + $0x84] sm:$0xf] %vm1670_vm7, %v7732_v14  ;;  %8773 = vst.msk [vmem:[#allocation4 + $0x64] sm:$0xf] %vm1670_vm7, %v8686_v16  ;;  %8707 = vrot.lane.b32.xlu1 %v19369_v4, %s16483_s16 }
 0x524   : > { %8961 = vrot.lane.b32.xlu0 %v19371_v11, %s20820_s17 }
 0x525   : > { %v8688_v20 = vpop.permute.xlu1 %8687 }
 0x526   : > { %v15785_v9 = vpop.f32.mrf.mxu0  ;;  %8774 = vst.msk [vmem:[#allocation4 + $0x70] sm:$0xf] %vm1670_vm7, %v8688_v20  ;;  %v8942_v27 = vpop.permute.xlu0 %8941 }
 0x527   : > { %9029 = vst.msk [vmem:[#allocation4 + $0x64] sm:$0xf] %vm1927_vm0, %v8942_v27  ;;  %8963 = vrot.lane.b32.xlu1 %v19379_v42, %s20820_s17 }
 0x528   : > { %v15786_v23 = vpop.f32.mrf.mxu0  ;;  %7493 = vrot.lane.b32.xlu0 %v19327_v17, %s20819_s26  ;;  %v16317_v55 = vld [vmem:[#allocation4 + $0xe0] ss:$12 sps:$4 sm:$0xff]  }
 0x529   : > { %v15787_v34 = vadd.f32 %v15786_v23, %v15785_v9  ;;  %16110 = vmatmul.mubr.msk.bf16.gmra.mxu0 %vm433_vm2, %v16317_v55  ;;  %v8944_v12 = vpop.permute.xlu1 %8943 }
 0x52a   : > { %v15788_v19 = vpop.f32.mrf.mxu0  ;;  %9030 = vst.msk [vmem:[#allocation4 + $0x70] sm:$0xf] %vm1927_vm0, %v8944_v12  ;;  %v7986_v49 = vpop.permute.xlu0 %7985 }
 0x52b   : > { %v6806_v60 = vadd.f32 %v19121_v26, %v15787_v34  ;;  %8071 = vst.msk [vmem:[#allocation4 + $0x78] sm:$0xf] %vm1927_vm0, %v7986_v49  ;;  %7495 = vrot.lane.b32.xlu1 %v19336_v39, %s20819_s26  ;;  %v6977_v49 = vpop.f32.mrf.mxu1 }
 0x52c   : > { %v15789_v58 = vpop.f32.mrf.mxu0  ;;  %8453 = vrot.lane.b32.xlu0 %v19354_v41, %s20819_s26 }
 0x52d   : > { %v6967_v15 = vadd.f32 %v19286_v21, %v6806_v60  ;;  %v15790_v2 = vadd.f32 %v15789_v58, %v15788_v19  ;;  %v8436_v5 = vpop.permute.xlu1 %8435 }
 0x52e   : > { %8520 = vst.msk [vmem:[#allocation4 + $0x88] sm:$0xf] %vm1413_vm5, %v8436_v5  ;;  %v7478_v54 = vpop.permute.xlu0 %7477  ;;  %v9261_v28 = vld [vmem:[#allocation4 + $0x60] sm:$0xff] }
 0x52f   : > { %vm7027_vm15 = vcmp.ge.f32.partialorder %v6967_v15, 0.0  ;;  %v7059_v1 = vmul.f32 0.01, %v6967_v15  ;;  %v6809_v7 = vadd.f32 %v19121_v26, %v15790_v2  ;;  %7561 = vst.msk [vmem:[#allocation4 + $0x90] sm:$0xf] %vm1413_vm5, %v7478_v54  ;;  %8455 = vrot.lane.b32.xlu1 %v19357_v6, %s20819_s26 }
 0x530   : > { %7749 = vrot.lane.b32.xlu0 %v19299_v31, %s16483_s16 }
 0x531   : > { %v7091_v48 = vsel %vm7027_vm15, %v6967_v15, %v7059_v1  ;;  %v6970_v21 = vadd.f32 %v19305_v47, %v6809_v7  ;;  %v7988_v32 = vpop.permute.xlu1 %7987  ;;  %v9263_v17 = vld [vmem:[#allocation4 + $0x6c] sm:$0xff] }
 0x532   : > { %7123 = vst.msk [vmem:[#allocation2 + $0x121] sm:$0xff] %vm433_vm2, %v7091_v48  ;;  %v16318_v26 = vld [vmem:[#allocation4 + $0x64] ss:$12 sps:$4 sm:$0xff]   ;;  %v8434_v33 = vpop.permute.xlu0 %8433  ;;  %v13985_v3 = vcombine.low %v9261_v28, %v9263_v17 }
 0x533   : > { %vm7028_vm1 = vcmp.ge.f32.partialorder %v6970_v21, 0.0  ;;  %v7060_v25 = vmul.f32 0.01, %v6970_v21  ;;  %8072 = vst.msk [vmem:[#allocation4 + $0x84] sm:$0xf] %vm1927_vm0, %v7988_v32  ;;  %7751 = vrot.lane.b32.xlu1 %v19301_v40, %s16483_s16  ;;  %9812 = vmatprep.mubr.bf16.mxu1 %v16318_v26 }
 0x534   : > { %8519 = vst.msk [vmem:[#allocation4 + $0x7c] sm:$0xf] %vm1413_vm5, %v8434_v33  ;;  %9813 = vmatmul.mubr.bf16.gmra.mxu1 %v13985_v3 }
 0x535   : > { %v7092_v31 = vsel %vm7028_vm1, %v6970_v21, %v7060_v25  ;;  %v7480_v47 = vpop.permute.xlu1 %7479 }
 0x536   : > { %7124 = vst.msk [vmem:[#allocation2 + $0x129] sm:$0xff] %vm433_vm2, %v7092_v31  ;;  %v7734_v45 = vpop.permute.xlu0 %7733 }
 0x537   : > { %7562 = vst.msk [vmem:[#allocation4 + $0x9c] sm:$0xf] %vm1413_vm5, %v7480_v47 }
 0x538   : > { %7817 = vst.msk [vmem:[#allocation4 + $0x90] sm:$0xf] %vm1670_vm7, %v7734_v45 }
 0x539   : > { %v8561_v51 = vld [vmem:[#allocation2 + $0x120] sm:$0xff]  ;;  %v7736_v61 = vpop.permute.xlu1 %7735 }
 0x53a   : > { %v15791_v39 = vpop.f32.mrf.mxu0  ;;  %v19414_v13 = vpack.c.bf16 %v8561_v51, %v8561_v51  ;;  %v8115_v43 = vld [vmem:[#allocation2 + $0x121] sm:$0xff]  ;;  %7818 = vst.msk [vmem:[#allocation4 + $0x9c] sm:$0xf] %vm1670_vm7, %v7736_v61  ;;  %v8690_v46 = vpop.permute.xlu0 %8689 }
 0x53b   : > { %v7157_v40 = vld [vmem:[#allocation2 + $0x120] sm:$0xff]  ;;  %v15128_v38 = vpack.c.bf16 %v8115_v43, %v8115_v43  ;;  %8775 = vst.msk [vmem:[#allocation4 + $0x7c] sm:$0xf] %vm1670_vm7, %v8690_v46 }
 0x53c   : > { %v15002_v59 = vpack.c.bf16 %v7157_v40, %v7157_v40  ;;  %v15792_v36 = vpop.f32.mrf.mxu0  ;;  %8709 = vrot.lane.b32.xlu0 %v19414_v13, %s16483_s16  ;;  %v8817_v44 = vld [vmem:[#allocation2 + $0x121] sm:$0xff] }
 0x53d   : > { %v15793_v30 = vadd.f32 %v15792_v36, %v15791_v39  ;;  %v8562_v63 = vld [vmem:[#allocation2 + $0x128] sm:$0xff]  ;;  %8275 = vst.msk [vmem:[#allocation4 + $0x10c] sm:$0xf] %vm1156_vm6, %v15128_v38  ;;  %v8692_v10 = vpop.permute.xlu1 %8691  ;;  %v19447_v34 = vpack.c.bf16 %v8817_v44, %v8817_v44 }
 0x53e   : > { %v9073_v0 = vld [vmem:[#allocation2 + $0x122] sm:$0xff]  ;;  %7317 = vst.msk [vmem:[#allocation4 + $0x120] sm:$0xf] %vm1156_vm6, %v15002_v59  ;;  %v15794_v8 = vpop.f32.mrf.mxu0  ;;  %v19422_v53 = vpack.c.bf16 %v8562_v63, %v8562_v63  ;;  %v9074_v35 = vld [vmem:[#allocation2 + $0x12a] sm:$0xff]  ;;  %v8946_v57 = vpop.permute.xlu0 %8945 }
 0x53f   : > { %v19424_v37 = vpack.c.bf16 %v9073_v0, %v9073_v0  ;;  %v8116_v29 = vld [vmem:[#allocation2 + $0x129] sm:$0xff]  ;;  %v6814_v52 = vadd.f32 %v19429_v22, %v15793_v30  ;;  %8776 = vst.msk [vmem:[#allocation4 + $0x88] sm:$0xf] %vm1670_vm7, %v8692_v10  ;;  %v19433_v24 = vpack.c.bf16 %v9074_v35, %v9074_v35 }
 0x540   : > { %v15129_v14 = vpack.c.bf16 %v8116_v29, %v8116_v29  ;;  %v7158_v16 = vld [vmem:[#allocation2 + $0x128] sm:$0xff]  ;;  %9031 = vst.msk [vmem:[#allocation4 + $0x7c] sm:$0xf] %vm1927_vm0, %v8946_v57  ;;  %v15795_v9 = vpop.f32.mrf.mxu0  ;;  %8711 = vrot.lane.b32.xlu1 %v19422_v53, %s16483_s16  ;;  %8005 = vrot.lane.b32.xlu0 %v19344_v18, %s20820_s17 }
 0x541   : > { %9233 = vst.msk [vmem:[#allocation4 + $0xf8] sm:$0xf] %vm1156_vm6, %v19424_v37  ;;  %v15003_v20 = vpack.c.bf16 %v7158_v16, %v7158_v16  ;;  %v6975_v27 = vadd.f32 %v6974_v62, %v6814_v52  ;;  %v15796_v23 = vadd.f32 %v15795_v9, %v15794_v8  ;;  %9234 = vst.msk [vmem:[#allocation4 + $0x104] sm:$0xf] %vm1156_vm6, %v19433_v24  ;;  %v8948_v55 = vpop.permute.xlu1 %8947  ;;  %v8818_v60 = vld [vmem:[#allocation2 + $0x129] sm:$0xff] }
 0x542   : > { %8276 = vst.msk [vmem:[#allocation4 + $0x118] sm:$0xf] %vm1156_vm6, %v15129_v14  ;;  %v7990_v12 = vpop.permute.xlu0 %7989  ;;  %v19458_v5 = vpack.c.bf16 %v8818_v60, %v8818_v60 }
 0x543   : > { %7318 = vst.msk [vmem:[#allocation4 + $0x12c] sm:$0xf] %vm1156_vm6, %v15003_v20  ;;  %vm7029_vm3 = vcmp.ge.f32.partialorder %v6975_v27, 0.0  ;;  %v7061_v19 = vmul.f32 0.01, %v6975_v27  ;;  %v6817_v18 = vadd.f32 %v19429_v22, %v15796_v23 }
 0x544   : > { %9032 = vst.msk [vmem:[#allocation4 + $0x88] sm:$0xf] %vm1927_vm0, %v8948_v55  ;;  %8073 = vst.msk [vmem:[#allocation4 + $0x90] sm:$0xf] %vm1927_vm0, %v7990_v12  ;;  %8007 = vrot.lane.b32.xlu1 %v19369_v4, %s20820_s17  ;;  %8965 = vrot.lane.b32.xlu0 %v19447_v34, %s20820_s17  ;;  %v19521_v12 = vpop.f32.mrf.mxu1 }
 0x545   : > { %v7093_v58 = vsel %vm7029_vm3, %v6975_v27, %v7061_v19  ;;  %v6978_v15 = vadd.f32 %v6977_v49, %v6817_v18  ;;  %v8440_v2 = vpop.permute.xlu1 %8439 }
 0x546   : > { %7125 = vst.msk [vmem:[#allocation2 + $0x139] sm:$0xff] %vm433_vm2, %v7093_v58  ;;  %v7482_v7 = vpop.permute.xlu0 %7481 }
 0x547   : > { %vm7030_vm4 = vcmp.ge.f32.partialorder %v6978_v15, 0.0  ;;  %v7062_v1 = vmul.f32 0.01, %v6978_v15  ;;  %8522 = vst.msk [vmem:[#allocation4 + $0xa0] sm:$0xf] %vm1413_vm5, %v8440_v2  ;;  %v9265_v21 = vld [vmem:[#allocation4 + $0x78] sm:$0xff] }
 0x548   : > { %7563 = vst.msk [vmem:[#allocation4 + $0xa8] sm:$0xf] %vm1413_vm5, %v7482_v7  ;;  %8967 = vrot.lane.b32.xlu1 %v19458_v5, %s20820_s17  ;;  %7497 = vrot.lane.b32.xlu0 %v19371_v11, %s20819_s26  ;;  %v16320_v4 = vld [vmem:[#allocation4 + $0xf8] ss:$12 sps:$4 sm:$0xff]  }
 0x549   : > { %v7094_v54 = vsel %vm7030_vm4, %v6978_v15, %v7062_v1  ;;  %16113 = vmatprep.mubr.msk.bf16.mxu0 %vm433_vm2, %v16320_v4  ;;  %v7992_v48 = vpop.permute.xlu1 %7991  ;;  %v6990_v15 = vpop.f32.mrf.mxu1 }
 0x54a   : > { %7126 = vst.msk [vmem:[#allocation2 + $0x141] sm:$0xff] %vm433_vm2, %v7094_v54  ;;  %v8438_v17 = vpop.permute.xlu0 %8437 }
 0x54b   : > { %v9267_v32 = vld [vmem:[#allocation4 + $0x84] sm:$0xff]  ;;  %8074 = vst.msk [vmem:[#allocation4 + $0x9c] sm:$0xf] %vm1927_vm0, %v7992_v48 }
 0x54c   : > { %v16321_v28 = vld [vmem:[#allocation4 + $0x7c] ss:$12 sps:$4 sm:$0xff]   ;;  %v13988_v26 = vcombine.low %v9265_v21, %v9267_v32  ;;  %8521 = vst.msk [vmem:[#allocation4 + $0x94] sm:$0xf] %vm1413_vm5, %v8438_v17  ;;  %7499 = vrot.lane.b32.xlu1 %v19379_v42, %s20819_s26  ;;  %8457 = vrot.lane.b32.xlu0 %v19424_v37, %s20819_s26 }
 0x54d   : > { %9820 = vmatprep.mubr.bf16.mxu1 %v16321_v28  ;;  %v8117_v11 = vld [vmem:[#allocation2 + $0x139] sm:$0xff]  ;;  %v15797_v25 = vpop.f32.mrf.mxu0  ;;  %v7484_v33 = vpop.permute.xlu1 %7483 }
 0x54e   : > { %9821 = vmatmul.mubr.bf16.gmra.mxu1 %v13988_v26  ;;  %v15130_v3 = vpack.c.bf16 %v8117_v11, %v8117_v11  ;;  %v7159_v31 = vld [vmem:[#allocation2 + $0x138] sm:$0xff]  ;;  %7564 = vst.msk [vmem:[#allocation4 + $0xb4] sm:$0xf] %vm1413_vm5, %v7484_v33  ;;  %v7738_v47 = vpop.permute.xlu0 %7737  ;;  %v19540_v11 = vpop.f32.mrf.mxu1 }
 0x54f   : > { %v8563_v45 = vld [vmem:[#allocation2 + $0x138] sm:$0xff]  ;;  %v15004_v51 = vpack.c.bf16 %v7159_v31, %v7159_v31  ;;  %7819 = vst.msk [vmem:[#allocation4 + $0xa8] sm:$0xf] %vm1670_vm7, %v7738_v47  ;;  %v15798_v39 = vpop.f32.mrf.mxu0 }
 0x550   : > { %8459 = vrot.lane.b32.xlu1 %v19433_v24, %s20819_s26  ;;  %7753 = vrot.lane.b32.xlu0 %v19354_v41, %s16483_s16  ;;  %8277 = vst.msk [vmem:[#allocation4 + $0x124] sm:$0xf] %vm1156_vm6, %v15130_v3  ;;  %v15799_v42 = vadd.f32 %v15798_v39, %v15797_v25  ;;  %v19482_v38 = vpack.c.bf16 %v8563_v45, %v8563_v45  ;;  %v8819_v9 = vld [vmem:[#allocation2 + $0x139] sm:$0xff] }
 0x551   : > { %v9075_v61 = vld [vmem:[#allocation2 + $0x13a] sm:$0xff]  ;;  %v9076_v43 = vld [vmem:[#allocation2 + $0x142] sm:$0xff]  ;;  %7319 = vst.msk [vmem:[#allocation4 + $0x138] sm:$0xf] %vm1156_vm6, %v15004_v51  ;;  %v15800_v40 = vpop.f32.mrf.mxu0  ;;  %v7740_v46 = vpop.permute.xlu1 %7739  ;;  %v19513_v23 = vpack.c.bf16 %v8819_v9, %v8819_v9 }
 0x552   : > { %v19484_v59 = vpack.c.bf16 %v9075_v61, %v9075_v61  ;;  %v19486_v62 = vpack.c.bf16 %v9076_v43, %v9076_v43  ;;  %v8118_v36 = vld [vmem:[#allocation2 + $0x141] sm:$0xff]  ;;  %v6822_v63 = vadd.f32 %v19429_v22, %v15799_v42  ;;  %7820 = vst.msk [vmem:[#allocation4 + $0xb4] sm:$0xf] %vm1670_vm7, %v7740_v46  ;;  %v8694_v41 = vpop.permute.xlu0 %8693 }
 0x553   : > { %v7160_v30 = vld [vmem:[#allocation2 + $0x140] sm:$0xff]  ;;  %v15131_v8 = vpack.c.bf16 %v8118_v36, %v8118_v36  ;;  %8777 = vst.msk [vmem:[#allocation4 + $0x94] sm:$0xf] %vm1670_vm7, %v8694_v41  ;;  %v15801_v35 = vpop.f32.mrf.mxu0  ;;  %v6993_v41 = vpop.f32.mrf.mxu1 }
 0x554   : > { %v8564_v0 = vld [vmem:[#allocation2 + $0x140] sm:$0xff]  ;;  %v15005_v10 = vpack.c.bf16 %v7160_v30, %v7160_v30  ;;  %7755 = vrot.lane.b32.xlu1 %v19357_v6, %s16483_s16  ;;  %8713 = vrot.lane.b32.xlu0 %v19482_v38, %s16483_s16  ;;  %9235 = vst.msk [vmem:[#allocation4 + $0x110] sm:$0xf] %vm1156_vm6, %v19484_v59  ;;  %9236 = vst.msk [vmem:[#allocation4 + $0x11c] sm:$0xf] %vm1156_vm6, %v19486_v62  ;;  %v6983_v29 = vadd.f32 %v19411_v56, %v6822_v63 }
 0x555   : > { %v15802_v52 = vadd.f32 %v15801_v35, %v15800_v40  ;;  %8278 = vst.msk [vmem:[#allocation4 + $0x130] sm:$0xf] %vm1156_vm6, %v15131_v8  ;;  %v8696_v57 = vpop.permute.xlu1 %8695  ;;  %v19502_v44 = vpack.c.bf16 %v8564_v0, %v8564_v0  ;;  %v8820_v18 = vld [vmem:[#allocation2 + $0x141] sm:$0xff] }
 0x556   : > { %7320 = vst.msk [vmem:[#allocation4 + $0x144] sm:$0xf] %vm1156_vm6, %v15005_v10  ;;  %vm7031_vm8 = vcmp.ge.f32.partialorder %v6983_v29, 0.0  ;;  %v7063_v6 = vmul.f32 0.01, %v6983_v29  ;;  %v8950_v16 = vpop.permute.xlu0 %8949  ;;  %v19525_v49 = vpack.c.bf16 %v8820_v18, %v8820_v18 }
 0x557   : > { %v6825_v14 = vadd.f32 %v19429_v22, %v15802_v52  ;;  %8778 = vst.msk [vmem:[#allocation4 + $0xa0] sm:$0xf] %vm1670_vm7, %v8696_v57 }
 0x558   : > { %9033 = vst.msk [vmem:[#allocation4 + $0x94] sm:$0xf] %vm1927_vm0, %v8950_v16  ;;  %8715 = vrot.lane.b32.xlu1 %v19502_v44, %s16483_s16  ;;  %8009 = vrot.lane.b32.xlu0 %v19414_v13, %s20820_s17  ;;  %v7095_v56 = vsel %vm7031_vm8, %v6983_v29, %v7063_v6 }
 0x559   : > { %v6986_v20 = vadd.f32 %v19435_v50, %v6825_v14  ;;  %7127 = vst.msk [vmem:[#allocation2 + $0x151] sm:$0xff] %vm433_vm2, %v7095_v56  ;;  %v8952_v27 = vpop.permute.xlu1 %8951 }
 0x55a   : > { %9034 = vst.msk [vmem:[#allocation4 + $0xa0] sm:$0xf] %vm1927_vm0, %v8952_v27  ;;  %v7994_v19 = vpop.permute.xlu0 %7993 }
 0x55b   : > { %vm7032_vm9 = vcmp.ge.f32.partialorder %v6986_v20, 0.0  ;;  %v7064_v55 = vmul.f32 0.01, %v6986_v20  ;;  %8075 = vst.msk [vmem:[#allocation4 + $0xa8] sm:$0xf] %vm1927_vm0, %v7994_v19 }
 0x55c   : > { %8011 = vrot.lane.b32.xlu1 %v19422_v53, %s20820_s17  ;;  %8969 = vrot.lane.b32.xlu0 %v19513_v23, %s20820_s17  ;;  %v16323_v13 = vld [vmem:[#allocation4 + $0x110] ss:$12 sps:$4 sm:$0xff]  }
 0x55d   : > { %v7096_v50 = vsel %vm7032_vm9, %v6986_v20, %v7064_v55  ;;  %16114 = vmatmul.mubr.msk.bf16.gmra.mxu0 %vm433_vm2, %v16323_v13  ;;  %v8444_v60 = vpop.permute.xlu1 %8443 }
 0x55e   : > { %7128 = vst.msk [vmem:[#allocation2 + $0x159] sm:$0xff] %vm433_vm2, %v7096_v50  ;;  %v7486_v58 = vpop.permute.xlu0 %7485 }
 0x55f   : > { %8524 = vst.msk [vmem:[#allocation4 + $0xb8] sm:$0xf] %vm1413_vm5, %v8444_v60  ;;  %7565 = vst.msk [vmem:[#allocation4 + $0xc0] sm:$0xf] %vm1413_vm5, %v7486_v58  ;;  %v9269_v53 = vld [vmem:[#allocation4 + $0x90] sm:$0xff] }
 0x560   : > { %8971 = vrot.lane.b32.xlu1 %v19525_v49, %s20820_s17  ;;  %7501 = vrot.lane.b32.xlu0 %v19447_v34, %s20819_s26  ;;  %v8119_v2 = vld [vmem:[#allocation2 + $0x151] sm:$0xff] }
 0x561   : > { %v15803_v1 = vpop.f32.mrf.mxu0  ;;  %v7996_v7 = vpop.permute.xlu1 %7995  ;;  %v9271_v4 = vld [vmem:[#allocation4 + $0x9c] sm:$0xff]  ;;  %v15132_v48 = vpack.c.bf16 %v8119_v2, %v8119_v2  ;;  %v7161_v21 = vld [vmem:[#allocation2 + $0x150] sm:$0xff] }
 0x562   : > { %v16324_v54 = vld [vmem:[#allocation4 + $0x94] ss:$12 sps:$4 sm:$0xff]   ;;  %8076 = vst.msk [vmem:[#allocation4 + $0xb4] sm:$0xf] %vm1927_vm0, %v7996_v7  ;;  %v8442_v32 = vpop.permute.xlu0 %8441  ;;  %v13991_v28 = vcombine.low %v9269_v53, %v9271_v4  ;;  %v15006_v17 = vpack.c.bf16 %v7161_v21, %v7161_v21 }
 0x563   : > { %8523 = vst.msk [vmem:[#allocation4 + $0xac] sm:$0xf] %vm1413_vm5, %v8442_v32  ;;  %v15804_v26 = vpop.f32.mrf.mxu0  ;;  %9828 = vmatprep.mubr.bf16.mxu1 %v16324_v54  ;;  %v8565_v61 = vld [vmem:[#allocation2 + $0x150] sm:$0xff] }
 0x564   : > { %7503 = vrot.lane.b32.xlu1 %v19458_v5, %s20819_s26  ;;  %8461 = vrot.lane.b32.xlu0 %v19484_v59, %s20819_s26  ;;  %8279 = vst.msk [vmem:[#allocation4 + $0x13c] sm:$0xf] %vm1156_vm6, %v15132_v48  ;;  %v15805_v34 = vadd.f32 %v15804_v26, %v15803_v1  ;;  %7321 = vst.msk [vmem:[#allocation4 + $0x150] sm:$0xf] %vm1156_vm6, %v15006_v17  ;;  %v19563_v0 = vpack.c.bf16 %v8565_v61, %v8565_v61  ;;  %v8821_v9 = vld [vmem:[#allocation2 + $0x151] sm:$0xff] }
 0x565   : > { %v9077_v25 = vld [vmem:[#allocation2 + $0x152] sm:$0xff]  ;;  %v9078_v33 = vld [vmem:[#allocation2 + $0x15a] sm:$0xff]  ;;  %v15806_v3 = vpop.f32.mrf.mxu0  ;;  %v7488_v31 = vpop.permute.xlu1 %7487  ;;  %9829 = vmatmul.mubr.bf16.gmra.mxu1 %v13991_v28  ;;  %v19583_v27 = vpack.c.bf16 %v8821_v9, %v8821_v9 }
 0x566   : > { %v19543_v47 = vpack.c.bf16 %v9077_v25, %v9077_v25  ;;  %v19545_v45 = vpack.c.bf16 %v9078_v33, %v9078_v33  ;;  %v8822_v5 = vld [vmem:[#allocation2 + $0x159] sm:$0xff]  ;;  %7566 = vst.msk [vmem:[#allocation4 + $0xcc] sm:$0xf] %vm1413_vm5, %v7488_v31  ;;  %v7742_v39 = vpop.permute.xlu0 %7741  ;;  %v6830_v42 = vadd.f32 %v19429_v22, %v15805_v34 }
 0x567   : > { %v7162_v51 = vld [vmem:[#allocation2 + $0x158] sm:$0xff]  ;;  %v19549_v43 = vpack.c.bf16 %v8822_v5, %v8822_v5  ;;  %7821 = vst.msk [vmem:[#allocation4 + $0xc0] sm:$0xf] %vm1670_vm7, %v7742_v39  ;;  %v15807_v46 = vpop.f32.mrf.mxu0 }
 0x568   : > { %v15007_v40 = vpack.c.bf16 %v7162_v51, %v7162_v51  ;;  %8463 = vrot.lane.b32.xlu1 %v19486_v62, %s20819_s26  ;;  %7757 = vrot.lane.b32.xlu0 %v19424_v37, %s16483_s16  ;;  %9237 = vst.msk [vmem:[#allocation4 + $0x128] sm:$0xf] %vm1156_vm6, %v19543_v47  ;;  %9238 = vst.msk [vmem:[#allocation4 + $0x134] sm:$0xf] %vm1156_vm6, %v19545_v45  ;;  %v15808_v36 = vadd.f32 %v15807_v46, %v15806_v3  ;;  %v8566_v35 = vld [vmem:[#allocation2 + $0x158] sm:$0xff] }
 0x569   : > { %v6991_v30 = vadd.f32 %v6990_v15, %v6830_v42  ;;  %8280 = vst.msk [vmem:[#allocation4 + $0x148] sm:$0xf] %vm1156_vm6, %v19549_v43  ;;  %v7744_v63 = vpop.permute.xlu1 %7743  ;;  %v19573_v6 = vpack.c.bf16 %v8566_v35, %v8566_v35 }
 0x56a   : > { %7322 = vst.msk [vmem:[#allocation4 + $0x15c] sm:$0xf] %vm1156_vm6, %v15007_v40  ;;  %v8698_v37 = vpop.permute.xlu0 %8697  ;;  %v6833_v10 = vadd.f32 %v19429_v22, %v15808_v36 }
 0x56b   : > { %vm7033_vm10 = vcmp.ge.f32.partialorder %v6991_v30, 0.0  ;;  %v7065_v8 = vmul.f32 0.01, %v6991_v30  ;;  %7822 = vst.msk [vmem:[#allocation4 + $0xcc] sm:$0xf] %vm1670_vm7, %v7744_v63 }
 0x56c   : > { %8779 = vst.msk [vmem:[#allocation4 + $0xac] sm:$0xf] %vm1670_vm7, %v8698_v37  ;;  %7759 = vrot.lane.b32.xlu1 %v19433_v24, %s16483_s16  ;;  %8717 = vrot.lane.b32.xlu0 %v19563_v0, %s16483_s16  ;;  %v6994_v52 = vadd.f32 %v6993_v41, %v6833_v10 }
 0x56d   : > { %v7097_v29 = vsel %vm7033_vm10, %v6991_v30, %v7065_v8  ;;  %v8700_v57 = vpop.permute.xlu1 %8699 }
 0x56e   : > { %7129 = vst.msk [vmem:[#allocation2 + $0x169] sm:$0xff] %vm433_vm2, %v7097_v29  ;;  %vm7034_vm11 = vcmp.ge.f32.partialorder %v6994_v52, 0.0  ;;  %v7066_v14 = vmul.f32 0.01, %v6994_v52  ;;  %v8954_v16 = vpop.permute.xlu0 %8953 }
 0x56f   : > { %8780 = vst.msk [vmem:[#allocation4 + $0xb8] sm:$0xf] %vm1670_vm7, %v8700_v57  ;;  %v16326_v24 = vld [vmem:[#allocation4 + $0x128] ss:$12 sps:$4 sm:$0xff]  }
 0x570   : > { %9035 = vst.msk [vmem:[#allocation4 + $0xac] sm:$0xf] %vm1927_vm0, %v8954_v16  ;;  %8719 = vrot.lane.b32.xlu1 %v19573_v6, %s16483_s16  ;;  %8013 = vrot.lane.b32.xlu0 %v19482_v38, %s20820_s17  ;;  %v7098_v56 = vsel %vm7034_vm11, %v6994_v52, %v7066_v14 }
 0x571   : > { %7130 = vst.msk [vmem:[#allocation2 + $0x171] sm:$0xff] %vm433_vm2, %v7098_v56  ;;  %16117 = vmatprep.mubr.msk.bf16.mxu0 %vm433_vm2, %v16326_v24  ;;  %v8956_v20 = vpop.permute.xlu1 %8955 }
 0x572   : > { %9036 = vst.msk [vmem:[#allocation4 + $0xb8] sm:$0xf] %vm1927_vm0, %v8956_v20  ;;  %v7998_v55 = vpop.permute.xlu0 %7997 }
 0x573   : > { %8077 = vst.msk [vmem:[#allocation4 + $0xc0] sm:$0xf] %vm1927_vm0, %v7998_v55 }
 0x574   : > { %8015 = vrot.lane.b32.xlu1 %v19502_v44, %s20820_s17  ;;  %8973 = vrot.lane.b32.xlu0 %v19583_v27, %s20820_s17 }
 0x575   : > { %v8823_v38 = vld [vmem:[#allocation2 + $0x169] sm:$0xff]  ;;  %v15809_v18 = vpop.f32.mrf.mxu0  ;;  %v8448_v13 = vpop.permute.xlu1 %8447 }
 0x576   : > { %v7163_v19 = vld [vmem:[#allocation2 + $0x168] sm:$0xff]  ;;  %v19591_v50 = vpack.c.bf16 %v8823_v38, %v8823_v38  ;;  %8526 = vst.msk [vmem:[#allocation4 + $0xd0] sm:$0xf] %vm1413_vm5, %v8448_v13  ;;  %v7490_v58 = vpop.permute.xlu0 %7489 }
 0x577   : > { %v15008_v60 = vpack.c.bf16 %v7163_v19, %v7163_v19  ;;  %7567 = vst.msk [vmem:[#allocation4 + $0xd8] sm:$0xf] %vm1413_vm5, %v7490_v58  ;;  %v15810_v53 = vpop.f32.mrf.mxu0  ;;  %v9273_v15 = vld [vmem:[#allocation4 + $0xa8] sm:$0xff] }
 0x578   : > { %8975 = vrot.lane.b32.xlu1 %v19549_v43, %s20820_s17  ;;  %7505 = vrot.lane.b32.xlu0 %v19513_v23, %s20819_s26  ;;  %8281 = vst.msk [vmem:[#allocation4 + $0x154] sm:$0xf] %vm1156_vm6, %v19591_v50  ;;  %v15811_v44 = vadd.f32 %v15810_v53, %v15809_v18  ;;  %v9079_v2 = vld [vmem:[#allocation2 + $0x16a] sm:$0xff]  ;;  %v9080_v1 = vld [vmem:[#allocation2 + $0x172] sm:$0xff] }
 0x579   : > { %7323 = vst.msk [vmem:[#allocation4 + $0x168] sm:$0xf] %vm1156_vm6, %v15008_v60  ;;  %v15812_v7 = vpop.f32.mrf.mxu0  ;;  %v8000_v4 = vpop.permute.xlu1 %7999  ;;  %v9275_v54 = vld [vmem:[#allocation4 + $0xb4] sm:$0xff]  ;;  %v19602_v21 = vpack.c.bf16 %v9079_v2, %v9079_v2  ;;  %v19604_v32 = vpack.c.bf16 %v9080_v1, %v9080_v1  ;;  %v8567_v61 = vld [vmem:[#allocation2 + $0x168] sm:$0xff] }
 0x57a   : > { %v16327_v48 = vld [vmem:[#allocation4 + $0xac] ss:$12 sps:$4 sm:$0xff]   ;;  %v6838_v23 = vadd.f32 %v19429_v22, %v15811_v44  ;;  %8078 = vst.msk [vmem:[#allocation4 + $0xcc] sm:$0xf] %vm1927_vm0, %v8000_v4  ;;  %v8446_v17 = vpop.permute.xlu0 %8445  ;;  %v13994_v26 = vcombine.low %v9273_v15, %v9275_v54  ;;  %v7164_v25 = vld [vmem:[#allocation2 + $0x170] sm:$0xff]  ;;  %v19632_v36 = vpack.c.bf16 %v8567_v61, %v8567_v61 }
 0x57b   : > { %v8824_v28 = vld [vmem:[#allocation2 + $0x171] sm:$0xff]  ;;  %8525 = vst.msk [vmem:[#allocation4 + $0xc4] sm:$0xf] %vm1413_vm5, %v8446_v17  ;;  %v15813_v33 = vpop.f32.mrf.mxu0  ;;  %v15009_v3 = vpack.c.bf16 %v7164_v25, %v7164_v25  ;;  %9836 = vmatprep.mubr.bf16.mxu1 %v16327_v48  ;;  %v19700_v4 = vld [vmem:[%s20804_s9] ss:$0 sm:$0xff] }
 0x57c   : > { %v19608_v34 = vpack.c.bf16 %v8824_v28, %v8824_v28  ;;  %7507 = vrot.lane.b32.xlu1 %v19525_v49, %s20819_s26  ;;  %8465 = vrot.lane.b32.xlu0 %v19543_v47, %s20819_s26  ;;  %9239 = vst.msk [vmem:[#allocation4 + $0x140] sm:$0xf] %vm1156_vm6, %v19602_v21  ;;  %9240 = vst.msk [vmem:[#allocation4 + $0x14c] sm:$0xf] %vm1156_vm6, %v19604_v32  ;;  %v6999_v31 = vadd.f32 %v19521_v12, %v6838_v23  ;;  %v8568_v63 = vld [vmem:[#allocation2 + $0x170] sm:$0xff] }
 0x57d   : > { %v15814_v5 = vadd.f32 %v15813_v33, %v15812_v7  ;;  %v7492_v51 = vpop.permute.xlu1 %7491  ;;  %9837 = vmatmul.mubr.bf16.gmra.mxu1 %v13994_v26  ;;  %7324 = vst.msk [vmem:[#allocation4 + $0x174] sm:$0xf] %vm1156_vm6, %v15009_v3  ;;  %v19642_v8 = vpack.c.bf16 %v8568_v63, %v8568_v63  ;;  %v19685_v53 = vpop.f32.mrf.mxu0 }
 0x57e   : > { %8282 = vst.msk [vmem:[#allocation4 + $0x160] sm:$0xf] %vm1156_vm6, %v19608_v34  ;;  %vm7035_vm12 = vcmp.ge.f32.partialorder %v6999_v31, 0.0  ;;  %v7067_v49 = vmul.f32 0.01, %v6999_v31  ;;  %v7746_v42 = vpop.permute.xlu0 %7745 }
 0x57f   : > { %v6841_v39 = vadd.f32 %v19429_v22, %v15814_v5  ;;  %7568 = vst.msk [vmem:[#allocation4 + $0xe4] sm:$0xf] %vm1413_vm5, %v7492_v51  ;;  %v9943_v7 = vpop.f32.mrf.mxu0 }
 0x580   : > { %7823 = vst.msk [vmem:[#allocation4 + $0xd8] sm:$0xf] %vm1670_vm7, %v7746_v42  ;;  %8467 = vrot.lane.b32.xlu1 %v19545_v45, %s20819_s26  ;;  %7761 = vrot.lane.b32.xlu0 %v19484_v59, %s16483_s16  ;;  %v7099_v12 = vsel %vm7035_vm12, %v6999_v31, %v7067_v49 }
 0x581   : > { %v7002_v40 = vadd.f32 %v19540_v11, %v6841_v39  ;;  %7131 = vst.msk [vmem:[#allocation2 + $0x181] sm:$0xff] %vm433_vm2, %v7099_v12  ;;  %v7748_v46 = vpop.permute.xlu1 %7747  ;;  %v19710_v25 = vpop.f32.mrf.mxu0 }
 0x582   : > { %7824 = vst.msk [vmem:[#allocation4 + $0xe4] sm:$0xf] %vm1670_vm7, %v7748_v46  ;;  %v8702_v30 = vpop.permute.xlu0 %8701 }
 0x583   : > { %vm7036_vm13 = vcmp.ge.f32.partialorder %v7002_v40, 0.0  ;;  %v7068_v22 = vmul.f32 0.01, %v7002_v40  ;;  %8781 = vst.msk [vmem:[#allocation4 + $0xc4] sm:$0xf] %vm1670_vm7, %v8702_v30 }
 0x584   : > { %7763 = vrot.lane.b32.xlu1 %v19486_v62, %s16483_s16  ;;  %8721 = vrot.lane.b32.xlu0 %v19632_v36, %s16483_s16  ;;  %v16329_v59 = vld [vmem:[#allocation4 + $0x140] ss:$12 sps:$4 sm:$0xff]  }
 0x585   : > { %v7100_v11 = vsel %vm7036_vm13, %v7002_v40, %v7068_v22  ;;  %16118 = vmatmul.mubr.msk.bf16.gmra.mxu0 %vm433_vm2, %v16329_v59  ;;  %v8704_v41 = vpop.permute.xlu1 %8703  ;;  %v9946_v40 = vpop.f32.mrf.mxu0  ;;  %v16345_v59 = vld [vmem:[#allocation4 + $0x170] ss:$12 sps:$4 sm:$0xff]  }
 0x586   : > { %7132 = vst.msk [vmem:[#allocation2 + $0x189] sm:$0xff] %vm433_vm2, %v7100_v11  ;;  %v8958_v37 = vpop.permute.xlu0 %8957  ;;  %v8571_v11 = vld [vmem:[#allocation2 + $0x198] sm:$0xff] }
 0x587   : > { %8782 = vst.msk [vmem:[#allocation4 + $0xd0] sm:$0xf] %vm1670_vm7, %v8704_v41 }
 0x588   : > { %9037 = vst.msk [vmem:[#allocation4 + $0xc4] sm:$0xf] %vm1927_vm0, %v8958_v37  ;;  %8723 = vrot.lane.b32.xlu1 %v19642_v8, %s16483_s16  ;;  %8017 = vrot.lane.b32.xlu0 %v19563_v0, %s20820_s17  ;;  %v8825_v62 = vld [vmem:[#allocation2 + $0x181] sm:$0xff] }
 0x589   : > { %v8960_v10 = vpop.permute.xlu1 %8959  ;;  %v19650_v35 = vpack.c.bf16 %v8825_v62, %v8825_v62  ;;  %v8569_v13 = vld [vmem:[#allocation2 + $0x180] sm:$0xff] }
 0x58a   : > { %9038 = vst.msk [vmem:[#allocation4 + $0xd0] sm:$0xf] %vm1927_vm0, %v8960_v10  ;;  %v8450_v29 = vpop.permute.xlu0 %8449  ;;  %v19693_v15 = vpack.c.bf16 %v8569_v13, %v8569_v13  ;;  %v10199_v13 = vld [vmem:[#allocation3 + $0x8] sm:$0xff] }
 0x58b   : > { %8527 = vst.msk [vmem:[#allocation4 + $0xdc] sm:$0xf] %vm1413_vm5, %v8450_v29 }
 0x58c   : > { %8019 = vrot.lane.b32.xlu1 %v19573_v6, %s20820_s17  ;;  %8977 = vrot.lane.b32.xlu0 %v19591_v50, %s20820_s17  ;;  %8283 = vst.msk [vmem:[#allocation4 + $0x16c] sm:$0xf] %vm1156_vm6, %v19650_v35 }
 0x58d   : > { %v9081_v52 = vld [vmem:[#allocation2 + $0x182] sm:$0xff]  ;;  %v9082_v0 = vld [vmem:[#allocation2 + $0x18a] sm:$0xff]  ;;  %v8452_v57 = vpop.permute.xlu1 %8451 }
 0x58e   : > { %v19660_v14 = vpack.c.bf16 %v9081_v52, %v9081_v52  ;;  %v19662_v16 = vpack.c.bf16 %v9082_v0, %v9082_v0  ;;  %v8826_v9 = vld [vmem:[#allocation2 + $0x189] sm:$0xff]  ;;  %8528 = vst.msk [vmem:[#allocation4 + $0xe8] sm:$0xf] %vm1413_vm5, %v8452_v57  ;;  %v8706_v24 = vpop.permute.xlu0 %8705  ;;  %v12149_v57 = vld [vmem:[#allocation3 + $0x1a2] sm:$0xff] }
 0x58f   : > { %v19665_v56 = vpack.c.bf16 %v8826_v9, %v8826_v9  ;;  %8783 = vst.msk [vmem:[#allocation4 + $0xdc] sm:$0xf] %vm1670_vm7, %v8706_v24  ;;  %v9277_v20 = vld [vmem:[#allocation4 + $0xc0] sm:$0xff]  ;;  %v8570_v1 = vld [vmem:[#allocation2 + $0x188] sm:$0xff]  ;;  %v15553_v24 = vpack.c.bf16 %v12149_v57, %v12149_v57 }
 0x590   : > { %8979 = vrot.lane.b32.xlu1 %v19608_v34, %s20820_s17  ;;  %7509 = vrot.lane.b32.xlu0 %v19583_v27, %s20819_s26  ;;  %9241 = vst.msk [vmem:[#allocation4 + $0x158] sm:$0xf] %vm1156_vm6, %v19660_v14  ;;  %9242 = vst.msk [vmem:[#allocation4 + $0x164] sm:$0xf] %vm1156_vm6, %v19662_v16  ;;  %v19706_v23 = vpack.c.bf16 %v8570_v1, %v8570_v1  ;;  %v12148_v0 = vld [vmem:[#allocation3 + $0x19a] sm:$0xff] }
 0x591   : > { %8284 = vst.msk [vmem:[#allocation4 + $0x178] sm:$0xf] %vm1156_vm6, %v19665_v56  ;;  %v8004_v6 = vpop.permute.xlu1 %8003  ;;  %v9279_v55 = vld [vmem:[#allocation4 + $0xcc] sm:$0xff]  ;;  %12309 = vst.msk [vmem:[#allocation4 + $0x17c] sm:$0xf] %vm1156_vm6, %v15553_v24 }
 0x592   : > { %v16330_v38 = vld [vmem:[#allocation4 + $0xc4] ss:$12 sps:$4 sm:$0xff]   ;;  %8080 = vst.msk [vmem:[#allocation4 + $0xe4] sm:$0xf] %vm1927_vm0, %v8004_v6  ;;  %v8002_v19 = vpop.permute.xlu0 %8001  ;;  %v13997_v18 = vcombine.low %v9277_v20, %v9279_v55 }
 0x593   : > { %8079 = vst.msk [vmem:[#allocation4 + $0xd8] sm:$0xf] %vm1927_vm0, %v8002_v19  ;;  %9844 = vmatprep.mubr.bf16.mxu1 %v16330_v38  ;;  %v8827_v38 = vld [vmem:[#allocation2 + $0x199] sm:$0xff] }
 0x594   : > { %7511 = vrot.lane.b32.xlu1 %v19549_v43, %s20819_s26  ;;  %8469 = vrot.lane.b32.xlu0 %v19602_v21, %s20819_s26 }
 0x595   : > { %v8708_v27 = vpop.permute.xlu1 %8707  ;;  %9845 = vmatmul.mubr.bf16.gmra.mxu1 %v13997_v18 }
 0x596   : > { %8784 = vst.msk [vmem:[#allocation4 + $0xe8] sm:$0xf] %vm1670_vm7, %v8708_v27  ;;  %v8962_v60 = vpop.permute.xlu0 %8961  ;;  %v10198_v27 = vld [vmem:[#allocation3] sm:$0xff] }
 0x597   : > { %v16332_v58 = vld [vmem:[#allocation4 + $0x158] ss:$12 sps:$4 sm:$0xff]   ;;  %9039 = vst.msk [vmem:[#allocation4 + $0xdc] sm:$0xf] %vm1927_vm0, %v8962_v60 }
 0x598   : > { %8471 = vrot.lane.b32.xlu1 %v19604_v32, %s20819_s26  ;;  %7765 = vrot.lane.b32.xlu0 %v19543_v47, %s16483_s16  ;;  %v15849_v43 = vpop.f32.mrf.mxu1 }
 0x599   : > { %16121 = vmatprep.mubr.msk.bf16.mxu0 %vm433_vm2, %v16332_v58  ;;  %v8964_v44 = vpop.permute.xlu1 %8963  ;;  %v15266_v58 = vpack.c.bf16 %v10198_v27, %v10198_v27 }
 0x59a   : > { %9040 = vst.msk [vmem:[#allocation4 + $0xe8] sm:$0xf] %vm1927_vm0, %v8964_v44  ;;  %v7494_v2 = vpop.permute.xlu0 %7493  ;;  %v15850_v54 = vpop.f32.mrf.mxu1  ;;  %16122 = vmatmul.mubr.msk.bf16.gmra.mxu0 %vm433_vm2, %v16345_v59 }
 0x59b   : > { %7569 = vst.msk [vmem:[#allocation4 + $0xf0] sm:$0xf] %vm1413_vm5, %v7494_v2  ;;  %v15851_v47 = vadd.f32 %v15850_v54, %v15849_v43  ;;  %v15267_v43 = vpack.c.bf16 %v10199_v13, %v10199_v13  ;;  %v15232_v2 = vpack.c.bf16 %v8827_v38, %v8827_v38  ;;  %v8828_v54 = vld [vmem:[#allocation2 + $0x1a1] sm:$0xff] }
 0x59c   : > { %7767 = vrot.lane.b32.xlu1 %v19545_v45, %s16483_s16  ;;  %8725 = vrot.lane.b32.xlu0 %v19693_v15, %s16483_s16  ;;  %v15852_v48 = vpop.f32.mrf.mxu1  ;;  %10358 = vst.msk [vmem:[#allocation4] sm:$0xf] %vm1156_vm6, %v15266_v58 }
 0x59d   : > { %v7496_v28 = vpop.permute.xlu1 %7495  ;;  %v9783_v17 = vadd.f32 %v15851_v47, %v19700_v4  ;;  %v10390_v47 = vld [vmem:[#allocation3 + $0x1] sm:$0xff]  ;;  %10359 = vst.msk [vmem:[#allocation4 + $0xc] sm:$0xf] %vm1156_vm6, %v15267_v43 }
 0x59e   : > { %7570 = vst.msk [vmem:[#allocation4 + $0xfc] sm:$0xf] %vm1413_vm5, %v7496_v28  ;;  %v8454_v26 = vpop.permute.xlu0 %8453  ;;  %v15853_v33 = vpop.f32.mrf.mxu1  ;;  %v9281_v5 = vld [vmem:[#allocation4 + $0xd8] sm:$0xff] }
 0x59f   : > { %8529 = vst.msk [vmem:[#allocation4 + $0xf4] sm:$0xf] %vm1413_vm5, %v8454_v26  ;;  %v9944_v45 = vadd.f32 %v9943_v7, %v9783_v17  ;;  %v15854_v3 = vadd.f32 %v15853_v33, %v15852_v48 }
 0x5a0   : > { %8727 = vrot.lane.b32.xlu1 %v19706_v23, %s16483_s16  ;;  %8021 = vrot.lane.b32.xlu0 %v19632_v36, %s20820_s17 }
 0x5a1   : > { %v8456_v31 = vpop.permute.xlu1 %8455  ;;  %v9283_v51 = vld [vmem:[#allocation4 + $0xe4] sm:$0xff]  ;;  %vm10070_vm14 = vcmp.ge.f32.partialorder %v9944_v45, 0.0  ;;  %v10102_v39 = vmul.f32 0.01, %v9944_v45  ;;  %v9786_v42 = vadd.f32 %v15854_v3, %v19700_v4  ;;  %v10391_v3 = vld [vmem:[#allocation3 + $0x9] sm:$0xff] }
 0x5a2   : > { %v16333_v49 = vld [vmem:[#allocation4 + $0xdc] ss:$12 sps:$4 sm:$0xff]   ;;  %8530 = vst.msk [vmem:[#allocation4 + $0x100] sm:$0xf] %vm1413_vm5, %v8456_v31  ;;  %v7750_v61 = vpop.permute.xlu0 %7749  ;;  %v14000_v12 = vcombine.low %v9281_v5, %v9283_v51  ;;  %v10646_v31 = vld [vmem:[#allocation3 + $0x2] sm:$0xff] }
 0x5a3   : > { %7825 = vst.msk [vmem:[#allocation4 + $0xf0] sm:$0xf] %vm1670_vm7, %v7750_v61  ;;  %v10134_v46 = vsel %vm10070_vm14, %v9944_v45, %v10102_v39  ;;  %v9947_v36 = vadd.f32 %v9946_v40, %v9786_v42  ;;  %9852 = vmatprep.mubr.bf16.mxu1 %v16333_v49  ;;  %v15330_v39 = vpack.c.bf16 %v10646_v31, %v10646_v31 }
 0x5a4   : > { %8023 = vrot.lane.b32.xlu1 %v19642_v8, %s20820_s17  ;;  %8981 = vrot.lane.b32.xlu0 %v19650_v35, %s20820_s17  ;;  %10166 = vst.msk [vmem:[#allocation3 + $0x19] sm:$0xff] %vm433_vm2, %v10134_v46 }
 0x5a5   : > { %v7752_v22 = vpop.permute.xlu1 %7751  ;;  %9853 = vmatmul.mubr.bf16.gmra.mxu1 %v14000_v12  ;;  %vm10071_vm15 = vcmp.ge.f32.partialorder %v9947_v36, 0.0  ;;  %v10103_v30 = vmul.f32 0.01, %v9947_v36 }
 0x5a6   : > { %7826 = vst.msk [vmem:[#allocation4 + $0xfc] sm:$0xf] %vm1670_vm7, %v7752_v22 }
 0x5a7   : > { %v10135_v63 = vsel %vm10071_vm15, %v9947_v36, %v10103_v30 }
 0x5a8   : > { %8983 = vrot.lane.b32.xlu1 %v19665_v56, %s20820_s17  ;;  %7513 = vrot.lane.b32.xlu0 %v19591_v50, %s20819_s26  ;;  %10167 = vst.msk [vmem:[#allocation3 + $0x21] sm:$0xff] %vm433_vm2, %v10135_v63  ;;  %v15200_v50 = vpack.c.bf16 %v8571_v11, %v8571_v11  ;;  %v19781_v63 = vpop.f32.mrf.mxu0 }
 0x5ab   : > { %v10902_v41 = vld [vmem:[#allocation3 + $0x18] sm:$0xff] }
 0x5ac   : > { %7515 = vrot.lane.b32.xlu1 %v19608_v34, %s20819_s26  ;;  %8473 = vrot.lane.b32.xlu0 %v19660_v14, %s20819_s26  ;;  %v11158_v8 = vld [vmem:[#allocation3 + $0x19] sm:$0xff]  ;;  %v19736_v62 = vpack.c.bf16 %v10902_v41, %v10902_v41  ;;  %v8572_v34 = vld [vmem:[#allocation2 + $0x1a0] sm:$0xff] }
 0x5ad   : > { %v15394_v10 = vpack.c.bf16 %v11158_v8, %v11158_v8  ;;  %v15201_v6 = vpack.c.bf16 %v8572_v34, %v8572_v34  ;;  %v10392_v30 = vld [vmem:[#allocation3 + $0x19] sm:$0xff] }
 0x5ae   : > { %v8710_v37 = vpop.permute.xlu0 %8709  ;;  %10360 = vst.msk [vmem:[#allocation4 + $0x18] sm:$0xf] %vm1156_vm6, %v19736_v62 }
 0x5af   : > { %8785 = vst.msk [vmem:[#allocation4 + $0xf4] sm:$0xf] %vm1670_vm7, %v8710_v37  ;;  %v10903_v52 = vld [vmem:[#allocation3 + $0x20] sm:$0xff] }
 0x5b0   : > { %8475 = vrot.lane.b32.xlu1 %v19662_v16, %s20819_s26  ;;  %7769 = vrot.lane.b32.xlu0 %v19602_v21, %s16483_s16  ;;  %11318 = vst.msk [vmem:[#allocation4 + $0x4] sm:$0xf] %vm1156_vm6, %v15394_v10  ;;  %v19747_v9 = vpack.c.bf16 %v10903_v52, %v10903_v52  ;;  %v15552_v16 = vpack.c.bf16 %v12148_v0, %v12148_v0  ;;  %v11159_v21 = vld [vmem:[#allocation3 + $0x21] sm:$0xff]  ;;  %v9959_v52 = vpop.f32.mrf.mxu0 }
 0x5b1   : > { %v15855_v29 = vpop.f32.mrf.mxu1  ;;  %v15395_v20 = vpack.c.bf16 %v11159_v21, %v11159_v21  ;;  %v15300_v10 = vpack.c.bf16 %v10392_v30, %v10392_v30 }
 0x5b2   : > { %v8712_v35 = vpop.permute.xlu1 %8711  ;;  %v8006_v14 = vpop.permute.xlu0 %8005  ;;  %12308 = vst.msk [vmem:[#allocation4 + $0x170] sm:$0xf] %vm1156_vm6, %v15552_v16  ;;  %10361 = vst.msk [vmem:[#allocation4 + $0x24] sm:$0xf] %vm1156_vm6, %v19747_v9 }
 0x5b3   : > { %8786 = vst.msk [vmem:[#allocation4 + $0x100] sm:$0xf] %vm1670_vm7, %v8712_v35  ;;  %v15856_v56 = vpop.f32.mrf.mxu1 }
 0x5b4   : > { %8081 = vst.msk [vmem:[#allocation4 + $0xf0] sm:$0xf] %vm1927_vm0, %v8006_v14  ;;  %7771 = vrot.lane.b32.xlu1 %v19604_v32, %s16483_s16  ;;  %8729 = vrot.lane.b32.xlu0 %v15200_v50, %s16483_s16  ;;  %v15857_v55 = vadd.f32 %v15856_v56, %v15855_v29  ;;  %v10393_v29 = vld [vmem:[#allocation3 + $0x21] sm:$0xff] }
 0x5b5   : > { %v15858_v18 = vpop.f32.mrf.mxu1  ;;  %11319 = vst.msk [vmem:[#allocation4 + $0x10] sm:$0xf] %vm1156_vm6, %v15395_v20  ;;  %v15301_v21 = vpack.c.bf16 %v10393_v29, %v10393_v29 }
 0x5b6   : > { %v8008_v19 = vpop.permute.xlu1 %8007  ;;  %v9791_v32 = vadd.f32 %v15857_v55, %v19700_v4  ;;  %v8966_v60 = vpop.permute.xlu0 %8965 }
 0x5b7   : > { %8082 = vst.msk [vmem:[#allocation4 + $0xfc] sm:$0xf] %vm1927_vm0, %v8008_v19  ;;  %9041 = vst.msk [vmem:[#allocation4 + $0xf4] sm:$0xf] %vm1927_vm0, %v8966_v60  ;;  %v15859_v44 = vpop.f32.mrf.mxu1  ;;  %v10649_v19 = vld [vmem:[#allocation3 + $0x22] sm:$0xff]  ;;  %v19804_v60 = vpop.f32.mrf.mxu0 }
 0x5b8   : > { %8731 = vrot.lane.b32.xlu1 %v15201_v6, %s16483_s16  ;;  %8025 = vrot.lane.b32.xlu0 %v19693_v15, %s20820_s17  ;;  %v9952_v1 = vadd.f32 %v19685_v53, %v9791_v32  ;;  %v15860_v7 = vadd.f32 %v15859_v44, %v15858_v18  ;;  %v15233_v53 = vpack.c.bf16 %v8828_v54, %v8828_v54  ;;  %v10648_v18 = vld [vmem:[#allocation3 + $0x1a] sm:$0xff] }
 0x5b9   : > { %v15298_v15 = vpack.c.bf16 %v10390_v47, %v10390_v47  ;;  %v15332_v54 = vpack.c.bf16 %v10648_v18, %v10648_v18 }
 0x5ba   : > { %v8968_v48 = vpop.permute.xlu1 %8967  ;;  %vm10072_vm1 = vcmp.ge.f32.partialorder %v9952_v1, 0.0  ;;  %v10104_v28 = vmul.f32 0.01, %v9952_v1  ;;  %v9794_v17 = vadd.f32 %v15860_v7, %v19700_v4  ;;  %v7498_v26 = vpop.permute.xlu0 %7497  ;;  %v15333_v7 = vpack.c.bf16 %v10649_v19, %v10649_v19 }
 0x5bb   : > { %9042 = vst.msk [vmem:[#allocation4 + $0x100] sm:$0xf] %vm1927_vm0, %v8968_v48 }
 0x5bc   : > { %7571 = vst.msk [vmem:[#allocation4 + $0x108] sm:$0xf] %vm1413_vm5, %v7498_v26  ;;  %8027 = vrot.lane.b32.xlu1 %v19706_v23, %s20820_s17  ;;  %8985 = vrot.lane.b32.xlu0 %v15232_v2, %s20820_s17  ;;  %v10136_v33 = vsel %vm10072_vm1, %v9952_v1, %v10104_v28  ;;  %v9955_v45 = vadd.f32 %v19710_v25, %v9794_v17  ;;  %v10647_v25 = vld [vmem:[#allocation3 + $0xa] sm:$0xff]  ;;  %v9962_v28 = vpop.f32.mrf.mxu0 }
 0x5bd   : > { %10168 = vst.msk [vmem:[#allocation3 + $0x31] sm:$0xff] %vm433_vm2, %v10136_v33  ;;  %v15299_v23 = vpack.c.bf16 %v10391_v3, %v10391_v3  ;;  %v15331_v59 = vpack.c.bf16 %v10647_v25, %v10647_v25 }
 0x5be   : > { %v7500_v5 = vpop.permute.xlu1 %7499  ;;  %vm10073_vm3 = vcmp.ge.f32.partialorder %v9955_v45, 0.0  ;;  %v10105_v51 = vmul.f32 0.01, %v9955_v45  ;;  %v8458_v49 = vpop.permute.xlu0 %8457  ;;  %v9285_v12 = vld [vmem:[#allocation4 + $0xf0] sm:$0xff] }
 0x5bf   : > { %7572 = vst.msk [vmem:[#allocation4 + $0x114] sm:$0xf] %vm1413_vm5, %v7500_v5  ;;  %8531 = vst.msk [vmem:[#allocation4 + $0x10c] sm:$0xf] %vm1413_vm5, %v8458_v49 }
 0x5c0   : > { %8987 = vrot.lane.b32.xlu1 %v15233_v53, %s20820_s17  ;;  %10518 = vrot.lane.b32.xlu0 %v15298_v15, %s20819_s26  ;;  %v10137_v42 = vsel %vm10073_vm3, %v9955_v45, %v10105_v51 }
 0x5c1   : > { %10169 = vst.msk [vmem:[#allocation3 + $0x39] sm:$0xff] %vm433_vm2, %v10137_v42 }
 0x5c2   : > { %v8460_v61 = vpop.permute.xlu1 %8459  ;;  %v9287_v40 = vld [vmem:[#allocation4 + $0xfc] sm:$0xff]  ;;  %v7754_v36 = vpop.permute.xlu0 %7753 }
 0x5c3   : > { %v16335_v46 = vld [vmem:[#allocation4 + $0xf4] ss:$12 sps:$4 sm:$0xff]   ;;  %8532 = vst.msk [vmem:[#allocation4 + $0x118] sm:$0xf] %vm1413_vm5, %v8460_v61  ;;  %v14003_v22 = vcombine.low %v9285_v12, %v9287_v40 }
 0x5c4   : > { %7827 = vst.msk [vmem:[#allocation4 + $0x108] sm:$0xf] %vm1670_vm7, %v7754_v36  ;;  %10520 = vrot.lane.b32.xlu1 %v15299_v23, %s20819_s26  ;;  %10774 = vrot.lane.b32.xlu0 %v15330_v39, %s16483_s16  ;;  %v10904_v11 = vld [vmem:[#allocation3 + $0x30] sm:$0xff]  ;;  %v15861_v37 = vpop.f32.mrf.mxu1 }
 0x5c5   : > { %9860 = vmatprep.mubr.bf16.mxu1 %v16335_v46  ;;  %v11160_v41 = vld [vmem:[#allocation3 + $0x31] sm:$0xff]  ;;  %v19786_v50 = vpack.c.bf16 %v10904_v11, %v10904_v11 }
 0x5c6   : > { %v7756_v8 = vpop.permute.xlu1 %7755  ;;  %9861 = vmatmul.mubr.bf16.gmra.mxu1 %v14003_v22  ;;  %v19788_v34 = vpack.c.bf16 %v11160_v41, %v11160_v41  ;;  %v8714_v35 = vpop.permute.xlu0 %8713  ;;  %v10394_v45 = vld [vmem:[#allocation3 + $0x31] sm:$0xff] }
 0x5c7   : > { %7828 = vst.msk [vmem:[#allocation4 + $0x114] sm:$0xf] %vm1670_vm7, %v7756_v8  ;;  %8787 = vst.msk [vmem:[#allocation4 + $0x10c] sm:$0xf] %vm1670_vm7, %v8714_v35  ;;  %v15862_v0 = vpop.f32.mrf.mxu1  ;;  %v15302_v5 = vpack.c.bf16 %v10394_v45, %v10394_v45 }
 0x5c8   : > { %10776 = vrot.lane.b32.xlu1 %v15331_v59, %s16483_s16  ;;  %10522 = vrot.lane.b32.xlu0 %v15300_v10, %s20819_s26  ;;  %10362 = vst.msk [vmem:[#allocation4 + $0x30] sm:$0xf] %vm1156_vm6, %v19786_v50  ;;  %11320 = vst.msk [vmem:[#allocation4 + $0x1c] sm:$0xf] %vm1156_vm6, %v19788_v34  ;;  %v15863_v57 = vadd.f32 %v15862_v0, %v15861_v37  ;;  %v10395_v14 = vld [vmem:[#allocation3 + $0x39] sm:$0xff] }
 0x5c9   : > { %v15864_v24 = vpop.f32.mrf.mxu1  ;;  %v19798_v56 = vpack.c.bf16 %v10395_v14, %v10395_v14  ;;  %v10905_v6 = vld [vmem:[#allocation3 + $0x38] sm:$0xff] }
 0x5ca   : > { %v8716_v16 = vpop.permute.xlu1 %8715  ;;  %v12118_v20 = vld [vmem:[#allocation3 + $0x32] sm:$0xff]  ;;  %v9799_v55 = vadd.f32 %v15863_v57, %v19700_v4  ;;  %v8010_v38 = vpop.permute.xlu0 %8009  ;;  %v19802_v27 = vpack.c.bf16 %v10905_v6, %v10905_v6  ;;  %v12119_v13 = vld [vmem:[#allocation3 + $0x3a] sm:$0xff] }
 0x5cb   : > { %8788 = vst.msk [vmem:[#allocation4 + $0x118] sm:$0xf] %vm1670_vm7, %v8716_v16  ;;  %v15522_v32 = vpack.c.bf16 %v12118_v20, %v12118_v20  ;;  %v15865_v58 = vpop.f32.mrf.mxu1  ;;  %v15523_v43 = vpack.c.bf16 %v12119_v13, %v12119_v13  ;;  %v10651_v22 = vld [vmem:[#allocation3 + $0x3a] sm:$0xff] }
 0x5cc   : > { %8083 = vst.msk [vmem:[#allocation4 + $0x108] sm:$0xf] %vm1927_vm0, %v8010_v38  ;;  %10524 = vrot.lane.b32.xlu1 %v15301_v21, %s20819_s26  ;;  %11030 = vrot.lane.b32.xlu0 %v19736_v62, %s20820_s17  ;;  %v9960_v44 = vadd.f32 %v9959_v52, %v9799_v55  ;;  %v15866_v2 = vadd.f32 %v15865_v58, %v15864_v24  ;;  %v10650_v52 = vld [vmem:[#allocation3 + $0x32] sm:$0xff] }
 0x5cd   : > { %11321 = vst.msk [vmem:[#allocation4 + $0x28] sm:$0xf] %vm1156_vm6, %v19798_v56  ;;  %10363 = vst.msk [vmem:[#allocation4 + $0x3c] sm:$0xf] %vm1156_vm6, %v19802_v27  ;;  %v15335_v41 = vpack.c.bf16 %v10651_v22, %v10651_v22 }
 0x5ce   : > { %12278 = vst.msk [vmem:[#allocation4 + $0x8] sm:$0xf] %vm1156_vm6, %v15522_v32  ;;  %v8012_v1 = vpop.permute.xlu1 %8011  ;;  %12279 = vst.msk [vmem:[#allocation4 + $0x14] sm:$0xf] %vm1156_vm6, %v15523_v43  ;;  %vm10074_vm4 = vcmp.ge.f32.partialorder %v9960_v44, 0.0  ;;  %v9802_v62 = vadd.f32 %v15866_v2, %v19700_v4  ;;  %v8970_v48 = vpop.permute.xlu0 %8969 }
 0x5cf   : > { %v10106_v47 = vmul.f32 0.01, %v9960_v44  ;;  %8084 = vst.msk [vmem:[#allocation4 + $0x114] sm:$0xf] %vm1927_vm0, %v8012_v1  ;;  %9043 = vst.msk [vmem:[#allocation4 + $0x10c] sm:$0xf] %vm1927_vm0, %v8970_v48 }
 0x5d0   : > { %10780 = vrot.lane.b32.xlu1 %v15333_v7, %s16483_s16  ;;  %10778 = vrot.lane.b32.xlu0 %v15332_v54, %s16483_s16  ;;  %v9963_v26 = vadd.f32 %v9962_v28, %v9802_v62  ;;  %v19884_v28 = vpop.f32.mrf.mxu0 }
 0x5d1   : > { %v10138_v17 = vsel %vm10074_vm4, %v9960_v44, %v10106_v47 }
 0x5d2   : > { %10170 = vst.msk [vmem:[#allocation3 + $0x49] sm:$0xff] %vm433_vm2, %v10138_v17  ;;  %v8972_v53 = vpop.permute.xlu1 %8971  ;;  %vm10075_vm8 = vcmp.ge.f32.partialorder %v9963_v26, 0.0  ;;  %v10107_v15 = vmul.f32 0.01, %v9963_v26  ;;  %v7502_v33 = vpop.permute.xlu0 %7501 }
 0x5d3   : > { %9044 = vst.msk [vmem:[#allocation4 + $0x118] sm:$0xf] %vm1927_vm0, %v8972_v53 }
 0x5d4   : > { %7573 = vst.msk [vmem:[#allocation4 + $0x120] sm:$0xf] %vm1413_vm5, %v7502_v33  ;;  %11480 = vrot.lane.b32.xlu1 %v15333_v7, %s20819_s26  ;;  %11478 = vrot.lane.b32.xlu0 %v15332_v54, %s20819_s26  ;;  %v10139_v3 = vsel %vm10075_vm8, %v9963_v26, %v10107_v15 }
 0x5d5   : > { %10171 = vst.msk [vmem:[#allocation3 + $0x51] sm:$0xff] %vm433_vm2, %v10139_v3 }
 0x5d6   : > { %v7504_v31 = vpop.permute.xlu1 %7503  ;;  %v8462_v51 = vpop.permute.xlu0 %8461  ;;  %v9289_v42 = vld [vmem:[#allocation4 + $0x108] sm:$0xff] }
 0x5d7   : > { %7574 = vst.msk [vmem:[#allocation4 + $0x12c] sm:$0xf] %vm1413_vm5, %v7504_v31  ;;  %8533 = vst.msk [vmem:[#allocation4 + $0x124] sm:$0xf] %vm1413_vm5, %v8462_v51 }
 0x5d8   : > { %11032 = vrot.lane.b32.xlu1 %v19747_v9, %s20820_s17  ;;  %10526 = vrot.lane.b32.xlu0 %v15302_v5, %s20819_s26 }
 0x5d9   : > { %v10906_v49 = vld [vmem:[#allocation3 + $0x48] sm:$0xff] }
 0x5da   : > { %v11162_v23 = vld [vmem:[#allocation3 + $0x49] sm:$0xff]  ;;  %v8464_v39 = vpop.permute.xlu1 %8463  ;;  %v19832_v12 = vpack.c.bf16 %v10906_v49, %v10906_v49  ;;  %v7758_v46 = vpop.permute.xlu0 %7757 }
 0x5db   : > { %v9291_v25 = vld [vmem:[#allocation4 + $0x114] sm:$0xff]  ;;  %v15398_v40 = vpack.c.bf16 %v11162_v23, %v11162_v23  ;;  %8534 = vst.msk [vmem:[#allocation4 + $0x130] sm:$0xf] %vm1413_vm5, %v8464_v39  ;;  %v9975_v39 = vpop.f32.mrf.mxu0 }
 0x5dc   : > { %v16337_v61 = vld [vmem:[#allocation4 + $0x10c] ss:$12 sps:$4 sm:$0xff]   ;;  %v14006_v36 = vcombine.low %v9289_v42, %v9291_v25  ;;  %7829 = vst.msk [vmem:[#allocation4 + $0x120] sm:$0xf] %vm1670_vm7, %v7758_v46  ;;  %10528 = vrot.lane.b32.xlu1 %v19798_v56, %s20819_s26  ;;  %11034 = vrot.lane.b32.xlu0 %v19786_v50, %s20820_s17  ;;  %v10397_v9 = vld [vmem:[#allocation3 + $0x51] sm:$0xff]  ;;  %v15867_v11 = vpop.f32.mrf.mxu1  ;;  %v15334_v56 = vpack.c.bf16 %v10650_v52, %v10650_v52 }
 0x5dd   : > { %10364 = vst.msk [vmem:[#allocation4 + $0x48] sm:$0xf] %vm1156_vm6, %v19832_v12  ;;  %11322 = vst.msk [vmem:[#allocation4 + $0x34] sm:$0xf] %vm1156_vm6, %v15398_v40  ;;  %9868 = vmatprep.mubr.bf16.mxu1 %v16337_v61  ;;  %v10907_v30 = vld [vmem:[#allocation3 + $0x50] sm:$0xff]  ;;  %v19843_v8 = vpack.c.bf16 %v10397_v9, %v10397_v9 }
 0x5de   : > { %v7760_v59 = vpop.permute.xlu1 %7759  ;;  %9869 = vmatmul.mubr.bf16.gmra.mxu1 %v14006_v36  ;;  %v19845_v37 = vpack.c.bf16 %v10907_v30, %v10907_v30  ;;  %v12120_v10 = vld [vmem:[#allocation3 + $0x4a] sm:$0xff]  ;;  %v12121_v35 = vld [vmem:[#allocation3 + $0x52] sm:$0xff]  ;;  %v8718_v29 = vpop.permute.xlu0 %8717 }
 0x5df   : > { %7830 = vst.msk [vmem:[#allocation4 + $0x12c] sm:$0xf] %vm1670_vm7, %v7760_v59  ;;  %v15524_v0 = vpack.c.bf16 %v12120_v10, %v12120_v10  ;;  %v15525_v57 = vpack.c.bf16 %v12121_v35, %v12121_v35  ;;  %8789 = vst.msk [vmem:[#allocation4 + $0x124] sm:$0xf] %vm1670_vm7, %v8718_v29  ;;  %v15868_v14 = vpop.f32.mrf.mxu1  ;;  %v10396_v58 = vld [vmem:[#allocation3 + $0x49] sm:$0xff]  ;;  %v10653_v62 = vld [vmem:[#allocation3 + $0x52] sm:$0xff]  ;;  %v19910_v10 = vpop.f32.mrf.mxu0 }
 0x5e0   : > { %10784 = vrot.lane.b32.xlu1 %v15335_v41, %s16483_s16  ;;  %11734 = vrot.lane.b32.xlu0 %v19786_v50, %s16483_s16  ;;  %10365 = vst.msk [vmem:[#allocation4 + $0x54] sm:$0xf] %vm1156_vm6, %v19845_v37  ;;  %11323 = vst.msk [vmem:[#allocation4 + $0x40] sm:$0xf] %vm1156_vm6, %v19843_v8  ;;  %v15869_v16 = vadd.f32 %v15868_v14, %v15867_v11  ;;  %v15304_v2 = vpack.c.bf16 %v10396_v58, %v10396_v58  ;;  %v10652_v22 = vld [vmem:[#allocation3 + $0x4a] sm:$0xff] }
 0x5e1   : > { %12280 = vst.msk [vmem:[#allocation4 + $0x20] sm:$0xf] %vm1156_vm6, %v15524_v0  ;;  %12281 = vst.msk [vmem:[#allocation4 + $0x2c] sm:$0xf] %vm1156_vm6, %v15525_v57  ;;  %v15870_v21 = vpop.f32.mrf.mxu1  ;;  %v15337_v26 = vpack.c.bf16 %v10653_v62, %v10653_v62  ;;  %v16348_v11 = vld [vmem:[#allocation4 + $0x170] ss:$12 sps:$4 sm:$0xff]   ;;  %v15336_v52 = vpack.c.bf16 %v10652_v22, %v10652_v22 }
 0x5e2   : > { %v8720_v24 = vpop.permute.xlu1 %8719  ;;  %v9807_v6 = vadd.f32 %v15869_v16, %v19700_v4  ;;  %v8014_v50 = vpop.permute.xlu0 %8013  ;;  %16142 = vmatprep.subr.msk.bf16.mxu0 %vm433_vm2, %v16348_v11 }
 0x5e3   : > { %8790 = vst.msk [vmem:[#allocation4 + $0x130] sm:$0xf] %vm1670_vm7, %v8720_v24  ;;  %v15871_v20 = vpop.f32.mrf.mxu1 }
 0x5e4   : > { %8085 = vst.msk [vmem:[#allocation4 + $0x120] sm:$0xf] %vm1927_vm0, %v8014_v50  ;;  %11484 = vrot.lane.b32.xlu1 %v15335_v41, %s20819_s26  ;;  %10782 = vrot.lane.b32.xlu0 %v15334_v56, %s16483_s16  ;;  %v9968_v55 = vadd.f32 %v19781_v63, %v9807_v6  ;;  %v15872_v38 = vadd.f32 %v15871_v20, %v15870_v21  ;;  %v9978_v6 = vpop.f32.mrf.mxu0 }
 0x5e6   : > { %v8016_v19 = vpop.permute.xlu1 %8015  ;;  %vm10076_vm9 = vcmp.ge.f32.partialorder %v9968_v55, 0.0  ;;  %v10108_v18 = vmul.f32 0.01, %v9968_v55  ;;  %v9810_v13 = vadd.f32 %v15872_v38, %v19700_v4  ;;  %v8974_v32 = vpop.permute.xlu0 %8973 }
 0x5e7   : > { %8086 = vst.msk [vmem:[#allocation4 + $0x12c] sm:$0xf] %vm1927_vm0, %v8016_v19  ;;  %9045 = vst.msk [vmem:[#allocation4 + $0x124] sm:$0xf] %vm1927_vm0, %v8974_v32 }
 0x5e8   : > { %11036 = vrot.lane.b32.xlu1 %v19802_v27, %s20820_s17  ;;  %11482 = vrot.lane.b32.xlu0 %v15334_v56, %s20819_s26  ;;  %v10140_v43 = vsel %vm10076_vm9, %v9968_v55, %v10108_v18  ;;  %v9971_v63 = vadd.f32 %v19804_v60, %v9810_v13 }
 0x5e9   : > { %10172 = vst.msk [vmem:[#allocation3 + $0x61] sm:$0xff] %vm433_vm2, %v10140_v43 }
 0x5ea   : > { %v8976_v44 = vpop.permute.xlu1 %8975  ;;  %vm10077_vm10 = vcmp.ge.f32.partialorder %v9971_v63, 0.0  ;;  %v10109_v1 = vmul.f32 0.01, %v9971_v63  ;;  %v7506_v7 = vpop.permute.xlu0 %7505 }
 0x5eb   : > { %9046 = vst.msk [vmem:[#allocation4 + $0x130] sm:$0xf] %vm1927_vm0, %v8976_v44 }
 0x5ec   : > { %7575 = vst.msk [vmem:[#allocation4 + $0x138] sm:$0xf] %vm1413_vm5, %v7506_v7  ;;  %11736 = vrot.lane.b32.xlu1 %v19802_v27, %s16483_s16  ;;  %10530 = vrot.lane.b32.xlu0 %v15304_v2, %s20819_s26  ;;  %v10141_v54 = vsel %vm10077_vm10, %v9971_v63, %v10109_v1 }
 0x5ed   : > { %10173 = vst.msk [vmem:[#allocation3 + $0x69] sm:$0xff] %vm433_vm2, %v10141_v54 }
 0x5ee   : > { %v7508_v60 = vpop.permute.xlu1 %7507  ;;  %v8466_v47 = vpop.permute.xlu0 %8465  ;;  %v9293_v53 = vld [vmem:[#allocation4 + $0x120] sm:$0xff] }
 0x5ef   : > { %7576 = vst.msk [vmem:[#allocation4 + $0x144] sm:$0xf] %vm1413_vm5, %v7508_v60  ;;  %8535 = vst.msk [vmem:[#allocation4 + $0x13c] sm:$0xf] %vm1413_vm5, %v8466_v47 }
 0x5f0   : > { %10532 = vrot.lane.b32.xlu1 %v19843_v8, %s20819_s26  ;;  %11038 = vrot.lane.b32.xlu0 %v19832_v12, %s20820_s17  ;;  %v10908_v48 = vld [vmem:[#allocation3 + $0x60] sm:$0xff] }
 0x5f1   : > { %v11164_v27 = vld [vmem:[#allocation3 + $0x61] sm:$0xff]  ;;  %v19886_v45 = vpack.c.bf16 %v10908_v48, %v10908_v48 }
 0x5f2   : > { %v8468_v17 = vpop.permute.xlu1 %8467  ;;  %v9295_v15 = vld [vmem:[#allocation4 + $0x12c] sm:$0xff]  ;;  %v15400_v3 = vpack.c.bf16 %v11164_v27, %v11164_v27  ;;  %v7762_v31 = vpop.permute.xlu0 %7761 }
 0x5f3   : > { %v16339_v33 = vld [vmem:[#allocation4 + $0x124] ss:$12 sps:$4 sm:$0xff]   ;;  %8536 = vst.msk [vmem:[#allocation4 + $0x148] sm:$0xf] %vm1413_vm5, %v8468_v17  ;;  %v14009_v5 = vcombine.low %v9293_v53, %v9295_v15 }
 0x5f4   : > { %7831 = vst.msk [vmem:[#allocation4 + $0x138] sm:$0xf] %vm1670_vm7, %v7762_v31  ;;  %10788 = vrot.lane.b32.xlu1 %v15337_v26, %s16483_s16  ;;  %11738 = vrot.lane.b32.xlu0 %v19832_v12, %s16483_s16  ;;  %v15873_v51 = vpop.f32.mrf.mxu1  ;;  %v10399_v49 = vld [vmem:[#allocation3 + $0x69] sm:$0xff]  ;;  %v10398_v20 = vld [vmem:[#allocation3 + $0x61] sm:$0xff] }
 0x5f5   : > { %10366 = vst.msk [vmem:[#allocation4 + $0x60] sm:$0xf] %vm1156_vm6, %v19886_v45  ;;  %11324 = vst.msk [vmem:[#allocation4 + $0x4c] sm:$0xf] %vm1156_vm6, %v15400_v3  ;;  %9876 = vmatprep.mubr.bf16.mxu1 %v16339_v33  ;;  %v10909_v23 = vld [vmem:[#allocation3 + $0x68] sm:$0xff]  ;;  %v19896_v25 = vpack.c.bf16 %v10399_v49, %v10399_v49  ;;  %v15306_v13 = vpack.c.bf16 %v10398_v20, %v10398_v20 }
 0x5f6   : > { %v7764_v42 = vpop.permute.xlu1 %7763  ;;  %9877 = vmatmul.mubr.bf16.gmra.mxu1 %v14009_v5  ;;  %v19898_v61 = vpack.c.bf16 %v10909_v23, %v10909_v23  ;;  %v12122_v40 = vld [vmem:[#allocation3 + $0x62] sm:$0xff]  ;;  %v12123_v46 = vld [vmem:[#allocation3 + $0x6a] sm:$0xff]  ;;  %v8722_v12 = vpop.permute.xlu0 %8721 }
 0x5f7   : > { %7832 = vst.msk [vmem:[#allocation4 + $0x144] sm:$0xf] %vm1670_vm7, %v7764_v42  ;;  %v15874_v36 = vpop.f32.mrf.mxu1  ;;  %v15526_v9 = vpack.c.bf16 %v12122_v40, %v12122_v40  ;;  %v15527_v30 = vpack.c.bf16 %v12123_v46, %v12123_v46  ;;  %8791 = vst.msk [vmem:[#allocation4 + $0x13c] sm:$0xf] %vm1670_vm7, %v8722_v12  ;;  %v10655_v63 = vld [vmem:[#allocation3 + $0x6a] sm:$0xff] }
 0x5f8   : > { %11488 = vrot.lane.b32.xlu1 %v15337_v26, %s20819_s26  ;;  %11994 = vrot.lane.b32.xlu0 %v15304_v2, %s20820_s17  ;;  %v15875_v59 = vadd.f32 %v15874_v36, %v15873_v51  ;;  %10367 = vst.msk [vmem:[#allocation4 + $0x6c] sm:$0xf] %vm1156_vm6, %v19898_v61  ;;  %11325 = vst.msk [vmem:[#allocation4 + $0x58] sm:$0xf] %vm1156_vm6, %v19896_v25  ;;  %v15339_v54 = vpack.c.bf16 %v10655_v63, %v10655_v63 }
 0x5f9   : > { %v15876_v41 = vpop.f32.mrf.mxu1  ;;  %12282 = vst.msk [vmem:[#allocation4 + $0x38] sm:$0xf] %vm1156_vm6, %v15526_v9  ;;  %12283 = vst.msk [vmem:[#allocation4 + $0x44] sm:$0xf] %vm1156_vm6, %v15527_v30 }
 0x5fa   : > { %v9815_v35 = vadd.f32 %v15875_v59, %v19700_v4  ;;  %v8724_v29 = vpop.permute.xlu1 %8723  ;;  %v8018_v0 = vpop.permute.xlu0 %8017 }
 0x5fb   : > { %8792 = vst.msk [vmem:[#allocation4 + $0x148] sm:$0xf] %vm1670_vm7, %v8724_v29  ;;  %v15877_v57 = vpop.f32.mrf.mxu1 }
 0x5fc   : > { %v9976_v14 = vadd.f32 %v9975_v39, %v9815_v35  ;;  %8087 = vst.msk [vmem:[#allocation4 + $0x138] sm:$0xf] %vm1927_vm0, %v8018_v0  ;;  %11040 = vrot.lane.b32.xlu1 %v19845_v37, %s20820_s17  ;;  %10786 = vrot.lane.b32.xlu0 %v15336_v52, %s16483_s16  ;;  %v15878_v16 = vadd.f32 %v15877_v57, %v15876_v41  ;;  %v10654_v39 = vld [vmem:[#allocation3 + $0x62] sm:$0xff] }
 0x5fd   : > { %v15338_v12 = vpack.c.bf16 %v10654_v39, %v10654_v39 }
 0x5fe   : > { %vm10078_vm11 = vcmp.ge.f32.partialorder %v9976_v14, 0.0  ;;  %v10110_v24 = vmul.f32 0.01, %v9976_v14  ;;  %v9818_v21 = vadd.f32 %v15878_v16, %v19700_v4  ;;  %v8020_v56 = vpop.permute.xlu1 %8019  ;;  %v8978_v50 = vpop.permute.xlu0 %8977 }
 0x5ff   : > { %8088 = vst.msk [vmem:[#allocation4 + $0x144] sm:$0xf] %vm1927_vm0, %v8020_v56  ;;  %9047 = vst.msk [vmem:[#allocation4 + $0x13c] sm:$0xf] %vm1927_vm0, %v8978_v50 }
 0x600   : > { %v10142_v55 = vsel %vm10078_vm11, %v9976_v14, %v10110_v24  ;;  %v9979_v38 = vadd.f32 %v9978_v6, %v9818_v21  ;;  %11740 = vrot.lane.b32.xlu1 %v19845_v37, %s16483_s16  ;;  %11486 = vrot.lane.b32.xlu0 %v15336_v52, %s20819_s26 }
 0x601   : > { %10174 = vst.msk [vmem:[#allocation3 + $0x79] sm:$0xff] %vm433_vm2, %v10142_v55 }
 0x602   : > { %vm10079_vm12 = vcmp.ge.f32.partialorder %v9979_v38, 0.0  ;;  %v10111_v19 = vmul.f32 0.01, %v9979_v38  ;;  %v8980_v18 = vpop.permute.xlu1 %8979  ;;  %v7510_v32 = vpop.permute.xlu0 %7509 }
 0x603   : > { %9048 = vst.msk [vmem:[#allocation4 + $0x148] sm:$0xf] %vm1927_vm0, %v8980_v18 }
 0x604   : > { %v10143_v58 = vsel %vm10079_vm12, %v9979_v38, %v10111_v19  ;;  %7577 = vst.msk [vmem:[#allocation4 + $0x150] sm:$0xf] %vm1413_vm5, %v7510_v32  ;;  %11996 = vrot.lane.b32.xlu1 %v19843_v8, %s20820_s17  ;;  %10534 = vrot.lane.b32.xlu0 %v15306_v13, %s20819_s26 }
 0x605   : > { %10175 = vst.msk [vmem:[#allocation3 + $0x81] sm:$0xff] %vm433_vm2, %v10143_v58 }
 0x606   : > { %v7512_v37 = vpop.permute.xlu1 %7511  ;;  %v8470_v43 = vpop.permute.xlu0 %8469  ;;  %v9297_v60 = vld [vmem:[#allocation4 + $0x138] sm:$0xff] }
 0x607   : > { %7578 = vst.msk [vmem:[#allocation4 + $0x15c] sm:$0xf] %vm1413_vm5, %v7512_v37  ;;  %8537 = vst.msk [vmem:[#allocation4 + $0x154] sm:$0xf] %vm1413_vm5, %v8470_v43 }
 0x608   : > { %10536 = vrot.lane.b32.xlu1 %v19896_v25, %s20819_s26  ;;  %11042 = vrot.lane.b32.xlu0 %v19886_v45, %s20820_s17  ;;  %v10400_v44 = vld [vmem:[#allocation3 + $0x79] sm:$0xff] }
 0x609   : > { %v10910_v2 = vld [vmem:[#allocation3 + $0x78] sm:$0xff]  ;;  %v19938_v8 = vpack.c.bf16 %v10400_v44, %v10400_v44 }
 0x60a   : > { %v19940_v1 = vpack.c.bf16 %v10910_v2, %v10910_v2  ;;  %v8472_v7 = vpop.permute.xlu1 %8471  ;;  %v9299_v47 = vld [vmem:[#allocation4 + $0x144] sm:$0xff]  ;;  %v7766_v48 = vpop.permute.xlu0 %7765 }
 0x60b   : > { %v16341_v62 = vld [vmem:[#allocation4 + $0x13c] ss:$12 sps:$4 sm:$0xff]   ;;  %8538 = vst.msk [vmem:[#allocation4 + $0x160] sm:$0xf] %vm1413_vm5, %v8472_v7  ;;  %v14012_v27 = vcombine.low %v9297_v60, %v9299_v47 }
 0x60c   : > { %10368 = vst.msk [vmem:[#allocation4 + $0x78] sm:$0xf] %vm1156_vm6, %v19940_v1  ;;  %11326 = vst.msk [vmem:[#allocation4 + $0x64] sm:$0xf] %vm1156_vm6, %v19938_v8  ;;  %10792 = vrot.lane.b32.xlu1 %v15339_v54, %s16483_s16  ;;  %11742 = vrot.lane.b32.xlu0 %v19886_v45, %s16483_s16  ;;  %v10401_v17 = vld [vmem:[#allocation3 + $0x81] sm:$0xff] }
 0x60d   : > { %7833 = vst.msk [vmem:[#allocation4 + $0x150] sm:$0xf] %vm1670_vm7, %v7766_v48  ;;  %v10911_v26 = vld [vmem:[#allocation3 + $0x80] sm:$0xff]  ;;  %9884 = vmatprep.mubr.bf16.mxu1 %v16341_v62  ;;  %v19951_v53 = vpack.c.bf16 %v10401_v17, %v10401_v17 }
 0x60e   : > { %v19953_v15 = vpack.c.bf16 %v10911_v26, %v10911_v26  ;;  %v12124_v33 = vld [vmem:[#allocation3 + $0x7a] sm:$0xff]  ;;  %v12125_v3 = vld [vmem:[#allocation3 + $0x82] sm:$0xff]  ;;  %v7768_v31 = vpop.permute.xlu1 %7767  ;;  %v15879_v5 = vpop.f32.mrf.mxu1  ;;  %9885 = vmatmul.mubr.bf16.gmra.mxu1 %v14012_v27 }
 0x60f   : > { %v15528_v51 = vpack.c.bf16 %v12124_v33, %v12124_v33  ;;  %v15529_v49 = vpack.c.bf16 %v12125_v3, %v12125_v3  ;;  %7834 = vst.msk [vmem:[#allocation4 + $0x15c] sm:$0xf] %vm1670_vm7, %v7768_v31  ;;  %v8726_v23 = vpop.permute.xlu0 %8725  ;;  %v10657_v16 = vld [vmem:[#allocation3 + $0x82] sm:$0xff]  ;;  %v20026_v3 = vld [vmem:[%s20804_s9] ss:$0 sm:$0xff] }
 0x610   : > { %10369 = vst.msk [vmem:[#allocation4 + $0x84] sm:$0xf] %vm1156_vm6, %v19953_v15  ;;  %11327 = vst.msk [vmem:[#allocation4 + $0x70] sm:$0xf] %vm1156_vm6, %v19951_v53  ;;  %v15880_v45 = vpop.f32.mrf.mxu1  ;;  %11492 = vrot.lane.b32.xlu1 %v15339_v54, %s20819_s26  ;;  %11998 = vrot.lane.b32.xlu0 %v15306_v13, %s20820_s17  ;;  %v15341_v56 = vpack.c.bf16 %v10657_v16, %v10657_v16  ;;  %v19998_v13 = vpop.f32.mrf.mxu0  ;;  %v10656_v54 = vld [vmem:[#allocation3 + $0x7a] sm:$0xff] }
 0x611   : > { %8793 = vst.msk [vmem:[#allocation4 + $0x154] sm:$0xf] %vm1670_vm7, %v8726_v23  ;;  %v15881_v42 = vadd.f32 %v15880_v45, %v15879_v5  ;;  %v15340_v33 = vpack.c.bf16 %v10656_v54, %v10656_v54 }
 0x612   : > { %12284 = vst.msk [vmem:[#allocation4 + $0x50] sm:$0xf] %vm1156_vm6, %v15528_v51  ;;  %12285 = vst.msk [vmem:[#allocation4 + $0x5c] sm:$0xf] %vm1156_vm6, %v15529_v49  ;;  %v8728_v40 = vpop.permute.xlu1 %8727  ;;  %v15882_v46 = vpop.f32.mrf.mxu1 }
 0x613   : > { %v9823_v36 = vadd.f32 %v15881_v42, %v19700_v4  ;;  %8794 = vst.msk [vmem:[#allocation4 + $0x160] sm:$0xf] %vm1670_vm7, %v8728_v40  ;;  %v8022_v22 = vpop.permute.xlu0 %8021  ;;  %v9991_v62 = vpop.f32.mrf.mxu0 }
 0x614   : > { %8089 = vst.msk [vmem:[#allocation4 + $0x150] sm:$0xf] %vm1927_vm0, %v8022_v22  ;;  %v15883_v9 = vpop.f32.mrf.mxu1  ;;  %11044 = vrot.lane.b32.xlu1 %v19898_v61, %s20820_s17  ;;  %10790 = vrot.lane.b32.xlu0 %v15338_v12, %s16483_s16 }
 0x615   : > { %v9984_v30 = vadd.f32 %v19884_v28, %v9823_v36  ;;  %v15884_v59 = vadd.f32 %v15883_v9, %v15882_v46  ;;  %v20030_v5 = vpop.f32.mrf.mxu0 }
 0x616   : > { %v8024_v11 = vpop.permute.xlu1 %8023 }
 0x617   : > { %vm10080_vm13 = vcmp.ge.f32.partialorder %v9984_v30, 0.0  ;;  %v10112_v41 = vmul.f32 0.01, %v9984_v30  ;;  %v9826_v35 = vadd.f32 %v15884_v59, %v19700_v4  ;;  %8090 = vst.msk [vmem:[#allocation4 + $0x15c] sm:$0xf] %vm1927_vm0, %v8024_v11  ;;  %v8982_v29 = vpop.permute.xlu0 %8981  ;;  %v9994_v46 = vpop.f32.mrf.mxu0 }
 0x618   : > { %9049 = vst.msk [vmem:[#allocation4 + $0x154] sm:$0xf] %vm1927_vm0, %v8982_v29  ;;  %11744 = vrot.lane.b32.xlu1 %v19898_v61, %s16483_s16  ;;  %11490 = vrot.lane.b32.xlu0 %v15338_v12, %s20819_s26 }
 0x619   : > { %v10144_v52 = vsel %vm10080_vm13, %v9984_v30, %v10112_v41  ;;  %v9987_v0 = vadd.f32 %v19910_v10, %v9826_v35 }
 0x61a   : > { %10176 = vst.msk [vmem:[#allocation3 + $0x91] sm:$0xff] %vm433_vm2, %v10144_v52  ;;  %v8984_v28 = vpop.permute.xlu1 %8983 }
 0x61b   : > { %vm10081_vm14 = vcmp.ge.f32.partialorder %v9987_v0, 0.0  ;;  %v10113_v57 = vmul.f32 0.01, %v9987_v0  ;;  %9050 = vst.msk [vmem:[#allocation4 + $0x160] sm:$0xf] %vm1927_vm0, %v8984_v28  ;;  %v7514_v4 = vpop.permute.xlu0 %7513 }
 0x61c   : > { %7579 = vst.msk [vmem:[#allocation4 + $0x168] sm:$0xf] %vm1413_vm5, %v7514_v4  ;;  %12000 = vrot.lane.b32.xlu1 %v19896_v25, %s20820_s17  ;;  %10538 = vrot.lane.b32.xlu0 %v19938_v8, %s20819_s26 }
 0x61d   : > { %v10145_v61 = vsel %vm10081_vm14, %v9987_v0, %v10113_v57 }
 0x61e   : > { %10177 = vst.msk [vmem:[#allocation3 + $0x99] sm:$0xff] %vm433_vm2, %v10145_v61  ;;  %v7516_v10 = vpop.permute.xlu1 %7515 }
 0x61f   : > { %7580 = vst.msk [vmem:[#allocation4 + $0x174] sm:$0xf] %vm1413_vm5, %v7516_v10  ;;  %v8474_v14 = vpop.permute.xlu0 %8473  ;;  %v9301_v6 = vld [vmem:[#allocation4 + $0x150] sm:$0xff] }
 0x620   : > { %8539 = vst.msk [vmem:[#allocation4 + $0x16c] sm:$0xf] %vm1413_vm5, %v8474_v14  ;;  %10540 = vrot.lane.b32.xlu1 %v19951_v53, %s20819_s26  ;;  %11046 = vrot.lane.b32.xlu0 %v19940_v1, %s20820_s17 }
 0x621   : > { %v10402_v25 = vld [vmem:[#allocation3 + $0x91] sm:$0xff] }
 0x622   : > { %v10912_v24 = vld [vmem:[#allocation3 + $0x90] sm:$0xff]  ;;  %v8476_v21 = vpop.permute.xlu1 %8475  ;;  %v19993_v55 = vpack.c.bf16 %v10402_v25, %v10402_v25 }
 0x623   : > { %v9303_v50 = vld [vmem:[#allocation4 + $0x15c] sm:$0xff]  ;;  %v19995_v38 = vpack.c.bf16 %v10912_v24, %v10912_v24  ;;  %8540 = vst.msk [vmem:[#allocation4 + $0x178] sm:$0xf] %vm1413_vm5, %v8476_v21  ;;  %v7770_v19 = vpop.permute.xlu0 %7769 }
 0x624   : > { %v16343_v20 = vld [vmem:[#allocation4 + $0x154] ss:$12 sps:$4 sm:$0xff]   ;;  %v14015_v18 = vcombine.low %v9301_v6, %v9303_v50  ;;  %7835 = vst.msk [vmem:[#allocation4 + $0x168] sm:$0xf] %vm1670_vm7, %v7770_v19  ;;  %10796 = vrot.lane.b32.xlu1 %v15341_v56, %s16483_s16  ;;  %11746 = vrot.lane.b32.xlu0 %v19940_v1, %s16483_s16 }
 0x625   : > { %10370 = vst.msk [vmem:[#allocation4 + $0x90] sm:$0xf] %vm1156_vm6, %v19995_v38  ;;  %11328 = vst.msk [vmem:[#allocation4 + $0x7c] sm:$0xf] %vm1156_vm6, %v19993_v55  ;;  %9892 = vmatprep.mubr.bf16.mxu1 %v16343_v20  ;;  %v10403_v32 = vld [vmem:[#allocation3 + $0x99] sm:$0xff]  ;;  %v15885_v43 = vpop.f32.mrf.mxu1 }
 0x626   : > { %v10913_v58 = vld [vmem:[#allocation3 + $0x98] sm:$0xff]  ;;  %v7772_v37 = vpop.permute.xlu1 %7771  ;;  %9893 = vmatmul.mubr.bf16.gmra.mxu1 %v14015_v18  ;;  %v20008_v63 = vpack.c.bf16 %v10403_v32, %v10403_v32 }
 0x627   : > { %v20010_v44 = vpack.c.bf16 %v10913_v58, %v10913_v58  ;;  %v12126_v2 = vld [vmem:[#allocation3 + $0x92] sm:$0xff]  ;;  %v12127_v7 = vld [vmem:[#allocation3 + $0x9a] sm:$0xff]  ;;  %7836 = vst.msk [vmem:[#allocation4 + $0x174] sm:$0xf] %vm1670_vm7, %v7772_v37  ;;  %v8730_v1 = vpop.permute.xlu0 %8729  ;;  %v15886_v48 = vpop.f32.mrf.mxu1 }
 0x628   : > { %v15530_v60 = vpack.c.bf16 %v12126_v2, %v12126_v2  ;;  %v15531_v47 = vpack.c.bf16 %v12127_v7, %v12127_v7  ;;  %8795 = vst.msk [vmem:[#allocation4 + $0x16c] sm:$0xf] %vm1670_vm7, %v8730_v1  ;;  %11496 = vrot.lane.b32.xlu1 %v15341_v56, %s20819_s26  ;;  %12002 = vrot.lane.b32.xlu0 %v19938_v8, %s20820_s17  ;;  %v10659_v41 = vld [vmem:[#allocation3 + $0x9a] sm:$0xff]  ;;  %v10658_v19 = vld [vmem:[#allocation3 + $0x92] sm:$0xff] }
 0x629   : > { %10371 = vst.msk [vmem:[#allocation4 + $0x9c] sm:$0xf] %vm1156_vm6, %v20010_v44  ;;  %11329 = vst.msk [vmem:[#allocation4 + $0x88] sm:$0xf] %vm1156_vm6, %v20008_v63  ;;  %v15887_v27 = vadd.f32 %v15886_v48, %v15885_v43  ;;  %v15888_v26 = vpop.f32.mrf.mxu1  ;;  %v15343_v52 = vpack.c.bf16 %v10659_v41, %v10659_v41  ;;  %v15342_v7 = vpack.c.bf16 %v10658_v19, %v10658_v19 }
 0x62a   : > { %12286 = vst.msk [vmem:[#allocation4 + $0x68] sm:$0xf] %vm1156_vm6, %v15530_v60  ;;  %12287 = vst.msk [vmem:[#allocation4 + $0x74] sm:$0xf] %vm1156_vm6, %v15531_v47  ;;  %v8732_v17 = vpop.permute.xlu1 %8731 }
 0x62b   : > { %v9831_v8 = vadd.f32 %v20026_v3, %v15887_v27  ;;  %8796 = vst.msk [vmem:[#allocation4 + $0x178] sm:$0xf] %vm1670_vm7, %v8732_v17  ;;  %v8026_v31 = vpop.permute.xlu0 %8025  ;;  %v15889_v51 = vpop.f32.mrf.mxu1 }
 0x62c   : > { %8091 = vst.msk [vmem:[#allocation4 + $0x168] sm:$0xf] %vm1927_vm0, %v8026_v31  ;;  %11048 = vrot.lane.b32.xlu1 %v19953_v15, %s20820_s17  ;;  %10794 = vrot.lane.b32.xlu0 %v15340_v33, %s16483_s16  ;;  %v15890_v23 = vadd.f32 %v15889_v51, %v15888_v26 }
 0x62d   : > { %v9992_v49 = vadd.f32 %v9991_v62, %v9831_v8 }
 0x62e   : > { %v8028_v39 = vpop.permute.xlu1 %8027  ;;  %v9834_v42 = vadd.f32 %v20026_v3, %v15890_v23 }
 0x62f   : > { %vm10082_vm15 = vcmp.ge.f32.partialorder %v9992_v49, 0.0  ;;  %v10114_v45 = vmul.f32 0.01, %v9992_v49  ;;  %8092 = vst.msk [vmem:[#allocation4 + $0x174] sm:$0xf] %vm1927_vm0, %v8028_v39  ;;  %v8986_v40 = vpop.permute.xlu0 %8985 }
 0x630   : > { %9051 = vst.msk [vmem:[#allocation4 + $0x16c] sm:$0xf] %vm1927_vm0, %v8986_v40  ;;  %11748 = vrot.lane.b32.xlu1 %v19953_v15, %s16483_s16  ;;  %11494 = vrot.lane.b32.xlu0 %v15340_v33, %s20819_s26  ;;  %v9995_v36 = vadd.f32 %v9994_v46, %v9834_v42 }
 0x631   : > { %v10146_v12 = vsel %vm10082_vm15, %v9992_v49, %v10114_v45 }
 0x632   : > { %10178 = vst.msk [vmem:[#allocation3 + $0xa9] sm:$0xff] %vm433_vm2, %v10146_v12  ;;  %v8988_v22 = vpop.permute.xlu1 %8987  ;;  %vm10083_vm1 = vcmp.ge.f32.partialorder %v9995_v36, 0.0  ;;  %v10115_v9 = vmul.f32 0.01, %v9995_v36  ;;  %v20115_v12 = vpop.f32.mrf.mxu0 }
 0x633   : > { %9052 = vst.msk [vmem:[#allocation4 + $0x178] sm:$0xf] %vm1927_vm0, %v8988_v22  ;;  %v10519_v30 = vpop.permute.xlu0 %10518 }
 0x634   : > { %10614 = vst.msk [vmem:[#allocation4] sm:$0xf] %vm1413_vm5, %v10519_v30  ;;  %12004 = vrot.lane.b32.xlu1 %v19951_v53, %s20820_s17  ;;  %10542 = vrot.lane.b32.xlu0 %v19993_v55, %s20819_s26  ;;  %v10147_v15 = vsel %vm10083_vm1, %v9995_v36, %v10115_v9 }
 0x635   : > { %10179 = vst.msk [vmem:[#allocation3 + $0xb1] sm:$0xff] %vm433_vm2, %v10147_v15 }
 0x636   : > { %v10521_v59 = vpop.permute.xlu1 %10520 }
 0x637   : > { %10615 = vst.msk [vmem:[#allocation4 + $0xc] sm:$0xf] %vm1413_vm5, %v10521_v59  ;;  %v10775_v11 = vpop.permute.xlu0 %10774  ;;  %v9305_v0 = vld [vmem:[#allocation4 + $0x168] sm:$0xff] }
 0x638   : > { %10870 = vst.msk [vmem:[#allocation4] sm:$0xf] %vm1670_vm7, %v10775_v11  ;;  %10544 = vrot.lane.b32.xlu1 %v20008_v63, %s20819_s26  ;;  %11050 = vrot.lane.b32.xlu0 %v19995_v38, %s20820_s17 }
 0x639   : > { %v10404_v53 = vld [vmem:[#allocation3 + $0xa9] sm:$0xff] }
 0x63a   : > { %v10914_v35 = vld [vmem:[#allocation3 + $0xa8] sm:$0xff]  ;;  %v10777_v29 = vpop.permute.xlu1 %10776  ;;  %v20056_v4 = vpack.c.bf16 %v10404_v53, %v10404_v53 }
 0x63b   : > { %v9307_v28 = vld [vmem:[#allocation4 + $0x174] sm:$0xff]  ;;  %v20058_v61 = vpack.c.bf16 %v10914_v35, %v10914_v35  ;;  %10871 = vst.msk [vmem:[#allocation4 + $0xc] sm:$0xf] %vm1670_vm7, %v10777_v29  ;;  %v10523_v10 = vpop.permute.xlu0 %10522 }
 0x63c   : > { %v16346_v57 = vld [vmem:[#allocation4 + $0x16c] ss:$12 sps:$4 sm:$0xff]   ;;  %v14018_v14 = vcombine.low %v9305_v0, %v9307_v28  ;;  %10616 = vst.msk [vmem:[#allocation4 + $0x18] sm:$0xf] %vm1413_vm5, %v10523_v10  ;;  %10800 = vrot.lane.b32.xlu1 %v15343_v52, %s16483_s16  ;;  %11750 = vrot.lane.b32.xlu0 %v19995_v38, %s16483_s16  ;;  %v10405_v16 = vld [vmem:[#allocation3 + $0xb1] sm:$0xff] }
 0x63d   : > { %10372 = vst.msk [vmem:[#allocation4 + $0xa8] sm:$0xf] %vm1156_vm6, %v20058_v61  ;;  %11330 = vst.msk [vmem:[#allocation4 + $0x94] sm:$0xf] %vm1156_vm6, %v20056_v4  ;;  %9900 = vmatprep.mubr.bf16.mxu1 %v16346_v57  ;;  %v10915_v25 = vld [vmem:[#allocation3 + $0xb0] sm:$0xff]  ;;  %v15891_v21 = vpop.f32.mrf.mxu1  ;;  %v20069_v56 = vpack.c.bf16 %v10405_v16, %v10405_v16 }
 0x63e   : > { %v10525_v24 = vpop.permute.xlu1 %10524  ;;  %9901 = vmatmul.mubr.bf16.gmra.mxu1 %v14018_v14  ;;  %v20071_v6 = vpack.c.bf16 %v10915_v25, %v10915_v25  ;;  %v12128_v50 = vld [vmem:[#allocation3 + $0xaa] sm:$0xff]  ;;  %v12129_v20 = vld [vmem:[#allocation3 + $0xb2] sm:$0xff] }
 0x63f   : > { %10617 = vst.msk [vmem:[#allocation4 + $0x24] sm:$0xf] %vm1413_vm5, %v10525_v24  ;;  %v11031_v38 = vpop.permute.xlu0 %11030  ;;  %v15532_v18 = vpack.c.bf16 %v12128_v50, %v12128_v50  ;;  %v15533_v32 = vpack.c.bf16 %v12129_v20, %v12129_v20  ;;  %v15892_v58 = vpop.f32.mrf.mxu1  ;;  %v10661_v49 = vld [vmem:[#allocation3 + $0xb2] sm:$0xff]  ;;  %v10660_v53 = vld [vmem:[#allocation3 + $0xaa] sm:$0xff] }
 0x640   : > { %11126 = vst.msk [vmem:[#allocation4] sm:$0xf] %vm1927_vm0, %v11031_v38  ;;  %11500 = vrot.lane.b32.xlu1 %v15343_v52, %s20819_s26  ;;  %12006 = vrot.lane.b32.xlu0 %v19993_v55, %s20820_s17  ;;  %v15893_v37 = vadd.f32 %v15892_v58, %v15891_v21  ;;  %v15345_v39 = vpack.c.bf16 %v10661_v49, %v10661_v49  ;;  %v10007_v52 = vpop.f32.mrf.mxu0 }
 0x641   : > { %10373 = vst.msk [vmem:[#allocation4 + $0xb4] sm:$0xf] %vm1156_vm6, %v20071_v6  ;;  %11331 = vst.msk [vmem:[#allocation4 + $0xa0] sm:$0xf] %vm1156_vm6, %v20069_v56  ;;  %v15894_v2 = vpop.f32.mrf.mxu1  ;;  %v15344_v14 = vpack.c.bf16 %v10660_v53, %v10660_v53 }
 0x642   : > { %12288 = vst.msk [vmem:[#allocation4 + $0x80] sm:$0xf] %vm1156_vm6, %v15532_v18  ;;  %12289 = vst.msk [vmem:[#allocation4 + $0x8c] sm:$0xf] %vm1156_vm6, %v15533_v32  ;;  %v10781_v43 = vpop.permute.xlu1 %10780  ;;  %v9839_v1 = vadd.f32 %v20026_v3, %v15893_v37  ;;  %v20144_v25 = vpop.f32.mrf.mxu0 }
 0x643   : > { %10873 = vst.msk [vmem:[#allocation4 + $0x24] sm:$0xf] %vm1670_vm7, %v10781_v43  ;;  %v10779_v54 = vpop.permute.xlu0 %10778  ;;  %v15895_v55 = vpop.f32.mrf.mxu1 }
 0x644   : > { %10872 = vst.msk [vmem:[#allocation4 + $0x18] sm:$0xf] %vm1670_vm7, %v10779_v54  ;;  %11052 = vrot.lane.b32.xlu1 %v20010_v44, %s20820_s17  ;;  %10798 = vrot.lane.b32.xlu0 %v15342_v7, %s16483_s16  ;;  %v10000_v60 = vadd.f32 %v19998_v13, %v9839_v1  ;;  %v15896_v47 = vadd.f32 %v15895_v55, %v15894_v2  ;;  %v10010_v58 = vpop.f32.mrf.mxu0 }
 0x646   : > { %v11481_v62 = vpop.permute.xlu1 %11480  ;;  %vm10084_vm3 = vcmp.ge.f32.partialorder %v10000_v60, 0.0  ;;  %v10116_v48 = vmul.f32 0.01, %v10000_v60  ;;  %v9842_v27 = vadd.f32 %v20026_v3, %v15896_v47 }
 0x647   : > { %11575 = vst.msk [vmem:[#allocation4 + $0x10] sm:$0xf] %vm1413_vm5, %v11481_v62  ;;  %v11479_v17 = vpop.permute.xlu0 %11478 }
 0x648   : > { %11574 = vst.msk [vmem:[#allocation4 + $0x4] sm:$0xf] %vm1413_vm5, %v11479_v17  ;;  %11752 = vrot.lane.b32.xlu1 %v20010_v44, %s16483_s16  ;;  %11498 = vrot.lane.b32.xlu0 %v15342_v7, %s20819_s26  ;;  %v10148_v26 = vsel %vm10084_vm3, %v10000_v60, %v10116_v48  ;;  %v10003_v33 = vadd.f32 %v20030_v5, %v9842_v27 }
 0x649   : > { %10180 = vst.msk [vmem:[#allocation3 + $0xc1] sm:$0xff] %vm433_vm2, %v10148_v26 }
 0x64a   : > { %v11033_v13 = vpop.permute.xlu1 %11032  ;;  %vm10085_vm4 = vcmp.ge.f32.partialorder %v10003_v33, 0.0  ;;  %v10117_v8 = vmul.f32 0.01, %v10003_v33 }
 0x64b   : > { %11127 = vst.msk [vmem:[#allocation4 + $0xc] sm:$0xf] %vm1927_vm0, %v11033_v13  ;;  %v10527_v31 = vpop.permute.xlu0 %10526 }
 0x64c   : > { %10618 = vst.msk [vmem:[#allocation4 + $0x30] sm:$0xf] %vm1413_vm5, %v10527_v31  ;;  %12008 = vrot.lane.b32.xlu1 %v20008_v63, %s20820_s17  ;;  %10546 = vrot.lane.b32.xlu0 %v20056_v4, %s20819_s26  ;;  %v10149_v44 = vsel %vm10085_vm4, %v10003_v33, %v10117_v8 }
 0x64d   : > { %10181 = vst.msk [vmem:[#allocation3 + $0xc9] sm:$0xff] %vm433_vm2, %v10149_v44 }
 0x64e   : > { %v10529_v5 = vpop.permute.xlu1 %10528 }
 0x64f   : > { %10619 = vst.msk [vmem:[#allocation4 + $0x3c] sm:$0xf] %vm1413_vm5, %v10529_v5  ;;  %v11035_v51 = vpop.permute.xlu0 %11034 }
 0x650   : > { %11128 = vst.msk [vmem:[#allocation4 + $0x18] sm:$0xf] %vm1927_vm0, %v11035_v51  ;;  %10548 = vrot.lane.b32.xlu1 %v20069_v56, %s20819_s26  ;;  %11054 = vrot.lane.b32.xlu0 %v20058_v61, %s20820_s17  ;;  %v11874_v63 = vld [vmem:[#allocation3 + $0xc1] sm:$0xff] }
 0x651   : > { %v20112_v45 = vpack.c.bf16 %v11874_v63, %v11874_v63  ;;  %v10214_v42 = vld [vmem:[#allocation3 + $0xc0] sm:$0xff] }
 0x652   : > { %v10785_v23 = vpop.permute.xlu1 %10784  ;;  %v15282_v46 = vpack.c.bf16 %v10214_v42, %v10214_v42  ;;  %v10916_v32 = vld [vmem:[#allocation3 + $0xc0] sm:$0xff] }
 0x653   : > { %10875 = vst.msk [vmem:[#allocation4 + $0x3c] sm:$0xf] %vm1670_vm7, %v10785_v23  ;;  %v11735_v40 = vpop.permute.xlu0 %11734  ;;  %v15376_v7 = vpack.c.bf16 %v10916_v32, %v10916_v32 }
 0x654   : > { %11830 = vst.msk [vmem:[#allocation4 + $0x4] sm:$0xf] %vm1670_vm7, %v11735_v40  ;;  %10804 = vrot.lane.b32.xlu1 %v15345_v39, %s16483_s16  ;;  %11754 = vrot.lane.b32.xlu0 %v20058_v61, %s16483_s16  ;;  %v11365_v36 = vld [vmem:[#allocation3 + $0xca] sm:$0xff]  ;;  %v11364_v22 = vld [vmem:[#allocation3 + $0xc2] sm:$0xff] }
 0x655   : > { %11332 = vst.msk [vmem:[#allocation4 + $0xac] sm:$0xf] %vm1156_vm6, %v20112_v45  ;;  %10374 = vst.msk [vmem:[#allocation4 + $0xc0] sm:$0xf] %vm1156_vm6, %v15282_v46  ;;  %v15897_v30 = vpop.f32.mrf.mxu1  ;;  %v20124_v15 = vpack.c.bf16 %v11365_v36, %v11365_v36  ;;  %v20126_v59 = vpack.c.bf16 %v11364_v22, %v11364_v22  ;;  %v11875_v11 = vld [vmem:[#allocation3 + $0xc9] sm:$0xff] }
 0x656   : > { %v11485_v9 = vpop.permute.xlu1 %11484  ;;  %v20129_v35 = vpack.c.bf16 %v11875_v11, %v11875_v11  ;;  %v10215_v29 = vld [vmem:[#allocation3 + $0xc8] sm:$0xff] }
 0x657   : > { %11577 = vst.msk [vmem:[#allocation4 + $0x28] sm:$0xf] %vm1413_vm5, %v11485_v9  ;;  %v10783_v41 = vpop.permute.xlu0 %10782  ;;  %v15898_v0 = vpop.f32.mrf.mxu1  ;;  %v15283_v28 = vpack.c.bf16 %v10215_v29, %v10215_v29  ;;  %v10917_v62 = vld [vmem:[#allocation3 + $0xc8] sm:$0xff] }
 0x658   : > { %10874 = vst.msk [vmem:[#allocation4 + $0x30] sm:$0xf] %vm1670_vm7, %v10783_v41  ;;  %11504 = vrot.lane.b32.xlu1 %v15345_v39, %s20819_s26  ;;  %12010 = vrot.lane.b32.xlu0 %v20056_v4, %s20820_s17  ;;  %v15899_v57 = vadd.f32 %v15898_v0, %v15897_v30  ;;  %v15377_v33 = vpack.c.bf16 %v10917_v62, %v10917_v62 }
 0x659   : > { %12290 = vst.msk [vmem:[#allocation4 + $0x98] sm:$0xf] %vm1156_vm6, %v20126_v59  ;;  %12291 = vst.msk [vmem:[#allocation4 + $0xa4] sm:$0xf] %vm1156_vm6, %v20124_v15  ;;  %v15900_v10 = vpop.f32.mrf.mxu1 }
 0x65a   : > { %11333 = vst.msk [vmem:[#allocation4 + $0xb8] sm:$0xf] %vm1156_vm6, %v20129_v35  ;;  %v11037_v61 = vpop.permute.xlu1 %11036  ;;  %10375 = vst.msk [vmem:[#allocation4 + $0xcc] sm:$0xf] %vm1156_vm6, %v15283_v28  ;;  %v9847_v16 = vadd.f32 %v20026_v3, %v15899_v57  ;;  %v11863_v28 = vld [vmem:[#allocation3 + $0x39] sm:$0xff] }
 0x65b   : > { %11129 = vst.msk [vmem:[#allocation4 + $0x24] sm:$0xf] %vm1927_vm0, %v11037_v61  ;;  %v11483_v4 = vpop.permute.xlu0 %11482  ;;  %v15901_v24 = vpop.f32.mrf.mxu1 }
 0x65c   : > { %11576 = vst.msk [vmem:[#allocation4 + $0x1c] sm:$0xf] %vm1413_vm5, %v11483_v4  ;;  %11056 = vrot.lane.b32.xlu1 %v20071_v6, %s20820_s17  ;;  %10802 = vrot.lane.b32.xlu0 %v15344_v14, %s16483_s16  ;;  %v10008_v21 = vadd.f32 %v10007_v52, %v9847_v16  ;;  %v15902_v50 = vadd.f32 %v15901_v24, %v15900_v10 }
 0x65e   : > { %v11737_v20 = vpop.permute.xlu1 %11736  ;;  %vm10086_vm8 = vcmp.ge.f32.partialorder %v10008_v21, 0.0  ;;  %v10118_v38 = vmul.f32 0.01, %v10008_v21  ;;  %v9850_v19 = vadd.f32 %v20026_v3, %v15902_v50 }
 0x65f   : > { %11831 = vst.msk [vmem:[#allocation4 + $0x10] sm:$0xf] %vm1670_vm7, %v11737_v20  ;;  %v10531_v18 = vpop.permute.xlu0 %10530 }
 0x660   : > { %10620 = vst.msk [vmem:[#allocation4 + $0x48] sm:$0xf] %vm1413_vm5, %v10531_v18  ;;  %11756 = vrot.lane.b32.xlu1 %v20071_v6, %s16483_s16  ;;  %11502 = vrot.lane.b32.xlu0 %v15344_v14, %s20819_s26  ;;  %v10150_v37 = vsel %vm10086_vm8, %v10008_v21, %v10118_v38  ;;  %v10011_v43 = vadd.f32 %v10010_v58, %v9850_v19  ;;  %v11636_v21 = vld [vmem:[#allocation3 + $0x198] sm:$0xff] }
 0x661   : > { %10182 = vst.msk [vmem:[#allocation3 + $0xd9] sm:$0xff] %vm433_vm2, %v10150_v37  ;;  %v15491_v14 = vpack.c.bf16 %v11863_v28, %v11863_v28 }
 0x662   : > { %v10533_v2 = vpop.permute.xlu1 %10532  ;;  %vm10087_vm9 = vcmp.ge.f32.partialorder %v10011_v43, 0.0  ;;  %v10119_v1 = vmul.f32 0.01, %v10011_v43 }
 0x663   : > { %10621 = vst.msk [vmem:[#allocation4 + $0x54] sm:$0xf] %vm1413_vm5, %v10533_v2  ;;  %v11039_v54 = vpop.permute.xlu0 %11038  ;;  %v11637_v2 = vld [vmem:[#allocation3 + $0x1a0] sm:$0xff] }
 0x664   : > { %11130 = vst.msk [vmem:[#allocation4 + $0x30] sm:$0xf] %vm1927_vm0, %v11039_v54  ;;  %12012 = vrot.lane.b32.xlu1 %v20069_v56, %s20820_s17  ;;  %11058 = vrot.lane.b32.xlu0 %v15376_v7, %s20820_s17  ;;  %v10151_v6 = vsel %vm10087_vm9, %v10011_v43, %v10119_v1  ;;  %v15488_v43 = vpack.c.bf16 %v11636_v21, %v11636_v21 }
 0x665   : > { %10183 = vst.msk [vmem:[#allocation3 + $0xe1] sm:$0xff] %vm433_vm2, %v10151_v6  ;;  %v15903_v60 = vpop.f32.mrf.mxu1 }
 0x666   : > { %v10789_v55 = vpop.permute.xlu1 %10788 }
 0x667   : > { %10877 = vst.msk [vmem:[#allocation4 + $0x54] sm:$0xf] %vm1670_vm7, %v10789_v55  ;;  %v11739_v47 = vpop.permute.xlu0 %11738  ;;  %v15904_v48 = vpop.f32.mrf.mxu1 }
 0x668   : > { %11832 = vst.msk [vmem:[#allocation4 + $0x1c] sm:$0xf] %vm1670_vm7, %v11739_v47  ;;  %11508 = vrot.lane.b32.xlu1 %v20124_v15, %s20819_s26  ;;  %11758 = vrot.lane.b32.xlu0 %v15376_v7, %s16483_s16  ;;  %v15905_v56 = vadd.f32 %v15904_v48, %v15903_v60  ;;  %v10408_v27 = vld [vmem:[#allocation3 + $0xd9] sm:$0xff] }
 0x669   : > { %v15906_v26 = vpop.f32.mrf.mxu1  ;;  %v20168_v13 = vpack.c.bf16 %v10408_v27, %v10408_v27  ;;  %v10918_v8 = vld [vmem:[#allocation3 + $0xd8] sm:$0xff]  ;;  %v15489_v27 = vpack.c.bf16 %v11637_v2, %v11637_v2 }
 0x66a   : > { %v11489_v17 = vpop.permute.xlu1 %11488  ;;  %v9855_v31 = vadd.f32 %v20026_v3, %v15905_v56  ;;  %v20172_v5 = vpack.c.bf16 %v10918_v8, %v10918_v8  ;;  %v11620_v30 = vld [vmem:[#allocation3 + $0xd8] sm:$0xff] }
 0x66b   : > { %11579 = vst.msk [vmem:[#allocation4 + $0x40] sm:$0xf] %vm1413_vm5, %v11489_v17  ;;  %v11995_v44 = vpop.permute.xlu0 %11994  ;;  %v15907_v51 = vpop.f32.mrf.mxu1  ;;  %v15472_v52 = vpack.c.bf16 %v11620_v30, %v11620_v30  ;;  %v11876_v57 = vld [vmem:[#allocation3 + $0xd9] sm:$0xff] }
 0x66c   : > { %12088 = vst.msk [vmem:[#allocation4 + $0x1c] sm:$0xf] %vm1927_vm0, %v11995_v44  ;;  %11060 = vrot.lane.b32.xlu1 %v15377_v33, %s20820_s17  ;;  %12014 = vrot.lane.b32.xlu0 %v20112_v45, %s20820_s17  ;;  %v10016_v49 = vadd.f32 %v20115_v12, %v9855_v31  ;;  %v15908_v63 = vadd.f32 %v15907_v51, %v15906_v26  ;;  %v12132_v23 = vld [vmem:[#allocation3 + $0xda] sm:$0xff]  ;;  %v12133_v39 = vld [vmem:[#allocation3 + $0xe2] sm:$0xff]  ;;  %v20246_v44 = vpop.f32.mrf.mxu0 }
 0x66d   : > { %11334 = vst.msk [vmem:[#allocation4 + $0xc4] sm:$0xf] %vm1156_vm6, %v20168_v13  ;;  %10376 = vst.msk [vmem:[#allocation4 + $0xd8] sm:$0xf] %vm1156_vm6, %v20172_v5  ;;  %v15536_v40 = vpack.c.bf16 %v12132_v23, %v12132_v23  ;;  %v15537_v46 = vpack.c.bf16 %v12133_v39, %v12133_v39  ;;  %v10409_v36 = vld [vmem:[#allocation3 + $0xe1] sm:$0xff]  ;;  %v15504_v16 = vpack.c.bf16 %v11876_v57, %v11876_v57  ;;  %v11892_v7 = vld [vmem:[#allocation3 + $0x199] sm:$0xff] }
 0x66e   : > { %v11041_v42 = vpop.permute.xlu1 %11040  ;;  %vm10088_vm10 = vcmp.ge.f32.partialorder %v10016_v49, 0.0  ;;  %v10120_v22 = vmul.f32 0.01, %v10016_v49  ;;  %v9858_v9 = vadd.f32 %v20026_v3, %v15908_v63  ;;  %v10919_v15 = vld [vmem:[#allocation3 + $0xe0] sm:$0xff]  ;;  %v20191_v12 = vpack.c.bf16 %v10409_v36, %v10409_v36  ;;  %v10023_v39 = vpop.f32.mrf.mxu0 }
 0x66f   : > { %11131 = vst.msk [vmem:[#allocation4 + $0x3c] sm:$0xf] %vm1927_vm0, %v11041_v42  ;;  %v10787_v45 = vpop.permute.xlu0 %10786  ;;  %v20194_v53 = vpack.c.bf16 %v10919_v15, %v10919_v15  ;;  %v11621_v4 = vld [vmem:[#allocation3 + $0xe0] sm:$0xff]  ;;  %v15520_v17 = vpack.c.bf16 %v11892_v7, %v11892_v7 }
 0x670   : > { %10876 = vst.msk [vmem:[#allocation4 + $0x48] sm:$0xf] %vm1670_vm7, %v10787_v45  ;;  %11760 = vrot.lane.b32.xlu1 %v15377_v33, %s16483_s16  ;;  %11506 = vrot.lane.b32.xlu0 %v20126_v59, %s20819_s26  ;;  %v10152_v11 = vsel %vm10088_vm10, %v10016_v49, %v10120_v22  ;;  %v10019_v41 = vadd.f32 %v20144_v25, %v9858_v9  ;;  %v11877_v37 = vld [vmem:[#allocation3 + $0xe1] sm:$0xff]  ;;  %v20256_v45 = vpop.f32.mrf.mxu0 }
 0x671   : > { %12292 = vst.msk [vmem:[#allocation4 + $0xb0] sm:$0xf] %vm1156_vm6, %v15536_v40  ;;  %12293 = vst.msk [vmem:[#allocation4 + $0xbc] sm:$0xf] %vm1156_vm6, %v15537_v46  ;;  %v15473_v19 = vpack.c.bf16 %v11621_v4, %v11621_v4  ;;  %v15505_v60 = vpack.c.bf16 %v11877_v37, %v11877_v37  ;;  %v11893_v33 = vld [vmem:[#allocation3 + $0x1a1] sm:$0xff] }
 0x672   : > { %10184 = vst.msk [vmem:[#allocation3 + $0xf1] sm:$0xff] %vm433_vm2, %v10152_v11  ;;  %v11741_v29 = vpop.permute.xlu1 %11740  ;;  %vm10089_vm11 = vcmp.ge.f32.partialorder %v10019_v41, 0.0  ;;  %v10121_v59 = vmul.f32 0.01, %v10019_v41  ;;  %v15521_v51 = vpack.c.bf16 %v11893_v33, %v11893_v33 }
 0x673   : > { %11335 = vst.msk [vmem:[#allocation4 + $0xd0] sm:$0xf] %vm1156_vm6, %v20191_v12  ;;  %v11487_v0 = vpop.permute.xlu0 %11486  ;;  %10377 = vst.msk [vmem:[#allocation4 + $0xe4] sm:$0xf] %vm1156_vm6, %v20194_v53 }
 0x674   : > { %11833 = vst.msk [vmem:[#allocation4 + $0x28] sm:$0xf] %vm1670_vm7, %v11741_v29  ;;  %12016 = vrot.lane.b32.xlu1 %v20129_v35, %s20820_s17  ;;  %11762 = vrot.lane.b32.xlu0 %v15472_v52, %s16483_s16  ;;  %v10153_v61 = vsel %vm10089_vm11, %v10019_v41, %v10121_v59 }
 0x675   : > { %11578 = vst.msk [vmem:[#allocation4 + $0x34] sm:$0xf] %vm1413_vm5, %v11487_v0  ;;  %v10026_v0 = vpop.f32.mrf.mxu0 }
 0x676   : > { %10185 = vst.msk [vmem:[#allocation3 + $0xf9] sm:$0xff] %vm433_vm2, %v10153_v61  ;;  %v11997_v10 = vpop.permute.xlu1 %11996 }
 0x677   : > { %12089 = vst.msk [vmem:[#allocation4 + $0x28] sm:$0xf] %vm1927_vm0, %v11997_v10  ;;  %v10535_v25 = vpop.permute.xlu0 %10534 }
 0x678   : > { %v16349_v24 = vld [vmem:[#allocation4 + $0xb0] ss:$12 sps:$4 sm:$0xff]   ;;  %10622 = vst.msk [vmem:[#allocation4 + $0x60] sm:$0xf] %vm1413_vm5, %v10535_v25  ;;  %11992 = vrot.lane.b32.xlu1 %v15491_v14, %s20820_s17  ;;  %12018 = vrot.lane.b32.xlu0 %v15504_v16, %s20820_s17 }
 0x679   : > { %v12672_v35 = vsel %vm433_vm2, %v16349_v24, 0  ;;  %v10410_v50 = vld [vmem:[#allocation3 + $0xf1] sm:$0xff] }
 0x67a   : > { %v10920_v20 = vld [vmem:[#allocation3 + $0xf0] sm:$0xff]  ;;  %v10537_v38 = vpop.permute.xlu1 %10536  ;;  %15964 = vmatpush3.bf16.xpose.msra.mxu0 %v12672_v35  ;;  %v20212_v18 = vpack.c.bf16 %v10410_v50, %v10410_v50 }
 0x67b   : > { %v20214_v32 = vpack.c.bf16 %v10920_v20, %v10920_v20  ;;  %10623 = vst.msk [vmem:[#allocation4 + $0x6c] sm:$0xf] %vm1413_vm5, %v10537_v38  ;;  %v11043_v58 = vpop.permute.xlu0 %11042 }
 0x67c   : > { %11132 = vst.msk [vmem:[#allocation4 + $0x48] sm:$0xf] %vm1927_vm0, %v11043_v58  ;;  %11764 = vrot.lane.b32.xlu1 %v15473_v19, %s16483_s16  ;;  %11990 = vrot.lane.b32.xlu0 %v19788_v34, %s20820_s17 }
 0x67d   : > { %10378 = vst.msk [vmem:[#allocation4 + $0xf0] sm:$0xf] %vm1156_vm6, %v20214_v32  ;;  %11336 = vst.msk [vmem:[#allocation4 + $0xdc] sm:$0xf] %vm1156_vm6, %v20212_v18  ;;  %v12134_v1 = vld [vmem:[#allocation3 + $0xf2] sm:$0xff]  ;;  %v12135_v54 = vld [vmem:[#allocation3 + $0xfa] sm:$0xff] }
 0x67e   : > { %v10411_v6 = vld [vmem:[#allocation3 + $0xf9] sm:$0xff]  ;;  %v10793_v55 = vpop.permute.xlu1 %10792  ;;  %v20225_v47 = vpack.c.bf16 %v12134_v1, %v12134_v1  ;;  %v20227_v62 = vpack.c.bf16 %v12135_v54, %v12135_v54 }
 0x67f   : > { %v20229_v48 = vpack.c.bf16 %v10411_v6, %v10411_v6  ;;  %10879 = vst.msk [vmem:[#allocation4 + $0x6c] sm:$0xf] %vm1670_vm7, %v10793_v55  ;;  %v11743_v34 = vpop.permute.xlu0 %11742  ;;  %v10921_v56 = vld [vmem:[#allocation3 + $0xf8] sm:$0xff] }
 0x680   : > { %11834 = vst.msk [vmem:[#allocation4 + $0x34] sm:$0xf] %vm1670_vm7, %v11743_v34  ;;  %12020 = vrot.lane.b32.xlu1 %v15505_v60, %s20820_s17  ;;  %11794 = vrot.lane.b32.xlu0 %v15488_v43, %s16483_s16  ;;  %v20239_v26 = vpack.c.bf16 %v10921_v56, %v10921_v56 }
 0x681   : > { %12294 = vst.msk [vmem:[#allocation4 + $0xc8] sm:$0xf] %vm1156_vm6, %v20225_v47  ;;  %12295 = vst.msk [vmem:[#allocation4 + $0xd4] sm:$0xf] %vm1156_vm6, %v20227_v62 }
 0x682   : > { %11337 = vst.msk [vmem:[#allocation4 + $0xe8] sm:$0xf] %vm1156_vm6, %v20229_v48  ;;  %v11493_v8 = vpop.permute.xlu1 %11492  ;;  %10379 = vst.msk [vmem:[#allocation4 + $0xfc] sm:$0xf] %vm1156_vm6, %v20239_v26 }
 0x683   : > { %11581 = vst.msk [vmem:[#allocation4 + $0x58] sm:$0xf] %vm1413_vm5, %v11493_v8  ;;  %v11999_v31 = vpop.permute.xlu0 %11998 }
 0x684   : > { %12090 = vst.msk [vmem:[#allocation4 + $0x34] sm:$0xf] %vm1927_vm0, %v11999_v31  ;;  %11796 = vrot.lane.b32.xlu1 %v15489_v27, %s16483_s16  ;;  %12050 = vrot.lane.b32.xlu0 %v15520_v17, %s20820_s17 }
 0x686   : > { %v15909_v49 = vpop.f32.mrf.mxu1  ;;  %v11045_v63 = vpop.permute.xlu1 %11044 }
 0x687   : > { %11133 = vst.msk [vmem:[#allocation4 + $0x54] sm:$0xf] %vm1927_vm0, %v11045_v63  ;;  %v10791_v23 = vpop.permute.xlu0 %10790 }
 0x688   : > { %10878 = vst.msk [vmem:[#allocation4 + $0x60] sm:$0xf] %vm1670_vm7, %v10791_v23  ;;  %v15910_v42 = vpop.f32.mrf.mxu1  ;;  %12052 = vrot.lane.b32.xlu1 %v15521_v51, %s20820_s17 }
 0x689   : > { %v15911_v40 = vadd.f32 %v15910_v42, %v15909_v49 }
 0x68a   : > { %v15912_v46 = vpop.f32.mrf.mxu1  ;;  %v11745_v36 = vpop.permute.xlu1 %11744 }
 0x68b   : > { %v9863_v22 = vadd.f32 %v20026_v3, %v15911_v40  ;;  %11835 = vst.msk [vmem:[#allocation4 + $0x40] sm:$0xf] %vm1670_vm7, %v11745_v36  ;;  %v11491_v9 = vpop.permute.xlu0 %11490 }
 0x68c   : > { %11580 = vst.msk [vmem:[#allocation4 + $0x4c] sm:$0xf] %vm1413_vm5, %v11491_v9  ;;  %v15913_v30 = vpop.f32.mrf.mxu1 }
 0x68d   : > { %v10024_v15 = vadd.f32 %v10023_v39, %v9863_v22  ;;  %v15914_v11 = vadd.f32 %v15913_v30, %v15912_v46 }
 0x68e   : > { %v12001_v41 = vpop.permute.xlu1 %12000 }
 0x68f   : > { %vm10090_vm12 = vcmp.ge.f32.partialorder %v10024_v15, 0.0  ;;  %v10122_v29 = vmul.f32 0.01, %v10024_v15  ;;  %v9866_v52 = vadd.f32 %v20026_v3, %v15914_v11  ;;  %12091 = vst.msk [vmem:[#allocation4 + $0x40] sm:$0xf] %vm1927_vm0, %v12001_v41  ;;  %v10539_v59 = vpop.permute.xlu0 %10538 }
 0x690   : > { %10624 = vst.msk [vmem:[#allocation4 + $0x78] sm:$0xf] %vm1413_vm5, %v10539_v59 }
 0x691   : > { %v10154_v28 = vsel %vm10090_vm12, %v10024_v15, %v10122_v29  ;;  %v10027_v57 = vadd.f32 %v10026_v0, %v9866_v52  ;;  %v20315_v0 = vpop.f32.mrf.mxu0 }
 0x692   : > { %10186 = vst.msk [vmem:[#allocation3 + $0x109] sm:$0xff] %vm433_vm2, %v10154_v28  ;;  %v10541_v61 = vpop.permute.xlu1 %10540 }
 0x693   : > { %vm10091_vm13 = vcmp.ge.f32.partialorder %v10027_v57, 0.0  ;;  %v10123_v10 = vmul.f32 0.01, %v10027_v57  ;;  %10625 = vst.msk [vmem:[#allocation4 + $0x84] sm:$0xf] %vm1413_vm5, %v10541_v61  ;;  %v11047_v14 = vpop.permute.xlu0 %11046 }
 0x694   : > { %11134 = vst.msk [vmem:[#allocation4 + $0x60] sm:$0xf] %vm1927_vm0, %v11047_v14 }
 0x695   : > { %v10155_v16 = vsel %vm10091_vm13, %v10027_v57, %v10123_v10 }
 0x696   : > { %10187 = vst.msk [vmem:[#allocation3 + $0x111] sm:$0xff] %vm433_vm2, %v10155_v16  ;;  %v10797_v4 = vpop.permute.xlu1 %10796 }
 0x697   : > { %10881 = vst.msk [vmem:[#allocation4 + $0x84] sm:$0xf] %vm1670_vm7, %v10797_v4  ;;  %v11747_v25 = vpop.permute.xlu0 %11746 }
 0x698   : > { %11836 = vst.msk [vmem:[#allocation4 + $0x4c] sm:$0xf] %vm1670_vm7, %v11747_v25 }
 0x699   : > { %v10412_v24 = vld [vmem:[#allocation3 + $0x109] sm:$0xff] }
 0x69a   : > { %v10922_v35 = vld [vmem:[#allocation3 + $0x108] sm:$0xff]  ;;  %v11497_v21 = vpop.permute.xlu1 %11496  ;;  %v20268_v50 = vpack.c.bf16 %v10412_v24, %v10412_v24 }
 0x69b   : > { %v20270_v20 = vpack.c.bf16 %v10922_v35, %v10922_v35  ;;  %11583 = vst.msk [vmem:[#allocation4 + $0x70] sm:$0xf] %vm1413_vm5, %v11497_v21  ;;  %v12003_v38 = vpop.permute.xlu0 %12002 }
 0x69c   : > { %12092 = vst.msk [vmem:[#allocation4 + $0x4c] sm:$0xf] %vm1927_vm0, %v12003_v38  ;;  %v10039_v38 = vpop.f32.mrf.mxu0 }
 0x69d   : > { %10380 = vst.msk [vmem:[#allocation4 + $0x108] sm:$0xf] %vm1156_vm6, %v20270_v20  ;;  %11338 = vst.msk [vmem:[#allocation4 + $0xf4] sm:$0xf] %vm1156_vm6, %v20268_v50  ;;  %v12136_v19 = vld [vmem:[#allocation3 + $0x10a] sm:$0xff]  ;;  %v12137_v58 = vld [vmem:[#allocation3 + $0x112] sm:$0xff] }
 0x69e   : > { %v10413_v37 = vld [vmem:[#allocation3 + $0x111] sm:$0xff]  ;;  %v15915_v43 = vpop.f32.mrf.mxu1  ;;  %v11049_v2 = vpop.permute.xlu1 %11048  ;;  %v20278_v7 = vpack.c.bf16 %v12136_v19, %v12136_v19  ;;  %v20280_v1 = vpack.c.bf16 %v12137_v58, %v12137_v58 }
 0x69f   : > { %v20282_v54 = vpack.c.bf16 %v10413_v37, %v10413_v37  ;;  %v10923_v6 = vld [vmem:[#allocation3 + $0x110] sm:$0xff]  ;;  %11135 = vst.msk [vmem:[#allocation4 + $0x6c] sm:$0xf] %vm1927_vm0, %v11049_v2  ;;  %v10795_v55 = vpop.permute.xlu0 %10794 }
 0x6a0   : > { %v20285_v60 = vpack.c.bf16 %v10923_v6, %v10923_v6  ;;  %10880 = vst.msk [vmem:[#allocation4 + $0x78] sm:$0xf] %vm1670_vm7, %v10795_v55  ;;  %v15916_v34 = vpop.f32.mrf.mxu1  ;;  %v20342_v55 = vpop.f32.mrf.mxu0 }
 0x6a1   : > { %12296 = vst.msk [vmem:[#allocation4 + $0xe0] sm:$0xf] %vm1156_vm6, %v20278_v7  ;;  %12297 = vst.msk [vmem:[#allocation4 + $0xec] sm:$0xf] %vm1156_vm6, %v20280_v1  ;;  %v15917_v56 = vadd.f32 %v15916_v34, %v15915_v43 }
 0x6a2   : > { %11339 = vst.msk [vmem:[#allocation4 + $0x100] sm:$0xf] %vm1156_vm6, %v20282_v54  ;;  %10381 = vst.msk [vmem:[#allocation4 + $0x114] sm:$0xf] %vm1156_vm6, %v20285_v60  ;;  %v15918_v27 = vpop.f32.mrf.mxu1  ;;  %v11749_v17 = vpop.permute.xlu1 %11748 }
 0x6a3   : > { %v9871_v33 = vadd.f32 %v20026_v3, %v15917_v56  ;;  %11837 = vst.msk [vmem:[#allocation4 + $0x58] sm:$0xf] %vm1670_vm7, %v11749_v17  ;;  %v11495_v8 = vpop.permute.xlu0 %11494 }
 0x6a4   : > { %11582 = vst.msk [vmem:[#allocation4 + $0x64] sm:$0xf] %vm1413_vm5, %v11495_v8  ;;  %v15919_v31 = vpop.f32.mrf.mxu1 }
 0x6a5   : > { %v10032_v51 = vadd.f32 %v20246_v44, %v9871_v33  ;;  %v15920_v49 = vadd.f32 %v15919_v31, %v15918_v27 }
 0x6a6   : > { %v12005_v63 = vpop.permute.xlu1 %12004 }
 0x6a7   : > { %vm10092_vm14 = vcmp.ge.f32.partialorder %v10032_v51, 0.0  ;;  %v10124_v23 = vmul.f32 0.01, %v10032_v51  ;;  %v9874_v39 = vadd.f32 %v20026_v3, %v15920_v49  ;;  %12093 = vst.msk [vmem:[#allocation4 + $0x58] sm:$0xf] %vm1927_vm0, %v12005_v63  ;;  %v10543_v42 = vpop.permute.xlu0 %10542 }
 0x6a8   : > { %10626 = vst.msk [vmem:[#allocation4 + $0x90] sm:$0xf] %vm1413_vm5, %v10543_v42 }
 0x6a9   : > { %v10156_v40 = vsel %vm10092_vm14, %v10032_v51, %v10124_v23  ;;  %v10035_v46 = vadd.f32 %v20256_v45, %v9874_v39  ;;  %v10042_v51 = vpop.f32.mrf.mxu0 }
 0x6aa   : > { %10188 = vst.msk [vmem:[#allocation3 + $0x121] sm:$0xff] %vm433_vm2, %v10156_v40  ;;  %v10545_v36 = vpop.permute.xlu1 %10544 }
 0x6ab   : > { %vm10093_vm15 = vcmp.ge.f32.partialorder %v10035_v46, 0.0  ;;  %v10125_v22 = vmul.f32 0.01, %v10035_v46  ;;  %10627 = vst.msk [vmem:[#allocation4 + $0x9c] sm:$0xf] %vm1413_vm5, %v10545_v36  ;;  %v11051_v44 = vpop.permute.xlu0 %11050 }
 0x6ac   : > { %11136 = vst.msk [vmem:[#allocation4 + $0x78] sm:$0xf] %vm1927_vm0, %v11051_v44 }
 0x6ad   : > { %v10157_v9 = vsel %vm10093_vm15, %v10035_v46, %v10125_v22 }
 0x6ae   : > { %10189 = vst.msk [vmem:[#allocation3 + $0x129] sm:$0xff] %vm433_vm2, %v10157_v9  ;;  %v10801_v30 = vpop.permute.xlu1 %10800 }
 0x6af   : > { %10883 = vst.msk [vmem:[#allocation4 + $0x9c] sm:$0xf] %vm1670_vm7, %v10801_v30  ;;  %v11751_v15 = vpop.permute.xlu0 %11750 }
 0x6b0   : > { %11838 = vst.msk [vmem:[#allocation4 + $0x64] sm:$0xf] %vm1670_vm7, %v11751_v15 }
 0x6b1   : > { %v10414_v45 = vld [vmem:[#allocation3 + $0x121] sm:$0xff] }
 0x6b2   : > { %v10924_v11 = vld [vmem:[#allocation3 + $0x120] sm:$0xff]  ;;  %v11501_v41 = vpop.permute.xlu1 %11500  ;;  %v20310_v29 = vpack.c.bf16 %v10414_v45, %v10414_v45 }
 0x6b3   : > { %v20312_v52 = vpack.c.bf16 %v10924_v11, %v10924_v11  ;;  %11585 = vst.msk [vmem:[#allocation4 + $0x88] sm:$0xf] %vm1413_vm5, %v11501_v41  ;;  %v12007_v59 = vpop.permute.xlu0 %12006 }
 0x6b4   : > { %12094 = vst.msk [vmem:[#allocation4 + $0x64] sm:$0xf] %vm1927_vm0, %v12007_v59 }
 0x6b5   : > { %10382 = vst.msk [vmem:[#allocation4 + $0x120] sm:$0xf] %vm1156_vm6, %v20312_v52  ;;  %11340 = vst.msk [vmem:[#allocation4 + $0x10c] sm:$0xf] %vm1156_vm6, %v20310_v29  ;;  %v10415_v28 = vld [vmem:[#allocation3 + $0x129] sm:$0xff] }
 0x6b6   : > { %v12138_v57 = vld [vmem:[#allocation3 + $0x122] sm:$0xff]  ;;  %v12139_v61 = vld [vmem:[#allocation3 + $0x12a] sm:$0xff]  ;;  %v15921_v10 = vpop.f32.mrf.mxu1  ;;  %v11053_v14 = vpop.permute.xlu1 %11052  ;;  %v20322_v16 = vpack.c.bf16 %v10415_v28, %v10415_v28 }
 0x6b7   : > { %v20324_v4 = vpack.c.bf16 %v12138_v57, %v12138_v57  ;;  %v20326_v25 = vpack.c.bf16 %v12139_v61, %v12139_v61  ;;  %v10925_v24 = vld [vmem:[#allocation3 + $0x128] sm:$0xff]  ;;  %11137 = vst.msk [vmem:[#allocation4 + $0x84] sm:$0xf] %vm1927_vm0, %v11053_v14  ;;  %v10799_v35 = vpop.permute.xlu0 %10798 }
 0x6b8   : > { %v20329_v21 = vpack.c.bf16 %v10925_v24, %v10925_v24  ;;  %10882 = vst.msk [vmem:[#allocation4 + $0x90] sm:$0xf] %vm1670_vm7, %v10799_v35  ;;  %v15922_v19 = vpop.f32.mrf.mxu1 }
 0x6b9   : > { %12298 = vst.msk [vmem:[#allocation4 + $0xf8] sm:$0xf] %vm1156_vm6, %v20324_v4  ;;  %12299 = vst.msk [vmem:[#allocation4 + $0x104] sm:$0xf] %vm1156_vm6, %v20326_v25  ;;  %v15923_v58 = vadd.f32 %v15922_v19, %v15921_v10 }
 0x6ba   : > { %11341 = vst.msk [vmem:[#allocation4 + $0x118] sm:$0xf] %vm1156_vm6, %v20322_v16  ;;  %10383 = vst.msk [vmem:[#allocation4 + $0x12c] sm:$0xf] %vm1156_vm6, %v20329_v21  ;;  %v15924_v37 = vpop.f32.mrf.mxu1  ;;  %v11753_v43 = vpop.permute.xlu1 %11752 }
 0x6bb   : > { %v9879_v2 = vadd.f32 %v20026_v3, %v15923_v58  ;;  %11839 = vst.msk [vmem:[#allocation4 + $0x70] sm:$0xf] %vm1670_vm7, %v11753_v43  ;;  %v11499_v6 = vpop.permute.xlu0 %11498 }
 0x6bc   : > { %11584 = vst.msk [vmem:[#allocation4 + $0x7c] sm:$0xf] %vm1413_vm5, %v11499_v6  ;;  %v15925_v34 = vpop.f32.mrf.mxu1 }
 0x6bd   : > { %v10040_v56 = vadd.f32 %v10039_v38, %v9879_v2  ;;  %v15926_v27 = vadd.f32 %v15925_v34, %v15924_v37 }
 0x6be   : > { %v12009_v17 = vpop.permute.xlu1 %12008 }
 0x6bf   : > { %vm10094_vm1 = vcmp.ge.f32.partialorder %v10040_v56, 0.0  ;;  %v10126_v33 = vmul.f32 0.01, %v10040_v56  ;;  %v9882_v8 = vadd.f32 %v20026_v3, %v15926_v27  ;;  %12095 = vst.msk [vmem:[#allocation4 + $0x70] sm:$0xf] %vm1927_vm0, %v12009_v17  ;;  %v10547_v31 = vpop.permute.xlu0 %10546 }
 0x6c0   : > { %10628 = vst.msk [vmem:[#allocation4 + $0xa8] sm:$0xf] %vm1413_vm5, %v10547_v31 }
 0x6c1   : > { %v10158_v49 = vsel %vm10094_vm1, %v10040_v56, %v10126_v33  ;;  %v10043_v63 = vadd.f32 %v10042_v51, %v9882_v8  ;;  %v20387_v56 = vld [vmem:[%s20804_s9] ss:$0 sm:$0xff] }
 0x6c2   : > { %10190 = vst.msk [vmem:[#allocation3 + $0x139] sm:$0xff] %vm433_vm2, %v10158_v49  ;;  %v10549_v23 = vpop.permute.xlu1 %10548 }
 0x6c3   : > { %vm10095_vm3 = vcmp.ge.f32.partialorder %v10043_v63, 0.0  ;;  %v10127_v39 = vmul.f32 0.01, %v10043_v63  ;;  %10629 = vst.msk [vmem:[#allocation4 + $0xb4] sm:$0xf] %vm1413_vm5, %v10549_v23  ;;  %v11055_v42 = vpop.permute.xlu0 %11054 }
 0x6c4   : > { %11138 = vst.msk [vmem:[#allocation4 + $0x90] sm:$0xf] %vm1927_vm0, %v11055_v42 }
 0x6c5   : > { %v10159_v40 = vsel %vm10095_vm3, %v10043_v63, %v10127_v39 }
 0x6c6   : > { %10191 = vst.msk [vmem:[#allocation3 + $0x141] sm:$0xff] %vm433_vm2, %v10159_v40  ;;  %v10805_v3 = vpop.permute.xlu1 %10804 }
 0x6c7   : > { %10885 = vst.msk [vmem:[#allocation4 + $0xb4] sm:$0xf] %vm1670_vm7, %v10805_v3  ;;  %v11755_v46 = vpop.permute.xlu0 %11754 }
 0x6c8   : > { %11840 = vst.msk [vmem:[#allocation4 + $0x7c] sm:$0xf] %vm1670_vm7, %v11755_v46 }
 0x6c9   : > { %v10416_v36 = vld [vmem:[#allocation3 + $0x139] sm:$0xff] }
 0x6ca   : > { %v10224_v22 = vld [vmem:[#allocation3 + $0x138] sm:$0xff]  ;;  %v11505_v9 = vpop.permute.xlu1 %11504  ;;  %v20354_v30 = vpack.c.bf16 %v10416_v36, %v10416_v36 }
 0x6cb   : > { %v11182_v44 = vld [vmem:[#allocation3 + $0x139] sm:$0xff]  ;;  %v20356_v15 = vpack.c.bf16 %v10224_v22, %v10224_v22  ;;  %11587 = vst.msk [vmem:[#allocation4 + $0xa0] sm:$0xf] %vm1413_vm5, %v11505_v9  ;;  %v12011_v11 = vpop.permute.xlu0 %12010 }
 0x6cc   : > { %v15418_v45 = vpack.c.bf16 %v11182_v44, %v11182_v44  ;;  %12096 = vst.msk [vmem:[#allocation4 + $0x7c] sm:$0xf] %vm1927_vm0, %v12011_v11  ;;  %10570 = vrot.lane.b32.xlu0 %v20354_v30, %s20819_s26  ;;  %v20403_v44 = vpop.f32.mrf.mxu0 }
 0x6cd   : > { %10384 = vst.msk [vmem:[#allocation4 + $0x138] sm:$0xf] %vm1156_vm6, %v20356_v15  ;;  %v10417_v41 = vld [vmem:[#allocation3 + $0x141] sm:$0xff] }
 0x6ce   : > { %11342 = vst.msk [vmem:[#allocation4 + $0x124] sm:$0xf] %vm1156_vm6, %v15418_v45  ;;  %v10672_v59 = vld [vmem:[#allocation3 + $0x13a] sm:$0xff]  ;;  %v10673_v28 = vld [vmem:[#allocation3 + $0x142] sm:$0xff]  ;;  %v15927_v57 = vpop.f32.mrf.mxu1  ;;  %v11057_v61 = vpop.permute.xlu1 %11056  ;;  %v20365_v10 = vpack.c.bf16 %v10417_v41, %v10417_v41 }
 0x6cf   : > { %v20367_v14 = vpack.c.bf16 %v10672_v59, %v10672_v59  ;;  %v20369_v24 = vpack.c.bf16 %v10673_v28, %v10673_v28  ;;  %v10225_v35 = vld [vmem:[#allocation3 + $0x140] sm:$0xff]  ;;  %11139 = vst.msk [vmem:[#allocation4 + $0x9c] sm:$0xf] %vm1927_vm0, %v11057_v61  ;;  %v10803_v19 = vpop.permute.xlu0 %10802  ;;  %v10055_v61 = vpop.f32.mrf.mxu0 }
 0x6d0   : > { %v11183_v38 = vld [vmem:[#allocation3 + $0x141] sm:$0xff]  ;;  %v20372_v58 = vpack.c.bf16 %v10225_v35, %v10225_v35  ;;  %10884 = vst.msk [vmem:[#allocation4 + $0xa8] sm:$0xf] %vm1670_vm7, %v10803_v19  ;;  %v15928_v43 = vpop.f32.mrf.mxu1  ;;  %10572 = vrot.lane.b32.xlu1 %v20365_v10, %s20819_s26 }
 0x6d1   : > { %v15419_v37 = vpack.c.bf16 %v11183_v38, %v11183_v38  ;;  %12300 = vst.msk [vmem:[#allocation4 + $0x110] sm:$0xf] %vm1156_vm6, %v20367_v14  ;;  %12301 = vst.msk [vmem:[#allocation4 + $0x11c] sm:$0xf] %vm1156_vm6, %v20369_v24  ;;  %v15929_v2 = vadd.f32 %v15928_v43, %v15927_v57 }
 0x6d2   : > { %10385 = vst.msk [vmem:[#allocation4 + $0x144] sm:$0xf] %vm1156_vm6, %v20372_v58  ;;  %v15930_v6 = vpop.f32.mrf.mxu1  ;;  %v11757_v34 = vpop.permute.xlu1 %11756 }
 0x6d3   : > { %11343 = vst.msk [vmem:[#allocation4 + $0x130] sm:$0xf] %vm1156_vm6, %v15419_v37  ;;  %v9887_v27 = vadd.f32 %v20387_v56, %v15929_v2  ;;  %v11503_v17 = vpop.permute.xlu0 %11502 }
 0x6d4   : > { %11841 = vst.msk [vmem:[#allocation4 + $0x88] sm:$0xf] %vm1670_vm7, %v11757_v34  ;;  %v15931_v33 = vpop.f32.mrf.mxu1 }
 0x6d5   : > { %11586 = vst.msk [vmem:[#allocation4 + $0x94] sm:$0xf] %vm1413_vm5, %v11503_v17  ;;  %v10048_v8 = vadd.f32 %v20315_v0, %v9887_v27  ;;  %v15932_v31 = vadd.f32 %v15931_v33, %v15930_v6 }
 0x6d6   : > { %v12013_v51 = vpop.permute.xlu1 %12012 }
 0x6d7   : > { %vm10096_vm4 = vcmp.ge.f32.partialorder %v10048_v8, 0.0  ;;  %v10128_v49 = vmul.f32 0.01, %v10048_v8  ;;  %v9890_v63 = vadd.f32 %v20387_v56, %v15932_v31  ;;  %12097 = vst.msk [vmem:[#allocation4 + $0x88] sm:$0xf] %vm1927_vm0, %v12013_v51  ;;  %v11059_v23 = vpop.permute.xlu0 %11058 }
 0x6d8   : > { %11140 = vst.msk [vmem:[#allocation4 + $0xa8] sm:$0xf] %vm1927_vm0, %v11059_v23 }
 0x6d9   : > { %v10160_v39 = vsel %vm10096_vm4, %v10048_v8, %v10128_v49  ;;  %v10051_v42 = vadd.f32 %v20342_v55, %v9890_v63  ;;  %v20430_v8 = vpop.f32.mrf.mxu0 }
 0x6da   : > { %10192 = vst.msk [vmem:[#allocation3 + $0x151] sm:$0xff] %vm433_vm2, %v10160_v39  ;;  %v11509_v40 = vpop.permute.xlu1 %11508 }
 0x6db   : > { %vm10097_vm8 = vcmp.ge.f32.partialorder %v10051_v42, 0.0  ;;  %v10129_v3 = vmul.f32 0.01, %v10051_v42  ;;  %11589 = vst.msk [vmem:[#allocation4 + $0xb8] sm:$0xf] %vm1413_vm5, %v11509_v40  ;;  %v11759_v0 = vpop.permute.xlu0 %11758 }
 0x6dc   : > { %11842 = vst.msk [vmem:[#allocation4 + $0x94] sm:$0xf] %vm1670_vm7, %v11759_v0 }
 0x6dd   : > { %v10161_v46 = vsel %vm10097_vm8, %v10051_v42, %v10129_v3  ;;  %v10058_v3 = vpop.f32.mrf.mxu0 }
 0x6de   : > { %10193 = vst.msk [vmem:[#allocation3 + $0x159] sm:$0xff] %vm433_vm2, %v10161_v46  ;;  %v11061_v36 = vpop.permute.xlu1 %11060 }
 0x6df   : > { %11141 = vst.msk [vmem:[#allocation4 + $0xb4] sm:$0xf] %vm1927_vm0, %v11061_v36  ;;  %v12015_v22 = vpop.permute.xlu0 %12014 }
 0x6e0   : > { %12098 = vst.msk [vmem:[#allocation4 + $0x94] sm:$0xf] %vm1927_vm0, %v12015_v22 }
 0x6e1   : > { %v10418_v55 = vld [vmem:[#allocation3 + $0x151] sm:$0xff] }
 0x6e2   : > { %v10928_v9 = vld [vmem:[#allocation3 + $0x150] sm:$0xff]  ;;  %v11761_v45 = vpop.permute.xlu1 %11760  ;;  %v20405_v11 = vpack.c.bf16 %v10418_v55, %v10418_v55 }
 0x6e3   : > { %v20407_v41 = vpack.c.bf16 %v10928_v9, %v10928_v9  ;;  %11843 = vst.msk [vmem:[#allocation4 + $0xa0] sm:$0xf] %vm1670_vm7, %v11761_v45  ;;  %v11507_v59 = vpop.permute.xlu0 %11506 }
 0x6e4   : > { %11588 = vst.msk [vmem:[#allocation4 + $0xac] sm:$0xf] %vm1413_vm5, %v11507_v59  ;;  %10574 = vrot.lane.b32.xlu0 %v20405_v11, %s20819_s26 }
 0x6e5   : > { %10386 = vst.msk [vmem:[#allocation4 + $0x150] sm:$0xf] %vm1156_vm6, %v20407_v41  ;;  %11344 = vst.msk [vmem:[#allocation4 + $0x13c] sm:$0xf] %vm1156_vm6, %v20405_v11  ;;  %v10419_v28 = vld [vmem:[#allocation3 + $0x159] sm:$0xff] }
 0x6e6   : > { %v10674_v57 = vld [vmem:[#allocation3 + $0x152] sm:$0xff]  ;;  %v10675_v35 = vld [vmem:[#allocation3 + $0x15a] sm:$0xff]  ;;  %v15933_v38 = vpop.f32.mrf.mxu1  ;;  %v12017_v19 = vpop.permute.xlu1 %12016  ;;  %v20417_v37 = vpack.c.bf16 %v10419_v28, %v10419_v28 }
 0x6e7   : > { %v15358_v43 = vpack.c.bf16 %v10674_v57, %v10674_v57  ;;  %v15359_v2 = vpack.c.bf16 %v10675_v35, %v10675_v35  ;;  %v10929_v6 = vld [vmem:[#allocation3 + $0x158] sm:$0xff]  ;;  %12099 = vst.msk [vmem:[#allocation4 + $0xa0] sm:$0xf] %vm1927_vm0, %v12017_v19  ;;  %v11763_v34 = vpop.permute.xlu0 %11762 }
 0x6e8   : > { %v20420_v27 = vpack.c.bf16 %v10929_v6, %v10929_v6  ;;  %11844 = vst.msk [vmem:[#allocation4 + $0xac] sm:$0xf] %vm1670_vm7, %v11763_v34  ;;  %v15934_v17 = vpop.f32.mrf.mxu1  ;;  %10576 = vrot.lane.b32.xlu1 %v20417_v37, %s20819_s26  ;;  %v16350_v35 = vld [vmem:[#allocation4 + $0xa8] ss:$12 sps:$4 sm:$0xff]  }
 0x6e9   : > { %10830 = vrot.lane.b32.xlu0 %v15358_v43, %s16483_s16  ;;  %12302 = vst.msk [vmem:[#allocation4 + $0x128] sm:$0xf] %vm1156_vm6, %v15358_v43  ;;  %12303 = vst.msk [vmem:[#allocation4 + $0x134] sm:$0xf] %vm1156_vm6, %v15359_v2  ;;  %v15935_v33 = vadd.f32 %v15934_v17, %v15933_v38 }
 0x6ea   : > { %11345 = vst.msk [vmem:[#allocation4 + $0x148] sm:$0xf] %vm1156_vm6, %v20417_v37  ;;  %10387 = vst.msk [vmem:[#allocation4 + $0x15c] sm:$0xf] %vm1156_vm6, %v20420_v27  ;;  %v15936_v31 = vpop.f32.mrf.mxu1  ;;  %v11993_v51 = vpop.permute.xlu1 %11992 }
 0x6eb   : > { %12087 = vst.msk [vmem:[#allocation4 + $0x10] sm:$0xf] %vm1927_vm0, %v11993_v51  ;;  %v12019_v49 = vpop.permute.xlu0 %12018  ;;  %v9895_v63 = vadd.f32 %v20387_v56, %v15935_v33 }
 0x6ec   : > { %12100 = vst.msk [vmem:[#allocation4 + $0xac] sm:$0xf] %vm1927_vm0, %v12019_v49  ;;  %v15937_v23 = vpop.f32.mrf.mxu1  ;;  %10832 = vrot.lane.b32.xlu1 %v15359_v2, %s16483_s16 }
 0x6ed   : > { %11530 = vrot.lane.b32.xlu0 %v15358_v43, %s20819_s26  ;;  %v15938_v39 = vadd.f32 %v15937_v23, %v15936_v31  ;;  %v10056_v42 = vadd.f32 %v10055_v61, %v9895_v63 }
 0x6ee   : > { %v11765_v40 = vpop.permute.xlu1 %11764  ;;  %v16355_v43 = vld [vmem:[#allocation4 + $0x94] ss:$12 sps:$4 sm:$0xff]  }
 0x6ef   : > { %vm10098_vm9 = vcmp.ge.f32.partialorder %v10056_v42, 0.0  ;;  %v10130_v0 = vmul.f32 0.01, %v10056_v42  ;;  %11845 = vst.msk [vmem:[#allocation4 + $0xb8] sm:$0xf] %vm1670_vm7, %v11765_v40  ;;  %v11991_v46 = vpop.permute.xlu0 %11990  ;;  %v9898_v36 = vadd.f32 %v20387_v56, %v15938_v39 }
 0x6f0   : > { %12086 = vst.msk [vmem:[#allocation4 + $0x4] sm:$0xf] %vm1927_vm0, %v11991_v46  ;;  %11532 = vrot.lane.b32.xlu1 %v15359_v2, %s20819_s26  ;;  %v16353_v40 = vld [vmem:[#allocation4 + $0x90] ss:$12 sps:$4 sm:$0xff]  }
 0x6f1   : > { %v10162_v22 = vsel %vm10098_vm9, %v10056_v42, %v10130_v0  ;;  %v10059_v55 = vadd.f32 %v10058_v3, %v9898_v36  ;;  %v16358_v46 = vld [vmem:[#allocation4 + $0x7c] ss:$12 sps:$4 sm:$0xff]  }
 0x6f2   : > { %10194 = vst.msk [vmem:[#allocation3 + $0x169] sm:$0xff] %vm433_vm2, %v10162_v22  ;;  %v12021_v9 = vpop.permute.xlu1 %12020 }
 0x6f3   : > { %vm10099_vm10 = vcmp.ge.f32.partialorder %v10059_v55, 0.0  ;;  %v10131_v45 = vmul.f32 0.01, %v10059_v55  ;;  %12101 = vst.msk [vmem:[#allocation4 + $0xb8] sm:$0xf] %vm1927_vm0, %v12021_v9 }
 0x6f5   : > { %v10163_v59 = vsel %vm10099_vm10, %v10059_v55, %v10131_v45 }
 0x6f6   : > { %10195 = vst.msk [vmem:[#allocation3 + $0x171] sm:$0xff] %vm433_vm2, %v10163_v59 }
 0x6f9   : > { %v10420_v28 = vld [vmem:[#allocation3 + $0x169] sm:$0xff] }
 0x6fa   : > { %v10930_v57 = vld [vmem:[#allocation3 + $0x168] sm:$0xff]  ;;  %v20446_v61 = vpack.c.bf16 %v10420_v28, %v10420_v28 }
 0x6fb   : > { %v16352_v38 = vld [vmem:[#allocation4 + $0xac] ss:$12 sps:$4 sm:$0xff]   ;;  %v20448_v19 = vpack.c.bf16 %v10930_v57, %v10930_v57 }
 0x6fc   : > { %10578 = vrot.lane.b32.xlu0 %v20446_v61, %s20819_s26  ;;  %12698 = vmatprep.subr.bf16.mxu1 %v16352_v38  ;;  %11346 = vst.msk [vmem:[#allocation4 + $0x154] sm:$0xf] %vm1156_vm6, %v20446_v61  ;;  %v16356_v57 = vld [vmem:[#allocation4 + $0x78] ss:$12 sps:$4 sm:$0xff]  }
 0x6fd   : > { %10388 = vst.msk [vmem:[#allocation4 + $0x168] sm:$0xf] %vm1156_vm6, %v20448_v19  ;;  %12699 = vmatpush1.bf16.xpose.msra.mxu1 %v16350_v35  ;;  %v10421_v2 = vld [vmem:[#allocation3 + $0x171] sm:$0xff] }
 0x6fe   : > { %v10677_v6 = vld [vmem:[#allocation3 + $0x172] sm:$0xff]  ;;  %v10676_v34 = vld [vmem:[#allocation3 + $0x16a] sm:$0xff]  ;;  %v15939_v17 = vpop.f32.mrf.mxu1  ;;  %12700 = vmatprep.subr.bf16.mxu1 %v16355_v43  ;;  %v20456_v33 = vpack.c.bf16 %v10421_v2, %v10421_v2 }
 0x6ff   : > { %v15361_v31 = vpack.c.bf16 %v10677_v6, %v10677_v6  ;;  %v15360_v51 = vpack.c.bf16 %v10676_v34, %v10676_v34  ;;  %v10931_v49 = vld [vmem:[#allocation3 + $0x170] sm:$0xff] }
 0x700   : > { %v20458_v63 = vpack.c.bf16 %v10931_v49, %v10931_v49  ;;  %v15940_v23 = vpop.f32.mrf.mxu1  ;;  %10580 = vrot.lane.b32.xlu1 %v20456_v33, %s20819_s26  ;;  %11086 = vrot.lane.b32.xlu0 %v20448_v19, %s20820_s17  ;;  %11347 = vst.msk [vmem:[#allocation4 + $0x160] sm:$0xf] %vm1156_vm6, %v20456_v33  ;;  %v16359_v6 = vld [vmem:[#allocation4 + $0x60] ss:$12 sps:$4 sm:$0xff]  }
 0x701   : > { %12304 = vst.msk [vmem:[#allocation4 + $0x140] sm:$0xf] %vm1156_vm6, %v15360_v51  ;;  %12305 = vst.msk [vmem:[#allocation4 + $0x14c] sm:$0xf] %vm1156_vm6, %v15361_v31  ;;  %v15941_v39 = vadd.f32 %v15940_v23, %v15939_v17 }
 0x702   : > { %10389 = vst.msk [vmem:[#allocation4 + $0x174] sm:$0xf] %vm1156_vm6, %v20458_v63  ;;  %v15942_v42 = vpop.f32.mrf.mxu1 }
 0x703   : > { %v9903_v3 = vadd.f32 %v20387_v56, %v15941_v39 }
 0x704   : > { %v15943_v0 = vpop.f32.mrf.mxu1  ;;  %10836 = vrot.lane.b32.xlu1 %v15361_v31, %s16483_s16  ;;  %10834 = vrot.lane.b32.xlu0 %v15360_v51, %s16483_s16 }
 0x705   : > { %v10064_v36 = vadd.f32 %v20403_v44, %v9903_v3  ;;  %v15944_v22 = vadd.f32 %v15943_v0, %v15942_v42  ;;  %12701 = vmatpush1.bf16.xpose.msra.mxu1 %v16353_v40  ;;  %v16361_v44 = vld [vmem:[#allocation4 + $0x64] ss:$12 sps:$4 sm:$0xff]   ;;  %v16362_v40 = vld [vmem:[#allocation4 + $0x48] ss:$12 sps:$4 sm:$0xff]  }
 0x706   : > { %12702 = vmatprep.subr.bf16.mxu1 %v16358_v46  ;;  %v16367_v3 = vld [vmem:[#allocation4 + $0x34] ss:$12 sps:$4 sm:$0xff]   ;;  %v16369_v0 = vld [vmem:[#allocation4 + $0x98] ss:$12 sps:$4 sm:$0xff]  }
 0x707   : > { %vm10100_vm11 = vcmp.ge.f32.partialorder %v10064_v36, 0.0  ;;  %v10132_v55 = vmul.f32 0.01, %v10064_v36  ;;  %v9906_v9 = vadd.f32 %v20387_v56, %v15944_v22 }
 0x708   : > { %11536 = vrot.lane.b32.xlu1 %v15361_v31, %s20819_s26  ;;  %11534 = vrot.lane.b32.xlu0 %v15360_v51, %s20819_s26  ;;  %v16370_v22 = vld [vmem:[#allocation4 + $0x140] ss:$12 sps:$4 sm:$0xff]  }
 0x709   : > { %v10164_v45 = vsel %vm10100_vm11, %v10064_v36, %v10132_v55  ;;  %v10067_v59 = vadd.f32 %v20430_v8, %v9906_v9  ;;  %v16364_v8 = vld [vmem:[#allocation4 + $0x4c] ss:$12 sps:$4 sm:$0xff]   ;;  %v12669_v36 = vsel %vm433_vm2, %v16369_v0, 0  ;;  %v16365_v55 = vld [vmem:[#allocation4 + $0x30] ss:$12 sps:$4 sm:$0xff]  }
 0x70a   : > { %10196 = vst.msk [vmem:[#allocation3 + $0x181] sm:$0xff] %vm433_vm2, %v10164_v45  ;;  %v16373_v9 = vld [vmem:[#allocation4 + $0x1c] ss:$12 sps:$4 sm:$0xff]   ;;  %v16374_v45 = vld [vmem:[#allocation4 + $0x80] ss:$12 sps:$4 sm:$0xff]  }
 0x70b   : > { %vm10101_vm12 = vcmp.ge.f32.partialorder %v10067_v59, 0.0  ;;  %v10133_v28 = vmul.f32 0.01, %v10067_v59 }
 0x70c   : > { %11088 = vrot.lane.b32.xlu1 %v20458_v63, %s20820_s17 }
 0x70d   : > { %v10165_v35 = vsel %vm10101_vm12, %v10067_v59, %v10133_v28  ;;  %12703 = vmatpush1.bf16.xpose.msra.mxu1 %v16356_v57  ;;  %v12666_v59 = vsel %vm433_vm2, %v16374_v45, 0  ;;  %v16375_v28 = vld [vmem:[#allocation4 + $0x128] ss:$12 sps:$4 sm:$0xff]   ;;  %v16371_v57 = vld [vmem:[#allocation4 + $0x18] ss:$12 sps:$4 sm:$0xff]  }
 0x70e   : > { %10197 = vst.msk [vmem:[#allocation3 + $0x189] sm:$0xff] %vm433_vm2, %v10165_v35  ;;  %12704 = vmatprep.subr.bf16.mxu1 %v16361_v44  ;;  %v16378_v44 = vld [vmem:[#allocation4 + $0x4] ss:$12 sps:$4 sm:$0xff]   ;;  %v16379_v35 = vld [vmem:[#allocation4 + $0x68] ss:$12 sps:$4 sm:$0xff]  }
 0x70f   : > { %v10662_v45 = vld [vmem:[#allocation3 + $0xc2] sm:$0xff] }
 0x711   : > { %v10932_v56 = vld [vmem:[#allocation3 + $0x180] sm:$0xff] }
 0x712   : > { %v11890_v38 = vld [vmem:[#allocation3 + $0x181] sm:$0xff]  ;;  %v15392_v43 = vpack.c.bf16 %v10932_v56, %v10932_v56 }
 0x713   : > { %v15518_v2 = vpack.c.bf16 %v11890_v38, %v11890_v38  ;;  %v16380_v56 = vld [vmem:[#allocation4 + $0x110] ss:$12 sps:$4 sm:$0xff]   ;;  %v20514_v38 = vpop.permute.xlu0 %11794 }
 0x714   : > { %11090 = vrot.lane.b32.xlu0 %v15392_v43, %s20820_s17 }
 0x715   : > { %11348 = vst.msk [vmem:[#allocation4 + $0x16c] sm:$0xf] %vm1156_vm6, %v15518_v2  ;;  %12705 = vmatpush1.bf16.xpose.msra.mxu1 %v16359_v6  ;;  %v11381_v34 = vld [vmem:[#allocation3 + $0x18a] sm:$0xff]  ;;  %v11380_v17 = vld [vmem:[#allocation3 + $0x182] sm:$0xff] }
 0x716   : > { %12706 = vmatprep.subr.bf16.mxu1 %v16364_v8  ;;  %v15457_v31 = vpack.c.bf16 %v11381_v34, %v11381_v34  ;;  %v15456_v51 = vpack.c.bf16 %v11380_v17, %v11380_v17  ;;  %v11891_v49 = vld [vmem:[#allocation3 + $0x189] sm:$0xff] }
 0x717   : > { %v10933_v23 = vld [vmem:[#allocation3 + $0x188] sm:$0xff]  ;;  %v15519_v39 = vpack.c.bf16 %v11891_v49, %v11891_v49  ;;  %v16386_v49 = vld [vmem:[#allocation4 + $0xc8] ss:$12 sps:$4 sm:$0xff]  }
 0x718   : > { %11540 = vrot.lane.b32.xlu1 %v15457_v31, %s20819_s26  ;;  %11790 = vrot.lane.b32.xlu0 %v15392_v43, %s16483_s16  ;;  %12306 = vst.msk [vmem:[#allocation4 + $0x158] sm:$0xf] %vm1156_vm6, %v15456_v51  ;;  %12307 = vst.msk [vmem:[#allocation4 + $0x164] sm:$0xf] %vm1156_vm6, %v15457_v31  ;;  %v15393_v42 = vpack.c.bf16 %v10933_v23, %v10933_v23  ;;  %v16381_v43 = vld [vmem:[#allocation4 + $0x50] ss:$12 sps:$4 sm:$0xff]  }
 0x719   : > { %11349 = vst.msk [vmem:[#allocation4 + $0x178] sm:$0xf] %vm1156_vm6, %v15519_v39  ;;  %v12660_v6 = vsel %vm433_vm2, %v16381_v43, 0  ;;  %v16382_v8 = vld [vmem:[#allocation4 + $0xf8] ss:$12 sps:$4 sm:$0xff]  }
 0x71a   : > { %v16383_v34 = vld [vmem:[#allocation4 + $0x38] ss:$12 sps:$4 sm:$0xff]   ;;  %v16384_v31 = vld [vmem:[#allocation4 + $0xe0] ss:$12 sps:$4 sm:$0xff]  }
 0x71c   : > { %11092 = vrot.lane.b32.xlu1 %v15393_v42, %s20820_s17  ;;  %12046 = vrot.lane.b32.xlu0 %v15518_v2, %s20820_s17  ;;  %v20521_v2 = vpop.permute.xlu1 %11796 }
 0x71d   : > { %12707 = vmatpush1.bf16.xpose.msra.mxu1 %v16362_v40  ;;  %v10664_v40 = vld [vmem:[#allocation3 + $0xda] sm:$0xff] }
 0x71e   : > { %12708 = vmatprep.subr.bf16.mxu1 %v16367_v3  ;;  %v10665_v3 = vld [vmem:[#allocation3 + $0xe2] sm:$0xff] }
 0x71f   : > { %v16368_v46 = vld [vmem:[#allocation4 + $0x158] ss:$12 sps:$4 sm:$0xff]   ;;  %v15349_v0 = vpack.c.bf16 %v10665_v3, %v10665_v3 }
 0x720   : > { %11792 = vrot.lane.b32.xlu1 %v15393_v42, %s16483_s16  ;;  %11538 = vrot.lane.b32.xlu0 %v15456_v51, %s20819_s26 }
 0x721   : > { %16143 = vmatprep.subr.msk.bf16.mxu0 %vm433_vm2, %v16368_v46 }
 0x722   : > { %15966 = vmatpush3.bf16.xpose.msra.mxu0 %v12669_v36 }
 0x723   : > { %16144 = vmatprep.subr.msk.bf16.mxu0 %vm433_vm2, %v16370_v22  ;;  %v10407_v22 = vld [vmem:[#allocation3 + $0xc9] sm:$0xff] }
 0x724   : > { %12048 = vrot.lane.b32.xlu1 %v15519_v39, %s20820_s17  ;;  %10826 = vrot.lane.b32.xlu0 %v20367_v14, %s16483_s16 }
 0x725   : > { %12709 = vmatpush1.bf16.xpose.msra.mxu1 %v16365_v55 }
 0x726   : > { %12710 = vmatprep.subr.bf16.mxu1 %v16373_v9  ;;  %v15315_v9 = vpack.c.bf16 %v10407_v22, %v10407_v22 }
 0x728   : > { %10828 = vrot.lane.b32.xlu1 %v20369_v24, %s16483_s16  ;;  %11786 = vrot.lane.b32.xlu0 %v20448_v19, %s16483_s16  ;;  %v12663_v19 = vsel %vm433_vm2, %v16379_v35, 0 }
 0x72a   : > { %15968 = vmatpush3.bf16.xpose.msra.mxu0 %v12666_v59 }
 0x72b   : > { %16145 = vmatprep.subr.msk.bf16.mxu0 %vm433_vm2, %v16375_v28 }
 0x72c   : > { %11788 = vrot.lane.b32.xlu1 %v20458_v63, %s16483_s16  ;;  %11082 = vrot.lane.b32.xlu0 %v20407_v41, %s20820_s17  ;;  %v16376_v63 = vld [vmem:[#allocation4] ss:$12 sps:$4 sm:$0xff]  }
 0x72d   : > { %12711 = vmatpush1.bf16.xpose.msra.mxu1 %v16371_v57  ;;  %v10663_v57 = vld [vmem:[#allocation3 + $0xca] sm:$0xff] }
 0x72e   : > { %12712 = vmatprep.subr.bf16.mxu1 %v16378_v44 }
 0x730   : > { %11084 = vrot.lane.b32.xlu1 %v20420_v27, %s20820_s17  ;;  %12042 = vrot.lane.b32.xlu0 %v20446_v61, %s20820_s17  ;;  %v20527_v61 = vpop.permute.xlu0 %12050 }
 0x732   : > { %15970 = vmatpush3.bf16.xpose.msra.mxu0 %v12663_v19 }
 0x733   : > { %16146 = vmatprep.subr.msk.bf16.mxu0 %vm433_vm2, %v16380_v56 }
 0x734   : > { %12044 = vrot.lane.b32.xlu1 %v20456_v33, %s20820_s17  ;;  %10566 = vrot.lane.b32.xlu0 %v20310_v29, %s20819_s26  ;;  %v20535_v33 = vpop.permute.xlu1 %12052 }
 0x735   : > { %12713 = vmatpush1.bf16.xpose.msra.mxu1 %v16376_v63 }
 0x738   : > { %10568 = vrot.lane.b32.xlu1 %v20322_v16, %s20819_s26  ;;  %11526 = vrot.lane.b32.xlu0 %v20367_v14, %s20819_s26  ;;  %v12657_v14 = vsel %vm433_vm2, %v16383_v34, 0 }
 0x73a   : > { %15972 = vmatpush3.bf16.xpose.msra.mxu0 %v12660_v6 }
 0x73b   : > { %16147 = vmatprep.subr.msk.bf16.mxu0 %vm433_vm2, %v16382_v8  ;;  %v12393_v8 = vlaneseq }
 0x73c   : > { %11528 = vrot.lane.b32.xlu1 %v20369_v24, %s20819_s26  ;;  %10822 = vrot.lane.b32.xlu0 %v20324_v4, %s16483_s16  ;;  %v16385_v24 = vld [vmem:[#allocation4 + $0x20] ss:$12 sps:$4 sm:$0xff]  }
 0x73e   : > { %v10571_v17 = vpop.permute.xlu0 %10570 }
 0x73f   : > { %10640 = vst.msk [vmem:[#allocation4 + $0x138] sm:$0xf] %vm1413_vm5, %v10571_v17 }
 0x740   : > { %10824 = vrot.lane.b32.xlu1 %v20326_v25, %s16483_s16  ;;  %11782 = vrot.lane.b32.xlu0 %v20407_v41, %s16483_s16  ;;  %v12654_v41 = vsel %vm433_vm2, %v16385_v24, 0 }
 0x742   : > { %v10573_v51 = vpop.permute.xlu1 %10572  ;;  %15974 = vmatpush3.bf16.xpose.msra.mxu0 %v12657_v14  ;;  %v12394_v14 = vshrl.u32 %v12393_v8, 7 }
 0x743   : > { %10641 = vst.msk [vmem:[#allocation4 + $0x144] sm:$0xf] %vm1413_vm5, %v10573_v51  ;;  %16148 = vmatprep.subr.msk.bf16.mxu0 %vm433_vm2, %v16384_v31 }
 0x744   : > { %11784 = vrot.lane.b32.xlu1 %v20420_v27, %s16483_s16  ;;  %11078 = vrot.lane.b32.xlu0 %v20356_v15, %s20820_s17  ;;  %v16387_v27 = vld [vmem:[#allocation4 + $0x8] ss:$12 sps:$4 sm:$0xff]  }
 0x748   : > { %11080 = vrot.lane.b32.xlu1 %v20372_v58, %s20820_s17  ;;  %12038 = vrot.lane.b32.xlu0 %v20405_v11, %s20820_s17  ;;  %v12651_v11 = vsel %vm433_vm2, %v16387_v27, 0 }
 0x74a   : > { %15976 = vmatpush3.bf16.xpose.msra.mxu0 %v12654_v41 }
 0x74b   : > { %16149 = vmatprep.subr.msk.bf16.mxu0 %vm433_vm2, %v16386_v49 }
 0x74c   : > { %12040 = vrot.lane.b32.xlu1 %v20417_v37, %s20820_s17  ;;  %10562 = vrot.lane.b32.xlu0 %v20268_v50, %s20819_s26 }
 0x750   : > { %10564 = vrot.lane.b32.xlu1 %v20282_v54, %s20819_s26  ;;  %11522 = vrot.lane.b32.xlu0 %v20324_v4, %s20819_s26 }
 0x752   : > { %15978 = vmatpush3.bf16.xpose.msra.mxu0 %v12651_v11 }
 0x754   : > { %11524 = vrot.lane.b32.xlu1 %v20326_v25, %s20819_s26  ;;  %10818 = vrot.lane.b32.xlu0 %v20278_v7, %s16483_s16 }
 0x756   : > { %v10575_v37 = vpop.permute.xlu0 %10574 }
 0x757   : > { %10642 = vst.msk [vmem:[#allocation4 + $0x150] sm:$0xf] %vm1413_vm5, %v10575_v37 }
 0x758   : > { %10820 = vrot.lane.b32.xlu1 %v20280_v1, %s16483_s16  ;;  %11778 = vrot.lane.b32.xlu0 %v20356_v15, %s16483_s16 }
 0x75a   : > { %v10577_v23 = vpop.permute.xlu1 %10576 }
 0x75b   : > { %v10831_v4 = vpop.permute.xlu0 %10830  ;;  %10643 = vst.msk [vmem:[#allocation4 + $0x15c] sm:$0xf] %vm1413_vm5, %v10577_v23  ;;  %v16486_v23 = vmov 0  }
 0x75c   : > { %10898 = vst.msk [vmem:[#allocation4 + $0x150] sm:$0xf] %vm1670_vm7, %v10831_v4  ;;  %11780 = vrot.lane.b32.xlu1 %v20372_v58, %s16483_s16  ;;  %11074 = vrot.lane.b32.xlu0 %v20312_v52, %s20820_s17 }
 0x75d   : > { %16195 = vset.pattern.permute.xlu0 %v16486_v23 }
 0x75e   : > { %v10833_v25 = vpop.permute.xlu1 %10832 }
 0x75f   : > { %v11531_v39 = vpop.permute.xlu0 %11530  ;;  %10899 = vst.msk [vmem:[#allocation4 + $0x15c] sm:$0xf] %vm1670_vm7, %v10833_v25 }
 0x760   : > { %11600 = vst.msk [vmem:[#allocation4 + $0x13c] sm:$0xf] %vm1413_vm5, %v11531_v39  ;;  %11076 = vrot.lane.b32.xlu1 %v20329_v21, %s20820_s17  ;;  %12034 = vrot.lane.b32.xlu0 %v20354_v30, %s20820_s17 }
 0x762   : > { %v11533_v15 = vpop.permute.xlu1 %11532 }
 0x763   : > { %11601 = vst.msk [vmem:[#allocation4 + $0x148] sm:$0xf] %vm1413_vm5, %v11533_v15 }
 0x764   : > { %12036 = vrot.lane.b32.xlu1 %v20365_v10, %s20820_s17  ;;  %10558 = vrot.lane.b32.xlu0 %v20212_v18, %s20819_s26 }
 0x768   : > { %10560 = vrot.lane.b32.xlu1 %v20229_v48, %s20819_s26  ;;  %11518 = vrot.lane.b32.xlu0 %v20278_v7, %s20819_s26 }
 0x76c   : > { %11520 = vrot.lane.b32.xlu1 %v20280_v1, %s20819_s26  ;;  %10814 = vrot.lane.b32.xlu0 %v20225_v47, %s16483_s16 }
 0x76e   : > { %v10579_v30 = vpop.permute.xlu0 %10578 }
 0x76f   : > { %10644 = vst.msk [vmem:[#allocation4 + $0x168] sm:$0xf] %vm1413_vm5, %v10579_v30 }
 0x770   : > { %10816 = vrot.lane.b32.xlu1 %v20227_v62, %s16483_s16  ;;  %11774 = vrot.lane.b32.xlu0 %v20312_v52, %s16483_s16 }
 0x772   : > { %v10581_v10 = vpop.permute.xlu1 %10580  ;;  %v11087_v58 = vpop.permute.xlu0 %11086 }
 0x773   : > { %10645 = vst.msk [vmem:[#allocation4 + $0x174] sm:$0xf] %vm1413_vm5, %v10581_v10 }
 0x774   : > { %11154 = vst.msk [vmem:[#allocation4 + $0x150] sm:$0xf] %vm1927_vm0, %v11087_v58  ;;  %11776 = vrot.lane.b32.xlu1 %v20329_v21, %s16483_s16  ;;  %11070 = vrot.lane.b32.xlu0 %v20270_v20, %s20820_s17 }
 0x776   : > { %v10837_v7 = vpop.permute.xlu1 %10836  ;;  %v10835_v1 = vpop.permute.xlu0 %10834 }
 0x777   : > { %10901 = vst.msk [vmem:[#allocation4 + $0x174] sm:$0xf] %vm1670_vm7, %v10837_v7  ;;  %10900 = vst.msk [vmem:[#allocation4 + $0x168] sm:$0xf] %vm1670_vm7, %v10835_v1 }
 0x778   : > { %11072 = vrot.lane.b32.xlu1 %v20285_v60, %s20820_s17  ;;  %12030 = vrot.lane.b32.xlu0 %v20310_v29, %s20820_s17  ;;  %v15348_v29 = vpack.c.bf16 %v10664_v40, %v10664_v40 }
 0x77a   : > { %v11537_v52 = vpop.permute.xlu1 %11536  ;;  %v11535_v42 = vpop.permute.xlu0 %11534 }
 0x77b   : > { %11603 = vst.msk [vmem:[#allocation4 + $0x160] sm:$0xf] %vm1413_vm5, %v11537_v52  ;;  %11602 = vst.msk [vmem:[#allocation4 + $0x154] sm:$0xf] %vm1413_vm5, %v11535_v42 }
 0x77c   : > { %12032 = vrot.lane.b32.xlu1 %v20322_v16, %s20820_s17  ;;  %10554 = vrot.lane.b32.xlu0 %v20168_v13, %s20819_s26 }
 0x77e   : > { %v11089_v21 = vpop.permute.xlu1 %11088 }
 0x77f   : > { %11155 = vst.msk [vmem:[#allocation4 + $0x15c] sm:$0xf] %vm1927_vm0, %v11089_v21 }
 0x780   : > { %10556 = vrot.lane.b32.xlu1 %v20191_v12, %s20819_s26  ;;  %11514 = vrot.lane.b32.xlu0 %v20225_v47, %s20819_s26 }
 0x784   : > { %11516 = vrot.lane.b32.xlu1 %v20227_v62, %s20819_s26  ;;  %10810 = vrot.lane.b32.xlu0 %v15348_v29, %s16483_s16 }
 0x786   : > { %v11091_v16 = vpop.permute.xlu0 %11090 }
 0x787   : > { %11156 = vst.msk [vmem:[#allocation4 + $0x168] sm:$0xf] %vm1927_vm0, %v11091_v16 }
 0x788   : > { %10812 = vrot.lane.b32.xlu1 %v15349_v0, %s16483_s16  ;;  %11770 = vrot.lane.b32.xlu0 %v20270_v20, %s16483_s16  ;;  %v10406_v20 = vld [vmem:[#allocation3 + $0xc1] sm:$0xff] }
 0x789   : > { %v15314_v36 = vpack.c.bf16 %v10406_v20, %v10406_v20 }
 0x78a   : > { %v11541_v13 = vpop.permute.xlu1 %11540  ;;  %v11791_v12 = vpop.permute.xlu0 %11790 }
 0x78b   : > { %11605 = vst.msk [vmem:[#allocation4 + $0x178] sm:$0xf] %vm1413_vm5, %v11541_v13 }
 0x78c   : > { %11858 = vst.msk [vmem:[#allocation4 + $0x154] sm:$0xf] %vm1670_vm7, %v11791_v12  ;;  %11861 = vst.msk [vmem:[#allocation4 + $0x178] sm:$0xf] %vm1670_vm7, %v20521_v2  ;;  %11772 = vrot.lane.b32.xlu1 %v20285_v60, %s16483_s16  ;;  %11066 = vrot.lane.b32.xlu0 %v20214_v32, %s20820_s17 }
 0x78d   : > { %12117 = vst.msk [vmem:[#allocation4 + $0x178] sm:$0xf] %vm1927_vm0, %v20535_v33  ;;  %v16391_v33 = vld [vmem:[#allocation4 + $0x150] ss:$12 sps:$4 sm:$0xff]  }
 0x78e   : > { %v11093_v47 = vpop.permute.xlu1 %11092  ;;  %v12047_v62 = vpop.permute.xlu0 %12046 }
 0x78f   : > { %11157 = vst.msk [vmem:[#allocation4 + $0x174] sm:$0xf] %vm1927_vm0, %v11093_v47  ;;  %12114 = vst.msk [vmem:[#allocation4 + $0x154] sm:$0xf] %vm1927_vm0, %v12047_v62 }
 0x790   : > { %11068 = vrot.lane.b32.xlu1 %v20239_v26, %s20820_s17  ;;  %12026 = vrot.lane.b32.xlu0 %v20268_v50, %s20820_s17 }
 0x792   : > { %v11793_v60 = vpop.permute.xlu1 %11792  ;;  %v11539_v46 = vpop.permute.xlu0 %11538 }
 0x793   : > { %11859 = vst.msk [vmem:[#allocation4 + $0x160] sm:$0xf] %vm1670_vm7, %v11793_v60 }
 0x794   : > { %11604 = vst.msk [vmem:[#allocation4 + $0x16c] sm:$0xf] %vm1413_vm5, %v11539_v46  ;;  %12028 = vrot.lane.b32.xlu1 %v20282_v54, %s20820_s17  ;;  %10550 = vrot.lane.b32.xlu0 %v15314_v36, %s20819_s26  ;;  %v15346_v54 = vpack.c.bf16 %v10662_v45, %v10662_v45 }
 0x795   : > { %11860 = vst.msk [vmem:[#allocation4 + $0x16c] sm:$0xf] %vm1670_vm7, %v20514_v38  ;;  %v15347_v38 = vpack.c.bf16 %v10663_v57, %v10663_v57 }
 0x796   : > { %12116 = vst.msk [vmem:[#allocation4 + $0x16c] sm:$0xf] %vm1927_vm0, %v20527_v61  ;;  %v12049_v50 = vpop.permute.xlu1 %12048  ;;  %v10827_v55 = vpop.permute.xlu0 %10826  ;;  %v16388_v44 = vld [vmem:[#allocation4 + $0x168] ss:$12 sps:$4 sm:$0xff]   ;;  %v16485_v61 = vmov 1966171168  }
 0x797   : > { %12115 = vst.msk [vmem:[#allocation4 + $0x160] sm:$0xf] %vm1927_vm0, %v12049_v50  ;;  %v12391_v6 = vunpack.c.l.s4 %v16485_v61 }
 0x798   : > { %10896 = vst.msk [vmem:[#allocation4 + $0x138] sm:$0xf] %vm1670_vm7, %v10827_v55  ;;  %10552 = vrot.lane.b32.xlu1 %v15315_v9, %s20819_s26  ;;  %11510 = vrot.lane.b32.xlu0 %v15348_v29, %s20819_s26 }
 0x79a   : > { %v10829_v59 = vpop.permute.xlu1 %10828  ;;  %v11787_v28 = vpop.permute.xlu0 %11786 }
 0x79b   : > { %10897 = vst.msk [vmem:[#allocation4 + $0x144] sm:$0xf] %vm1670_vm7, %v10829_v59  ;;  %11856 = vst.msk [vmem:[#allocation4 + $0x13c] sm:$0xf] %vm1670_vm7, %v11787_v28 }
 0x79c   : > { %11512 = vrot.lane.b32.xlu1 %v15349_v0, %s20819_s26  ;;  %10806 = vrot.lane.b32.xlu0 %v15346_v54, %s16483_s16 }
 0x79d   : > { %v16390_v35 = vld [vmem:[#allocation4 + $0x16c] ss:$12 sps:$4 sm:$0xff]  }
 0x79e   : > { %v11789_v19 = vpop.permute.xlu1 %11788  ;;  %v11083_v56 = vpop.permute.xlu0 %11082  ;;  %12714 = vmatprep.subr.bf16.mxu1 %v16390_v35  ;;  %v16393_v63 = vld [vmem:[#allocation4 + $0x154] ss:$12 sps:$4 sm:$0xff]  }
 0x79f   : > { %11857 = vst.msk [vmem:[#allocation4 + $0x148] sm:$0xf] %vm1670_vm7, %v11789_v19  ;;  %12715 = vmatpush2.bf16.xpose.msra.mxu1 %v16388_v44 }
 0x7a0   : > { %11152 = vst.msk [vmem:[#allocation4 + $0x138] sm:$0xf] %vm1927_vm0, %v11083_v56  ;;  %10808 = vrot.lane.b32.xlu1 %v15347_v38, %s16483_s16  ;;  %11766 = vrot.lane.b32.xlu0 %v20214_v32, %s16483_s16  ;;  %v12392_v32 = vunpack.c.0.s8 %v12391_v6 }
 0x7a1   : > { %12716 = vmatprep.subr.bf16.mxu1 %v16393_v63 }
 0x7a2   : > { %v11085_v43 = vpop.permute.xlu1 %11084  ;;  %v12043_v2 = vpop.permute.xlu0 %12042 }
 0x7a3   : > { %11153 = vst.msk [vmem:[#allocation4 + $0x144] sm:$0xf] %vm1927_vm0, %v11085_v43  ;;  %12112 = vst.msk [vmem:[#allocation4 + $0x13c] sm:$0xf] %vm1927_vm0, %v12043_v2 }
 0x7a4   : > { %11768 = vrot.lane.b32.xlu1 %v20239_v26, %s16483_s16  ;;  %11062 = vrot.lane.b32.xlu0 %v20172_v5, %s20820_s17  ;;  %v12395_v5 = vsub.s32 %v12392_v32, %v12394_v14  ;;  %v14343_v26 = vld.sshfl [vmem:[%s20805_s10] sm:$0x13 pattern:$0x75316420]  ;;  %s419_s16 = sand.u32 1, %s16471_s22  }
 0x7a5   : > { %v12389_v41 = vcombine.high %v14343_v26, %v14343_v26  ;;  %s12902_s26 = sshll.u32 %s419_s16, 2 }
 0x7a6   : > { %v12045_v34 = vpop.permute.xlu1 %12044  ;;  %v10567_v17 = vpop.permute.xlu0 %10566  ;;  %v20686_v24 = vrot.slane %v14343_v26, %v12395_v5  ;;  %s421_s15 = scalar_lea.vmem [#allocation5], %s12902_s26 }
 0x7a7   : > { %12113 = vst.msk [vmem:[#allocation4 + $0x148] sm:$0xf] %vm1927_vm0, %v12045_v34  ;;  %12717 = vmatpush2.bf16.xpose.msra.mxu1 %v16391_v33 }
 0x7a8   : > { %10638 = vst.msk [vmem:[#allocation4 + $0x120] sm:$0xf] %vm1413_vm5, %v10567_v17  ;;  %11064 = vrot.lane.b32.xlu1 %v20194_v53, %s20820_s17  ;;  %12022 = vrot.lane.b32.xlu0 %v20212_v18, %s20820_s17  ;;  %v12404_v53 = vcombine.high %v20686_v24, %v20686_v24  ;;  %v12403_v18 = vrot.slane %v12389_v41, %v12395_v5 }
 0x7aa   : > { %v10569_v31 = vpop.permute.xlu1 %10568  ;;  %v11527_v51 = vpop.permute.xlu0 %11526  ;;  %v16394_v11 = vld [vmem:[#allocation4 + $0x138] ss:$12 sps:$4 sm:$0xff]   ;;  %15979 = vmatprep.mubr.msk.bf16.mxu0 %vm433_vm2, %v12404_v53  ;;  %12730 = vmatprep.mubr.bf16.mxu1 %v12403_v18 }
 0x7ab   : > { %10639 = vst.msk [vmem:[#allocation4 + $0x12c] sm:$0xf] %vm1413_vm5, %v10569_v31  ;;  %11598 = vst.msk [vmem:[#allocation4 + $0x124] sm:$0xf] %vm1413_vm5, %v11527_v51  ;;  %15980 = vmatmul.mubr.msk.bf16.vlgmr.msra.gmra.mxu0 %vm433_vm2, %v12404_v53 }
 0x7ac   : > { %12024 = vrot.lane.b32.xlu1 %v20229_v48, %s20820_s17  ;;  %v12375_v48 = vld [vmem:[%s20806_s11] sm:$0x3]  ;;  %s12827_s17 = sshll.u32 %s421_s15, 4  ;;  %s12828_s17 = int_to_ptr.vmem [resolvable:$true] %s12827_s17 }
 0x7ad   : > { %12378 = vperm.xlu0 %16195, %v12375_v48   ;;  %s16419_s0 = scalar_lea.vmem %s12828_s17, 64  ;;  %p16426_p0 = scmp.lt.s32.totalorder %s12828_s17, %s16424_s2 }
 0x7ae   : > { %v11529_v49 = vpop.permute.xlu1 %11528  ;;  %v10823_v27 = vpop.permute.xlu0 %10822  ;;  %v16396_v37 = vld [vmem:[#allocation4 + $0x13c] ss:$12 sps:$4 sm:$0xff]   ;;  %p16420_p11 = scmp.ne.s32.totalorder %s12828_s17, %s16419_s0  ;;  %p16427_p1 = scmp.lt.s32.totalorder %s16425_s25, %s16419_s0 }
 0x7af   : > { %11599 = vst.msk [vmem:[#allocation4 + $0x130] sm:$0xf] %vm1413_vm5, %v11529_v49  ;;  %12718 = vmatprep.subr.bf16.mxu1 %v16396_v37 }
 0x7b0   : > { %10894 = vst.msk [vmem:[#allocation4 + $0x120] sm:$0xf] %vm1670_vm7, %v10823_v27  ;;  %12719 = vmatpush2.bf16.xpose.msra.mxu1 %v16394_v11  ;;  %p16421_p12 = pnand %p16420_p11, %p16591_p5  ;;  %p16428_p2 = por %p16427_p1, %p16426_p0 }
 0x7b2   : > { %v10825_v4 = vpop.permute.xlu1 %10824  ;;  %v11783_v25 = vpop.permute.xlu0 %11782  ;;  %p16422_p13 = pneg %p16421_p12 }
 0x7b3   : > { %10895 = vst.msk [vmem:[#allocation4 + $0x12c] sm:$0xf] %vm1670_vm7, %v10825_v4  ;;  %11854 = vst.msk [vmem:[#allocation4 + $0x124] sm:$0xf] %vm1670_vm7, %v11783_v25 }
 0x7b4   : > { %p16429_p3 = pnand %p16428_p2, %p16422_p13 }
 0x7b6   : > { %v11785_v39 = vpop.permute.xlu1 %11784  ;;  %v11079_v15 = vpop.permute.xlu0 %11078 }
 0x7b7   : > { %11855 = vst.msk [vmem:[#allocation4 + $0x130] sm:$0xf] %vm1670_vm7, %v11785_v39 }
 0x7b8   : > { %11150 = vst.msk [vmem:[#allocation4 + $0x120] sm:$0xf] %vm1927_vm0, %v11079_v15 }
 0x7ba   : > { %v11081_v30 = vpop.permute.xlu1 %11080  ;;  %v12039_v10 = vpop.permute.xlu0 %12038 }
 0x7bb   : > { %11151 = vst.msk [vmem:[#allocation4 + $0x12c] sm:$0xf] %vm1927_vm0, %v11081_v30  ;;  %12110 = vst.msk [vmem:[#allocation4 + $0x124] sm:$0xf] %vm1927_vm0, %v12039_v10 }
 0x7be   : > { %v12041_v58 = vpop.permute.xlu1 %12040  ;;  %v10563_v7 = vpop.permute.xlu0 %10562 }
 0x7bf   : > { %12111 = vst.msk [vmem:[#allocation4 + $0x130] sm:$0xf] %vm1927_vm0, %v12041_v58 }
 0x7c0   : > { %10636 = vst.msk [vmem:[#allocation4 + $0x108] sm:$0xf] %vm1413_vm5, %v10563_v7 }
 0x7c2   : > { %v10565_v1 = vpop.permute.xlu1 %10564  ;;  %v11523_v52 = vpop.permute.xlu0 %11522  ;;  %v16397_v40 = vld [vmem:[#allocation4 + $0x120] ss:$12 sps:$4 sm:$0xff]  }
 0x7c3   : > { %10637 = vst.msk [vmem:[#allocation4 + $0x114] sm:$0xf] %vm1413_vm5, %v10565_v1  ;;  %11596 = vst.msk [vmem:[#allocation4 + $0x10c] sm:$0xf] %vm1413_vm5, %v11523_v52 }
 0x7c4   : > { %v14393_v1 = vld.sshfl [vmem:[%s431_s20] sm:$0x33 pattern:$0x76325410]  ;;  %s12813_s20 = scalar_lea.sflag [#allocation6], %s419_s16 }
 0x7c6   : > { %v11525_v42 = vpop.permute.xlu1 %11524  ;;  %v10819_v21 = vpop.permute.xlu0 %10818  ;;  %v16399_v29 = vld [vmem:[#allocation4 + $0x124] ss:$12 sps:$4 sm:$0xff]  }
 0x7c7   : > { %11597 = vst.msk [vmem:[#allocation4 + $0x118] sm:$0xf] %vm1413_vm5, %v11525_v42  ;;  %12720 = vmatprep.subr.bf16.mxu1 %v16399_v29  ;;  %v12789_v29 = vcombine.high %v14393_v1, %v14393_v1 }
 0x7c8   : > { %10892 = vst.msk [vmem:[#allocation4 + $0x108] sm:$0xf] %vm1670_vm7, %v10819_v21  ;;  %12721 = vmatpush2.bf16.xpose.msra.mxu1 %v16397_v40 }
 0x7ca   : > { %v10821_v3 = vpop.permute.xlu1 %10820  ;;  %v11779_v16 = vpop.permute.xlu0 %11778 }
 0x7cb   : > { %10893 = vst.msk [vmem:[#allocation4 + $0x114] sm:$0xf] %vm1670_vm7, %v10821_v3  ;;  %11852 = vst.msk [vmem:[#allocation4 + $0x10c] sm:$0xf] %vm1670_vm7, %v11779_v16 }
 0x7ce   : > { %v11781_v0 = vpop.permute.xlu1 %11780  ;;  %v11075_v13 = vpop.permute.xlu0 %11074 }
 0x7cf   : > { %11853 = vst.msk [vmem:[#allocation4 + $0x118] sm:$0xf] %vm1670_vm7, %v11781_v0 }
 0x7d0   : > { %11148 = vst.msk [vmem:[#allocation4 + $0x108] sm:$0xf] %vm1927_vm0, %v11075_v13 }
 0x7d2   : > { %v11077_v12 = vpop.permute.xlu1 %11076  ;;  %v12035_v47 = vpop.permute.xlu0 %12034 }
 0x7d3   : > { %11149 = vst.msk [vmem:[#allocation4 + $0x114] sm:$0xf] %vm1927_vm0, %v11077_v12  ;;  %12108 = vst.msk [vmem:[#allocation4 + $0x10c] sm:$0xf] %vm1927_vm0, %v12035_v47 }
 0x7d6   : > { %v12037_v62 = vpop.permute.xlu1 %12036  ;;  %v10559_v20 = vpop.permute.xlu0 %10558 }
 0x7d7   : > { %12109 = vst.msk [vmem:[#allocation4 + $0x118] sm:$0xf] %vm1927_vm0, %v12037_v62 }
 0x7d8   : > { %10634 = vst.msk [vmem:[#allocation4 + $0xf0] sm:$0xf] %vm1413_vm5, %v10559_v20 }
 0x7da   : > { %v10561_v60 = vpop.permute.xlu1 %10560  ;;  %v11519_v46 = vpop.permute.xlu0 %11518  ;;  %v16400_v50 = vld [vmem:[#allocation4 + $0x108] ss:$12 sps:$4 sm:$0xff]  }
 0x7db   : > { %10635 = vst.msk [vmem:[#allocation4 + $0xfc] sm:$0xf] %vm1413_vm5, %v10561_v60  ;;  %11594 = vst.msk [vmem:[#allocation4 + $0xf4] sm:$0xf] %vm1413_vm5, %v11519_v46 }
 0x7de   : > { %v11521_v36 = vpop.permute.xlu1 %11520  ;;  %v10815_v22 = vpop.permute.xlu0 %10814  ;;  %v16402_v55 = vld [vmem:[#allocation4 + $0x10c] ss:$12 sps:$4 sm:$0xff]  }
 0x7df   : > { %11595 = vst.msk [vmem:[#allocation4 + $0x100] sm:$0xf] %vm1413_vm5, %v11521_v36  ;;  %12722 = vmatprep.subr.bf16.mxu1 %v16402_v55 }
 0x7e0   : > { %10890 = vst.msk [vmem:[#allocation4 + $0xf0] sm:$0xf] %vm1670_vm7, %v10815_v22  ;;  %12723 = vmatpush2.bf16.xpose.msra.mxu1 %v16400_v50 }
 0x7e2   : > { %v10817_v9 = vpop.permute.xlu1 %10816  ;;  %v11775_v45 = vpop.permute.xlu0 %11774 }
 0x7e3   : > { %10891 = vst.msk [vmem:[#allocation4 + $0xfc] sm:$0xf] %vm1670_vm7, %v10817_v9  ;;  %11850 = vst.msk [vmem:[#allocation4 + $0xf4] sm:$0xf] %vm1670_vm7, %v11775_v45 }
 0x7e6   : > { %v11777_v59 = vpop.permute.xlu1 %11776  ;;  %v11071_v28 = vpop.permute.xlu0 %11070 }
 0x7e7   : > { %11851 = vst.msk [vmem:[#allocation4 + $0x100] sm:$0xf] %vm1670_vm7, %v11777_v59 }
 0x7e8   : > { %11146 = vst.msk [vmem:[#allocation4 + $0xf0] sm:$0xf] %vm1927_vm0, %v11071_v28 }
 0x7ea   : > { %v11073_v54 = vpop.permute.xlu1 %11072  ;;  %v12031_v57 = vpop.permute.xlu0 %12030 }
 0x7eb   : > { %11147 = vst.msk [vmem:[#allocation4 + $0xfc] sm:$0xf] %vm1927_vm0, %v11073_v54  ;;  %12106 = vst.msk [vmem:[#allocation4 + $0xf4] sm:$0xf] %vm1927_vm0, %v12031_v57 }
 0x7ee   : > { %v12033_v44 = vpop.permute.xlu1 %12032  ;;  %v10555_v35 = vpop.permute.xlu0 %10554 }
 0x7ef   : > { %12107 = vst.msk [vmem:[#allocation4 + $0x100] sm:$0xf] %vm1927_vm0, %v12033_v44 }
 0x7f0   : > { %10632 = vst.msk [vmem:[#allocation4 + $0xd8] sm:$0xf] %vm1413_vm5, %v10555_v35 }
 0x7f2   : > { %v10557_v19 = vpop.permute.xlu1 %10556  ;;  %v11515_v56 = vpop.permute.xlu0 %11514  ;;  %v16403_v43 = vld [vmem:[#allocation4 + $0xf0] ss:$12 sps:$4 sm:$0xff]  }
 0x7f3   : > { %10633 = vst.msk [vmem:[#allocation4 + $0xe4] sm:$0xf] %vm1413_vm5, %v10557_v19  ;;  %11592 = vst.msk [vmem:[#allocation4 + $0xdc] sm:$0xf] %vm1413_vm5, %v11515_v56 }
 0x7f6   : > { %v11517_v38 = vpop.permute.xlu1 %11516  ;;  %v10811_v63 = vpop.permute.xlu0 %10810  ;;  %v16405_v2 = vld [vmem:[#allocation4 + $0xf4] ss:$12 sps:$4 sm:$0xff]  }
 0x7f7   : > { %11593 = vst.msk [vmem:[#allocation4 + $0xe8] sm:$0xf] %vm1413_vm5, %v11517_v38  ;;  %12724 = vmatprep.subr.bf16.mxu1 %v16405_v2 }
 0x7f8   : > { %10888 = vst.msk [vmem:[#allocation4 + $0xd8] sm:$0xf] %vm1670_vm7, %v10811_v63  ;;  %12725 = vmatpush2.bf16.xpose.msra.mxu1 %v16403_v43 }
 0x7fa   : > { %v10813_v61 = vpop.permute.xlu1 %10812  ;;  %v11771_v6 = vpop.permute.xlu0 %11770 }
 0x7fb   : > { %10889 = vst.msk [vmem:[#allocation4 + $0xe4] sm:$0xf] %vm1670_vm7, %v10813_v61  ;;  %11848 = vst.msk [vmem:[#allocation4 + $0xdc] sm:$0xf] %vm1670_vm7, %v11771_v6 }
 0x7fe   : > { %v11773_v8 = vpop.permute.xlu1 %11772  ;;  %v11067_v33 = vpop.permute.xlu0 %11066 }
 0x7ff   : > { %11849 = vst.msk [vmem:[#allocation4 + $0xe8] sm:$0xf] %vm1670_vm7, %v11773_v8 }
 0x800   : > { %11144 = vst.msk [vmem:[#allocation4 + $0xd8] sm:$0xf] %vm1927_vm0, %v11067_v33 }
 0x802   : > { %v11069_v34 = vpop.permute.xlu1 %11068  ;;  %v12027_v17 = vpop.permute.xlu0 %12026 }
 0x803   : > { %11145 = vst.msk [vmem:[#allocation4 + $0xe4] sm:$0xf] %vm1927_vm0, %v11069_v34  ;;  %12104 = vst.msk [vmem:[#allocation4 + $0xdc] sm:$0xf] %vm1927_vm0, %v12027_v17 }
 0x806   : > { %v12029_v32 = vpop.permute.xlu1 %12028  ;;  %v10551_v14 = vpop.permute.xlu0 %10550 }
 0x807   : > { %12105 = vst.msk [vmem:[#allocation4 + $0xe8] sm:$0xf] %vm1927_vm0, %v12029_v32 }
 0x808   : > { %10630 = vst.msk [vmem:[#allocation4 + $0xc0] sm:$0xf] %vm1413_vm5, %v10551_v14 }
 0x80a   : > { %v10553_v5 = vpop.permute.xlu1 %10552  ;;  %v11511_v26 = vpop.permute.xlu0 %11510  ;;  %v16406_v41 = vld [vmem:[#allocation4 + $0xd8] ss:$12 sps:$4 sm:$0xff]  }
 0x80b   : > { %10631 = vst.msk [vmem:[#allocation4 + $0xcc] sm:$0xf] %vm1413_vm5, %v10553_v5  ;;  %11590 = vst.msk [vmem:[#allocation4 + $0xc4] sm:$0xf] %vm1413_vm5, %v11511_v26 }
 0x80e   : > { %v11513_v31 = vpop.permute.xlu1 %11512  ;;  %v10807_v51 = vpop.permute.xlu0 %10806  ;;  %v16408_v53 = vld [vmem:[#allocation4 + $0xdc] ss:$12 sps:$4 sm:$0xff]  }
 0x80f   : > { %11591 = vst.msk [vmem:[#allocation4 + $0xd0] sm:$0xf] %vm1413_vm5, %v11513_v31  ;;  %12726 = vmatprep.subr.bf16.mxu1 %v16408_v53 }
 0x810   : > { %10886 = vst.msk [vmem:[#allocation4 + $0xc0] sm:$0xf] %vm1670_vm7, %v10807_v51  ;;  %12727 = vmatpush2.bf16.xpose.msra.mxu1 %v16406_v41 }
 0x812   : > { %v10809_v18 = vpop.permute.xlu1 %10808  ;;  %v11767_v49 = vpop.permute.xlu0 %11766 }
 0x813   : > { %10887 = vst.msk [vmem:[#allocation4 + $0xcc] sm:$0xf] %vm1670_vm7, %v10809_v18  ;;  %11846 = vst.msk [vmem:[#allocation4 + $0xc4] sm:$0xf] %vm1670_vm7, %v11767_v49 }
 0x816   : > { %v11769_v27 = vpop.permute.xlu1 %11768  ;;  %v11063_v11 = vpop.permute.xlu0 %11062 }
 0x817   : > { %11847 = vst.msk [vmem:[#allocation4 + $0xd0] sm:$0xf] %vm1670_vm7, %v11769_v27 }
 0x818   : > { %11142 = vst.msk [vmem:[#allocation4 + $0xc0] sm:$0xf] %vm1927_vm0, %v11063_v11 }
 0x81a   : > { %v11065_v37 = vpop.permute.xlu1 %11064  ;;  %v12023_v48 = vpop.permute.xlu0 %12022 }
 0x81b   : > { %11143 = vst.msk [vmem:[#allocation4 + $0xcc] sm:$0xf] %vm1927_vm0, %v11065_v37  ;;  %12102 = vst.msk [vmem:[#allocation4 + $0xc4] sm:$0xf] %vm1927_vm0, %v12023_v48 }
 0x81e   : > { %v12025_v23 = vpop.permute.xlu1 %12024 }
 0x81f   : > { %12103 = vst.msk [vmem:[#allocation4 + $0xd0] sm:$0xf] %vm1927_vm0, %v12025_v23 }
 0x822   : > { %v16409_v4 = vld [vmem:[#allocation4 + $0xc0] ss:$12 sps:$4 sm:$0xff]  }
 0x826   : > { %v16411_v25 = vld [vmem:[#allocation4 + $0xc4] ss:$12 sps:$4 sm:$0xff]  }
 0x827   : > { %12728 = vmatprep.subr.bf16.mxu1 %v16411_v25 }
 0x828   : > { %12729 = vmatpush2.bf16.xpose.msra.mxu1 %v16409_v4  ;;  %v12379_v58 = vpop.permute.xlu0 %12378 }
 0x82f   : > { %12731 = vmatmul.mubr.bf16.vlgmr.msra.gmra.mxu1 %v20686_v24 }
 0x86b   : > { %v12773_v39 = vpop.f32.mrf.mxu0 }
 0x86d   : > { %v12775_v15 = vpop.f32.mrf.mxu0 }
 0x86f   : > { %v12777_v30 = vpop.f32.mrf.mxu0 }
 0x871   : > { %v12778_v10 = vpop.f32.mrf.mxu0 }
 0x8ef   : > { %v12732_v7 = vpop.f32.mrf.mxu1 }
 0x8f0   : > { %v12733_v52 = vadd.f32 %v12732_v7, %v12379_v58 }
 0x8f1   : > { %v12734_v42 = vpop.f32.mrf.mxu1 }
 0x8f2   : > { %v12774_v21 = vadd.f32 %v12773_v39, %v12733_v52  ;;  %v12735_v40 = vadd.f32 %v12734_v42, %v12379_v58 }
 0x8f3   : > { %v12736_v24 = vpop.f32.mrf.mxu1 }
 0x8f4   : > { %v12792_v3 = vadd.f32 %v14393_v1, %v12774_v21  ;;  %v12776_v16 = vadd.f32 %v12775_v15, %v12735_v40 }
 0x8f5   : > { %v12737_v0 = vpop.f32.mrf.mxu1 }
 0x8f6   : > { %v12796_v13 = vmul.f32 0.01, %v12792_v3  ;;  %v12793_v12 = vadd.f32 %v12789_v29, %v12776_v16  ;;  %vm12794_vm2 = vcmp.ge.f32.partialorder %v12792_v3, 0.0 }
 0x8f8   : > { %v12797_v47 = vmul.f32 0.01, %v12793_v12  ;;  %vm12795_vm5 = vcmp.ge.f32.partialorder %v12793_v12, 0.0  ;;  %v12798_v62 = vsel %vm12794_vm2, %v12792_v3, %v12796_v13 }
 0x8fa   : > { %v12799_v20 = vsel %vm12795_vm5, %v12793_v12, %v12797_v47 }
 0x8fb   : > { %v12802_v60 = vcombine.low %v12798_v62, %v12799_v20 }
 0x8fd   : > { %14394 = vst.sshfl [vmem:[%s421_s15] sm:$0x33 pattern:$0x76325410] %v12802_v60 }
 0x8fe   : > { %16432 = shalt.err (!%p16429_p3)
}
 0x8ff   : > { %s16433_s26 = scalar_lea.hbm %s12825_s18, 64  ;;  %s16437_s15 = scalar_lea.hbm %s20807_s12, 128 }
 0x900   : > { %p16434_p4 = scmp.ne.s32.totalorder %s12825_s18, %s16433_s26  ;;  %p16438_p9 = scmp.lt.s32.totalorder %s12825_s18, %s20807_s12 }
 0x901   : > { %p16439_p10 = scmp.lt.s32.totalorder %s16437_s15, %s16433_s26 }
 0x902   : > { %p16435_p7 = pnand %p16434_p4, %p16591_p5 }
 0x903   : > { %p16440_p11 = por %p16439_p10, %p16438_p9 }
 0x904   : > { %p16436_p8 = pneg %p16435_p7 }
 0x906   : > { %p16441_p12 = pnand %p16440_p11, %p16436_p8 }
 0x908   : > { %16444 = shalt.err (!%p16441_p12)
}
 0x909   : > { %16150 = dma.vmem_to_hbm [thread:$0]  (%p16591_p5), %s12828_s17, 64, %s12825_s18, %s12813_s20  }
 0x90a PF: > { %p16156_p13 = scmp.ge.s32.totalorder %s16479_s24, 2  ;;  %s12839_s0 = sand.u32 1, %s16467_s21  }
 0x90b   : > { %s12840_s1 = scalar_lea.sflag [#allocation6], %s12839_s0 }
 0x90c   : > { %p16153_p0 = pnand %p16156_p13, %p16595_p6 }
 0x90e   : > { %p16154_p1 = pneg %p16153_p0 }
 0x910   : > { %16462 = dma.done.wait (%p16154_p1), %s12840_s1, 64  }
 0x911   : > { %16464 = vsyncadd (%p16154_p1), %s12840_s1, 4294967232  ;;  %p22_p2 = scmp.ge.s32.totalorder %s16578_s27, 4   ;;  %s20822_s21 = smov %s16471_s22 }
 0x912   : > { %s20823_s22 = smov %s16475_s23  ;;  %s20824_s23 = smov %s16589_s30 }
 0x913   : > { %s20825_s24 = smov %s16578_s27  ;;  %24 = sbr.rel (!%p22_p2) target bundleno = 7 (0x7), region = 112 }
 0x918   :  { %12845 = vsyncpa [#allocation6], 1 }
 0x919   :  { %12847 = vsyncpa [#allocation6 + $0x1], 1 }

</bundles_post_ra>
